<compile_context>
chip_gen: v7x
topology: tpu7x:2x2x1
jax: 0.10.0
libtpu: 0.0.40
codegen_flags: <defaults>
</compile_context>

<pallas_src>
import jax
import jax.numpy as jnp
from jax.experimental import pallas as pl
from jax.experimental.pallas import tpu as pltpu


def _round_up(x, m):
    return ((x + m - 1) // m) * m


def _make_crn_kernel(H, W, Cmid, last_layer, margin):
    Hp, Wp = H + 2, W + 2
    HpWp = Hp * Wp
    M = HpWp + 2 * margin
    inv_n = 1.0 / float(H * W)
    eps = 1e-5
    slope = 0.2
    # Static tap offsets into the (margin | padded image | margin) slab.
    taps = [margin + (dy - 1) * Wp + (dx - 1)
            for dy in range(3) for dx in range(3)]

    def conv3x3(x_ext, w):
        # x_ext: (M, C).  im2col: concat the 9 shifted slices along the
        # channel axis -> (HpWp, 9*C); single MXU matmul, K = 9*C.
        cols = jnp.concatenate([x_ext[s:s + HpWp, :] for s in taps], axis=-1)
        return jnp.dot(cols, w, preferred_element_type=jnp.float32)

    def inst_norm_lrelu(acc, mask):
        # Affine-free InstanceNorm (biased var, eps=1e-5) over valid pixels
        # only, single-pass moments, then LeakyReLU(0.2); re-zero the padding
        # ring so it feeds exact zeros into the next conv.
        am = acc * mask
        s1 = jnp.sum(am, axis=0, keepdims=True)
        s2 = jnp.sum(am * acc, axis=0, keepdims=True)
        mean = s1 * inv_n
        var = jnp.maximum(s2 * inv_n - mean * mean, 0.0)
        y = (acc - mean) * jax.lax.rsqrt(var + eps)
        y = jnp.maximum(y, slope * y)          # LeakyReLU(0.2)
        return y * mask

    def kernel(x_ref, mask_ref, w1_ref, w2_ref, b2_ref, o_ref, y1ext_ref):
        x_ext = x_ref[0]            # (M, Cin)
        mask = mask_ref[...]        # (HpWp, 1)

        # ---- ConvBlock 1: 3x3 conv + InstanceNorm + LeakyReLU ----
        # b1 is skipped: a per-channel constant cancels exactly under the
        # affine-free instance norm that follows.
        acc1 = conv3x3(x_ext, w1_ref[...])
        y1 = inst_norm_lrelu(acc1, mask)

        if last_layer:
            # ---- ConvBlock 2 (last_layer=True): 1x1 conv + bias only ----
            acc2 = jnp.dot(y1, w2_ref[...],
                           preferred_element_type=jnp.float32) + b2_ref[...]
            o_ref[0] = acc2.astype(o_ref.dtype)
        else:
            # Re-embed y1 with zero margins so conv2 taps stay contiguous.
            # Only the two margin strips need zeroing each step; the interior
            # HpWp rows are fully overwritten.  (b2 skipped: cancels under IN.)
            y1ext_ref[0:margin, :] = jnp.zeros((margin, Cmid), jnp.float32)
            y1ext_ref[margin + HpWp:M, :] = jnp.zeros((margin, Cmid),
                                                      jnp.float32)
            y1ext_ref[margin:margin + HpWp, :] = y1
            acc2 = conv3x3(y1ext_ref[...], w2_ref[...])
            o_ref[0] = inst_norm_lrelu(acc2, mask).astype(o_ref.dtype)

    return kernel


def crn_block_forward(x_nchw, params, last_layer=False):
    """CRNBlock forward.  x_nchw: (N, Cin, H, W) float32 -> (N, Cout, H, W)."""
    w1, b1, w2, b2 = params
    del b1  # cancels under the affine-free instance norm after conv1
    N, Cin, H, W = x_nchw.shape
    Cmid, Cout = w1.shape[0], w2.shape[0]
    Hp, Wp = H + 2, W + 2
    HpWp = Hp * Wp
    margin = _round_up(Wp + 1, 8)        # sublane-aligned zero margin
    M = HpWp + 2 * margin

    # ---- glue (plain JAX): channels-last flattening & parameter packing ----
    x_nhwc = jnp.transpose(x_nchw, (0, 2, 3, 1)).astype(jnp.float32)
    x_pad = jnp.pad(x_nhwc, ((0, 0), (1, 1), (1, 1), (0, 0)))
    x_ext = jnp.pad(x_pad.reshape(N, HpWp, Cin),
                    ((0, 0), (margin, margin), (0, 0)))
    mask = jnp.pad(jnp.ones((H, W), jnp.float32),
                   ((1, 1), (1, 1))).reshape(HpWp, 1)

    def pack_w3(w):  # (O, I, 3, 3) -> (9*I, O), matching im2col tap order
        return jnp.transpose(w, (2, 3, 1, 0)).reshape(
            9 * w.shape[1], w.shape[0]).astype(jnp.float32)

    w1p = pack_w3(w1)
    if last_layer:   # 1x1 conv: (O, I, 1, 1) -> (I, O)
        w2p = jnp.transpose(w2.reshape(Cout, Cmid), (1, 0)).astype(jnp.float32)
    else:
        w2p = pack_w3(w2)
    b2p = b2.reshape(1, Cout).astype(jnp.float32)
    K2 = w2p.shape[0]

    kernel = _make_crn_kernel(H, W, Cmid, last_layer, margin)

    out_flat = pl.pallas_call(
        kernel,
        out_shape=jax.ShapeDtypeStruct((N, HpWp, Cout), jnp.float32),
        grid_spec=pltpu.PrefetchScalarGridSpec(
            num_scalar_prefetch=0,
            grid=(N,),
            in_specs=[
                pl.BlockSpec((1, M, Cin), lambda n: (n, 0, 0)),
                pl.BlockSpec((HpWp, 1), lambda n: (0, 0)),
                pl.BlockSpec((9 * Cin, Cmid), lambda n: (0, 0)),
                pl.BlockSpec((K2, Cout), lambda n: (0, 0)),
                pl.BlockSpec((1, Cout), lambda n: (0, 0)),
            ],
            out_specs=pl.BlockSpec((1, HpWp, Cout), lambda n: (n, 0, 0)),
            scratch_shapes=[pltpu.VMEM((M, Cmid), jnp.float32)],
        ),
        compiler_params=pltpu.CompilerParams(
            dimension_semantics=("parallel",),
            vmem_limit_bytes=64 * 1024 * 1024),
    )(x_ext, mask, w1p, w2p, b2p)

    # ---- glue: drop padding ring, back to NCHW ----
    out = out_flat.reshape(N, Hp, Wp, Cout)[:, 1:-1, 1:-1, :]
    return jnp.transpose(out, (0, 3, 1, 2))


# ---------------- pure-JAX reference (for the correctness check) ------------
def _ref_conv_block(x, w, b, last):
    k = w.shape[2]
    pad = ((1, 1), (1, 1)) if k == 3 else ((0, 0), (0, 0))
    y = jax.lax.conv_general_dilated(
        x, w, window_strides=(1, 1), padding=pad,
        dimension_numbers=('NCHW', 'OIHW', 'NCHW'),
        precision=jax.lax.Precision.HIGHEST)
    y = y + b[None, :, None, None]
    if not last:
        m = jnp.mean(y, axis=(2, 3), keepdims=True)
        v = jnp.mean((y - m) ** 2, axis=(2, 3), keepdims=True)
        y = (y - m) * jax.lax.rsqrt(v + 1e-5)
        y = jnp.where(y >= 0.0, y, 0.2 * y)
    return y


def _ref_crn_block(x, params, last_layer=False):
    w1, b1, w2, b2 = params
    return _ref_conv_block(_ref_conv_block(x, w1, b1, False), w2, b2,
                           last_layer)


if __name__ == "__main__":
    N, Cin, Cmid, Cout, H, W = 2, 4, 8, 8, 16, 16
    ks = jax.random.split(jax.random.PRNGKey(0), 7)
    w1 = 0.1 * jax.random.normal(ks[0], (Cmid, Cin, 3, 3), jnp.float32)
    b1 = 0.1 * jax.random.normal(ks[1], (Cmid,), jnp.float32)
    w2 = 0.1 * jax.random.normal(ks[2], (Cout, Cmid, 3, 3), jnp.float32)
    b2 = 0.1 * jax.random.normal(ks[3], (Cout,), jnp.float32)
    x = jax.random.normal(ks[4], (N, Cin, H, W), jnp.float32)
    params = (w1, b1, w2, b2)

    # middle-layer CRNBlock (conv3x3 -> IN -> LReLU, twice)
    out = jax.block_until_ready(crn_block_forward(x, params, last_layer=False))
    ref = jax.block_until_ready(_ref_crn_block(x, params, last_layer=False))
    assert out.shape == (N, Cout, H, W), out.shape
    err = float(jnp.max(jnp.abs(out - ref)))
    if err > 5e-2:
        raise AssertionError(f"mismatch (middle block): max abs err = {err}")

    # last-layer CRNBlock (second ConvBlock is a plain 1x1 conv + bias)
    C_img = 3
    w2l = 0.1 * jax.random.normal(ks[5], (C_img, Cmid, 1, 1), jnp.float32)
    b2l = 0.1 * jax.random.normal(ks[6], (C_img,), jnp.float32)
    params_l = (w1, b1, w2l, b2l)
    out_l = jax.block_until_ready(
        crn_block_forward(x, params_l, last_layer=True))
    ref_l = jax.block_until_ready(_ref_crn_block(x, params_l, last_layer=True))
    assert out_l.shape == (N, C_img, H, W), out_l.shape
    err_l = float(jnp.max(jnp.abs(out_l - ref_l)))
    if err_l > 5e-2:
        raise AssertionError(f"mismatch (last block): max abs err = {err_l}")

    print("KERNEL_OK")
</pallas_src>

<mosaic_0001>
module attributes {stable_mosaic.version = 11 : i64} {
  func.func @kernel(%arg0: i32, %arg1: memref<1x372x4xf32, #tpu.memory_space<vmem>>, %arg2: memref<324x1xf32, #tpu.memory_space<vmem>>, %arg3: memref<36x8xf32, #tpu.memory_space<vmem>>, %arg4: memref<72x8xf32, #tpu.memory_space<vmem>>, %arg5: memref<1x8xf32, #tpu.memory_space<vmem>>, %arg6: memref<1x324x8xf32, #tpu.memory_space<vmem>>, %arg7: memref<372x8xf32, #tpu.memory_space<vmem>>) attributes {dimension_semantics = [#tpu.dimension_semantics<parallel>], iteration_bounds = array<i64: 2>, scalar_prefetch = 0 : i64, scratch_operands = 1 : i64, tpu.core_type = #tpu.core_type<tc>, window_params = [{transform_indices = @transform_0, window_bounds = array<i64: 1, 372, 4>}, {pipeline_mode = #tpu.pipeline_mode<synchronous>, transform_indices = @transform_1, window_bounds = array<i64: 324, 1>}, {pipeline_mode = #tpu.pipeline_mode<synchronous>, transform_indices = @transform_2, window_bounds = array<i64: 36, 8>}, {pipeline_mode = #tpu.pipeline_mode<synchronous>, transform_indices = @transform_3, window_bounds = array<i64: 72, 8>}, {pipeline_mode = #tpu.pipeline_mode<synchronous>, transform_indices = @transform_4, window_bounds = array<i64: 1, 8>}, {transform_indices = @transform_5, window_bounds = array<i64: 1, 324, 8>}]} {
    %c0 = arith.constant 0 : index
    %c0_0 = arith.constant 0 : index
    %c0_1 = arith.constant 0 : index
    %0 = vector.load %arg1[%c0, %c0_0, %c0_1] : memref<1x372x4xf32, #tpu.memory_space<vmem>>, vector<1x372x4xf32>
    %1 = vector.shape_cast %0 : vector<1x372x4xf32> to vector<372x4xf32>
    %c0_2 = arith.constant 0 : index
    %c0_3 = arith.constant 0 : index
    %2 = vector.load %arg2[%c0_2, %c0_3] : memref<324x1xf32, #tpu.memory_space<vmem>>, vector<324x1xf32>
    %c0_4 = arith.constant 0 : index
    %c0_5 = arith.constant 0 : index
    %3 = vector.load %arg3[%c0_4, %c0_5] : memref<36x8xf32, #tpu.memory_space<vmem>>, vector<36x8xf32>
    %4 = vector.extract_strided_slice %1 {offsets = [5, 0], sizes = [324, 4], strides = [1, 1]} : vector<372x4xf32> to vector<324x4xf32>
    %5 = vector.extract_strided_slice %1 {offsets = [6, 0], sizes = [324, 4], strides = [1, 1]} : vector<372x4xf32> to vector<324x4xf32>
    %6 = vector.extract_strided_slice %1 {offsets = [7, 0], sizes = [324, 4], strides = [1, 1]} : vector<372x4xf32> to vector<324x4xf32>
    %7 = vector.extract_strided_slice %1 {offsets = [23, 0], sizes = [324, 4], strides = [1, 1]} : vector<372x4xf32> to vector<324x4xf32>
    %8 = vector.extract_strided_slice %1 {offsets = [24, 0], sizes = [324, 4], strides = [1, 1]} : vector<372x4xf32> to vector<324x4xf32>
    %9 = vector.extract_strided_slice %1 {offsets = [25, 0], sizes = [324, 4], strides = [1, 1]} : vector<372x4xf32> to vector<324x4xf32>
    %10 = vector.extract_strided_slice %1 {offsets = [41, 0], sizes = [324, 4], strides = [1, 1]} : vector<372x4xf32> to vector<324x4xf32>
    %11 = vector.extract_strided_slice %1 {offsets = [42, 0], sizes = [324, 4], strides = [1, 1]} : vector<372x4xf32> to vector<324x4xf32>
    %12 = vector.extract_strided_slice %1 {offsets = [43, 0], sizes = [324, 4], strides = [1, 1]} : vector<372x4xf32> to vector<324x4xf32>
    %13 = tpu.concatenate %4, %5, %6, %7, %8, %9, %10, %11, %12 in 1 : vector<324x4xf32>, vector<324x4xf32>, vector<324x4xf32>, vector<324x4xf32>, vector<324x4xf32>, vector<324x4xf32>, vector<324x4xf32>, vector<324x4xf32>, vector<324x4xf32> -> vector<324x36xf32>
    %cst = arith.constant dense<0.000000e+00> : vector<324x8xf32>
    %14 = tpu.matmul %13, %3, %cst {dimension_numbers = #tpu.dot_dimension_numbers<[1], [0], [0], [1], [0, 0, 1, 1], [], []>} : vector<324x36xf32>, vector<36x8xf32>, vector<324x8xf32> -> vector<324x8xf32>
    %15 = vector.broadcast %2 : vector<324x1xf32> to vector<324x8xf32>
    %16 = arith.mulf %14, %15 : vector<324x8xf32>
    %cst_6 = arith.constant dense<0.000000e+00> : vector<8xf32>
    %17 = vector.multi_reduction <add>, %16, %cst_6 [0] : vector<324x8xf32> to vector<8xf32>
    %18 = vector.shape_cast %17 : vector<8xf32> to vector<1x8xf32>
    %19 = arith.mulf %16, %14 : vector<324x8xf32>
    %cst_7 = arith.constant dense<0.000000e+00> : vector<8xf32>
    %20 = vector.multi_reduction <add>, %19, %cst_7 [0] : vector<324x8xf32> to vector<8xf32>
    %21 = vector.shape_cast %20 : vector<8xf32> to vector<1x8xf32>
    %cst_8 = arith.constant 3.906250e-03 : f32
    %22 = vector.broadcast %cst_8 : f32 to vector<1x8xf32>
    %23 = arith.mulf %18, %22 : vector<1x8xf32>
    %cst_9 = arith.constant 3.906250e-03 : f32
    %24 = vector.broadcast %cst_9 : f32 to vector<1x8xf32>
    %25 = arith.mulf %21, %24 : vector<1x8xf32>
    %26 = arith.mulf %23, %23 : vector<1x8xf32>
    %27 = arith.subf %25, %26 : vector<1x8xf32>
    %cst_10 = arith.constant 0.000000e+00 : f32
    %28 = vector.broadcast %cst_10 : f32 to vector<1x8xf32>
    %29 = arith.maximumf %27, %28 : vector<1x8xf32>
    %30 = vector.broadcast %23 : vector<1x8xf32> to vector<324x8xf32>
    %31 = arith.subf %14, %30 : vector<324x8xf32>
    %cst_11 = arith.constant 9.99999974E-6 : f32
    %32 = vector.broadcast %cst_11 : f32 to vector<1x8xf32>
    %33 = arith.addf %29, %32 : vector<1x8xf32>
    %34 = math.rsqrt %33 : vector<1x8xf32>
    %35 = vector.broadcast %34 : vector<1x8xf32> to vector<324x8xf32>
    %36 = arith.mulf %31, %35 : vector<324x8xf32>
    %cst_12 = arith.constant 2.000000e-01 : f32
    %37 = vector.broadcast %cst_12 : f32 to vector<324x8xf32>
    %38 = arith.mulf %37, %36 : vector<324x8xf32>
    %39 = arith.maximumf %36, %38 : vector<324x8xf32>
    %40 = vector.broadcast %2 : vector<324x1xf32> to vector<324x8xf32>
    %41 = arith.mulf %39, %40 : vector<324x8xf32>
    %cst_13 = arith.constant 0.000000e+00 : f32
    %42 = vector.broadcast %cst_13 : f32 to vector<24x8xf32>
    %c0_14 = arith.constant 0 : index
    %c0_15 = arith.constant 0 : index
    %43 = vector.load %arg7[%c0_14, %c0_15] : memref<372x8xf32, #tpu.memory_space<vmem>>, vector<24x8xf32>
    tpu.vector_store %arg7[%c0_14, %c0_15], %42 {strides = array<i32>} : memref<372x8xf32, #tpu.memory_space<vmem>>, vector<24x8xf32>,
    %cst_16 = arith.constant 0.000000e+00 : f32
    %44 = vector.broadcast %cst_16 : f32 to vector<24x8xf32>
    %c348 = arith.constant 348 : index
    %c0_17 = arith.constant 0 : index
    %45 = vector.load %arg7[%c348, %c0_17] : memref<372x8xf32, #tpu.memory_space<vmem>>, vector<24x8xf32>
    tpu.vector_store %arg7[%c348, %c0_17], %44 {strides = array<i32>} : memref<372x8xf32, #tpu.memory_space<vmem>>, vector<24x8xf32>,
    %c24 = arith.constant 24 : index
    %c0_18 = arith.constant 0 : index
    %46 = vector.load %arg7[%c24, %c0_18] : memref<372x8xf32, #tpu.memory_space<vmem>>, vector<324x8xf32>
    tpu.vector_store %arg7[%c24, %c0_18], %41 {strides = array<i32>} : memref<372x8xf32, #tpu.memory_space<vmem>>, vector<324x8xf32>,
    %c0_19 = arith.constant 0 : index
    %c0_20 = arith.constant 0 : index
    %47 = vector.load %arg7[%c0_19, %c0_20] : memref<372x8xf32, #tpu.memory_space<vmem>>, vector<372x8xf32>
    %c0_21 = arith.constant 0 : index
    %c0_22 = arith.constant 0 : index
    %48 = vector.load %arg4[%c0_21, %c0_22] : memref<72x8xf32, #tpu.memory_space<vmem>>, vector<72x8xf32>
    %49 = vector.extract_strided_slice %47 {offsets = [5, 0], sizes = [324, 8], strides = [1, 1]} : vector<372x8xf32> to vector<324x8xf32>
    %50 = vector.extract_strided_slice %47 {offsets = [6, 0], sizes = [324, 8], strides = [1, 1]} : vector<372x8xf32> to vector<324x8xf32>
    %51 = vector.extract_strided_slice %47 {offsets = [7, 0], sizes = [324, 8], strides = [1, 1]} : vector<372x8xf32> to vector<324x8xf32>
    %52 = vector.extract_strided_slice %47 {offsets = [23, 0], sizes = [324, 8], strides = [1, 1]} : vector<372x8xf32> to vector<324x8xf32>
    %53 = vector.extract_strided_slice %47 {offsets = [24, 0], sizes = [324, 8], strides = [1, 1]} : vector<372x8xf32> to vector<324x8xf32>
    %54 = vector.extract_strided_slice %47 {offsets = [25, 0], sizes = [324, 8], strides = [1, 1]} : vector<372x8xf32> to vector<324x8xf32>
    %55 = vector.extract_strided_slice %47 {offsets = [41, 0], sizes = [324, 8], strides = [1, 1]} : vector<372x8xf32> to vector<324x8xf32>
    %56 = vector.extract_strided_slice %47 {offsets = [42, 0], sizes = [324, 8], strides = [1, 1]} : vector<372x8xf32> to vector<324x8xf32>
    %57 = vector.extract_strided_slice %47 {offsets = [43, 0], sizes = [324, 8], strides = [1, 1]} : vector<372x8xf32> to vector<324x8xf32>
    %58 = tpu.concatenate %49, %50, %51, %52, %53, %54, %55, %56, %57 in 1 : vector<324x8xf32>, vector<324x8xf32>, vector<324x8xf32>, vector<324x8xf32>, vector<324x8xf32>, vector<324x8xf32>, vector<324x8xf32>, vector<324x8xf32>, vector<324x8xf32> -> vector<324x72xf32>
    %cst_23 = arith.constant dense<0.000000e+00> : vector<324x8xf32>
    %59 = tpu.matmul %58, %48, %cst_23 {dimension_numbers = #tpu.dot_dimension_numbers<[1], [0], [0], [1], [0, 0, 1, 1], [], []>} : vector<324x72xf32>, vector<72x8xf32>, vector<324x8xf32> -> vector<324x8xf32>
    %60 = vector.broadcast %2 : vector<324x1xf32> to vector<324x8xf32>
    %61 = arith.mulf %59, %60 : vector<324x8xf32>
    %cst_24 = arith.constant dense<0.000000e+00> : vector<8xf32>
    %62 = vector.multi_reduction <add>, %61, %cst_24 [0] : vector<324x8xf32> to vector<8xf32>
    %63 = vector.shape_cast %62 : vector<8xf32> to vector<1x8xf32>
    %64 = arith.mulf %61, %59 : vector<324x8xf32>
    %cst_25 = arith.constant dense<0.000000e+00> : vector<8xf32>
    %65 = vector.multi_reduction <add>, %64, %cst_25 [0] : vector<324x8xf32> to vector<8xf32>
    %66 = vector.shape_cast %65 : vector<8xf32> to vector<1x8xf32>
    %cst_26 = arith.constant 3.906250e-03 : f32
    %67 = vector.broadcast %cst_26 : f32 to vector<1x8xf32>
    %68 = arith.mulf %63, %67 : vector<1x8xf32>
    %cst_27 = arith.constant 3.906250e-03 : f32
    %69 = vector.broadcast %cst_27 : f32 to vector<1x8xf32>
    %70 = arith.mulf %66, %69 : vector<1x8xf32>
    %71 = arith.mulf %68, %68 : vector<1x8xf32>
    %72 = arith.subf %70, %71 : vector<1x8xf32>
    %cst_28 = arith.constant 0.000000e+00 : f32
    %73 = vector.broadcast %cst_28 : f32 to vector<1x8xf32>
    %74 = arith.maximumf %72, %73 : vector<1x8xf32>
    %75 = vector.broadcast %68 : vector<1x8xf32> to vector<324x8xf32>
    %76 = arith.subf %59, %75 : vector<324x8xf32>
    %cst_29 = arith.constant 9.99999974E-6 : f32
    %77 = vector.broadcast %cst_29 : f32 to vector<1x8xf32>
    %78 = arith.addf %74, %77 : vector<1x8xf32>
    %79 = math.rsqrt %78 : vector<1x8xf32>
    %80 = vector.broadcast %79 : vector<1x8xf32> to vector<324x8xf32>
    %81 = arith.mulf %76, %80 : vector<324x8xf32>
    %cst_30 = arith.constant 2.000000e-01 : f32
    %82 = vector.broadcast %cst_30 : f32 to vector<324x8xf32>
    %83 = arith.mulf %82, %81 : vector<324x8xf32>
    %84 = arith.maximumf %81, %83 : vector<324x8xf32>
    %85 = vector.broadcast %2 : vector<324x1xf32> to vector<324x8xf32>
    %86 = arith.mulf %84, %85 : vector<324x8xf32>
    %c0_31 = arith.constant 0 : index
    %c0_32 = arith.constant 0 : index
    %c0_33 = arith.constant 0 : index
    %87 = vector.load %arg6[%c0_31, %c0_32, %c0_33] : memref<1x324x8xf32, #tpu.memory_space<vmem>>, vector<1x324x8xf32>
    %88 = vector.shape_cast %87 : vector<1x324x8xf32> to vector<324x8xf32>
    %89 = vector.shape_cast %86 : vector<324x8xf32> to vector<1x324x8xf32>
    tpu.vector_store %arg6[%c0_31, %c0_32, %c0_33], %89 {strides = array<i32>} : memref<1x324x8xf32, #tpu.memory_space<vmem>>, vector<1x324x8xf32>,
    return
  }
  func.func @transform_0(%arg0: i32) -> (i32, i32, i32) {
    %c0_i32 = arith.constant 0 : i32
    %c0_i32_0 = arith.constant 0 : i32
    %c0_i32_1 = arith.constant 0 : i32
    return %arg0, %c0_i32, %c0_i32_0 : i32, i32, i32
  }
  func.func @transform_1(%arg0: i32) -> (i32, i32) {
    %c0_i32 = arith.constant 0 : i32
    %c0_i32_0 = arith.constant 0 : i32
    %c0_i32_1 = arith.constant 0 : i32
    return %c0_i32, %c0_i32_0 : i32, i32
  }
  func.func @transform_2(%arg0: i32) -> (i32, i32) {
    %c0_i32 = arith.constant 0 : i32
    %c0_i32_0 = arith.constant 0 : i32
    %c0_i32_1 = arith.constant 0 : i32
    return %c0_i32, %c0_i32_0 : i32, i32
  }
  func.func @transform_3(%arg0: i32) -> (i32, i32) {
    %c0_i32 = arith.constant 0 : i32
    %c0_i32_0 = arith.constant 0 : i32
    %c0_i32_1 = arith.constant 0 : i32
    return %c0_i32, %c0_i32_0 : i32, i32
  }
  func.func @transform_4(%arg0: i32) -> (i32, i32) {
    %c0_i32 = arith.constant 0 : i32
    %c0_i32_0 = arith.constant 0 : i32
    %c0_i32_1 = arith.constant 0 : i32
    return %c0_i32, %c0_i32_0 : i32, i32
  }
  func.func @transform_5(%arg0: i32) -> (i32, i32, i32) {
    %c0_i32 = arith.constant 0 : i32
    %c0_i32_0 = arith.constant 0 : i32
    %c0_i32_1 = arith.constant 0 : i32
    return %arg0, %c0_i32, %c0_i32_0 : i32, i32, i32
  }
}

</mosaic_0001>

<bundles_post_ra>
// kernel: tpu_custom_call.1
= control target key start
LH: loop header
LB: loop body
LE: loop exit
PB: predicated region body
PF: predicated region fallthrough
CT: control target
= control target key end

     0   :  { %10 = vsyncpa [#allocation4], 0  ;;  %s14507_s0 = inlined_call_operand.hbm [shape: f32[2,372,4], index: 0, kind: input, shape index: {}]   ;;  %s14508_s1 = inlined_call_operand.hbm [shape: f32[324,1], index: 1, kind: input, shape index: {}]   ;;  %s14509_s2 = inlined_call_operand.hbm [shape: f32[36,8], index: 2, kind: input, shape index: {}]   ;;  %s14510_s3 = inlined_call_operand.hbm [shape: f32[72,8], index: 3, kind: input, shape index: {}]   ;;  %s14511_s4 = inlined_call_operand.hbm [shape: f32[1,8], index: 4, kind: input, shape index: {}]   ;;  %s14512_s5 = inlined_call_operand.hbm [shape: f32[2,324,8], index: 5, kind: output, shape index: {}]  }
   0x1   :  { %12 = vsyncpa [#allocation4 + $0x1], 0 }
   0x2   :  { %13 = vsyncpa [#allocation7], 0 }
   0x3   :  { %14 = vsyncpa [#allocation10], 0 }
   0x4   :  { %15 = vsyncpa [#allocation5], 0 }
   0x5   :  { %17 = vsyncpa [#allocation5 + $0x1], 0  ;;  %s7567_s18 = smov 0   ;;  %s7569_s19 = smov 0  }
   0x6   :  { %s7571_s20 = smov 0   ;;  %s7573_s21 = smov 0  }
   0x7 LB: > { %s7588_s22 = sadd.s32 4294967295, %s7510_s21   ;;  %s6554_s23 = sadd.s32 4294967294, %s7510_s21   ;;  %s7510_s21 = sphi %s7573_s21, %s15750_s21   ;;  %s7506_s20 = sphi %s7571_s20, %s15749_s20   ;;  %s7502_s19 = sphi %s7569_s19, %s15748_s19   ;;  %s7498_s18 = sphi %s7567_s18, %s15747_s18  }
   0x8   : > { %p43_p0 = scmp.ne.s32.totalorder %s7502_s19, %s7498_s18  ;;  %p14513_p1 = scmp.eq.s32.totalorder %s7588_s22, 0 }
   0x9   : > { %p157_p3 = scmp.eq.s32.totalorder %s6554_s23, 1  ;;  %p6555_p5 = scmp.ge.s32.totalorder %s7510_s21, 1 }
   0xa   : > { %p7597_p4 = por %p14513_p1, %p43_p0  ;;  %p164_p7 = scmp.lt.s32.totalorder %s7510_s21, 3 }
   0xb   : > { %p7602_p6 = por %p157_p3, %p43_p0  ;;  %s7512_s27 = smov [#allocation6]  }
   0xc   : > { %s14741_s24 = scalar_select %p7597_p4, 1, 0 }
   0xd   : > { %s14742_s25 = scalar_select %p7602_p6, 1, 0 }
   0xe   : > { %p7607_p8 = pnand %p6555_p5, %p164_p7  ;;  %s176_s28 = sshll.u32 %s7512_s27, 4  ;;  %s7611_s28 = int_to_ptr.vmem [resolvable:$true] %s176_s28 }
   0xf   : > { %s7513_s30 = smov [#allocation9]   ;;  %s7514_s7 = smov [#allocation8]  }
  0x10   : > { %s14743_s26 = scalar_select %p7607_p8, 1, 0 }
  0x11   : > { %p7076_p9 = pneg %p7607_p8  ;;  %s202_s6 = sshll.u32 %s7513_s30, 4  ;;  %s7622_s6 = int_to_ptr.vmem [resolvable:$true] %s202_s6 }
  0x12   : > { %s7624_s8 = sshll.u32 %s7514_s7, 4  ;;  %s7294_s11 = scalar_lea.hbm %s14508_s1, 5248  ;;  %s190_s8 = int_to_ptr.vmem [resolvable:$true] %s7624_s8 }
  0x13   : > { %p7618_p11 = pnand %p7076_p9, %p14513_p1  ;;  %p7295_p12 = scmp.ne.s32.totalorder %s14508_s1, %s7294_s11 }
  0x14   : > { %p7301_p5 = scmp.lt.u32.totalorder %s7294_s11, %s14508_s1 }
  0x15   : > { %p7634_p13 = pneg %p7618_p11 }
  0x17   : > { %p7297_p0 = pnand %p7634_p13, %p7295_p12 }
  0x19   : > { %p7298_p3 = pneg %p7297_p0 }
  0x1b   : > { %p7303_p7 = pnand %p7301_p5, %p7298_p3 }
  0x1d   : > { %7306 = shalt.err (!%p7303_p7)
}
  0x1e   : > { %s7307_s17 = scalar_lea.vmem %s7611_s28, 5248  ;;  %p7315_p2 = scmp.lt.s32.totalorder %s7611_s28, %s7611_s28 }
  0x1f   : > { %p7308_p9 = scmp.ne.s32.totalorder %s7611_s28, %s7307_s17  ;;  %p7316_p6 = scmp.lt.s32.totalorder %s7307_s17, %s7307_s17 }
  0x21   : > { %p7310_p10 = pnand %p7308_p9, %p7634_p13  ;;  %p7317_p12 = por %p7316_p6, %p7315_p2 }
  0x23   : > { %p7311_p1 = pneg %p7310_p10 }
  0x25   : > { %p7318_p0 = pnand %p7317_p12, %p7311_p1 }
  0x27   : > { %7321 = shalt.err (!%p7318_p0)
}
  0x28   : > { %s14516_s23 = smov 128   ;;  %s7516_s27 = smov 8  }
  0x29   : > { %7079 = dma.hbm_to_vmem [thread:$0]  (!%p7618_p11), %s14508_s1, 5248, %s7611_s28, [#allocation7], %s14516_s23, %s14516_s23, %s7516_s27  }
  0x2a   : > { %s7322_s11 = scalar_lea.hbm %s14510_s3, 1152 }
  0x2b   : > { %p7323_p1 = scmp.ne.s32.totalorder %s14510_s3, %s7322_s11  ;;  %p7329_p10 = scmp.lt.u32.totalorder %s7322_s11, %s14510_s3 }
  0x2d   : > { %p7325_p2 = pnand %p7323_p1, %p7634_p13 }
  0x2f   : > { %p7326_p6 = pneg %p7325_p2 }
  0x31   : > { %p7331_p3 = pnand %p7329_p10, %p7326_p6 }
  0x33   : > { %7334 = shalt.err (!%p7331_p3)
}
  0x34   : > { %s7335_s28 = scalar_lea.vmem %s7622_s6, 1152  ;;  %p7343_p12 = scmp.lt.s32.totalorder %s7622_s6, %s7622_s6 }
  0x35   : > { %p7336_p5 = scmp.ne.s32.totalorder %s7622_s6, %s7335_s28  ;;  %p7344_p0 = scmp.lt.s32.totalorder %s7335_s28, %s7335_s28 }
  0x37   : > { %p7338_p7 = pnand %p7336_p5, %p7634_p13  ;;  %p7345_p1 = por %p7344_p0, %p7343_p12 }
  0x39   : > { %p7339_p9 = pneg %p7338_p7 }
  0x3b   : > { %p7346_p2 = pnand %p7345_p1, %p7339_p9 }
  0x3d   : > { %7349 = shalt.err (!%p7346_p2)
}
  0x3e   : > { %7085 = dma.hbm_to_vmem [thread:$0]  (!%p7618_p11), %s14510_s3, 1152, %s7622_s6, [#allocation10], %s14516_s23, %s14516_s23, %s7516_s27  }
  0x3f   : > { %s7350_s10 = scalar_lea.hbm %s14509_s2, 640 }
  0x40   : > { %p7351_p6 = scmp.ne.s32.totalorder %s14509_s2, %s7350_s10  ;;  %p7357_p5 = scmp.lt.u32.totalorder %s7350_s10, %s14509_s2 }
  0x42   : > { %p7353_p10 = pnand %p7351_p6, %p7634_p13 }
  0x44   : > { %p7354_p3 = pneg %p7353_p10 }
  0x46   : > { %p7359_p7 = pnand %p7357_p5, %p7354_p3 }
  0x48   : > { %7362 = shalt.err (!%p7359_p7)
}
  0x49   : > { %s7363_s16 = scalar_lea.vmem %s190_s8, 640  ;;  %p7371_p1 = scmp.lt.s32.totalorder %s190_s8, %s190_s8 }
  0x4a   : > { %p7364_p9 = scmp.ne.s32.totalorder %s190_s8, %s7363_s16  ;;  %p7372_p2 = scmp.lt.s32.totalorder %s7363_s16, %s7363_s16 }
  0x4c   : > { %p7366_p12 = pnand %p7364_p9, %p7634_p13  ;;  %p7373_p4 = por %p7372_p2, %p7371_p1 }
  0x4e   : > { %p7367_p0 = pneg %p7366_p12 }
  0x50   : > { %p7374_p8 = pnand %p7373_p4, %p7367_p0 }
  0x52   : > { %7377 = shalt.err (!%p7374_p8)
}
  0x53   : > { %7082 = dma.hbm_to_vmem [thread:$0]  (!%p7618_p11), %s14509_s2, 640, %s190_s8, [#allocation7], %s14516_s23, %s14516_s23, %s7516_s27  }
  0x54   : > { %s7517_s17 = smov [#allocation11]   ;;  %s7378_s10 = scalar_lea.hbm %s14511_s4, 16 }
  0x55   : > { %s216_s30 = sshll.u32 %s7517_s17, 4  ;;  %p7379_p4 = scmp.ne.s32.totalorder %s14511_s4, %s7378_s10  ;;  %s217_s30 = int_to_ptr.vmem [resolvable:$true] %s216_s30 }
  0x56   : > { %p7385_p10 = scmp.lt.u32.totalorder %s7378_s10, %s14511_s4 }
  0x57   : > { %p7381_p8 = pnand %p7379_p4, %p7634_p13 }
  0x59   : > { %p7382_p6 = pneg %p7381_p8 }
  0x5b   : > { %p7387_p3 = pnand %p7385_p10, %p7382_p6 }
  0x5d   : > { %7390 = shalt.err (!%p7387_p3)
}
  0x5e   : > { %s7391_s8 = scalar_lea.vmem %s217_s30, 16  ;;  %s7398_s16 = scalar_lea.vmem %s217_s30, 32 }
  0x5f   : > { %p7392_p5 = scmp.ne.s32.totalorder %s217_s30, %s7391_s8  ;;  %p7399_p12 = scmp.lt.s32.totalorder %s217_s30, %s217_s30 }
  0x60   : > { %p7400_p0 = scmp.lt.s32.totalorder %s7398_s16, %s7391_s8 }
  0x61   : > { %p7394_p7 = pnand %p7392_p5, %p7634_p13 }
  0x62   : > { %p7401_p1 = por %p7400_p0, %p7399_p12 }
  0x63   : > { %p7395_p9 = pneg %p7394_p7 }
  0x65   : > { %p7402_p2 = pnand %p7401_p1, %p7395_p9 }
  0x67   : > { %7405 = shalt.err (!%p7402_p2)
}
  0x68   : > { %7088 = dma.hbm_to_vmem [thread:$0]  (!%p7618_p11), %s14511_s4, 16, %s217_s30, [#allocation10]  }
  0x69   : > { %s7725_s14 = sadd.s32 1, %s7510_s21   ;;  %s30_s17 = sadd.s32 1, %s7506_s20 }
  0x6a   : > { %s27_s29 = ssub.s32 %s7510_s21, %s7725_s14  ;;  %p37_p13 = scmp.ne.s32.totalorder %s7506_s20, %s7502_s19 }
  0x6b   : > { %p28_p4 = scmp.eq.s32.totalorder %s27_s29, 0  ;;  %p38_p8 = scmp.eq.s32.totalorder %s7510_s21, 0 }
  0x6c   : > { %p14746_p6 = scmp.eq.s32.totalorder %s7588_s22, 1  ;;  %p7101_p3 = scmp.lt.s32.totalorder %s7510_s21, 2 }
  0x6d   : > { %s7741_s9 = scalar_select %p28_p4, %s7506_s20, %s30_s17  }
  0x6e   : > { %p7735_p10 = por %p14746_p6, %p37_p13  ;;  %p39_p5 = por %p38_p8, %p37_p13 }
  0x6f   : > { %s227_s10 = sand.u32 1, %s7506_s20   ;;  %s7052_s30 = smul.u32 6016, %s7510_s21 }
  0x70   : > { %s7051_s11 = smul.u32 376, %s227_s10  ;;  %p7745_p11 = pnand %p7101_p3, %p39_p5 }
  0x71   : > { %s7752_s8 = scalar_lea.hbm %s14507_s0, %s7052_s30  ;;  %s7756_s28 = scalar_lea.sflag [#allocation4], %s227_s10 }
  0x72   : > { %s231_s16 = scalar_lea.vmem [#allocation3], %s7051_s11  ;;  %s7406_s17 = scalar_lea.hbm %s7752_s8, 6016 }
  0x73   : > { %s238_s6 = sshll.u32 %s231_s16, 4  ;;  %p7407_p7 = scmp.ne.s32.totalorder %s7752_s8, %s7406_s17  ;;  %s7754_s6 = int_to_ptr.vmem [resolvable:$true] %s238_s6 }
  0x74   : > { %p7408_p9 = pneg %p7745_p11  ;;  %s7411_s13 = scalar_lea.hbm %s14507_s0, 12032 }
  0x75   : > { %p7412_p1 = scmp.lt.u32.totalorder %s7752_s8, %s14507_s0  ;;  %p7413_p2 = scmp.lt.u32.totalorder %s7411_s13, %s7406_s17 }
  0x76   : > { %p7409_p12 = pnand %p7408_p9, %p7407_p7  ;;  %p7415_p4 = scmp.lt.u32.totalorder %s7406_s17, %s7752_s8 }
  0x77   : > { %p7414_p13 = por %p7413_p2, %p7412_p1 }
  0x78   : > { %p7410_p0 = pneg %p7409_p12 }
  0x79   : > { %p7416_p8 = por %p7415_p4, %p7414_p13 }
  0x7b   : > { %p7417_p6 = pnand %p7416_p8, %p7410_p0 }
  0x7d   : > { %7420 = shalt.err (!%p7417_p6)
}
  0x7e   : > { %s7421_s10 = scalar_lea.vmem %s7754_s6, 6016  ;;  %s7518_s11 = smov [#allocation3]  }
  0x7f   : > { %p7422_p3 = scmp.ne.s32.totalorder %s7754_s6, %s7421_s10  ;;  %s7426_s16 = sshll.u32 %s7518_s11, 4  ;;  %s7427_s16 = int_to_ptr.vmem [resolvable:$false] %s7426_s16 }
  0x80   : > { %s7428_s23 = scalar_lea.vmem %s7427_s16, 12032  ;;  %p7429_p12 = scmp.lt.s32.totalorder %s7754_s6, %s7427_s16 }
  0x81   : > { %p7424_p5 = pnand %p7422_p3, %p7408_p9  ;;  %p7430_p1 = scmp.lt.s32.totalorder %s7428_s23, %s7421_s10 }
  0x83   : > { %p7425_p7 = pneg %p7424_p5  ;;  %p7431_p2 = por %p7430_p1, %p7429_p12 }
  0x85   : > { %p7432_p13 = pnand %p7431_p2, %p7425_p7 }
  0x87   : > { %7435 = shalt.err (!%p7432_p13)
}
  0x88   : > { %s14749_s17 = smov 128   ;;  %p14750_p9 = scmp.ne.s32.totalorder %s14743_s26, 0 }
  0x89   : > { %7092 = dma.hbm_to_vmem [thread:$0]  (!%p7745_p11), %s7752_s8, 6016, %s7754_s6, %s7756_s28, %s14749_s17, %s14749_s17, %s7516_s27  }
  0x8a   : > { %250 = sbr.rel (%p14750_p9) target bundleno = 2383 (0x94f), region = 40 }
  0x91   : > { %s7790_s29 = sand.u32 1, %s7502_s19   ;;  %p14751_p0 = scmp.ne.s32.totalorder %s14741_s24, 0 }
  0x92   : > { %s7053_s30 = smul.u32 376, %s7790_s29  ;;  %s253_s13 = scalar_lea.sflag [#allocation4], %s7790_s29 }
  0x94   : > { %s7794_s15 = scalar_lea.vmem [#allocation3], %s7053_s30 }
  0x95   : > { %7481 = dma.done.wait (%p14751_p0), %s253_s13, 6016  }
  0x96   : > { %7483 = vsyncadd (%p14751_p0), %s253_s13, 4294961280  ;;  %p14752_p11 = scmp.eq.s32.totalorder %s7588_s22, 0 }
  0x98   : > { %7485 = dma.done.wait (%p14752_p11), [#allocation7], 5888   ;;  %p14753_p4 = pmov %p14752_p11 }
  0x9a   : > { %7487 = vsyncadd (%p14753_p4), [#allocation7], 4294961408  ;;  %p14754_p8 = pmov %p14753_p4 }
  0x9b   : > { %p14755_p6 = pmov %p14753_p4 }
  0x9c   : > { %7489 = dma.done.wait (%p14754_p8), [#allocation10], 1168  }
  0x9d   : > { %7491 = vsyncadd (%p14755_p6), [#allocation10], 4294966128  ;;  %v7809_v0 = vld [vmem:[%s7794_s15 + $0x10] sm:$0xff]  ;;  %v7812_v1 = vld [vmem:[%s7794_s15 + $0x18] sm:$0xff]  ;;  %vm433_vm0 = vcmask 1046528   ;;  %s7519_s24 = smov 4  }
  0x9e   : > { %v7815_v2 = vld [vmem:[%s7794_s15] sm:$0xff]  ;;  %v437_v3 = vrot.slane %v7809_v0, 1  ;;  %v439_v4 = vrot.slane %v7812_v1, 1  ;;  %v7820_v5 = vld [vmem:[%s7794_s15 + $0x8] sm:$0xff]  ;;  %v7832_v11 = vld [vmem:[%s7794_s15 + $0x30] sm:$0xff]  ;;  %vm643_vm1 = vcmask 1045504  }
  0x9f   : > { %v434_v6 = vrot.slane %v7815_v2, 1  ;;  %v7824_v7 = vld [vmem:[%s7794_s15 + $0x20] sm:$0xff]  ;;  %v435_v8 = vrot.slane %v7820_v5, 1  ;;  %v7829_v10 = vld [vmem:[%s7794_s15 + $0x28] sm:$0xff]  ;;  %v445_v16 = vrot.slane %v7832_v11, 1  ;;  %v7843_v18 = vld [vmem:[%s7794_s15 + $0x38] sm:$0xff] }
  0xa0   : > { %v441_v9 = vrot.slane %v7824_v7, 1  ;;  %v440_v12 = vsel %vm433_vm0, %v437_v3, %v439_v4  ;;  %v443_v15 = vrot.slane %v7829_v10, 1  ;;  %v7846_v19 = vld [vmem:[%s7794_s15 + $0x40] sm:$0xff]  ;;  %v447_v21 = vrot.slane %v7843_v18, 1  ;;  %v7855_v24 = vld [vmem:[%s7794_s15 + $0x48] sm:$0xff]  ;;  %v7858_v25 = vld [vmem:[%s7794_s15 + $0x50] sm:$0xff] }
  0xa1   : > { %521 = vrot.lane.b32.xlu1 %v440_v12, %s7519_s24  ;;  %v436_v13 = vsel %vm433_vm0, %v434_v6, %v435_v8  ;;  %v438_v17 = vsel %vm433_vm0, %v435_v8, %v437_v3  ;;  %v449_v22 = vrot.slane %v7846_v19, 1  ;;  %v451_v27 = vrot.slane %v7855_v24, 1  ;;  %v7867_v30 = vld [vmem:[%s7794_s15 + $0x58] sm:$0xff]  ;;  %v7870_v31 = vld [vmem:[%s7794_s15 + $0x60] sm:$0xff]  ;;  %v7879_v36 = vld [vmem:[%s7794_s15 + $0x68] sm:$0xff]  ;;  %s7520_s26 = smov 8  }
  0xa2   : > { %517 = vrot.lane.b32.xlu0 %v436_v13, %s7519_s24  ;;  %v442_v14 = vsel %vm433_vm0, %v439_v4, %v441_v9  ;;  %v446_v20 = vsel %vm433_vm0, %v443_v15, %v445_v16  ;;  %v444_v23 = vsel %vm433_vm0, %v441_v9, %v443_v15  ;;  %v453_v28 = vrot.slane %v7858_v25, 1  ;;  %v7882_v37 = vld [vmem:[%s7794_s15 + $0x70] sm:$0xff]  ;;  %v7891_v42 = vld [vmem:[%s7794_s15 + $0x78] sm:$0xff]  ;;  %v7894_v43 = vld [vmem:[%s7794_s15 + $0x80] sm:$0xff]  ;;  %s7521_s27 = smov 12   ;;  %s7522_s12 = smov 16  }
  0xa3   : > { %v450_v26 = vsel %vm433_vm0, %v447_v21, %v449_v22  ;;  %v448_v29 = vsel %vm433_vm0, %v445_v16, %v447_v21  ;;  %v455_v33 = vrot.slane %v7867_v30, 1  ;;  %v457_v34 = vrot.slane %v7870_v31, 1  ;;  %v7903_v48 = vld [vmem:[%s7794_s15 + $0x88] sm:$0xff]  ;;  %v7906_v49 = vld [vmem:[%s7794_s15 + $0x90] sm:$0xff]  ;;  %v7915_v54 = vld [vmem:[%s7794_s15 + $0x98] sm:$0xff]  ;;  %s7523_s8 = smov 20  }
  0xa4   : > { %v454_v32 = vsel %vm433_vm0, %v451_v27, %v453_v28  ;;  %v452_v35 = vsel %vm433_vm0, %v449_v22, %v451_v27  ;;  %v459_v39 = vrot.slane %v7879_v36, 1  ;;  %v461_v40 = vrot.slane %v7882_v37, 1  ;;  %14756 = vst [vmem:[#allocation17_spill] sm:$0xff] %v7915_v54  ;;  %v7918_v55 = vld [vmem:[%s7794_s15 + $0xa0] sm:$0xff]  ;;  %v7927_v60 = vld [vmem:[%s7794_s15 + $0xa8] sm:$0xff]  ;;  %v7930_v61 = vld [vmem:[%s7794_s15 + $0xb0] sm:$0xff] }
  0xa5   : > { %523 = vrot.lane.b32.xlu1 %v442_v14, %s7519_s24  ;;  %v458_v38 = vsel %vm433_vm0, %v455_v33, %v457_v34  ;;  %v456_v41 = vsel %vm433_vm0, %v453_v28, %v455_v33  ;;  %v463_v45 = vrot.slane %v7891_v42, 1  ;;  %v465_v46 = vrot.slane %v7894_v43, 1  ;;  %14757 = vst [vmem:[#allocation18_spill] sm:$0xff] %v7918_v55  ;;  %14758 = vst [vmem:[#allocation19_spill] sm:$0xff] %v7927_v60  ;;  %v7939_v6 = vld [vmem:[%s7794_s15 + $0xb8] sm:$0xff]  ;;  %v7942_v8 = vld [vmem:[%s7794_s15 + $0xc0] sm:$0xff] }
  0xa6   : > { %519 = vrot.lane.b32.xlu0 %v438_v17, %s7519_s24  ;;  %v462_v44 = vsel %vm433_vm0, %v459_v39, %v461_v40  ;;  %v460_v47 = vsel %vm433_vm0, %v457_v34, %v459_v39  ;;  %v467_v51 = vrot.slane %v7903_v48, 1  ;;  %v469_v52 = vrot.slane %v7906_v49, 1  ;;  %14759 = vst [vmem:[#allocation20_spill] sm:$0xff] %v7930_v61  ;;  %14760 = vst [vmem:[#allocation21_spill] sm:$0xff] %v7939_v6  ;;  %v7951_v15 = vld [vmem:[%s7794_s15 + $0xc8] sm:$0xff]  ;;  %v7954_v16 = vld [vmem:[%s7794_s15 + $0xd0] sm:$0xff] }
  0xa7   : > { %v466_v50 = vsel %vm433_vm0, %v463_v45, %v465_v46  ;;  %v464_v53 = vsel %vm433_vm0, %v461_v40, %v463_v45  ;;  %v471_v57 = vrot.slane %v7915_v54, 1  ;;  %v473_v58 = vrot.slane %v7918_v55, 1  ;;  %14761 = vst [vmem:[#allocation22_spill] sm:$0xff] %v7942_v8  ;;  %14762 = vst [vmem:[#allocation23_spill] sm:$0xff] %v7951_v15  ;;  %v7975_v33 = vld [vmem:[%s7794_s15 + $0xe8] sm:$0xff]  ;;  %v7978_v34 = vld [vmem:[%s7794_s15 + $0xf0] sm:$0xff] }
  0xa8   : > { %v470_v56 = vsel %vm433_vm0, %v467_v51, %v469_v52  ;;  %v468_v59 = vsel %vm433_vm0, %v465_v46, %v467_v51  ;;  %v475_v63 = vrot.slane %v7927_v60, 1  ;;  %v477_v3 = vrot.slane %v7930_v61, 1  ;;  %14763 = vst [vmem:[#allocation24_spill] sm:$0xff] %v7954_v16  ;;  %14766 = vst [vmem:[#allocation27_spill] sm:$0xff] %v7975_v33  ;;  %v7999_v51 = vld [vmem:[%s7794_s15 + $0x108] sm:$0xff]  ;;  %s7524_s6 = smov 24  }
  0xa9   : > { %527 = vrot.lane.b32.xlu1 %v446_v20, %s7519_s24  ;;  %v474_v62 = vsel %vm433_vm0, %v471_v57, %v473_v58  ;;  %v472_v4 = vsel %vm433_vm0, %v469_v52, %v471_v57  ;;  %v479_v12 = vrot.slane %v7939_v6, 1  ;;  %v481_v13 = vrot.slane %v7942_v8, 1  ;;  %14767 = vst [vmem:[#allocation28_spill] sm:$0xff] %v7978_v34  ;;  %14770 = vst [vmem:[#allocation31_spill] sm:$0xff] %v7999_v51  ;;  %v8002_v52 = vld [vmem:[%s7794_s15 + $0x110] sm:$0xff]  ;;  %s7525_s28 = smov 28  }
  0xaa   : > { %525 = vrot.lane.b32.xlu0 %v444_v23, %s7519_s24  ;;  %v478_v9 = vsel %vm433_vm0, %v475_v63, %v477_v3  ;;  %v476_v14 = vsel %vm433_vm0, %v473_v58, %v475_v63  ;;  %v483_v20 = vrot.slane %v7951_v15, 1  ;;  %v485_v21 = vrot.slane %v7954_v16, 1  ;;  %v7963_v23 = vld [vmem:[%s7794_s15 + $0xd8] sm:$0xff]  ;;  %14771 = vst [vmem:[#allocation32_spill] sm:$0xff] %v8002_v52  ;;  %s7529_s10 = smov 32   ;;  %s7531_s11 = smov 40  }
  0xab   : > { %v482_v17 = vsel %vm433_vm0, %v479_v12, %v481_v13  ;;  %v480_v22 = vsel %vm433_vm0, %v477_v3, %v479_v12  ;;  %14764 = vst [vmem:[#allocation25_spill] sm:$0xff] %v7963_v23  ;;  %v487_v28 = vrot.slane %v7963_v23, 1  ;;  %v493_v39 = vrot.slane %v7978_v34, 1  ;;  %v8023_v12 = vld [vmem:[%s7794_s15 + $0x128] sm:$0xff]  ;;  %s7532_s16 = smov 48   ;;  %s7533_s23 = smov 56  }
  0xac   : > { %v486_v27 = vsel %vm433_vm0, %v483_v20, %v485_v21  ;;  %v501_v57 = vrot.slane %v8002_v52, 1  ;;  %14774 = vst [vmem:[#allocation35_spill] sm:$0xff] %v8023_v12  ;;  %vm985_vm2 = vcmask 1044480   ;;  %vm1193_vm3 = vcmask 1043456   ;;  %s7534_s17 = smov 64   ;;  %s7054_s30 = smul.u32 328, %s7790_s29 }
  0xad   : > { %531 = vrot.lane.b32.xlu1 %v450_v26, %s7519_s24  ;;  %v7966_v26 = vld [vmem:[%s7794_s15 + $0xe0] sm:$0xff]  ;;  %v488_v40 = vsel %vm433_vm0, %v485_v21, %v487_v28  ;;  %vm1533_vm4 = vcmask 1042432   ;;  %vm1992_vm5 = vcmask 64512   ;;  %vm7528_vm6 = vmmov 0  }
  0xae   : > { %529 = vrot.lane.b32.xlu0 %v448_v29, %s7519_s24  ;;  %14765 = vst [vmem:[#allocation26_spill] sm:$0xff] %v7966_v26  ;;  %v489_v29 = vrot.slane %v7966_v26, 1  ;;  %vm1741_vm7 = vcmask 1041408   ;;  %vm1949_vm8 = vcmask 31744   ;;  %vm2035_vm9 = vcmask 97280   ;;  %s14066_s13 = scalar_lea.vmem [#allocation12], %s7054_s30 }
  0xaf   : > { %vm2078_vm10 = vcmask 130048   ;;  %vm2121_vm11 = vcmask 162816   ;;  %vm2164_vm12 = vcmask 195584   ;;  %vm2207_vm13 = vcmask 228352  }
  0xb0   : > { %vm2250_vm14 = vcmask 261120   ;;  %vm2418_vm15 = vcmask 293888  }
  0xb1   : > { %535 = vrot.lane.b32.xlu1 %v454_v32, %s7519_s24  ;;  %v484_v32 = vsel %vm433_vm0, %v481_v13, %v483_v20  ;;  %v8026_v13 = vld [vmem:[%s7794_s15 + $0x130] sm:$0xff] }
  0xb2   : > { %533 = vrot.lane.b32.xlu0 %v452_v35, %s7519_s24  ;;  %v490_v35 = vsel %vm433_vm0, %v487_v28, %v489_v29  ;;  %14775 = vst [vmem:[#allocation36_spill] sm:$0xff] %v8026_v13  ;;  %v509_v20 = vrot.slane %v8026_v13, 1 }
  0xb5   : > { %539 = vrot.lane.b32.xlu1 %v458_v38, %s7519_s24  ;;  %v491_v38 = vrot.slane %v7975_v33, 1 }
  0xb6   : > { %537 = vrot.lane.b32.xlu0 %v456_v41, %s7519_s24  ;;  %v7987_v41 = vld [vmem:[%s7794_s15 + $0xf8] sm:$0xff] }
  0xb7   : > { %14768 = vst [vmem:[#allocation29_spill] sm:$0xff] %v7987_v41  ;;  %v494_v45 = vsel %vm433_vm0, %v491_v38, %v493_v39  ;;  %v495_v46 = vrot.slane %v7987_v41, 1 }
  0xb9   : > { %543 = vrot.lane.b32.xlu1 %v462_v44, %s7519_s24  ;;  %v7990_v44 = vld [vmem:[%s7794_s15 + $0x100] sm:$0xff]  ;;  %v496_v58 = vsel %vm433_vm0, %v493_v39, %v495_v46 }
  0xba   : > { %541 = vrot.lane.b32.xlu0 %v460_v47, %s7519_s24  ;;  %14769 = vst [vmem:[#allocation30_spill] sm:$0xff] %v7990_v44  ;;  %v497_v47 = vrot.slane %v7990_v44, 1 }
  0xbd   : > { %547 = vrot.lane.b32.xlu1 %v466_v50, %s7519_s24  ;;  %v492_v50 = vsel %vm433_vm0, %v489_v29, %v491_v38  ;;  %v8047_v38 = vld [vmem:[%s7794_s15 + $0x148] sm:$0xff] }
  0xbe   : > { %545 = vrot.lane.b32.xlu0 %v464_v53, %s7519_s24  ;;  %v498_v53 = vsel %vm433_vm0, %v495_v46, %v497_v47  ;;  %v645_v46 = vrot.slane %v7820_v5, 2  ;;  %v655_v5 = vrot.slane %v7832_v11, 2 }
  0xc1   : > { %551 = vrot.lane.b32.xlu1 %v470_v56, %s7519_s24  ;;  %v499_v56 = vrot.slane %v7999_v51, 1 }
  0xc2   : > { %549 = vrot.lane.b32.xlu0 %v468_v59, %s7519_s24  ;;  %v8011_v59 = vld [vmem:[%s7794_s15 + $0x118] sm:$0xff] }
  0xc3   : > { %14772 = vst [vmem:[#allocation33_spill] sm:$0xff] %v8011_v59  ;;  %v502_v63 = vsel %vm433_vm0, %v499_v56, %v501_v57  ;;  %v503_v3 = vrot.slane %v8011_v59, 1 }
  0xc5   : > { %555 = vrot.lane.b32.xlu1 %v474_v62, %s7519_s24  ;;  %v8014_v62 = vld [vmem:[%s7794_s15 + $0x120] sm:$0xff]  ;;  %v504_v21 = vsel %vm433_vm0, %v501_v57, %v503_v3  ;;  %v649_v57 = vrot.slane %v7812_v1, 2 }
  0xc6   : > { %553 = vrot.lane.b32.xlu0 %v472_v4, %s7519_s24  ;;  %14773 = vst [vmem:[#allocation34_spill] sm:$0xff] %v8014_v62  ;;  %v505_v4 = vrot.slane %v8014_v62, 1 }
  0xc9   : > { %559 = vrot.lane.b32.xlu1 %v478_v9, %s7519_s24  ;;  %v500_v9 = vsel %vm433_vm0, %v497_v47, %v499_v56  ;;  %v647_v47 = vrot.slane %v7809_v0, 2 }
  0xca   : > { %557 = vrot.lane.b32.xlu0 %v476_v14, %s7519_s24  ;;  %v506_v14 = vsel %vm433_vm0, %v503_v3, %v505_v4 }
  0xcb   : > { %v648_v56 = vsel %vm643_vm1, %v645_v46, %v647_v47  ;;  %v8074_v3 = vsel %vm643_vm1, %v647_v47, %v649_v57  ;;  %v671_v47 = vrot.slane %v7882_v37, 2 }
  0xcd   : > { %563 = vrot.lane.b32.xlu1 %v482_v17, %s7519_s24  ;;  %v507_v17 = vrot.slane %v8023_v12, 1 }
  0xce   : > { %561 = vrot.lane.b32.xlu0 %v480_v22, %s7519_s24  ;;  %v8035_v22 = vld [vmem:[%s7794_s15 + $0x138] sm:$0xff] }
  0xcf   : > { %v510_v28 = vsel %vm433_vm0, %v507_v17, %v509_v20  ;;  %v511_v29 = vrot.slane %v8035_v22, 1 }
  0xd1   : > { %567 = vrot.lane.b32.xlu1 %v486_v27, %s7519_s24  ;;  %v8038_v27 = vld [vmem:[%s7794_s15 + $0x140] sm:$0xff] }
  0xd2   : > { %565 = vrot.lane.b32.xlu0 %v484_v32, %s7519_s24  ;;  %14776 = vst [vmem:[#allocation37_spill] sm:$0xff] %v8038_v27  ;;  %v513_v32 = vrot.slane %v8038_v27, 1 }
  0xd4   : > { %v514_v39 = vsel %vm433_vm0, %v511_v29, %v513_v32 }
  0xd5   : > { %571 = vrot.lane.b32.xlu1 %v490_v35, %s7519_s24  ;;  %v508_v35 = vsel %vm433_vm0, %v505_v4, %v507_v17 }
  0xd6   : > { %569 = vrot.lane.b32.xlu0 %v488_v40, %s7519_s24  ;;  %v512_v40 = vsel %vm433_vm0, %v509_v20, %v511_v29 }
  0xd9   : > { %575 = vrot.lane.b32.xlu1 %v494_v45, %s7519_s24  ;;  %v515_v45 = vrot.slane %v8047_v38, 1 }
  0xda   : > { %573 = vrot.lane.b32.xlu0 %v492_v50, %s7519_s24 }
  0xdb   : > { %v516_v50 = vsel %vm433_vm0, %v513_v32, %v515_v45 }
  0xdd   : > { %579 = vrot.lane.b32.xlu1 %v498_v53, %s7519_s24  ;;  %v644_v53 = vrot.slane %v7815_v2, 2  ;;  %v653_v2 = vrot.slane %v7829_v10, 2 }
  0xde   : > { %577 = vrot.lane.b32.xlu0 %v496_v58, %s7519_s24  ;;  %v651_v58 = vrot.slane %v7824_v7, 2 }
  0xdf   : > { %v8081_v4 = vsel %vm643_vm1, %v653_v2, %v655_v5 }
  0xe0   : > { %v8069_v0 = vsel %vm643_vm1, %v649_v57, %v651_v58  ;;  %v8086_v17 = vsel %vm643_vm1, %v651_v58, %v653_v2  ;;  %v675_v57 = vrot.slane %v7894_v43, 2  ;;  %v677_v2 = vrot.slane %v7903_v48, 2 }
  0xe1   : > { %583 = vrot.lane.b32.xlu1 %v502_v63, %s7519_s24  ;;  %v646_v63 = vsel %vm643_vm1, %v644_v53, %v645_v46  ;;  %v669_v46 = vrot.slane %v7879_v36, 2 }
  0xe2   : > { %581 = vrot.lane.b32.xlu0 %v500_v9, %s7519_s24  ;;  %v657_v9 = vrot.slane %v7843_v18, 2 }
  0xe3   : > { %v8129_v53 = vsel %vm643_vm1, %v669_v46, %v671_v47 }
  0xe4   : > { %v8098_v29 = vsel %vm643_vm1, %v655_v5, %v657_v9  ;;  %v679_v5 = vrot.slane %v7906_v49, 2 }
  0xe5   : > { %587 = vrot.lane.b32.xlu1 %v506_v14, %s7519_s24  ;;  %v659_v14 = vrot.slane %v7846_v19, 2 }
  0xe6   : > { %585 = vrot.lane.b32.xlu0 %v504_v21, %s7519_s24  ;;  %v661_v21 = vrot.slane %v7855_v24, 2 }
  0xe7   : > { %v8093_v20 = vsel %vm643_vm1, %v657_v9, %v659_v14 }
  0xe9   : > { %591 = vrot.lane.b32.xlu1 %v510_v28, %s7519_s24  ;;  %v663_v28 = vrot.slane %v7858_v25, 2 }
  0xea   : > { %589 = vrot.lane.b32.xlu0 %v508_v35, %s7519_s24  ;;  %v665_v35 = vrot.slane %v7867_v30, 2 }
  0xeb   : > { %v8105_v32 = vsel %vm643_vm1, %v661_v21, %v663_v28 }
  0xed   : > { %595 = vrot.lane.b32.xlu1 %v514_v39, %s7519_s24  ;;  %v667_v39 = vrot.slane %v7870_v31, 2 }
  0xee   : > { %593 = vrot.lane.b32.xlu0 %v512_v40, %s7519_s24  ;;  %v8110_v40 = vsel %vm643_vm1, %v659_v14, %v661_v21  ;;  %v8153_v14 = vsel %vm643_vm1, %v677_v2, %v679_v5  ;;  %v681_v21 = vrot.slane %v7915_v54, 2 }
  0xef   : > { %v8134_v58 = vsel %vm643_vm1, %v667_v39, %v669_v46 }
  0xf1   : > { %599 = vrot.lane.b32.xlu1 %v515_v45, %s7519_s24  ;;  %v8117_v45 = vsel %vm643_vm1, %v665_v35, %v667_v39  ;;  %v8160_v39 = vsel %vm643_vm1, %v675_v57, %v677_v2 }
  0xf2   : > { %597 = vrot.lane.b32.xlu0 %v516_v50, %s7519_s24  ;;  %v8122_v50 = vsel %vm643_vm1, %v663_v28, %v665_v35  ;;  %v683_v28 = vrot.slane %v7918_v55, 2  ;;  %v687_v55 = vrot.slane %v7930_v61, 2  ;;  %v691_v61 = vrot.slane %v7942_v8, 2  ;;  %s6443_s24 = sshll.u32 %s14066_s13, 4  ;;  %s14450_s24 = int_to_ptr.vmem [resolvable:$true] %s6443_s24 }
  0xf3   : > { %v695_v8 = vrot.slane %v7954_v16, 2  ;;  %v699_v16 = vrot.slane %v7966_v26, 2  ;;  %v703_v26 = vrot.slane %v7978_v34, 2  ;;  %v707_v34 = vrot.slane %v7990_v44, 2 }
  0xf4   : > { %v711_v44 = vrot.slane %v8002_v52, 2  ;;  %v715_v52 = vrot.slane %v8014_v62, 2  ;;  %v719_v62 = vrot.slane %v8026_v13, 2  ;;  %v723_v13 = vrot.slane %v8038_v27, 2 }
  0xf5   : > { %729 = vrot.lane.b32.xlu1 %v648_v56, %s7520_s26  ;;  %v673_v56 = vrot.slane %v7891_v42, 2 }
  0xf6   : > { %727 = vrot.lane.b32.xlu0 %v646_v63, %s7520_s26 }
  0xf7   : > { %v8141_v63 = vsel %vm643_vm1, %v673_v56, %v675_v57  ;;  %v8146_v9 = vsel %vm643_vm1, %v671_v47, %v673_v56  ;;  %v8169_v47 = vsel %vm643_vm1, %v681_v21, %v683_v28  ;;  %v685_v56 = vrot.slane %v7927_v60, 2 }
  0xf8   : > { %v8176_v57 = vsel %vm643_vm1, %v679_v5, %v681_v21 }
  0xf9   : > { %733 = vrot.lane.b32.xlu1 %v8069_v0, %s7520_s26  ;;  %v8192_v5 = vsel %vm643_vm1, %v683_v28, %v685_v56 }
  0xfa   : > { %731 = vrot.lane.b32.xlu0 %v8074_v3, %s7520_s26 }
  0xfd   : > { %737 = vrot.lane.b32.xlu1 %v8081_v4, %s7520_s26 }
  0xfe   : > { %735 = vrot.lane.b32.xlu0 %v8086_v17, %s7520_s26 }
 0x101   : > { %741 = vrot.lane.b32.xlu1 %v8093_v20, %s7520_s26 }
 0x102   : > { %739 = vrot.lane.b32.xlu0 %v8098_v29, %s7520_s26 }
 0x105   : > { %745 = vrot.lane.b32.xlu1 %v8105_v32, %s7520_s26 }
 0x106   : > { %743 = vrot.lane.b32.xlu0 %v8110_v40, %s7520_s26 }
 0x109   : > { %749 = vrot.lane.b32.xlu1 %v8117_v45, %s7520_s26 }
 0x10a   : > { %747 = vrot.lane.b32.xlu0 %v8122_v50, %s7520_s26 }
 0x10d   : > { %753 = vrot.lane.b32.xlu1 %v8129_v53, %s7520_s26 }
 0x10e   : > { %751 = vrot.lane.b32.xlu0 %v8134_v58, %s7520_s26 }
 0x111   : > { %757 = vrot.lane.b32.xlu1 %v8141_v63, %s7520_s26 }
 0x112   : > { %755 = vrot.lane.b32.xlu0 %v8146_v9, %s7520_s26 }
 0x113   : > { %v8157_v35 = vpop.permute.xlu1 %521 }
 0x114   : > { %14777 = vst [vmem:[#allocation38_spill] sm:$0xff] %v8157_v35  ;;  %v8162_v46 = vpop.permute.xlu0 %517  ;;  %v689_v35 = vrot.slane %v7939_v6, 2 }
 0x115   : > { %14778 = vst [vmem:[#allocation39_spill] sm:$0xff] %v8162_v46  ;;  %761 = vrot.lane.b32.xlu1 %v8153_v14, %s7520_s26  ;;  %v8185_v46 = vsel %vm643_vm1, %v685_v56, %v687_v55 }
 0x116   : > { %759 = vrot.lane.b32.xlu0 %v8160_v39, %s7520_s26  ;;  %v8208_v28 = vsel %vm643_vm1, %v687_v55, %v689_v35 }
 0x117   : > { %v8173_v54 = vpop.permute.xlu1 %523 }
 0x118   : > { %14779 = vst [vmem:[#allocation40_spill] sm:$0xff] %v8173_v54  ;;  %v8178_v2 = vpop.permute.xlu0 %519  ;;  %v8201_v54 = vsel %vm643_vm1, %v689_v35, %v691_v61 }
 0x119   : > { %14780 = vst [vmem:[#allocation41_spill] sm:$0xff] %v8178_v2  ;;  %765 = vrot.lane.b32.xlu1 %v8169_v47, %s7520_s26  ;;  %v693_v2 = vrot.slane %v7951_v15, 2 }
 0x11a   : > { %763 = vrot.lane.b32.xlu0 %v8176_v57, %s7520_s26 }
 0x11b   : > { %v8189_v60 = vpop.permute.xlu1 %527  ;;  %v8224_v55 = vsel %vm643_vm1, %v691_v61, %v693_v2 }
 0x11c   : > { %14781 = vst [vmem:[#allocation42_spill] sm:$0xff] %v8189_v60  ;;  %v8194_v21 = vpop.permute.xlu0 %525  ;;  %v8217_v60 = vsel %vm643_vm1, %v693_v2, %v695_v8 }
 0x11d   : > { %14782 = vst [vmem:[#allocation43_spill] sm:$0xff] %v8194_v21  ;;  %769 = vrot.lane.b32.xlu1 %v8185_v46, %s7520_s26  ;;  %v697_v21 = vrot.slane %v7963_v23, 2 }
 0x11e   : > { %767 = vrot.lane.b32.xlu0 %v8192_v5, %s7520_s26 }
 0x11f   : > { %v8205_v6 = vpop.permute.xlu1 %531  ;;  %v8240_v61 = vsel %vm643_vm1, %v695_v8, %v697_v21 }
 0x120   : > { %14783 = vst [vmem:[#allocation44_spill] sm:$0xff] %v8205_v6  ;;  %v8210_v56 = vpop.permute.xlu0 %529  ;;  %v8233_v6 = vsel %vm643_vm1, %v697_v21, %v699_v16 }
 0x121   : > { %14784 = vst [vmem:[#allocation45_spill] sm:$0xff] %v8210_v56  ;;  %773 = vrot.lane.b32.xlu1 %v8201_v54, %s7520_s26  ;;  %v701_v56 = vrot.slane %v7975_v33, 2 }
 0x122   : > { %771 = vrot.lane.b32.xlu0 %v8208_v28, %s7520_s26 }
 0x123   : > { %v8221_v15 = vpop.permute.xlu1 %535  ;;  %v8256_v8 = vsel %vm643_vm1, %v699_v16, %v701_v56 }
 0x124   : > { %14785 = vst [vmem:[#allocation46_spill] sm:$0xff] %v8221_v15  ;;  %v8226_v35 = vpop.permute.xlu0 %533  ;;  %v8249_v15 = vsel %vm643_vm1, %v701_v56, %v703_v26 }
 0x125   : > { %14786 = vst [vmem:[#allocation47_spill] sm:$0xff] %v8226_v35  ;;  %777 = vrot.lane.b32.xlu1 %v8217_v60, %s7520_s26  ;;  %v705_v35 = vrot.slane %v7987_v41, 2 }
 0x126   : > { %775 = vrot.lane.b32.xlu0 %v8224_v55, %s7520_s26 }
 0x127   : > { %v8237_v23 = vpop.permute.xlu1 %539  ;;  %v8272_v16 = vsel %vm643_vm1, %v703_v26, %v705_v35 }
 0x128   : > { %14787 = vst [vmem:[#allocation48_spill] sm:$0xff] %v8237_v23  ;;  %v8242_v2 = vpop.permute.xlu0 %537  ;;  %v8265_v23 = vsel %vm643_vm1, %v705_v35, %v707_v34 }
 0x129   : > { %14788 = vst [vmem:[#allocation49_spill] sm:$0xff] %v8242_v2  ;;  %781 = vrot.lane.b32.xlu1 %v8233_v6, %s7520_s26  ;;  %v709_v2 = vrot.slane %v7999_v51, 2 }
 0x12a   : > { %779 = vrot.lane.b32.xlu0 %v8240_v61, %s7520_s26 }
 0x12b   : > { %v8253_v33 = vpop.permute.xlu1 %543  ;;  %v8288_v26 = vsel %vm643_vm1, %v707_v34, %v709_v2 }
 0x12c   : > { %14789 = vst [vmem:[#allocation50_spill] sm:$0xff] %v8253_v33  ;;  %v8258_v21 = vpop.permute.xlu0 %541  ;;  %v8281_v33 = vsel %vm643_vm1, %v709_v2, %v711_v44 }
 0x12d   : > { %14790 = vst [vmem:[#allocation51_spill] sm:$0xff] %v8258_v21  ;;  %785 = vrot.lane.b32.xlu1 %v8249_v15, %s7520_s26  ;;  %v713_v21 = vrot.slane %v8011_v59, 2 }
 0x12e   : > { %783 = vrot.lane.b32.xlu0 %v8256_v8, %s7520_s26 }
 0x12f   : > { %v8269_v41 = vpop.permute.xlu1 %547  ;;  %v8304_v34 = vsel %vm643_vm1, %v711_v44, %v713_v21 }
 0x130   : > { %14791 = vst [vmem:[#allocation52_spill] sm:$0xff] %v8269_v41  ;;  %v8274_v56 = vpop.permute.xlu0 %545  ;;  %v8297_v41 = vsel %vm643_vm1, %v713_v21, %v715_v52 }
 0x131   : > { %14792 = vst [vmem:[#allocation53_spill] sm:$0xff] %v8274_v56  ;;  %789 = vrot.lane.b32.xlu1 %v8265_v23, %s7520_s26  ;;  %v717_v56 = vrot.slane %v8023_v12, 2 }
 0x132   : > { %787 = vrot.lane.b32.xlu0 %v8272_v16, %s7520_s26 }
 0x133   : > { %v8285_v51 = vpop.permute.xlu1 %551  ;;  %v8320_v44 = vsel %vm643_vm1, %v715_v52, %v717_v56 }
 0x134   : > { %14793 = vst [vmem:[#allocation54_spill] sm:$0xff] %v8285_v51  ;;  %v8290_v35 = vpop.permute.xlu0 %549  ;;  %v8313_v51 = vsel %vm643_vm1, %v717_v56, %v719_v62 }
 0x135   : > { %14794 = vst [vmem:[#allocation55_spill] sm:$0xff] %v8290_v35  ;;  %793 = vrot.lane.b32.xlu1 %v8281_v33, %s7520_s26  ;;  %v721_v35 = vrot.slane %v8035_v22, 2 }
 0x136   : > { %791 = vrot.lane.b32.xlu0 %v8288_v26, %s7520_s26 }
 0x137   : > { %v8301_v59 = vpop.permute.xlu1 %555  ;;  %v8334_v27 = vsel %vm643_vm1, %v719_v62, %v721_v35 }
 0x138   : > { %14795 = vst [vmem:[#allocation56_spill] sm:$0xff] %v8301_v59  ;;  %v8306_v2 = vpop.permute.xlu0 %553  ;;  %v8329_v59 = vsel %vm643_vm1, %v721_v35, %v723_v13 }
 0x139   : > { %14796 = vst [vmem:[#allocation57_spill] sm:$0xff] %v8306_v2  ;;  %797 = vrot.lane.b32.xlu1 %v8297_v41, %s7520_s26 }
 0x13a   : > { %795 = vrot.lane.b32.xlu0 %v8304_v34, %s7520_s26 }
 0x13b   : > { %v8317_v12 = vpop.permute.xlu1 %559 }
 0x13c   : > { %14797 = vst [vmem:[#allocation58_spill] sm:$0xff] %v8317_v12  ;;  %v8322_v21 = vpop.permute.xlu0 %557  ;;  %v8337_v12 = vrot.slane %v8047_v38, 2 }
 0x13d   : > { %14798 = vst [vmem:[#allocation59_spill] sm:$0xff] %v8322_v21  ;;  %801 = vrot.lane.b32.xlu1 %v8313_v51, %s7520_s26 }
 0x13e   : > { %799 = vrot.lane.b32.xlu0 %v8320_v44, %s7520_s26  ;;  %v8349_v21 = vsel %vm643_vm1, %v723_v13, %v8337_v12 }
 0x13f   : > { %v8331_v2 = vpop.permute.xlu1 %563 }
 0x140   : > { %14799 = vst [vmem:[#allocation60_spill] sm:$0xff] %v8331_v2  ;;  %v8339_v52 = vpop.permute.xlu0 %561 }
 0x141   : > { %14800 = vst [vmem:[#allocation61_spill] sm:$0xff] %v8339_v52  ;;  %805 = vrot.lane.b32.xlu1 %v8329_v59, %s7520_s26 }
 0x142   : > { %803 = vrot.lane.b32.xlu0 %v8334_v27, %s7520_s26 }
 0x143   : > { %v8345_v56 = vpop.permute.xlu1 %567 }
 0x144   : > { %14801 = vst [vmem:[#allocation62_spill] sm:$0xff] %v8345_v56  ;;  %v8351_v2 = vpop.permute.xlu0 %565 }
 0x145   : > { %14802 = vst [vmem:[#allocation63_spill] sm:$0xff] %v8351_v2  ;;  %809 = vrot.lane.b32.xlu1 %v8337_v12, %s7520_s26  ;;  %v8768_v2 = vld [vmem:[%s7794_s15 + $0x40] sm:$0xff] }
 0x146   : > { %807 = vrot.lane.b32.xlu0 %v8349_v21, %s7520_s26 }
 0x147   : > { %v8357_v62 = vpop.permute.xlu1 %571 }
 0x148   : > { %14803 = vst [vmem:[#allocation64_spill] sm:$0xff] %v8357_v62  ;;  %v8359_v35 = vpop.permute.xlu0 %569 }
 0x149   : > { %14804 = vst [vmem:[#allocation65_spill] sm:$0xff] %v8359_v35  ;;  %861 = vrot.lane.b32.xlu1 %v8069_v0, %s7521_s27 }
 0x14a   : > { %859 = vrot.lane.b32.xlu0 %v8074_v3, %s7521_s27 }
 0x14b   : > { %v8365_v13 = vpop.permute.xlu1 %575 }
 0x14c   : > { %14805 = vst [vmem:[#allocation66_spill] sm:$0xff] %v8365_v13  ;;  %v8367_v56 = vpop.permute.xlu0 %573 }
 0x14d   : > { %14806 = vst [vmem:[#allocation67_spill] sm:$0xff] %v8367_v56  ;;  %865 = vrot.lane.b32.xlu1 %v8081_v4, %s7521_s27 }
 0x14e   : > { %863 = vrot.lane.b32.xlu0 %v8086_v17, %s7521_s27 }
 0x14f   : > { %v8373_v62 = vpop.permute.xlu1 %579 }
 0x150   : > { %14807 = vst [vmem:[#allocation68_spill] sm:$0xff] %v8373_v62  ;;  %v8375_v35 = vpop.permute.xlu0 %577 }
 0x151   : > { %14808 = vst [vmem:[#allocation69_spill] sm:$0xff] %v8375_v35  ;;  %869 = vrot.lane.b32.xlu1 %v8093_v20, %s7521_s27 }
 0x152   : > { %867 = vrot.lane.b32.xlu0 %v8098_v29, %s7521_s27 }
 0x153   : > { %v8381_v0 = vpop.permute.xlu1 %583 }
 0x154   : > { %14809 = vst [vmem:[#allocation70_spill] sm:$0xff] %v8381_v0  ;;  %v8383_v3 = vpop.permute.xlu0 %581 }
 0x155   : > { %14810 = vst [vmem:[#allocation71_spill] sm:$0xff] %v8383_v3  ;;  %873 = vrot.lane.b32.xlu1 %v8105_v32, %s7521_s27 }
 0x156   : > { %871 = vrot.lane.b32.xlu0 %v8110_v40, %s7521_s27 }
 0x157   : > { %v8389_v4 = vpop.permute.xlu1 %587 }
 0x158   : > { %14811 = vst [vmem:[#allocation72_spill] sm:$0xff] %v8389_v4  ;;  %v8391_v17 = vpop.permute.xlu0 %585 }
 0x159   : > { %14812 = vst [vmem:[#allocation73_spill] sm:$0xff] %v8391_v17  ;;  %877 = vrot.lane.b32.xlu1 %v8117_v45, %s7521_s27  ;;  %v999_v17 = vrot.slane %v7858_v25, 3 }
 0x15a   : > { %875 = vrot.lane.b32.xlu0 %v8122_v50, %s7521_s27 }
 0x15b   : > { %v8397_v20 = vpop.permute.xlu1 %591 }
 0x15c   : > { %14813 = vst [vmem:[#allocation74_spill] sm:$0xff] %v8397_v20  ;;  %v8399_v29 = vpop.permute.xlu0 %589 }
 0x15d   : > { %14814 = vst [vmem:[#allocation75_spill] sm:$0xff] %v8399_v29  ;;  %881 = vrot.lane.b32.xlu1 %v8129_v53, %s7521_s27  ;;  %v989_v29 = vrot.slane %v7829_v10, 3 }
 0x15e   : > { %879 = vrot.lane.b32.xlu0 %v8134_v58, %s7521_s27 }
 0x15f   : > { %v8405_v32 = vpop.permute.xlu1 %595 }
 0x160   : > { %14815 = vst [vmem:[#allocation76_spill] sm:$0xff] %v8405_v32  ;;  %v8407_v40 = vpop.permute.xlu0 %593 }
 0x161   : > { %14816 = vst [vmem:[#allocation77_spill] sm:$0xff] %v8407_v40  ;;  %885 = vrot.lane.b32.xlu1 %v8141_v63, %s7521_s27  ;;  %v986_v40 = vrot.slane %v7812_v1, 3 }
 0x162   : > { %883 = vrot.lane.b32.xlu0 %v8146_v9, %s7521_s27 }
 0x163   : > { %v8413_v45 = vpop.permute.xlu1 %599 }
 0x164   : > { %14817 = vst [vmem:[#allocation78_spill] sm:$0xff] %v8413_v45  ;;  %v8415_v50 = vpop.permute.xlu0 %597 }
 0x165   : > { %14818 = vst [vmem:[#allocation79_spill] sm:$0xff] %v8415_v50  ;;  %889 = vrot.lane.b32.xlu1 %v8153_v14, %s7521_s27  ;;  %v8510_v50 = vld [vmem:[%s7794_s15 + $0x158] sm:$0xff] }
 0x166   : > { %887 = vrot.lane.b32.xlu0 %v8160_v39, %s7521_s27 }
 0x167   : > { %v8421_v53 = vpop.permute.xlu1 %729 }
 0x168   : > { %14819 = vst [vmem:[#allocation80_spill] sm:$0xff] %v8421_v53  ;;  %v8423_v58 = vpop.permute.xlu0 %727 }
 0x169   : > { %14820 = vst [vmem:[#allocation81_spill] sm:$0xff] %v8423_v58  ;;  %893 = vrot.lane.b32.xlu1 %v8169_v47, %s7521_s27 }
 0x16a   : > { %891 = vrot.lane.b32.xlu0 %v8176_v57, %s7521_s27 }
 0x16b   : > { %v8429_v63 = vpop.permute.xlu1 %733 }
 0x16c   : > { %14821 = vst [vmem:[#allocation82_spill] sm:$0xff] %v8429_v63  ;;  %v8431_v9 = vpop.permute.xlu0 %731  ;;  %v9030_v63 = vld [vmem:[%s7794_s15 + $0x100] sm:$0xff] }
 0x16d   : > { %14822 = vst [vmem:[#allocation83_spill] sm:$0xff] %v8431_v9  ;;  %897 = vrot.lane.b32.xlu1 %v8185_v46, %s7521_s27  ;;  %v9026_v9 = vld [vmem:[%s7794_s15 + $0xf8] sm:$0xff]  ;;  %14945 = vst [vmem:[#allocation164_spill] sm:$0xff] %v9030_v63 }
 0x16e   : > { %895 = vrot.lane.b32.xlu0 %v8192_v5, %s7521_s27  ;;  %14944 = vst [vmem:[#allocation163_spill] sm:$0xff] %v9026_v9 }
 0x16f   : > { %v8437_v14 = vpop.permute.xlu1 %737 }
 0x170   : > { %14823 = vst [vmem:[#allocation84_spill] sm:$0xff] %v8437_v14  ;;  %v8439_v39 = vpop.permute.xlu0 %735 }
 0x171   : > { %14824 = vst [vmem:[#allocation85_spill] sm:$0xff] %v8439_v39  ;;  %901 = vrot.lane.b32.xlu1 %v8201_v54, %s7521_s27 }
 0x172   : > { %899 = vrot.lane.b32.xlu0 %v8208_v28, %s7521_s27 }
 0x173   : > { %v8445_v47 = vpop.permute.xlu1 %741 }
 0x174   : > { %14825 = vst [vmem:[#allocation86_spill] sm:$0xff] %v8445_v47  ;;  %v8447_v57 = vpop.permute.xlu0 %739 }
 0x175   : > { %14826 = vst [vmem:[#allocation87_spill] sm:$0xff] %v8447_v57  ;;  %905 = vrot.lane.b32.xlu1 %v8217_v60, %s7521_s27 }
 0x176   : > { %903 = vrot.lane.b32.xlu0 %v8224_v55, %s7521_s27 }
 0x177   : > { %v8453_v46 = vpop.permute.xlu1 %745 }
 0x178   : > { %14827 = vst [vmem:[#allocation88_spill] sm:$0xff] %v8453_v46  ;;  %v8455_v5 = vpop.permute.xlu0 %743 }
 0x179   : > { %14828 = vst [vmem:[#allocation89_spill] sm:$0xff] %v8455_v5  ;;  %909 = vrot.lane.b32.xlu1 %v8233_v6, %s7521_s27 }
 0x17a   : > { %907 = vrot.lane.b32.xlu0 %v8240_v61, %s7521_s27 }
 0x17b   : > { %v8461_v54 = vpop.permute.xlu1 %749 }
 0x17c   : > { %14829 = vst [vmem:[#allocation90_spill] sm:$0xff] %v8461_v54  ;;  %v8463_v28 = vpop.permute.xlu0 %747  ;;  %v8920_v54 = vld [vmem:[%s7794_s15 + $0xb0] sm:$0xff] }
 0x17d   : > { %14830 = vst [vmem:[#allocation91_spill] sm:$0xff] %v8463_v28  ;;  %913 = vrot.lane.b32.xlu1 %v8249_v15, %s7521_s27  ;;  %14925 = vst [vmem:[#allocation144_spill] sm:$0xff] %v8920_v54 }
 0x17e   : > { %911 = vrot.lane.b32.xlu0 %v8256_v8, %s7521_s27 }
 0x17f   : > { %v8469_v60 = vpop.permute.xlu1 %753 }
 0x180   : > { %14831 = vst [vmem:[#allocation92_spill] sm:$0xff] %v8469_v60  ;;  %v8471_v55 = vpop.permute.xlu0 %751  ;;  %v8898_v60 = vld [vmem:[%s7794_s15 + $0xa0] sm:$0xff] }
 0x181   : > { %14832 = vst [vmem:[#allocation93_spill] sm:$0xff] %v8471_v55  ;;  %917 = vrot.lane.b32.xlu1 %v8265_v23, %s7521_s27 }
 0x182   : > { %915 = vrot.lane.b32.xlu0 %v8272_v16, %s7521_s27  ;;  %v8496_v16 = vld [vmem:[%s7794_s15 + $0x150] sm:$0xff] }
 0x183   : > { %v8477_v6 = vpop.permute.xlu1 %757 }
 0x184   : > { %14833 = vst [vmem:[#allocation94_spill] sm:$0xff] %v8477_v6  ;;  %v8479_v61 = vpop.permute.xlu0 %755  ;;  %v8876_v6 = vld [vmem:[%s7794_s15 + $0x90] sm:$0xff] }
 0x185   : > { %14834 = vst [vmem:[#allocation95_spill] sm:$0xff] %v8479_v61  ;;  %921 = vrot.lane.b32.xlu1 %v8281_v33, %s7521_s27  ;;  %v855_v33 = vrot.slane %v8496_v16, 2 }
 0x186   : > { %919 = vrot.lane.b32.xlu0 %v8288_v26, %s7521_s27 }
 0x187   : > { %v8485_v15 = vpop.permute.xlu1 %761 }
 0x188   : > { %14835 = vst [vmem:[#allocation96_spill] sm:$0xff] %v8485_v15  ;;  %v8487_v8 = vpop.permute.xlu0 %759  ;;  %v8854_v15 = vld [vmem:[%s7794_s15 + $0x80] sm:$0xff] }
 0x189   : > { %14836 = vst [vmem:[#allocation97_spill] sm:$0xff] %v8487_v8  ;;  %925 = vrot.lane.b32.xlu1 %v8297_v41, %s7521_s27 }
 0x18a   : > { %923 = vrot.lane.b32.xlu0 %v8304_v34, %s7521_s27 }
 0x18b   : > { %v8493_v23 = vpop.permute.xlu1 %765 }
 0x18c   : > { %14837 = vst [vmem:[#allocation98_spill] sm:$0xff] %v8493_v23  ;;  %v8498_v45 = vpop.permute.xlu0 %763  ;;  %v8832_v23 = vld [vmem:[%s7794_s15 + $0x70] sm:$0xff] }
 0x18d   : > { %14838 = vst [vmem:[#allocation99_spill] sm:$0xff] %v8498_v45  ;;  %929 = vrot.lane.b32.xlu1 %v8313_v51, %s7521_s27  ;;  %v856_v51 = vsel %vm643_vm1, %v8337_v12, %v855_v33 }
 0x18e   : > { %927 = vrot.lane.b32.xlu0 %v8320_v44, %s7521_s27  ;;  %v857_v44 = vrot.slane %v8510_v50, 2 }
 0x18f   : > { %v8505_v26 = vpop.permute.xlu1 %769 }
 0x190   : > { %14839 = vst [vmem:[#allocation100_spill] sm:$0xff] %v8505_v26  ;;  %v8507_v41 = vpop.permute.xlu0 %767  ;;  %v8810_v26 = vld [vmem:[%s7794_s15 + $0x60] sm:$0xff] }
 0x191   : > { %14840 = vst [vmem:[#allocation101_spill] sm:$0xff] %v8507_v41  ;;  %933 = vrot.lane.b32.xlu1 %v8329_v59, %s7521_s27  ;;  %v987_v59 = vrot.slane %v7824_v7, 3 }
 0x192   : > { %931 = vrot.lane.b32.xlu0 %v8334_v27, %s7521_s27  ;;  %v858_v27 = vsel %vm643_vm1, %v855_v33, %v857_v44 }
 0x193   : > { %v8518_v34 = vpop.permute.xlu1 %773  ;;  %v990_v10 = vsel %vm985_vm2, %v987_v59, %v989_v29 }
 0x194   : > { %14841 = vst [vmem:[#allocation102_spill] sm:$0xff] %v8518_v34  ;;  %v8521_v32 = vpop.permute.xlu0 %771  ;;  %v8784_v34 = vld [vmem:[%s7794_s15 + $0x48] sm:$0xff] }
 0x195   : > { %14842 = vst [vmem:[#allocation103_spill] sm:$0xff] %v8521_v32  ;;  %937 = vrot.lane.b32.xlu1 %v856_v51, %s7521_s27  ;;  %v988_v51 = vsel %vm985_vm2, %v986_v40, %v987_v59  ;;  %v1001_v59 = vrot.slane %v7867_v30, 3 }
 0x196   : > { %935 = vrot.lane.b32.xlu0 %v8349_v21, %s7521_s27  ;;  %v991_v21 = vrot.slane %v7832_v11, 3 }
 0x197   : > { %v8528_v20 = vpop.permute.xlu1 %777  ;;  %v1002_v30 = vsel %vm985_vm2, %v999_v17, %v1001_v59 }
 0x198   : > { %14843 = vst [vmem:[#allocation104_spill] sm:$0xff] %v8528_v20  ;;  %v8531_v12 = vpop.permute.xlu0 %775  ;;  %v992_v33 = vsel %vm985_vm2, %v989_v29, %v991_v21 }
 0x199   : > { %14844 = vst [vmem:[#allocation105_spill] sm:$0xff] %v8531_v12  ;;  %941 = vrot.lane.b32.xlu1 %v857_v44, %s7521_s27  ;;  %v993_v44 = vrot.slane %v7843_v18, 3 }
 0x19a   : > { %939 = vrot.lane.b32.xlu0 %v858_v27, %s7521_s27  ;;  %v995_v27 = vrot.slane %v7846_v19, 3 }
 0x19b   : > { %v8538_v1 = vpop.permute.xlu1 %781  ;;  %v994_v18 = vsel %vm985_vm2, %v991_v21, %v993_v44 }
 0x19c   : > { %14845 = vst [vmem:[#allocation106_spill] sm:$0xff] %v8538_v1  ;;  %v8540_v7 = vpop.permute.xlu0 %779 }
 0x19d   : > { %14846 = vst [vmem:[#allocation107_spill] sm:$0xff] %v8540_v7  ;;  %1069 = vrot.lane.b32.xlu1 %v988_v51, %s7522_s12  ;;  %v996_v51 = vsel %vm985_vm2, %v993_v44, %v995_v27  ;;  %v1005_v44 = vrot.slane %v7879_v36, 3 }
 0x19e   : > { %1067 = vrot.lane.b32.xlu0 %v986_v40, %s7522_s12  ;;  %v997_v40 = vrot.slane %v7855_v24, 3 }
 0x19f   : > { %v8547_v4 = vpop.permute.xlu1 %785 }
 0x1a0   : > { %14847 = vst [vmem:[#allocation108_spill] sm:$0xff] %v8547_v4  ;;  %v8550_v11 = vpop.permute.xlu0 %783  ;;  %v1000_v29 = vsel %vm985_vm2, %v997_v40, %v999_v17  ;;  %v998_v24 = vsel %vm985_vm2, %v995_v27, %v997_v40  ;;  %v1009_v40 = vrot.slane %v7891_v42, 3 }
 0x1a1   : > { %14848 = vst [vmem:[#allocation109_spill] sm:$0xff] %v8550_v11  ;;  %1073 = vrot.lane.b32.xlu1 %v992_v33, %s7522_s12  ;;  %v1003_v33 = vrot.slane %v7870_v31, 3 }
 0x1a2   : > { %1071 = vrot.lane.b32.xlu0 %v990_v10, %s7522_s12 }
 0x1a3   : > { %v8557_v0 = vpop.permute.xlu1 %789  ;;  %v1004_v21 = vsel %vm985_vm2, %v1001_v59, %v1003_v33  ;;  %v1006_v36 = vsel %vm985_vm2, %v1003_v33, %v1005_v44  ;;  %v1013_v59 = vrot.slane %v7903_v48, 3 }
 0x1a4   : > { %14849 = vst [vmem:[#allocation110_spill] sm:$0xff] %v8557_v0  ;;  %v8560_v19 = vpop.permute.xlu0 %787 }
 0x1a5   : > { %14850 = vst [vmem:[#allocation111_spill] sm:$0xff] %v8560_v19  ;;  %1077 = vrot.lane.b32.xlu1 %v996_v51, %s7522_s12  ;;  %v1007_v51 = vrot.slane %v7882_v37, 3 }
 0x1a6   : > { %1075 = vrot.lane.b32.xlu0 %v994_v18, %s7522_s12 }
 0x1a7   : > { %v8567_v10 = vpop.permute.xlu1 %793  ;;  %v1008_v27 = vsel %vm985_vm2, %v1005_v44, %v1007_v51  ;;  %v1010_v42 = vsel %vm985_vm2, %v1007_v51, %v1009_v40  ;;  %v14859_v44 = vld [vmem:[#allocation17_spill] sm:$0xff] }
 0x1a8   : > { %14851 = vst [vmem:[#allocation112_spill] sm:$0xff] %v8567_v10  ;;  %v8570_v25 = vpop.permute.xlu0 %791 }
 0x1a9   : > { %14852 = vst [vmem:[#allocation113_spill] sm:$0xff] %v8570_v25  ;;  %1081 = vrot.lane.b32.xlu1 %v1000_v29, %s7522_s12  ;;  %v1011_v29 = vrot.slane %v7894_v43, 3 }
 0x1aa   : > { %1079 = vrot.lane.b32.xlu0 %v998_v24, %s7522_s12 }
 0x1ab   : > { %v8577_v18 = vpop.permute.xlu1 %797  ;;  %v1012_v17 = vsel %vm985_vm2, %v1009_v40, %v1011_v29  ;;  %v1014_v48 = vsel %vm985_vm2, %v1011_v29, %v1013_v59  ;;  %v14863_v40 = vld [vmem:[#allocation19_spill] sm:$0xff] }
 0x1ac   : > { %14853 = vst [vmem:[#allocation114_spill] sm:$0xff] %v8577_v18  ;;  %v8580_v31 = vpop.permute.xlu0 %795 }
 0x1ad   : > { %14854 = vst [vmem:[#allocation115_spill] sm:$0xff] %v8580_v31  ;;  %1085 = vrot.lane.b32.xlu1 %v1004_v21, %s7522_s12  ;;  %v1015_v21 = vrot.slane %v7906_v49, 3 }
 0x1ae   : > { %1083 = vrot.lane.b32.xlu0 %v1002_v30, %s7522_s12 }
 0x1af   : > { %v8587_v24 = vpop.permute.xlu1 %801  ;;  %v1016_v33 = vsel %vm985_vm2, %v1013_v59, %v1015_v21  ;;  %v14867_v59 = vld [vmem:[#allocation21_spill] sm:$0xff] }
 0x1b0   : > { %14855 = vst [vmem:[#allocation116_spill] sm:$0xff] %v8587_v24  ;;  %v8590_v37 = vpop.permute.xlu0 %799 }
 0x1b1   : > { %14856 = vst [vmem:[#allocation117_spill] sm:$0xff] %v8590_v37  ;;  %1089 = vrot.lane.b32.xlu1 %v1008_v27, %s7522_s12  ;;  %v1017_v27 = vrot.slane %v14859_v44, 3 }
 0x1b2   : > { %1087 = vrot.lane.b32.xlu0 %v1006_v36, %s7522_s12  ;;  %v14860_v36 = vld [vmem:[#allocation18_spill] sm:$0xff] }
 0x1b3   : > { %v8597_v30 = vpop.permute.xlu1 %805  ;;  %v1019_v24 = vrot.slane %v14860_v36, 3  ;;  %v1018_v44 = vsel %vm985_vm2, %v1015_v21, %v1017_v27 }
 0x1b4   : > { %14857 = vst [vmem:[#allocation118_spill] sm:$0xff] %v8597_v30  ;;  %v8600_v43 = vpop.permute.xlu0 %803 }
 0x1b5   : > { %14858 = vst [vmem:[#allocation119_spill] sm:$0xff] %v8600_v43  ;;  %1093 = vrot.lane.b32.xlu1 %v1012_v17, %s7522_s12  ;;  %v1020_v51 = vsel %vm985_vm2, %v1017_v27, %v1019_v24  ;;  %v1021_v17 = vrot.slane %v14863_v40, 3  ;;  %v14871_v27 = vld [vmem:[#allocation23_spill] sm:$0xff] }
 0x1b6   : > { %1091 = vrot.lane.b32.xlu0 %v1010_v42, %s7522_s12  ;;  %v14864_v42 = vld [vmem:[#allocation20_spill] sm:$0xff] }
 0x1b7   : > { %v8607_v37 = vpop.permute.xlu1 %809  ;;  %v1023_v30 = vrot.slane %v14864_v42, 3  ;;  %v1022_v40 = vsel %vm985_vm2, %v1019_v24, %v1021_v17 }
 0x1b8   : > { %14861 = vst [vmem:[#allocation17_spill] sm:$0xff] %v8607_v37  ;;  %v8610_v49 = vpop.permute.xlu0 %807 }
 0x1b9   : > { %14862 = vst [vmem:[#allocation18_spill] sm:$0xff] %v8610_v49  ;;  %1097 = vrot.lane.b32.xlu1 %v1016_v33, %s7522_s12  ;;  %v1024_v29 = vsel %vm985_vm2, %v1021_v17, %v1023_v30  ;;  %v1025_v33 = vrot.slane %v14867_v59, 3  ;;  %v14875_v17 = vld [vmem:[#allocation25_spill] sm:$0xff] }
 0x1ba   : > { %1095 = vrot.lane.b32.xlu0 %v1014_v48, %s7522_s12  ;;  %v14868_v48 = vld [vmem:[#allocation22_spill] sm:$0xff] }
 0x1bb   : > { %v8617_v43 = vpop.permute.xlu1 %861  ;;  %v1027_v37 = vrot.slane %v14868_v48, 3  ;;  %v1026_v59 = vsel %vm985_vm2, %v1023_v30, %v1025_v33 }
 0x1bc   : > { %14865 = vst [vmem:[#allocation19_spill] sm:$0xff] %v8617_v43  ;;  %v8620_v36 = vpop.permute.xlu0 %859 }
 0x1bd   : > { %14866 = vst [vmem:[#allocation20_spill] sm:$0xff] %v8620_v36  ;;  %1101 = vrot.lane.b32.xlu1 %v1020_v51, %s7522_s12  ;;  %v1028_v21 = vsel %vm985_vm2, %v1025_v33, %v1027_v37  ;;  %v1029_v51 = vrot.slane %v14871_v27, 3  ;;  %v14879_v33 = vld [vmem:[#allocation27_spill] sm:$0xff] }
 0x1be   : > { %1099 = vrot.lane.b32.xlu0 %v1018_v44, %s7522_s12  ;;  %v14872_v44 = vld [vmem:[#allocation24_spill] sm:$0xff] }
 0x1bf   : > { %v8627_v49 = vpop.permute.xlu1 %865  ;;  %v1031_v18 = vrot.slane %v14872_v44, 3  ;;  %v1030_v27 = vsel %vm985_vm2, %v1027_v37, %v1029_v51 }
 0x1c0   : > { %14869 = vst [vmem:[#allocation21_spill] sm:$0xff] %v8627_v49  ;;  %v8630_v42 = vpop.permute.xlu0 %863  ;;  %v9008_v49 = vld [vmem:[%s7794_s15 + $0xf0] sm:$0xff] }
 0x1c1   : > { %14870 = vst [vmem:[#allocation22_spill] sm:$0xff] %v8630_v42  ;;  %1105 = vrot.lane.b32.xlu1 %v1024_v29, %s7522_s12  ;;  %v1032_v24 = vsel %vm985_vm2, %v1029_v51, %v1031_v18  ;;  %v1033_v29 = vrot.slane %v14875_v17, 3  ;;  %v14883_v51 = vld [vmem:[#allocation29_spill] sm:$0xff]  ;;  %14941 = vst [vmem:[#allocation160_spill] sm:$0xff] %v9008_v49 }
 0x1c2   : > { %1103 = vrot.lane.b32.xlu0 %v1022_v40, %s7522_s12  ;;  %v14876_v40 = vld [vmem:[#allocation26_spill] sm:$0xff] }
 0x1c3   : > { %v8637_v31 = vpop.permute.xlu1 %869  ;;  %v1035_v10 = vrot.slane %v14876_v40, 3  ;;  %v1034_v17 = vsel %vm985_vm2, %v1031_v18, %v1033_v29  ;;  %v9004_v42 = vld [vmem:[%s7794_s15 + $0xe8] sm:$0xff] }
 0x1c4   : > { %14873 = vst [vmem:[#allocation23_spill] sm:$0xff] %v8637_v31  ;;  %v8640_v48 = vpop.permute.xlu0 %867  ;;  %v8964_v31 = vld [vmem:[%s7794_s15 + $0xd0] sm:$0xff]  ;;  %14940 = vst [vmem:[#allocation159_spill] sm:$0xff] %v9004_v42 }
 0x1c5   : > { %14874 = vst [vmem:[#allocation24_spill] sm:$0xff] %v8640_v48  ;;  %1109 = vrot.lane.b32.xlu1 %v1028_v21, %s7522_s12  ;;  %v1036_v30 = vsel %vm985_vm2, %v1033_v29, %v1035_v10  ;;  %v1037_v21 = vrot.slane %v14879_v33, 3  ;;  %v14887_v29 = vld [vmem:[#allocation31_spill] sm:$0xff]  ;;  %14933 = vst [vmem:[#allocation152_spill] sm:$0xff] %v8964_v31 }
 0x1c6   : > { %1107 = vrot.lane.b32.xlu0 %v1026_v59, %s7522_s12  ;;  %v14880_v59 = vld [vmem:[#allocation28_spill] sm:$0xff] }
 0x1c7   : > { %v8647_v25 = vpop.permute.xlu1 %873  ;;  %v1039_v3 = vrot.slane %v14880_v59, 3  ;;  %v1038_v33 = vsel %vm985_vm2, %v1035_v10, %v1037_v21 }
 0x1c8   : > { %14877 = vst [vmem:[#allocation25_spill] sm:$0xff] %v8647_v25  ;;  %v8650_v44 = vpop.permute.xlu0 %871 }
 0x1c9   : > { %14878 = vst [vmem:[#allocation26_spill] sm:$0xff] %v8650_v44  ;;  %1113 = vrot.lane.b32.xlu1 %v1032_v24, %s7522_s12  ;;  %v1040_v37 = vsel %vm985_vm2, %v1037_v21, %v1039_v3  ;;  %v1041_v24 = vrot.slane %v14883_v51, 3  ;;  %v14891_v21 = vld [vmem:[#allocation33_spill] sm:$0xff] }
 0x1ca   : > { %1111 = vrot.lane.b32.xlu0 %v1030_v27, %s7522_s12  ;;  %v14884_v27 = vld [vmem:[#allocation30_spill] sm:$0xff] }
 0x1cb   : > { %v8657_v0 = vpop.permute.xlu1 %877  ;;  %v1043_v62 = vrot.slane %v14884_v27, 3  ;;  %v1042_v51 = vsel %vm985_vm2, %v1039_v3, %v1041_v24  ;;  %v8960_v44 = vld [vmem:[%s7794_s15 + $0xc8] sm:$0xff] }
 0x1cc   : > { %14881 = vst [vmem:[#allocation27_spill] sm:$0xff] %v8657_v0  ;;  %v8660_v40 = vpop.permute.xlu0 %875  ;;  %v8938_v0 = vld [vmem:[%s7794_s15 + $0xb8] sm:$0xff]  ;;  %14932 = vst [vmem:[#allocation151_spill] sm:$0xff] %v8960_v44  ;;  %v1237_v57 = vrot.slane %v8960_v44, 4 }
 0x1cd   : > { %14882 = vst [vmem:[#allocation28_spill] sm:$0xff] %v8660_v40  ;;  %1117 = vrot.lane.b32.xlu1 %v1036_v30, %s7522_s12  ;;  %v1044_v18 = vsel %vm985_vm2, %v1041_v24, %v1043_v62  ;;  %v1045_v30 = vrot.slane %v14887_v29, 3  ;;  %v14895_v24 = vld [vmem:[#allocation35_spill] sm:$0xff]  ;;  %14928 = vst [vmem:[#allocation147_spill] sm:$0xff] %v8938_v0  ;;  %v1233_v46 = vrot.slane %v8938_v0, 4  ;;  %v8942_v40 = vld [vmem:[%s7794_s15 + $0xc0] sm:$0xff] }
 0x1ce   : > { %1115 = vrot.lane.b32.xlu0 %v1034_v17, %s7522_s12  ;;  %v14888_v17 = vld [vmem:[#allocation32_spill] sm:$0xff]  ;;  %14929 = vst [vmem:[#allocation148_spill] sm:$0xff] %v8942_v40 }
 0x1cf   : > { %v8667_v19 = vpop.permute.xlu1 %881  ;;  %v1047_v35 = vrot.slane %v14888_v17, 3  ;;  %v1046_v29 = vsel %vm985_vm2, %v1043_v62, %v1045_v30  ;;  %v9114_v44 = vld [vmem:[%s7794_s15 + $0x138] sm:$0xff] }
 0x1d0   : > { %14885 = vst [vmem:[#allocation29_spill] sm:$0xff] %v8667_v19  ;;  %v8670_v59 = vpop.permute.xlu0 %879  ;;  %v8916_v19 = vld [vmem:[%s7794_s15 + $0xa8] sm:$0xff]  ;;  %14960 = vst [vmem:[#allocation179_spill] sm:$0xff] %v9114_v44 }
 0x1d1   : > { %14886 = vst [vmem:[#allocation30_spill] sm:$0xff] %v8670_v59  ;;  %1121 = vrot.lane.b32.xlu1 %v1040_v37, %s7522_s12  ;;  %v1048_v10 = vsel %vm985_vm2, %v1045_v30, %v1047_v35  ;;  %v1049_v37 = vrot.slane %v14891_v21, 3  ;;  %v1057_v30 = vrot.slane %v8035_v22, 3  ;;  %v1063_v22 = vrot.slane %v8496_v16, 3  ;;  %14924 = vst [vmem:[#allocation143_spill] sm:$0xff] %v8916_v19 }
 0x1d2   : > { %1119 = vrot.lane.b32.xlu0 %v1038_v33, %s7522_s12  ;;  %v14892_v33 = vld [vmem:[#allocation34_spill] sm:$0xff] }
 0x1d3   : > { %v8677_v4 = vpop.permute.xlu1 %885  ;;  %v1051_v13 = vrot.slane %v14892_v33, 3  ;;  %v1050_v21 = vsel %vm985_vm2, %v1047_v35, %v1049_v37 }
 0x1d4   : > { %14889 = vst [vmem:[#allocation31_spill] sm:$0xff] %v8677_v4  ;;  %v8680_v27 = vpop.permute.xlu0 %883  ;;  %v8894_v4 = vld [vmem:[%s7794_s15 + $0x98] sm:$0xff] }
 0x1d5   : > { %14890 = vst [vmem:[#allocation32_spill] sm:$0xff] %v8680_v27  ;;  %1125 = vrot.lane.b32.xlu1 %v1044_v18, %s7522_s12  ;;  %v1052_v3 = vsel %vm985_vm2, %v1049_v37, %v1051_v13  ;;  %v1053_v18 = vrot.slane %v14895_v24, 3  ;;  %v1061_v37 = vrot.slane %v8047_v38, 3  ;;  %v1065_v38 = vrot.slane %v8510_v50, 3 }
 0x1d6   : > { %1123 = vrot.lane.b32.xlu0 %v1042_v51, %s7522_s12  ;;  %v14896_v51 = vld [vmem:[#allocation36_spill] sm:$0xff] }
 0x1d7   : > { %v8687_v11 = vpop.permute.xlu1 %889  ;;  %v1055_v56 = vrot.slane %v14896_v51, 3  ;;  %v1054_v24 = vsel %vm985_vm2, %v1051_v13, %v1053_v18  ;;  %v1064_v13 = vsel %vm985_vm2, %v1061_v37, %v1063_v22  ;;  %v1066_v12 = vsel %vm985_vm2, %v1063_v22, %v1065_v38 }
 0x1d8   : > { %14893 = vst [vmem:[#allocation33_spill] sm:$0xff] %v8687_v11  ;;  %v8690_v17 = vpop.permute.xlu0 %887  ;;  %v8872_v11 = vld [vmem:[%s7794_s15 + $0x88] sm:$0xff] }
 0x1d9   : > { %14894 = vst [vmem:[#allocation34_spill] sm:$0xff] %v8690_v17  ;;  %1129 = vrot.lane.b32.xlu1 %v1048_v10, %s7522_s12  ;;  %v1056_v62 = vsel %vm985_vm2, %v1053_v18, %v1055_v56  ;;  %v14899_v10 = vld [vmem:[#allocation37_spill] sm:$0xff] }
 0x1da   : > { %1127 = vrot.lane.b32.xlu0 %v1046_v29, %s7522_s12  ;;  %v1059_v29 = vrot.slane %v14899_v10, 3 }
 0x1db   : > { %v8697_v1 = vpop.permute.xlu1 %893 }
 0x1dc   : > { %14897 = vst [vmem:[#allocation35_spill] sm:$0xff] %v8697_v1  ;;  %v8700_v33 = vpop.permute.xlu0 %891  ;;  %v1060_v35 = vsel %vm985_vm2, %v1057_v30, %v1059_v29  ;;  %v8850_v1 = vld [vmem:[%s7794_s15 + $0x78] sm:$0xff] }
 0x1dd   : > { %14898 = vst [vmem:[#allocation36_spill] sm:$0xff] %v8700_v33  ;;  %1133 = vrot.lane.b32.xlu1 %v1052_v3, %s7522_s12 }
 0x1de   : > { %1131 = vrot.lane.b32.xlu0 %v1050_v21, %s7522_s12  ;;  %v1058_v21 = vsel %vm985_vm2, %v1055_v56, %v1057_v30  ;;  %v7168_v56 = vld [vmem:[%s7794_s15 + $0x18] sm:$0xff] }
 0x1df   : > { %v8707_v7 = vpop.permute.xlu1 %897  ;;  %v1194_v30 = vrot.slane %v7168_v56, 4  ;;  %v8750_v56 = vld [vmem:[%s7794_s15 + $0x30] sm:$0xff] }
 0x1e0   : > { %14900 = vst [vmem:[#allocation37_spill] sm:$0xff] %v8707_v7  ;;  %v8710_v51 = vpop.permute.xlu0 %895  ;;  %v1199_v22 = vrot.slane %v8750_v56, 4  ;;  %v8828_v7 = vld [vmem:[%s7794_s15 + $0x68] sm:$0xff] }
 0x1e1   : > { %14901 = vst [vmem:[#allocation120_spill] sm:$0xff] %v8710_v51  ;;  %1137 = vrot.lane.b32.xlu1 %v1056_v62, %s7522_s12  ;;  %v1062_v62 = vsel %vm985_vm2, %v1059_v29, %v1061_v37 }
 0x1e2   : > { %1135 = vrot.lane.b32.xlu0 %v1054_v24, %s7522_s12 }
 0x1e3   : > { %v8717_v3 = vpop.permute.xlu1 %901 }
 0x1e4   : > { %14902 = vst [vmem:[#allocation121_spill] sm:$0xff] %v8717_v3  ;;  %v8720_v10 = vpop.permute.xlu0 %899  ;;  %v8806_v3 = vld [vmem:[%s7794_s15 + $0x58] sm:$0xff] }
 0x1e5   : > { %14903 = vst [vmem:[#allocation122_spill] sm:$0xff] %v8720_v10  ;;  %1141 = vrot.lane.b32.xlu1 %v1060_v35, %s7522_s12  ;;  %v7169_v35 = vld [vmem:[%s7794_s15 + $0x20] sm:$0xff] }
 0x1e6   : > { %1139 = vrot.lane.b32.xlu0 %v1058_v21, %s7522_s12  ;;  %v1195_v21 = vrot.slane %v7169_v35, 4 }
 0x1e7   : > { %v8725_v18 = vpop.permute.xlu1 %905 }
 0x1e8   : > { %14904 = vst [vmem:[#allocation123_spill] sm:$0xff] %v8725_v18  ;;  %v8729_v24 = vpop.permute.xlu0 %903  ;;  %v1196_v37 = vsel %vm1193_vm3, %v1194_v30, %v1195_v21 }
 0x1e9   : > { %14905 = vst [vmem:[#allocation124_spill] sm:$0xff] %v8729_v24  ;;  %1145 = vrot.lane.b32.xlu1 %v1064_v13, %s7522_s12  ;;  %v8744_v13 = vld [vmem:[%s7794_s15 + $0x28] sm:$0xff]  ;;  %v1205_v24 = vrot.slane %v8784_v34, 4 }
 0x1ea   : > { %1143 = vrot.lane.b32.xlu0 %v1062_v62, %s7522_s12  ;;  %v8747_v62 = vrot.slane %v8744_v13, 4 }
 0x1eb   : > { %v8735_v20 = vpop.permute.xlu1 %909 }
 0x1ec   : > { %14906 = vst [vmem:[#allocation125_spill] sm:$0xff] %v8735_v20  ;;  %v8738_v29 = vpop.permute.xlu0 %907 }
 0x1ed   : > { %14907 = vst [vmem:[#allocation126_spill] sm:$0xff] %v8738_v29  ;;  %1149 = vrot.lane.b32.xlu1 %v1065_v38, %s7522_s12  ;;  %v8764_v38 = vld [vmem:[%s7794_s15 + $0x38] sm:$0xff] }
 0x1ee   : > { %1147 = vrot.lane.b32.xlu0 %v1066_v12, %s7522_s12  ;;  %v8761_v12 = vsel %vm1193_vm3, %v8747_v62, %v1199_v22  ;;  %v1201_v29 = vrot.slane %v8764_v38, 4 }
 0x1ef   : > { %v8753_v35 = vpop.permute.xlu1 %913 }
 0x1f0   : > { %14908 = vst [vmem:[#allocation127_spill] sm:$0xff] %v8753_v35  ;;  %v8755_v20 = vpop.permute.xlu0 %911  ;;  %v1203_v35 = vrot.slane %v8768_v2, 4 }
 0x1f1   : > { %14909 = vst [vmem:[#allocation128_spill] sm:$0xff] %v8755_v20  ;;  %1277 = vrot.lane.b32.xlu1 %v1196_v37, %s7523_s8  ;;  %v1198_v37 = vsel %vm1193_vm3, %v1195_v21, %v8747_v62 }
 0x1f2   : > { %1275 = vrot.lane.b32.xlu0 %v1194_v30, %s7523_s8  ;;  %v8781_v30 = vsel %vm1193_vm3, %v1201_v29, %v1203_v35 }
 0x1f3   : > { %v8771_v18 = vpop.permute.xlu1 %917 }
 0x1f4   : > { %14910 = vst [vmem:[#allocation129_spill] sm:$0xff] %v8771_v18  ;;  %v8775_v20 = vpop.permute.xlu0 %915  ;;  %v8788_v18 = vld [vmem:[%s7794_s15 + $0x50] sm:$0xff] }
 0x1f5   : > { %14911 = vst [vmem:[#allocation130_spill] sm:$0xff] %v8775_v20  ;;  %1281 = vrot.lane.b32.xlu1 %v8761_v12, %s7523_s8  ;;  %v1207_v32 = vrot.slane %v8788_v18, 4  ;;  %v8794_v20 = vsel %vm1193_vm3, %v1199_v22, %v1201_v29  ;;  %v1211_v29 = vrot.slane %v8810_v26, 4 }
 0x1f6   : > { %1279 = vrot.lane.b32.xlu0 %v1198_v37, %s7523_s8 }
 0x1f7   : > { %v8791_v21 = vpop.permute.xlu1 %921  ;;  %v8803_v37 = vsel %vm1193_vm3, %v1205_v24, %v1207_v32 }
 0x1f8   : > { %14912 = vst [vmem:[#allocation131_spill] sm:$0xff] %v8791_v21  ;;  %v8796_v52 = vpop.permute.xlu0 %919  ;;  %v1209_v21 = vrot.slane %v8806_v3, 4 }
 0x1f9   : > { %14913 = vst [vmem:[#allocation132_spill] sm:$0xff] %v8796_v52  ;;  %1285 = vrot.lane.b32.xlu1 %v8781_v30, %s7523_s8  ;;  %v8816_v52 = vsel %vm1193_vm3, %v1203_v35, %v1205_v24  ;;  %v1215_v24 = vrot.slane %v8832_v23, 4 }
 0x1fa   : > { %1283 = vrot.lane.b32.xlu0 %v8794_v20, %s7523_s8  ;;  %v8825_v41 = vsel %vm1193_vm3, %v1209_v21, %v1211_v29 }
 0x1fb   : > { %v8813_v22 = vpop.permute.xlu1 %925 }
 0x1fc   : > { %14914 = vst [vmem:[#allocation133_spill] sm:$0xff] %v8813_v22  ;;  %v8818_v10 = vpop.permute.xlu0 %923  ;;  %v1213_v22 = vrot.slane %v8828_v7, 4 }
 0x1fd   : > { %14915 = vst [vmem:[#allocation134_spill] sm:$0xff] %v8818_v10  ;;  %1289 = vrot.lane.b32.xlu1 %v8803_v37, %s7523_s8  ;;  %v8838_v10 = vsel %vm1193_vm3, %v1207_v32, %v1209_v21  ;;  %v1219_v32 = vrot.slane %v8854_v15, 4 }
 0x1fe   : > { %1287 = vrot.lane.b32.xlu0 %v8816_v52, %s7523_s8  ;;  %v8847_v45 = vsel %vm1193_vm3, %v1213_v22, %v1215_v24 }
 0x1ff   : > { %v8835_v35 = vpop.permute.xlu1 %929 }
 0x200   : > { %14916 = vst [vmem:[#allocation135_spill] sm:$0xff] %v8835_v35  ;;  %v8840_v51 = vpop.permute.xlu0 %927  ;;  %v1217_v35 = vrot.slane %v8850_v1, 4 }
 0x201   : > { %14917 = vst [vmem:[#allocation136_spill] sm:$0xff] %v8840_v51  ;;  %1293 = vrot.lane.b32.xlu1 %v8825_v41, %s7523_s8  ;;  %v8860_v51 = vsel %vm1193_vm3, %v1211_v29, %v1213_v22  ;;  %v1223_v29 = vrot.slane %v8876_v6, 4 }
 0x202   : > { %1291 = vrot.lane.b32.xlu0 %v8838_v10, %s7523_s8  ;;  %v8869_v8 = vsel %vm1193_vm3, %v1217_v35, %v1219_v32 }
 0x203   : > { %v8857_v21 = vpop.permute.xlu1 %933 }
 0x204   : > { %14918 = vst [vmem:[#allocation137_spill] sm:$0xff] %v8857_v21  ;;  %v8862_v33 = vpop.permute.xlu0 %931  ;;  %v1221_v21 = vrot.slane %v8872_v11, 4 }
 0x205   : > { %14919 = vst [vmem:[#allocation138_spill] sm:$0xff] %v8862_v33  ;;  %1297 = vrot.lane.b32.xlu1 %v8847_v45, %s7523_s8  ;;  %v8882_v33 = vsel %vm1193_vm3, %v1215_v24, %v1217_v35  ;;  %v1227_v24 = vrot.slane %v8898_v60, 4 }
 0x206   : > { %1295 = vrot.lane.b32.xlu0 %v8860_v51, %s7523_s8  ;;  %v8891_v61 = vsel %vm1193_vm3, %v1221_v21, %v1223_v29 }
 0x207   : > { %v8879_v22 = vpop.permute.xlu1 %937 }
 0x208   : > { %14920 = vst [vmem:[#allocation139_spill] sm:$0xff] %v8879_v22  ;;  %v8884_v17 = vpop.permute.xlu0 %935  ;;  %v1225_v22 = vrot.slane %v8894_v4, 4 }
 0x209   : > { %14921 = vst [vmem:[#allocation140_spill] sm:$0xff] %v8884_v17  ;;  %1301 = vrot.lane.b32.xlu1 %v8869_v8, %s7523_s8  ;;  %v8904_v17 = vsel %vm1193_vm3, %v1219_v32, %v1221_v21  ;;  %v1231_v32 = vrot.slane %v8920_v54, 4 }
 0x20a   : > { %1299 = vrot.lane.b32.xlu0 %v8882_v33, %s7523_s8  ;;  %v8913_v55 = vsel %vm1193_vm3, %v1225_v22, %v1227_v24 }
 0x20b   : > { %v8901_v35 = vpop.permute.xlu1 %941  ;;  %v8970_v14 = vsel %vm1193_vm3, %v1231_v32, %v1233_v46 }
 0x20c   : > { %14922 = vst [vmem:[#allocation141_spill] sm:$0xff] %v8901_v35  ;;  %v8906_v27 = vpop.permute.xlu0 %939  ;;  %v1229_v35 = vrot.slane %v8916_v19, 4 }
 0x20d   : > { %14923 = vst [vmem:[#allocation142_spill] sm:$0xff] %v8906_v27  ;;  %1305 = vrot.lane.b32.xlu1 %v8891_v61, %s7523_s8  ;;  %v8926_v27 = vsel %vm1193_vm3, %v1223_v29, %v1225_v22  ;;  %v1235_v29 = vrot.slane %v8942_v40, 4 }
 0x20e   : > { %1303 = vrot.lane.b32.xlu0 %v8904_v17, %s7523_s8  ;;  %v8935_v28 = vsel %vm1193_vm3, %v1229_v35, %v1231_v32  ;;  %v8948_v5 = vsel %vm1193_vm3, %v1227_v24, %v1229_v35  ;;  %v1239_v24 = vrot.slane %v8964_v31, 4 }
 0x20f   : > { %v8923_v21 = vpop.permute.xlu1 %1069  ;;  %v8957_v47 = vsel %vm1193_vm3, %v1233_v46, %v1235_v29 }
 0x210   : > { %14926 = vst [vmem:[#allocation145_spill] sm:$0xff] %v8923_v21  ;;  %v8928_v59 = vpop.permute.xlu0 %1067  ;;  %v8979_v39 = vsel %vm1193_vm3, %v1237_v57, %v1239_v24 }
 0x211   : > { %14927 = vst [vmem:[#allocation146_spill] sm:$0xff] %v8928_v59  ;;  %1309 = vrot.lane.b32.xlu1 %v8913_v55, %s7523_s8 }
 0x212   : > { %1307 = vrot.lane.b32.xlu0 %v8926_v27, %s7523_s8 }
 0x213   : > { %v8945_v22 = vpop.permute.xlu1 %1073 }
 0x214   : > { %14930 = vst [vmem:[#allocation149_spill] sm:$0xff] %v8945_v22  ;;  %v8950_v25 = vpop.permute.xlu0 %1071  ;;  %v8986_v22 = vld [vmem:[%s7794_s15 + $0xe0] sm:$0xff] }
 0x215   : > { %14931 = vst [vmem:[#allocation150_spill] sm:$0xff] %v8950_v25  ;;  %1313 = vrot.lane.b32.xlu1 %v8935_v28, %s7523_s8  ;;  %v8982_v25 = vld [vmem:[%s7794_s15 + $0xd8] sm:$0xff]  ;;  %14937 = vst [vmem:[#allocation156_spill] sm:$0xff] %v8986_v22  ;;  %v1243_v46 = vrot.slane %v8986_v22, 4 }
 0x216   : > { %1311 = vrot.lane.b32.xlu0 %v8948_v5, %s7523_s8  ;;  %14936 = vst [vmem:[#allocation155_spill] sm:$0xff] %v8982_v25 }
 0x217   : > { %v8967_v35 = vpop.permute.xlu1 %1077 }
 0x218   : > { %14934 = vst [vmem:[#allocation153_spill] sm:$0xff] %v8967_v35  ;;  %v8972_v48 = vpop.permute.xlu0 %1075  ;;  %v1241_v35 = vrot.slane %v8982_v25, 4  ;;  %v9092_v25 = vld [vmem:[%s7794_s15 + $0x128] sm:$0xff] }
 0x219   : > { %14935 = vst [vmem:[#allocation154_spill] sm:$0xff] %v8972_v48  ;;  %1317 = vrot.lane.b32.xlu1 %v8957_v47, %s7523_s8  ;;  %v8992_v48 = vsel %vm1193_vm3, %v1235_v29, %v1237_v57  ;;  %v1247_v57 = vrot.slane %v9008_v49, 4  ;;  %14956 = vst [vmem:[#allocation175_spill] sm:$0xff] %v9092_v25 }
 0x21a   : > { %1315 = vrot.lane.b32.xlu0 %v8970_v14, %s7523_s8  ;;  %v9001_v59 = vsel %vm1193_vm3, %v1241_v35, %v1243_v46 }
 0x21b   : > { %v8989_v32 = vpop.permute.xlu1 %1081 }
 0x21c   : > { %14938 = vst [vmem:[#allocation157_spill] sm:$0xff] %v8989_v32  ;;  %v8994_v21 = vpop.permute.xlu0 %1079  ;;  %v1245_v32 = vrot.slane %v9004_v42, 4  ;;  %v9070_v42 = vld [vmem:[%s7794_s15 + $0x118] sm:$0xff] }
 0x21d   : > { %14939 = vst [vmem:[#allocation158_spill] sm:$0xff] %v8994_v21  ;;  %1321 = vrot.lane.b32.xlu1 %v8979_v39, %s7523_s8  ;;  %v9014_v21 = vsel %vm1193_vm3, %v1239_v24, %v1241_v35  ;;  %v1251_v24 = vrot.slane %v9030_v63, 4  ;;  %v9052_v63 = vld [vmem:[%s7794_s15 + $0x110] sm:$0xff]  ;;  %14952 = vst [vmem:[#allocation171_spill] sm:$0xff] %v9070_v42 }
 0x21e   : > { %1319 = vrot.lane.b32.xlu0 %v8992_v48, %s7523_s8  ;;  %v9023_v43 = vsel %vm1193_vm3, %v1245_v32, %v1247_v57  ;;  %14949 = vst [vmem:[#allocation168_spill] sm:$0xff] %v9052_v63 }
 0x21f   : > { %v9011_v29 = vpop.permute.xlu1 %1085 }
 0x220   : > { %14942 = vst [vmem:[#allocation161_spill] sm:$0xff] %v9011_v29  ;;  %v9016_v36 = vpop.permute.xlu0 %1083  ;;  %v1249_v29 = vrot.slane %v9026_v9, 4  ;;  %v9048_v9 = vld [vmem:[%s7794_s15 + $0x108] sm:$0xff] }
 0x221   : > { %14943 = vst [vmem:[#allocation162_spill] sm:$0xff] %v9016_v36  ;;  %1325 = vrot.lane.b32.xlu1 %v9001_v59, %s7523_s8  ;;  %v9036_v36 = vsel %vm1193_vm3, %v1243_v46, %v1245_v32  ;;  %14948 = vst [vmem:[#allocation167_spill] sm:$0xff] %v9048_v9  ;;  %v1255_v46 = vrot.slane %v9052_v63, 4  ;;  %v9074_v63 = vld [vmem:[%s7794_s15 + $0x120] sm:$0xff] }
 0x222   : > { %1323 = vrot.lane.b32.xlu0 %v9014_v21, %s7523_s8  ;;  %v9045_v53 = vsel %vm1193_vm3, %v1249_v29, %v1251_v24  ;;  %14953 = vst [vmem:[#allocation172_spill] sm:$0xff] %v9074_v63 }
 0x223   : > { %v9033_v35 = vpop.permute.xlu1 %1089 }
 0x224   : > { %14946 = vst [vmem:[#allocation165_spill] sm:$0xff] %v9033_v35  ;;  %v9038_v58 = vpop.permute.xlu0 %1087  ;;  %v1253_v35 = vrot.slane %v9048_v9, 4 }
 0x225   : > { %14947 = vst [vmem:[#allocation166_spill] sm:$0xff] %v9038_v58  ;;  %1329 = vrot.lane.b32.xlu1 %v9023_v43, %s7523_s8  ;;  %v9058_v58 = vsel %vm1193_vm3, %v1247_v57, %v1249_v29  ;;  %v1259_v57 = vrot.slane %v9074_v63, 4  ;;  %v9096_v63 = vld [vmem:[%s7794_s15 + $0x130] sm:$0xff] }
 0x226   : > { %1327 = vrot.lane.b32.xlu0 %v9036_v36, %s7523_s8  ;;  %v9067_v9 = vsel %vm1193_vm3, %v1253_v35, %v1255_v46  ;;  %14957 = vst [vmem:[#allocation176_spill] sm:$0xff] %v9096_v63 }
 0x227   : > { %v9055_v32 = vpop.permute.xlu1 %1093 }
 0x228   : > { %14950 = vst [vmem:[#allocation169_spill] sm:$0xff] %v9055_v32  ;;  %v9060_v49 = vpop.permute.xlu0 %1091  ;;  %v1257_v32 = vrot.slane %v9070_v42, 4 }
 0x229   : > { %14951 = vst [vmem:[#allocation170_spill] sm:$0xff] %v9060_v49  ;;  %1333 = vrot.lane.b32.xlu1 %v9045_v53, %s7523_s8  ;;  %v9080_v49 = vsel %vm1193_vm3, %v1251_v24, %v1253_v35  ;;  %v1263_v24 = vrot.slane %v9096_v63, 4  ;;  %v1265_v63 = vrot.slane %v9114_v44, 4  ;;  %v9136_v44 = vld [vmem:[%s7794_s15 + $0x148] sm:$0xff] }
 0x22a   : > { %1331 = vrot.lane.b32.xlu0 %v9058_v58, %s7523_s8  ;;  %v9089_v42 = vsel %vm1193_vm3, %v1257_v32, %v1259_v57 }
 0x22b   : > { %v9077_v29 = vpop.permute.xlu1 %1097 }
 0x22c   : > { %14954 = vst [vmem:[#allocation173_spill] sm:$0xff] %v9077_v29  ;;  %v9082_v22 = vpop.permute.xlu0 %1095  ;;  %v1261_v29 = vrot.slane %v9092_v25, 4 }
 0x22d   : > { %14955 = vst [vmem:[#allocation174_spill] sm:$0xff] %v9082_v22  ;;  %1337 = vrot.lane.b32.xlu1 %v9067_v9, %s7523_s8  ;;  %v9102_v22 = vsel %vm1193_vm3, %v1255_v46, %v1257_v32 }
 0x22e   : > { %1335 = vrot.lane.b32.xlu0 %v9080_v49, %s7523_s8  ;;  %v9111_v25 = vsel %vm1193_vm3, %v1261_v29, %v1263_v24 }
 0x22f   : > { %v9099_v35 = vpop.permute.xlu1 %1101 }
 0x230   : > { %14958 = vst [vmem:[#allocation177_spill] sm:$0xff] %v9099_v35  ;;  %v9104_v31 = vpop.permute.xlu0 %1099  ;;  %v9118_v35 = vld [vmem:[%s7794_s15 + $0x140] sm:$0xff] }
 0x231   : > { %14959 = vst [vmem:[#allocation178_spill] sm:$0xff] %v9104_v31  ;;  %1341 = vrot.lane.b32.xlu1 %v9089_v42, %s7523_s8  ;;  %14961 = vst [vmem:[#allocation180_spill] sm:$0xff] %v9118_v35  ;;  %v1267_v46 = vrot.slane %v9118_v35, 4  ;;  %v9124_v31 = vsel %vm1193_vm3, %v1259_v57, %v1261_v29  ;;  %v1269_v35 = vrot.slane %v9136_v44, 4  ;;  %v9143_v57 = vsel %vm1193_vm3, %v1263_v24, %v1265_v63 }
 0x232   : > { %1339 = vrot.lane.b32.xlu0 %v9102_v22, %s7523_s8 }
 0x233   : > { %v9121_v32 = vpop.permute.xlu1 %1105  ;;  %v9133_v0 = vsel %vm1193_vm3, %v1265_v63, %v1267_v46 }
 0x234   : > { %14962 = vst [vmem:[#allocation181_spill] sm:$0xff] %v9121_v32  ;;  %v9126_v40 = vpop.permute.xlu0 %1103  ;;  %v1271_v32 = vrot.slane %v8496_v16, 4  ;;  %v9157_v16 = vsel %vm1193_vm3, %v1267_v46, %v1269_v35 }
 0x235   : > { %14963 = vst [vmem:[#allocation182_spill] sm:$0xff] %v9126_v40  ;;  %1345 = vrot.lane.b32.xlu1 %v9111_v25, %s7523_s8 }
 0x236   : > { %1343 = vrot.lane.b32.xlu0 %v9124_v31, %s7523_s8  ;;  %v9152_v40 = vsel %vm1193_vm3, %v1269_v35, %v1271_v32 }
 0x237   : > { %v9140_v54 = vpop.permute.xlu1 %1109 }
 0x238   : > { %14964 = vst [vmem:[#allocation183_spill] sm:$0xff] %v9140_v54  ;;  %v9145_v29 = vpop.permute.xlu0 %1107  ;;  %v9160_v54 = vrot.slane %v8510_v50, 4 }
 0x239   : > { %14965 = vst [vmem:[#allocation184_spill] sm:$0xff] %v9145_v29  ;;  %1349 = vrot.lane.b32.xlu1 %v9133_v0, %s7523_s8 }
 0x23a   : > { %1347 = vrot.lane.b32.xlu0 %v9143_v57, %s7523_s8  ;;  %v9172_v29 = vsel %vm1193_vm3, %v1271_v32, %v9160_v54 }
 0x23b   : > { %v9154_v19 = vpop.permute.xlu1 %1113 }
 0x23c   : > { %14966 = vst [vmem:[#allocation185_spill] sm:$0xff] %v9154_v19  ;;  %v9162_v63 = vpop.permute.xlu0 %1111 }
 0x23d   : > { %14967 = vst [vmem:[#allocation186_spill] sm:$0xff] %v9162_v63  ;;  %1353 = vrot.lane.b32.xlu1 %v9152_v40, %s7523_s8 }
 0x23e   : > { %1351 = vrot.lane.b32.xlu0 %v9157_v16, %s7523_s8 }
 0x23f   : > { %v9168_v24 = vpop.permute.xlu1 %1117 }
 0x240   : > { %14968 = vst [vmem:[#allocation187_spill] sm:$0xff] %v9168_v24  ;;  %v9174_v19 = vpop.permute.xlu0 %1115 }
 0x241   : > { %14969 = vst [vmem:[#allocation188_spill] sm:$0xff] %v9174_v19  ;;  %1357 = vrot.lane.b32.xlu1 %v9160_v54, %s7523_s8 }
 0x242   : > { %1355 = vrot.lane.b32.xlu0 %v9172_v29, %s7523_s8 }
 0x243   : > { %v9180_v50 = vpop.permute.xlu1 %1121 }
 0x244   : > { %14970 = vst [vmem:[#allocation189_spill] sm:$0xff] %v9180_v50  ;;  %v9182_v35 = vpop.permute.xlu0 %1119 }
 0x245   : > { %14971 = vst [vmem:[#allocation190_spill] sm:$0xff] %v9182_v35  ;;  %1409 = vrot.lane.b32.xlu1 %v8761_v12, %s7524_s6 }
 0x246   : > { %1407 = vrot.lane.b32.xlu0 %v8747_v62, %s7524_s6 }
 0x247   : > { %v9188_v46 = vpop.permute.xlu1 %1125 }
 0x248   : > { %14972 = vst [vmem:[#allocation191_spill] sm:$0xff] %v9188_v46  ;;  %v9190_v32 = vpop.permute.xlu0 %1123 }
 0x249   : > { %14973 = vst [vmem:[#allocation192_spill] sm:$0xff] %v9190_v32  ;;  %1413 = vrot.lane.b32.xlu1 %v8781_v30, %s7524_s6 }
 0x24a   : > { %1411 = vrot.lane.b32.xlu0 %v8794_v20, %s7524_s6 }
 0x24b   : > { %v9196_v50 = vpop.permute.xlu1 %1129 }
 0x24c   : > { %14974 = vst [vmem:[#allocation193_spill] sm:$0xff] %v9196_v50  ;;  %v9198_v35 = vpop.permute.xlu0 %1127 }
 0x24d   : > { %14975 = vst [vmem:[#allocation194_spill] sm:$0xff] %v9198_v35  ;;  %1417 = vrot.lane.b32.xlu1 %v8803_v37, %s7524_s6  ;;  %v1547_v35 = vrot.slane %v8810_v26, 5 }
 0x24e   : > { %1415 = vrot.lane.b32.xlu0 %v8816_v52, %s7524_s6 }
 0x24f   : > { %v9204_v62 = vpop.permute.xlu1 %1133 }
 0x250   : > { %14976 = vst [vmem:[#allocation195_spill] sm:$0xff] %v9204_v62  ;;  %v9206_v12 = vpop.permute.xlu0 %1131 }
 0x251   : > { %14977 = vst [vmem:[#allocation196_spill] sm:$0xff] %v9206_v12  ;;  %1421 = vrot.lane.b32.xlu1 %v8825_v41, %s7524_s6 }
 0x252   : > { %1419 = vrot.lane.b32.xlu0 %v8838_v10, %s7524_s6 }
 0x253   : > { %v9212_v20 = vpop.permute.xlu1 %1137 }
 0x254   : > { %14978 = vst [vmem:[#allocation197_spill] sm:$0xff] %v9212_v20  ;;  %v9214_v30 = vpop.permute.xlu0 %1135 }
 0x255   : > { %14979 = vst [vmem:[#allocation198_spill] sm:$0xff] %v9214_v30  ;;  %1425 = vrot.lane.b32.xlu1 %v8847_v45, %s7524_s6 }
 0x256   : > { %1423 = vrot.lane.b32.xlu0 %v8860_v51, %s7524_s6 }
 0x257   : > { %v9220_v52 = vpop.permute.xlu1 %1141 }
 0x258   : > { %14980 = vst [vmem:[#allocation199_spill] sm:$0xff] %v9220_v52  ;;  %v9222_v37 = vpop.permute.xlu0 %1139 }
 0x259   : > { %14981 = vst [vmem:[#allocation200_spill] sm:$0xff] %v9222_v37  ;;  %1429 = vrot.lane.b32.xlu1 %v8869_v8, %s7524_s6  ;;  %v1537_v37 = vrot.slane %v8764_v38, 5 }
 0x25a   : > { %1427 = vrot.lane.b32.xlu0 %v8882_v33, %s7524_s6 }
 0x25b   : > { %v9228_v41 = vpop.permute.xlu1 %1145 }
 0x25c   : > { %14982 = vst [vmem:[#allocation201_spill] sm:$0xff] %v9228_v41  ;;  %v9230_v10 = vpop.permute.xlu0 %1143 }
 0x25d   : > { %14983 = vst [vmem:[#allocation202_spill] sm:$0xff] %v9230_v10  ;;  %1433 = vrot.lane.b32.xlu1 %v8891_v61, %s7524_s6  ;;  %v1534_v10 = vrot.slane %v8744_v13, 5 }
 0x25e   : > { %1431 = vrot.lane.b32.xlu0 %v8904_v17, %s7524_s6 }
 0x25f   : > { %v9236_v45 = vpop.permute.xlu1 %1149 }
 0x260   : > { %14984 = vst [vmem:[#allocation203_spill] sm:$0xff] %v9236_v45  ;;  %v9238_v51 = vpop.permute.xlu0 %1147 }
 0x261   : > { %14985 = vst [vmem:[#allocation204_spill] sm:$0xff] %v9238_v51  ;;  %1437 = vrot.lane.b32.xlu1 %v8913_v55, %s7524_s6  ;;  %v9333_v51 = vld [vmem:[%s7794_s15 + $0x168] sm:$0xff] }
 0x262   : > { %1435 = vrot.lane.b32.xlu0 %v8926_v27, %s7524_s6 }
 0x263   : > { %v9244_v8 = vpop.permute.xlu1 %1277 }
 0x264   : > { %v9246_v33 = vpop.permute.xlu0 %1275 }
 0x265   : > { %1441 = vrot.lane.b32.xlu1 %v8935_v28, %s7524_s6 }
 0x266   : > { %1439 = vrot.lane.b32.xlu0 %v8948_v5, %s7524_s6 }
 0x267   : > { %v9252_v61 = vpop.permute.xlu1 %1281 }
 0x268   : > { %v9254_v17 = vpop.permute.xlu0 %1279 }
 0x269   : > { %1445 = vrot.lane.b32.xlu1 %v8957_v47, %s7524_s6 }
 0x26a   : > { %1443 = vrot.lane.b32.xlu0 %v8970_v14, %s7524_s6 }
 0x26b   : > { %v9260_v55 = vpop.permute.xlu1 %1285 }
 0x26c   : > { %v9262_v27 = vpop.permute.xlu0 %1283 }
 0x26d   : > { %1449 = vrot.lane.b32.xlu1 %v8979_v39, %s7524_s6 }
 0x26e   : > { %1447 = vrot.lane.b32.xlu0 %v8992_v48, %s7524_s6 }
 0x26f   : > { %v9268_v5 = vpop.permute.xlu1 %1289 }
 0x270   : > { %v9270_v28 = vpop.permute.xlu0 %1287 }
 0x271   : > { %1453 = vrot.lane.b32.xlu1 %v9001_v59, %s7524_s6 }
 0x272   : > { %1451 = vrot.lane.b32.xlu0 %v9014_v21, %s7524_s6 }
 0x273   : > { %v9276_v14 = vpop.permute.xlu1 %1293 }
 0x274   : > { %v9278_v47 = vpop.permute.xlu0 %1291 }
 0x275   : > { %1457 = vrot.lane.b32.xlu1 %v9023_v43, %s7524_s6 }
 0x276   : > { %1455 = vrot.lane.b32.xlu0 %v9036_v36, %s7524_s6 }
 0x277   : > { %v9284_v39 = vpop.permute.xlu1 %1297 }
 0x278   : > { %14986 = vst [vmem:[#allocation205_spill] sm:$0xff] %v9284_v39  ;;  %v9286_v48 = vpop.permute.xlu0 %1295 }
 0x279   : > { %1461 = vrot.lane.b32.xlu1 %v9045_v53, %s7524_s6 }
 0x27a   : > { %1459 = vrot.lane.b32.xlu0 %v9058_v58, %s7524_s6 }
 0x27b   : > { %v9292_v59 = vpop.permute.xlu1 %1301 }
 0x27c   : > { %14987 = vst [vmem:[#allocation206_spill] sm:$0xff] %v9292_v59  ;;  %v9294_v21 = vpop.permute.xlu0 %1299  ;;  %v7211_v59 = vld [vmem:[%s7794_s15] sm:$0xff] }
 0x27d   : > { %14988 = vst [vmem:[#allocation207_spill] sm:$0xff] %v9294_v21  ;;  %1465 = vrot.lane.b32.xlu1 %v9067_v9, %s7524_s6 }
 0x27e   : > { %1463 = vrot.lane.b32.xlu0 %v9080_v49, %s7524_s6  ;;  %v9319_v49 = vld [vmem:[%s7794_s15 + $0x160] sm:$0xff] }
 0x27f   : > { %v9300_v43 = vpop.permute.xlu1 %1305 }
 0x280   : > { %14989 = vst [vmem:[#allocation208_spill] sm:$0xff] %v9300_v43  ;;  %v9302_v36 = vpop.permute.xlu0 %1303  ;;  %v7209_v43 = vld [vmem:[%s7794_s15 + $0x8] sm:$0xff] }
 0x281   : > { %14990 = vst [vmem:[#allocation209_spill] sm:$0xff] %v9302_v36  ;;  %1469 = vrot.lane.b32.xlu1 %v9089_v42, %s7524_s6  ;;  %v1403_v42 = vrot.slane %v9319_v49, 4  ;;  %v7210_v36 = vld [vmem:[%s7794_s15 + $0x10] sm:$0xff] }
 0x282   : > { %1467 = vrot.lane.b32.xlu0 %v9102_v22, %s7524_s6 }
 0x283   : > { %v9308_v53 = vpop.permute.xlu1 %1309 }
 0x284   : > { %14991 = vst [vmem:[#allocation210_spill] sm:$0xff] %v9308_v53  ;;  %v9310_v58 = vpop.permute.xlu0 %1307 }
 0x285   : > { %14992 = vst [vmem:[#allocation211_spill] sm:$0xff] %v9310_v58  ;;  %1473 = vrot.lane.b32.xlu1 %v9111_v25, %s7524_s6 }
 0x286   : > { %1471 = vrot.lane.b32.xlu0 %v9124_v31, %s7524_s6 }
 0x287   : > { %v9316_v9 = vpop.permute.xlu1 %1313 }
 0x288   : > { %14993 = vst [vmem:[#allocation212_spill] sm:$0xff] %v9316_v9  ;;  %v9321_v45 = vpop.permute.xlu0 %1311 }
 0x289   : > { %14994 = vst [vmem:[#allocation213_spill] sm:$0xff] %v9321_v45  ;;  %1477 = vrot.lane.b32.xlu1 %v9133_v0, %s7524_s6  ;;  %v1404_v0 = vsel %vm1193_vm3, %v9160_v54, %v1403_v42 }
 0x28a   : > { %1475 = vrot.lane.b32.xlu0 %v9143_v57, %s7524_s6  ;;  %v1405_v57 = vrot.slane %v9333_v51, 4 }
 0x28b   : > { %v9328_v22 = vpop.permute.xlu1 %1317 }
 0x28c   : > { %14995 = vst [vmem:[#allocation214_spill] sm:$0xff] %v9328_v22  ;;  %v9330_v25 = vpop.permute.xlu0 %1315 }
 0x28d   : > { %14996 = vst [vmem:[#allocation215_spill] sm:$0xff] %v9330_v25  ;;  %1481 = vrot.lane.b32.xlu1 %v9152_v40, %s7524_s6  ;;  %v1535_v40 = vrot.slane %v8750_v56, 5 }
 0x28e   : > { %1479 = vrot.lane.b32.xlu0 %v9157_v16, %s7524_s6  ;;  %v1406_v16 = vsel %vm1193_vm3, %v1403_v42, %v1405_v57 }
 0x28f   : > { %v9341_v31 = vpop.permute.xlu1 %1321  ;;  %v1538_v12 = vsel %vm1533_vm4, %v1535_v40, %v1537_v37 }
 0x290   : > { %14997 = vst [vmem:[#allocation216_spill] sm:$0xff] %v9341_v31  ;;  %v9344_v41 = vpop.permute.xlu0 %1319 }
 0x291   : > { %14998 = vst [vmem:[#allocation217_spill] sm:$0xff] %v9344_v41  ;;  %1485 = vrot.lane.b32.xlu1 %v1404_v0, %s7524_s6  ;;  %v1536_v0 = vsel %vm1533_vm4, %v1534_v10, %v1535_v40  ;;  %v1551_v40 = vrot.slane %v8832_v23, 5 }
 0x292   : > { %1483 = vrot.lane.b32.xlu0 %v9172_v29, %s7524_s6  ;;  %v1539_v29 = vrot.slane %v8768_v2, 5 }
 0x293   : > { %v9351_v52 = vpop.permute.xlu1 %1325 }
 0x294   : > { %14999 = vst [vmem:[#allocation218_spill] sm:$0xff] %v9351_v52  ;;  %v9354_v54 = vpop.permute.xlu0 %1323  ;;  %v1540_v42 = vsel %vm1533_vm4, %v1537_v37, %v1539_v29  ;;  %v1549_v37 = vrot.slane %v8828_v7, 5 }
 0x295   : > { %15000 = vst [vmem:[#allocation219_spill] sm:$0xff] %v9354_v54  ;;  %1489 = vrot.lane.b32.xlu1 %v1405_v57, %s7524_s6  ;;  %v1541_v57 = vrot.slane %v8784_v34, 5 }
 0x296   : > { %1487 = vrot.lane.b32.xlu0 %v1406_v16, %s7524_s6  ;;  %v1543_v16 = vrot.slane %v8788_v18, 5 }
 0x297   : > { %v9361_v20 = vpop.permute.xlu1 %1329  ;;  %v1542_v32 = vsel %vm1533_vm4, %v1539_v29, %v1541_v57  ;;  %v1552_v29 = vsel %vm1533_vm4, %v1549_v37, %v1551_v40 }
 0x298   : > { %15001 = vst [vmem:[#allocation220_spill] sm:$0xff] %v9361_v20  ;;  %v9363_v30 = vpop.permute.xlu0 %1327 }
 0x299   : > { %15002 = vst [vmem:[#allocation221_spill] sm:$0xff] %v9363_v30  ;;  %1617 = vrot.lane.b32.xlu1 %v1536_v0, %s7525_s28  ;;  %v1544_v0 = vsel %vm1533_vm4, %v1541_v57, %v1543_v16  ;;  %v386_v57 = vld [vmem:[#allocation8] sm:$0xff] }
 0x29a   : > { %1615 = vrot.lane.b32.xlu0 %v1534_v10, %s7525_s28  ;;  %v1545_v10 = vrot.slane %v8806_v3, 5 }
 0x29b   : > { %v9370_v62 = vpop.permute.xlu1 %1333 }
 0x29c   : > { %15003 = vst [vmem:[#allocation222_spill] sm:$0xff] %v9370_v62  ;;  %v9373_v50 = vpop.permute.xlu0 %1331  ;;  %v1546_v62 = vsel %vm1533_vm4, %v1543_v16, %v1545_v10  ;;  %v14578_v16 = vmov 0.0|0.0  }
 0x29d   : > { %15004 = vst [vmem:[#allocation223_spill] sm:$0xff] %v9373_v50  ;;  %1621 = vrot.lane.b32.xlu1 %v1540_v42, %s7525_s28  ;;  %7023 = vmatprep.subr.bf16.mxu0 %v14578_v16 }
 0x29e   : > { %1619 = vrot.lane.b32.xlu0 %v1538_v12, %s7525_s28  ;;  %v1548_v12 = vsel %vm1533_vm4, %v1545_v10, %v1547_v35  ;;  %7041 = vmatprep.subr.bf16.mxu1 %v14578_v16 }
 0x29f   : > { %v9380_v46 = vpop.permute.xlu1 %1337 }
 0x2a0   : > { %15005 = vst [vmem:[#allocation224_spill] sm:$0xff] %v9380_v46  ;;  %v9383_v20 = vpop.permute.xlu0 %1335  ;;  %v1553_v46 = vrot.slane %v8850_v1, 5 }
 0x2a1   : > { %15006 = vst [vmem:[#allocation225_spill] sm:$0xff] %v9383_v20  ;;  %1625 = vrot.lane.b32.xlu1 %v1544_v0, %s7525_s28  ;;  %v387_v0 = vld [vmem:[#allocation8 + $0x8] sm:$0xff] }
 0x2a2   : > { %1623 = vrot.lane.b32.xlu0 %v1542_v32, %s7525_s28  ;;  %v1555_v32 = vrot.slane %v8854_v15, 5  ;;  %v7024_v20 = vpack.c.bf16 %v387_v0, %v386_v57 }
 0x2a3   : > { %v9390_v42 = vpop.permute.xlu1 %1341 }
 0x2a4   : > { %15007 = vst [vmem:[#allocation226_spill] sm:$0xff] %v9390_v42  ;;  %v9393_v50 = vpop.permute.xlu0 %1339  ;;  %v1550_v42 = vsel %vm1533_vm4, %v1547_v35, %v1549_v37  ;;  %7025 = vmatpush3.bf16.msra.mxu0 %v7024_v20  ;;  %v1556_v57 = vsel %vm1533_vm4, %v1553_v46, %v1555_v32  ;;  %v1557_v35 = vrot.slane %v8872_v11, 5  ;;  %v1559_v37 = vrot.slane %v8876_v6, 5 }
 0x2a5   : > { %15008 = vst [vmem:[#allocation227_spill] sm:$0xff] %v9393_v50  ;;  %1629 = vrot.lane.b32.xlu1 %v1548_v12, %s7525_s28  ;;  %7026 = vmatprep.subr.bf16.mxu0 %v14578_v16  ;;  %v389_v12 = vld [vmem:[#allocation8 + $0x18] sm:$0xff] }
 0x2a6   : > { %1627 = vrot.lane.b32.xlu0 %v1546_v62, %s7525_s28  ;;  %v388_v62 = vld [vmem:[#allocation8 + $0x10] sm:$0xff]  ;;  %v1558_v50 = vsel %vm1533_vm4, %v1555_v32, %v1557_v35  ;;  %v15015_v32 = vmov 0.0|0.0  }
 0x2a7   : > { %v9400_v30 = vpop.permute.xlu1 %1345  ;;  %v7027_v0 = vpack.c.bf16 %v389_v12, %v388_v62  ;;  %v1561_v62 = vrot.slane %v8894_v4, 5  ;;  %v14580_v12 = vmov 0.0  }
 0x2a8   : > { %15009 = vst [vmem:[#allocation228_spill] sm:$0xff] %v9400_v30  ;;  %v9405_v10 = vpop.permute.xlu0 %1343  ;;  %3448 = vst.msk [vmem:[#allocation2] sm:$0xff] %vm1992_vm5, %v14580_v12  ;;  %6759 = vmatprep.mubr.msk.f32.mxu0 %vm7528_vm6, %v14580_v12  ;;  %6903 = vmatprep.mubr.msk.f32.mxu1 %vm7528_vm6, %v14580_v12 }
 0x2a9   : > { %15010 = vst [vmem:[#allocation229_spill] sm:$0xff] %v9405_v10  ;;  %1633 = vrot.lane.b32.xlu1 %v1552_v29, %s7525_s28  ;;  %v1554_v10 = vsel %vm1533_vm4, %v1551_v40, %v1553_v46  ;;  %7028 = vmatpush3.bf16.msra.mxu0 %v7027_v0  ;;  %v390_v29 = vld [vmem:[#allocation8 + $0x20] sm:$0xf]  ;;  %3449 = vst.msk [vmem:[#allocation2 + $0x8] sm:$0xff] %vm1992_vm5, %v14580_v12  ;;  %v1742_v40 = vrot.slane %v8744_v13, 6  ;;  %v1562_v0 = vsel %vm1533_vm4, %v1559_v37, %v1561_v62 }
 0x2aa   : > { %1631 = vrot.lane.b32.xlu0 %v1550_v42, %s7525_s28  ;;  %v1560_v42 = vsel %vm1533_vm4, %v1557_v35, %v1559_v37  ;;  %6757 = vmatprep.subr.mxu0 %v14580_v12  ;;  %3450 = vst.msk [vmem:[#allocation2 + $0x10] sm:$0xff] %vm1992_vm5, %v14580_v12  ;;  %3451 = vst.msk [vmem:[#allocation2 + $0x15c] sm:$0xff] %vm1992_vm5, %v14580_v12 }
 0x2ab   : > { %v9413_v30 = vpop.permute.xlu1 %1349  ;;  %3452 = vst.msk [vmem:[#allocation2 + $0x164] sm:$0xff] %vm1992_vm5, %v14580_v12  ;;  %3453 = vst.msk [vmem:[#allocation2 + $0x16c] sm:$0xff] %vm1992_vm5, %v14580_v12 }
 0x2ac   : > { %15011 = vst [vmem:[#allocation230_spill] sm:$0xff] %v9413_v30  ;;  %v9416_v20 = vpop.permute.xlu0 %1347 }
 0x2ad   : > { %15012 = vst [vmem:[#allocation231_spill] sm:$0xff] %v9416_v20  ;;  %1637 = vrot.lane.b32.xlu1 %v1556_v57, %s7525_s28  ;;  %6758 = vmatpush3.msk.msra.mxu0 %vm1193_vm3, %v390_v29  ;;  %v1745_v57 = vrot.slane %v8764_v38, 6  ;;  %v1563_v38 = vrot.slane %v8898_v60, 5 }
 0x2ae   : > { %1635 = vrot.lane.b32.xlu0 %v1554_v10, %s7525_s28  ;;  %7029 = vmatprep.subr.bf16.mxu0 %v15015_v32  ;;  %v1743_v10 = vrot.slane %v8750_v56, 6 }
 0x2af   : > { %v9421_v16 = vpop.permute.xlu1 %1353 }
 0x2b0   : > { %15013 = vst [vmem:[#allocation232_spill] sm:$0xff] %v9421_v16  ;;  %v9440_v46 = vpop.permute.xlu0 %1351  ;;  %v1746_v13 = vsel %vm1741_vm7, %v1743_v10, %v1745_v57  ;;  %v1744_v56 = vsel %vm1741_vm7, %v1742_v40, %v1743_v10  ;;  %v1751_v10 = vrot.slane %v8788_v18, 6 }
 0x2b1   : > { %15014 = vst [vmem:[#allocation233_spill] sm:$0xff] %v9440_v46  ;;  %1641 = vrot.lane.b32.xlu1 %v1560_v42, %s7525_s28 }
 0x2b2   : > { %1639 = vrot.lane.b32.xlu0 %v1558_v50, %s7525_s28  ;;  %v1747_v50 = vrot.slane %v8768_v2, 6  ;;  %v1564_v2 = vsel %vm1533_vm4, %v1561_v62, %v1563_v38 }
 0x2b3   : > { %v9451_v35 = vpop.permute.xlu1 %1357 }
 0x2b4   : > { %15016 = vst [vmem:[#allocation234_spill] sm:$0xff] %v9451_v35  ;;  %v9454_v29 = vpop.permute.xlu0 %1355  ;;  %v1748_v37 = vsel %vm1741_vm7, %v1745_v57, %v1747_v50  ;;  %v15018_v35 = vld [vmem:[#allocation143_spill] sm:$0xff]  ;;  %v15019_v57 = vld [vmem:[#allocation144_spill] sm:$0xff] }
 0x2b5   : > { %15017 = vst [vmem:[#allocation235_spill] sm:$0xff] %v9454_v29  ;;  %1823 = vrot.lane.b32.xlu1 %v1742_v40, %s7529_s10  ;;  %v1565_v29 = vrot.slane %v15018_v35, 5 }
 0x2b6   : > { %1643 = vrot.lane.b32.xlu0 %v1562_v0, %s7525_s28  ;;  %v1749_v0 = vrot.slane %v8784_v34, 6 }
 0x2b7   : > { %v9460_v42 = vpop.permute.xlu1 %1409  ;;  %v1566_v34 = vsel %vm1533_vm4, %v1563_v38, %v1565_v29 }
 0x2b8   : > { %v9464_v12 = vpop.permute.xlu0 %1407  ;;  %v1750_v40 = vsel %vm1741_vm7, %v1747_v50, %v1749_v0  ;;  %v1752_v62 = vsel %vm1741_vm7, %v1749_v0, %v1751_v10  ;;  %v15020_v50 = vld [vmem:[#allocation147_spill] sm:$0xff]  ;;  %v15021_v0 = vld [vmem:[#allocation148_spill] sm:$0xff] }
 0x2b9   : > { %1827 = vrot.lane.b32.xlu1 %v1746_v13, %s7529_s10  ;;  %v1569_v30 = vrot.slane %v15020_v50, 5  ;;  %v1571_v52 = vrot.slane %v15021_v0, 5 }
 0x2ba   : > { %1825 = vrot.lane.b32.xlu0 %v1744_v56, %s7529_s10  ;;  %v1567_v56 = vrot.slane %v15019_v57, 5 }
 0x2bb   : > { %v9470_v32 = vpop.permute.xlu1 %1413 }
 0x2bc   : > { %v9474_v16 = vpop.permute.xlu0 %1411  ;;  %v1568_v18 = vsel %vm1533_vm4, %v1565_v29, %v1567_v56 }
 0x2bd   : > { %1829 = vrot.lane.b32.xlu1 %v1748_v37, %s7529_s10  ;;  %v1753_v37 = vrot.slane %v8806_v3, 6  ;;  %v1570_v3 = vsel %vm1533_vm4, %v1567_v56, %v1569_v30 }
 0x2be   : > { %1645 = vrot.lane.b32.xlu0 %v1564_v2, %s7525_s28 }
 0x2bf   : > { %v9480_v13 = vpop.permute.xlu1 %1417  ;;  %v1754_v38 = vsel %vm1741_vm7, %v1751_v10, %v1753_v37  ;;  %v15023_v10 = vld [vmem:[#allocation151_spill] sm:$0xff] }
 0x2c0   : > { %v9484_v46 = vpop.permute.xlu0 %1415  ;;  %v1573_v54 = vrot.slane %v15023_v10, 5 }
 0x2c1   : > { %1831 = vrot.lane.b32.xlu1 %v1750_v40, %s7529_s10  ;;  %v1755_v40 = vrot.slane %v8810_v26, 6  ;;  %v1572_v26 = vsel %vm1533_vm4, %v1569_v30, %v1571_v52 }
 0x2c2   : > { %1647 = vrot.lane.b32.xlu0 %v1566_v34, %s7525_s28 }
 0x2c3   : > { %v9490_v2 = vpop.permute.xlu1 %1421  ;;  %v1756_v29 = vsel %vm1741_vm7, %v1753_v37, %v1755_v40  ;;  %v15025_v37 = vld [vmem:[#allocation152_spill] sm:$0xff] }
 0x2c4   : > { %v9494_v20 = vpop.permute.xlu0 %1419  ;;  %v1575_v31 = vrot.slane %v15025_v37, 5 }
 0x2c5   : > { %1833 = vrot.lane.b32.xlu1 %v1752_v62, %s7529_s10  ;;  %v1757_v62 = vrot.slane %v8828_v7, 6  ;;  %v1574_v7 = vsel %vm1533_vm4, %v1571_v52, %v1573_v54 }
 0x2c6   : > { %1649 = vrot.lane.b32.xlu0 %v1568_v18, %s7525_s28 }
 0x2c7   : > { %v9500_v34 = vpop.permute.xlu1 %1425  ;;  %v1758_v56 = vsel %vm1741_vm7, %v1755_v40, %v1757_v62  ;;  %v15028_v40 = vld [vmem:[#allocation155_spill] sm:$0xff] }
 0x2c8   : > { %v9504_v24 = vpop.permute.xlu0 %1423  ;;  %v1577_v63 = vrot.slane %v15028_v40, 5 }
 0x2c9   : > { %1835 = vrot.lane.b32.xlu1 %v1754_v38, %s7529_s10  ;;  %v1759_v38 = vrot.slane %v8832_v23, 6  ;;  %v1576_v23 = vsel %vm1533_vm4, %v1573_v54, %v1575_v31 }
 0x2ca   : > { %1651 = vrot.lane.b32.xlu0 %v1570_v3, %s7525_s28 }
 0x2cb   : > { %v9510_v18 = vpop.permute.xlu1 %1429  ;;  %v1760_v30 = vsel %vm1741_vm7, %v1757_v62, %v1759_v38  ;;  %v15031_v62 = vld [vmem:[#allocation156_spill] sm:$0xff] }
 0x2cc   : > { %15022 = vst [vmem:[#allocation143_spill] sm:$0xff] %v9510_v18  ;;  %v9514_v19 = vpop.permute.xlu0 %1427  ;;  %v1579_v25 = vrot.slane %v15031_v62, 5  ;;  %v15077_v18 = vld [vmem:[#allocation82_spill] sm:$0xff] }
 0x2cd   : > { %1837 = vrot.lane.b32.xlu1 %v1756_v29, %s7529_s10  ;;  %v1761_v29 = vrot.slane %v8850_v1, 6  ;;  %v1578_v1 = vsel %vm1533_vm4, %v1575_v31, %v1577_v63 }
 0x2ce   : > { %1653 = vrot.lane.b32.xlu0 %v1572_v26, %s7525_s28 }
 0x2cf   : > { %v9520_v3 = vpop.permute.xlu1 %1433  ;;  %v1762_v52 = vsel %vm1741_vm7, %v1759_v38, %v1761_v29  ;;  %v15034_v38 = vld [vmem:[#allocation159_spill] sm:$0xff] }
 0x2d0   : > { %15024 = vst [vmem:[#allocation144_spill] sm:$0xff] %v9520_v3  ;;  %v9524_v41 = vpop.permute.xlu0 %1431  ;;  %v1581_v45 = vrot.slane %v15034_v38, 5 }
 0x2d1   : > { %15026 = vst [vmem:[#allocation147_spill] sm:$0xff] %v9524_v41  ;;  %1839 = vrot.lane.b32.xlu1 %v1758_v56, %s7529_s10  ;;  %v1763_v56 = vrot.slane %v8854_v15, 6  ;;  %v1580_v15 = vsel %vm1533_vm4, %v1577_v63, %v1579_v25  ;;  %v15072_v41 = vld [vmem:[#allocation39_spill] sm:$0xff] }
 0x2d2   : > { %1655 = vrot.lane.b32.xlu0 %v1574_v7, %s7525_s28  ;;  %v1950_v21 = vsel %vm1949_vm8, %v7211_v59, %v15072_v41  ;;  %v15079_v59 = vld [vmem:[#allocation19_spill] sm:$0xff] }
 0x2d3   : > { %v9530_v26 = vpop.permute.xlu1 %1437  ;;  %v1764_v54 = vsel %vm1741_vm7, %v1761_v29, %v1763_v56  ;;  %v15037_v29 = vld [vmem:[#allocation160_spill] sm:$0xff] }
 0x2d4   : > { %15027 = vst [vmem:[#allocation148_spill] sm:$0xff] %v9530_v26  ;;  %v9534_v22 = vpop.permute.xlu0 %1435  ;;  %v1613_v26 = vrot.slane %v9333_v51, 5 }
 0x2d5   : > { %15029 = vst [vmem:[#allocation151_spill] sm:$0xff] %v9534_v22  ;;  %1841 = vrot.lane.b32.xlu1 %v1760_v30, %s7529_s10  ;;  %v1765_v30 = vrot.slane %v8872_v11, 6  ;;  %v1582_v11 = vsel %vm1533_vm4, %v1579_v25, %v1581_v45  ;;  %v15070_v22 = vld [vmem:[#allocation41_spill] sm:$0xff] }
 0x2d6   : > { %1657 = vrot.lane.b32.xlu0 %v1576_v23, %s7525_s28 }
 0x2d7   : > { %v9540_v7 = vpop.permute.xlu1 %1441  ;;  %v1766_v31 = vsel %vm1741_vm7, %v1763_v56, %v1765_v30  ;;  %v15040_v56 = vld [vmem:[#allocation163_spill] sm:$0xff] }
 0x2d8   : > { %15030 = vst [vmem:[#allocation152_spill] sm:$0xff] %v9540_v7  ;;  %v9544_v9 = vpop.permute.xlu0 %1439 }
 0x2d9   : > { %15032 = vst [vmem:[#allocation155_spill] sm:$0xff] %v9544_v9  ;;  %1843 = vrot.lane.b32.xlu1 %v1762_v52, %s7529_s10  ;;  %v1767_v52 = vrot.slane %v8876_v6, 6 }
 0x2da   : > { %1659 = vrot.lane.b32.xlu0 %v1578_v1, %s7525_s28 }
 0x2db   : > { %v9550_v23 = vpop.permute.xlu1 %1445  ;;  %v1768_v63 = vsel %vm1741_vm7, %v1765_v30, %v1767_v52  ;;  %v15043_v30 = vld [vmem:[#allocation164_spill] sm:$0xff] }
 0x2dc   : > { %15033 = vst [vmem:[#allocation156_spill] sm:$0xff] %v9550_v23  ;;  %v9554_v7 = vpop.permute.xlu0 %1443  ;;  %v1583_v23 = vrot.slane %v15037_v29, 5 }
 0x2dd   : > { %15035 = vst [vmem:[#allocation159_spill] sm:$0xff] %v9554_v7  ;;  %1845 = vrot.lane.b32.xlu1 %v1764_v54, %s7529_s10  ;;  %v1769_v54 = vrot.slane %v8894_v4, 6 }
 0x2de   : > { %1661 = vrot.lane.b32.xlu0 %v1580_v15, %s7525_s28  ;;  %v1584_v6 = vsel %vm1533_vm4, %v1581_v45, %v1583_v23 }
 0x2df   : > { %v9560_v1 = vpop.permute.xlu1 %1449  ;;  %v1770_v25 = vsel %vm1741_vm7, %v1767_v52, %v1769_v54  ;;  %v15046_v52 = vld [vmem:[#allocation167_spill] sm:$0xff] }
 0x2e0   : > { %15036 = vst [vmem:[#allocation236_spill] sm:$0xff] %v9560_v1  ;;  %v9564_v53 = vpop.permute.xlu0 %1447  ;;  %v1585_v1 = vrot.slane %v15040_v56, 5 }
 0x2e1   : > { %15038 = vst [vmem:[#allocation160_spill] sm:$0xff] %v9564_v53  ;;  %1847 = vrot.lane.b32.xlu1 %v1766_v31, %s7529_s10  ;;  %v1771_v31 = vrot.slane %v8898_v60, 6 }
 0x2e2   : > { %1663 = vrot.lane.b32.xlu0 %v1582_v11, %s7525_s28  ;;  %v1586_v4 = vsel %vm1533_vm4, %v1583_v23, %v1585_v1 }
 0x2e3   : > { %v9570_v15 = vpop.permute.xlu1 %1453  ;;  %v1772_v45 = vsel %vm1741_vm7, %v1769_v54, %v1771_v31  ;;  %v15049_v54 = vld [vmem:[#allocation168_spill] sm:$0xff] }
 0x2e4   : > { %15039 = vst [vmem:[#allocation237_spill] sm:$0xff] %v9570_v15  ;;  %v9574_v7 = vpop.permute.xlu0 %1451  ;;  %v1587_v15 = vrot.slane %v15043_v30, 5 }
 0x2e5   : > { %15041 = vst [vmem:[#allocation163_spill] sm:$0xff] %v9574_v7  ;;  %1849 = vrot.lane.b32.xlu1 %v1768_v63, %s7529_s10  ;;  %v1773_v63 = vrot.slane %v15018_v35, 6 }
 0x2e6   : > { %1665 = vrot.lane.b32.xlu0 %v1584_v6, %s7525_s28  ;;  %v1588_v60 = vsel %vm1533_vm4, %v1585_v1, %v1587_v15 }
 0x2e7   : > { %v9580_v11 = vpop.permute.xlu1 %1457  ;;  %v1774_v23 = vsel %vm1741_vm7, %v1771_v31, %v1773_v63  ;;  %v15052_v31 = vld [vmem:[#allocation171_spill] sm:$0xff] }
 0x2e8   : > { %15042 = vst [vmem:[#allocation238_spill] sm:$0xff] %v9580_v11  ;;  %v9584_v53 = vpop.permute.xlu0 %1455  ;;  %v1589_v11 = vrot.slane %v15046_v52, 5 }
 0x2e9   : > { %15044 = vst [vmem:[#allocation164_spill] sm:$0xff] %v9584_v53  ;;  %1851 = vrot.lane.b32.xlu1 %v1770_v25, %s7529_s10  ;;  %v1775_v25 = vrot.slane %v15019_v57, 6 }
 0x2ea   : > { %1667 = vrot.lane.b32.xlu0 %v1586_v4, %s7525_s28  ;;  %v1590_v35 = vsel %vm1533_vm4, %v1587_v15, %v1589_v11 }
 0x2eb   : > { %v9590_v6 = vpop.permute.xlu1 %1461  ;;  %v1776_v1 = vsel %vm1741_vm7, %v1773_v63, %v1775_v25  ;;  %v15055_v63 = vld [vmem:[#allocation172_spill] sm:$0xff] }
 0x2ec   : > { %15045 = vst [vmem:[#allocation239_spill] sm:$0xff] %v9590_v6  ;;  %v9594_v7 = vpop.permute.xlu0 %1459  ;;  %v1591_v6 = vrot.slane %v15049_v54, 5 }
 0x2ed   : > { %15047 = vst [vmem:[#allocation167_spill] sm:$0xff] %v9594_v7  ;;  %1853 = vrot.lane.b32.xlu1 %v1772_v45, %s7529_s10  ;;  %v1777_v45 = vrot.slane %v15020_v50, 6 }
 0x2ee   : > { %1669 = vrot.lane.b32.xlu0 %v1588_v60, %s7525_s28  ;;  %v1592_v57 = vsel %vm1533_vm4, %v1589_v11, %v1591_v6 }
 0x2ef   : > { %v9600_v4 = vpop.permute.xlu1 %1465  ;;  %v1778_v15 = vsel %vm1741_vm7, %v1775_v25, %v1777_v45  ;;  %v15058_v25 = vld [vmem:[#allocation175_spill] sm:$0xff] }
 0x2f0   : > { %15048 = vst [vmem:[#allocation240_spill] sm:$0xff] %v9600_v4  ;;  %v9604_v53 = vpop.permute.xlu0 %1463  ;;  %v1593_v4 = vrot.slane %v15052_v31, 5 }
 0x2f1   : > { %15050 = vst [vmem:[#allocation168_spill] sm:$0xff] %v9604_v53  ;;  %1855 = vrot.lane.b32.xlu1 %v1774_v23, %s7529_s10  ;;  %v1779_v23 = vrot.slane %v15021_v0, 6 }
 0x2f2   : > { %1671 = vrot.lane.b32.xlu0 %v1590_v35, %s7525_s28  ;;  %v1594_v50 = vsel %vm1533_vm4, %v1591_v6, %v1593_v4 }
 0x2f3   : > { %v9610_v60 = vpop.permute.xlu1 %1469  ;;  %v1780_v11 = vsel %vm1741_vm7, %v1777_v45, %v1779_v23  ;;  %v15061_v45 = vld [vmem:[#allocation176_spill] sm:$0xff] }
 0x2f4   : > { %15051 = vst [vmem:[#allocation241_spill] sm:$0xff] %v9610_v60  ;;  %v9614_v7 = vpop.permute.xlu0 %1467  ;;  %v1595_v60 = vrot.slane %v15055_v63, 5 }
 0x2f5   : > { %15053 = vst [vmem:[#allocation171_spill] sm:$0xff] %v9614_v7  ;;  %1857 = vrot.lane.b32.xlu1 %v1776_v1, %s7529_s10  ;;  %v1781_v1 = vrot.slane %v15023_v10, 6 }
 0x2f6   : > { %1673 = vrot.lane.b32.xlu0 %v1592_v57, %s7525_s28  ;;  %v1596_v0 = vsel %vm1533_vm4, %v1593_v4, %v1595_v60 }
 0x2f7   : > { %v9620_v35 = vpop.permute.xlu1 %1473  ;;  %v1782_v6 = vsel %vm1741_vm7, %v1779_v23, %v1781_v1 }
 0x2f8   : > { %15054 = vst [vmem:[#allocation242_spill] sm:$0xff] %v9620_v35  ;;  %v9624_v53 = vpop.permute.xlu0 %1471  ;;  %v1597_v35 = vrot.slane %v15058_v25, 5 }
 0x2f9   : > { %15056 = vst [vmem:[#allocation172_spill] sm:$0xff] %v9624_v53  ;;  %1859 = vrot.lane.b32.xlu1 %v1778_v15, %s7529_s10  ;;  %v1783_v15 = vrot.slane %v15025_v37, 6 }
 0x2fa   : > { %1675 = vrot.lane.b32.xlu0 %v1594_v50, %s7525_s28  ;;  %v1598_v10 = vsel %vm1533_vm4, %v1595_v60, %v1597_v35 }
 0x2fb   : > { %v9630_v57 = vpop.permute.xlu1 %1477  ;;  %v1784_v4 = vsel %vm1741_vm7, %v1781_v1, %v1783_v15  ;;  %v1787_v1 = vrot.slane %v15031_v62, 6 }
 0x2fc   : > { %15057 = vst [vmem:[#allocation243_spill] sm:$0xff] %v9630_v57  ;;  %v9634_v7 = vpop.permute.xlu0 %1475  ;;  %v1599_v57 = vrot.slane %v15061_v45, 5 }
 0x2fd   : > { %15059 = vst [vmem:[#allocation175_spill] sm:$0xff] %v9634_v7  ;;  %1861 = vrot.lane.b32.xlu1 %v1780_v11, %s7529_s10  ;;  %v1785_v11 = vrot.slane %v15028_v40, 6 }
 0x2fe   : > { %1677 = vrot.lane.b32.xlu0 %v1596_v0, %s7525_s28  ;;  %v7530_v0 = vmov 0   ;;  %v1600_v37 = vsel %vm1533_vm4, %v1597_v35, %v1599_v57 }
 0x2ff   : > { %v9640_v50 = vpop.permute.xlu1 %1481  ;;  %7163 = vset.pattern.permute.xlu1 %v7530_v0  ;;  %7162 = vset.pattern.permute.xlu0 %v7530_v0  ;;  %v1789_v0 = vrot.slane %v15034_v38, 6 }
 0x300   : > { %15060 = vst [vmem:[#allocation244_spill] sm:$0xff] %v9640_v50  ;;  %v9644_v53 = vpop.permute.xlu0 %1479  ;;  %v15064_v50 = vld [vmem:[#allocation179_spill] sm:$0xff] }
 0x301   : > { %15062 = vst [vmem:[#allocation176_spill] sm:$0xff] %v9644_v53  ;;  %1863 = vrot.lane.b32.xlu1 %v1782_v6, %s7529_s10  ;;  %v1601_v60 = vrot.slane %v15064_v50, 5  ;;  %v1786_v6 = vsel %vm1741_vm7, %v1783_v15, %v1785_v11 }
 0x302   : > { %1679 = vrot.lane.b32.xlu0 %v1598_v10, %s7525_s28 }
 0x303   : > { %v9650_v23 = vpop.permute.xlu1 %1485  ;;  %v1602_v10 = vsel %vm1533_vm4, %v1599_v57, %v1601_v60 }
 0x304   : > { %15063 = vst [vmem:[#allocation245_spill] sm:$0xff] %v9650_v23  ;;  %v9654_v7 = vpop.permute.xlu0 %1483  ;;  %v15067_v23 = vld [vmem:[#allocation180_spill] sm:$0xff] }
 0x305   : > { %15065 = vst [vmem:[#allocation179_spill] sm:$0xff] %v9654_v7  ;;  %1865 = vrot.lane.b32.xlu1 %v1784_v4, %s7529_s10  ;;  %v1603_v53 = vrot.slane %v15067_v23, 5  ;;  %v1788_v4 = vsel %vm1741_vm7, %v1785_v11, %v1787_v1  ;;  %v9697_v7 = vld [vmem:[%s7794_s15 + $0x158] sm:$0xff] }
 0x306   : > { %1681 = vrot.lane.b32.xlu0 %v1600_v37, %s7525_s28  ;;  %v1605_v37 = vrot.slane %v9136_v44, 5 }
 0x307   : > { %v9660_v40 = vpop.permute.xlu1 %1489  ;;  %v1604_v62 = vsel %vm1533_vm4, %v1601_v60, %v1603_v53 }
 0x308   : > { %15066 = vst [vmem:[#allocation246_spill] sm:$0xff] %v9660_v40  ;;  %v9664_v35 = vpop.permute.xlu0 %1487  ;;  %v1606_v38 = vsel %vm1533_vm4, %v1603_v53, %v1605_v37  ;;  %v9684_v40 = vld [vmem:[%s7794_s15 + $0x150] sm:$0xff]  ;;  %v1609_v53 = vrot.slane %v9697_v7, 5 }
 0x309   : > { %15068 = vst [vmem:[#allocation180_spill] sm:$0xff] %v9664_v35  ;;  %1867 = vrot.lane.b32.xlu1 %v1786_v6, %s7529_s10  ;;  %v1790_v6 = vsel %vm1741_vm7, %v1787_v1, %v1789_v0  ;;  %v1607_v60 = vrot.slane %v9684_v40, 5  ;;  %v1793_v1 = vrot.slane %v15040_v56, 6 }
 0x30a   : > { %1683 = vrot.lane.b32.xlu0 %v1602_v10, %s7525_s28  ;;  %v1791_v10 = vrot.slane %v15037_v29, 6 }
 0x30b   : > { %v9670_v15 = vpop.permute.xlu1 %1617  ;;  %v1608_v29 = vsel %vm1533_vm4, %v1605_v37, %v1607_v60  ;;  %v1610_v56 = vsel %vm1533_vm4, %v1607_v60, %v1609_v53  ;;  %v1611_v37 = vrot.slane %v9319_v49, 5 }
 0x30c   : > { %v9674_v57 = vpop.permute.xlu0 %1615 }
 0x30d   : > { %1869 = vrot.lane.b32.xlu1 %v1788_v4, %s7529_s10  ;;  %v1792_v4 = vsel %vm1741_vm7, %v1789_v0, %v1791_v10  ;;  %v1795_v0 = vrot.slane %v15043_v30, 6  ;;  %v1612_v30 = vsel %vm1533_vm4, %v1609_v53, %v1611_v37 }
 0x30e   : > { %1685 = vrot.lane.b32.xlu0 %v1604_v62, %s7525_s28 }
 0x30f   : > { %v9680_v11 = vpop.permute.xlu1 %1621 }
 0x310   : > { %v9687_v35 = vpop.permute.xlu0 %1619 }
 0x311   : > { %1871 = vrot.lane.b32.xlu1 %v1790_v6, %s7529_s10  ;;  %v1794_v6 = vsel %vm1741_vm7, %v1791_v10, %v1793_v1 }
 0x312   : > { %1687 = vrot.lane.b32.xlu0 %v1606_v38, %s7525_s28 }
 0x313   : > { %v9693_v62 = vpop.permute.xlu1 %1625 }
 0x314   : > { %v9700_v9 = vpop.permute.xlu0 %1623 }
 0x315   : > { %1873 = vrot.lane.b32.xlu1 %v1792_v4, %s7529_s10  ;;  %v1796_v4 = vsel %vm1741_vm7, %v1793_v1, %v1795_v0  ;;  %v1799_v1 = vrot.slane %v15049_v54, 6  ;;  %v1801_v54 = vrot.slane %v15052_v31, 6  ;;  %v15076_v31 = vld [vmem:[#allocation81_spill] sm:$0xff] }
 0x316   : > { %1689 = vrot.lane.b32.xlu0 %v1608_v29, %s7525_s28  ;;  %v1797_v29 = vrot.slane %v15046_v52, 6  ;;  %v1614_v52 = vsel %vm1533_vm4, %v1611_v37, %v1613_v26  ;;  %v15071_v37 = vld [vmem:[#allocation38_spill] sm:$0xff] }
 0x317   : > { %v9706_v38 = vpop.permute.xlu1 %1629  ;;  %v1952_v3 = vsel %vm1949_vm8, %v7210_v36, %v15071_v37  ;;  %v15078_v36 = vld [vmem:[#allocation83_spill] sm:$0xff] }
 0x318   : > { %v9710_v58 = vpop.permute.xlu0 %1627  ;;  %v1995_v37 = vsel %vm1992_vm5, %v1952_v3, %v15078_v36  ;;  %v1807_v3 = vrot.slane %v15061_v45, 6  ;;  %v1802_v36 = vsel %vm1741_vm7, %v1799_v1, %v1801_v54 }
 0x319   : > { %1875 = vrot.lane.b32.xlu1 %v1794_v6, %s7529_s10  ;;  %v1798_v6 = vsel %vm1741_vm7, %v1795_v0, %v1797_v29  ;;  %v1800_v0 = vsel %vm1741_vm7, %v1797_v29, %v1799_v1  ;;  %v1809_v1 = vrot.slane %v15064_v50, 6 }
 0x31a   : > { %1691 = vrot.lane.b32.xlu0 %v1610_v56, %s7525_s28 }
 0x31b   : > { %v9716_v10 = vpop.permute.xlu1 %1633 }
 0x31c   : > { %v9720_v60 = vpop.permute.xlu0 %1631 }
 0x31d   : > { %1877 = vrot.lane.b32.xlu1 %v1796_v4, %s7529_s10  ;;  %v1951_v4 = vsel %vm1949_vm8, %v7209_v43, %v15070_v22  ;;  %v7212_v43 = vld [vmem:[%s7794_s15 + $0x18] sm:$0xff] }
 0x31e   : > { %1693 = vrot.lane.b32.xlu0 %v1612_v30, %s7525_s28  ;;  %v1803_v30 = vrot.slane %v15055_v63, 6  ;;  %v15073_v22 = vld [vmem:[#allocation40_spill] sm:$0xff]  ;;  %v1993_v63 = vsel %vm1992_vm5, %v1950_v21, %v15076_v31  ;;  %v15083_v31 = vld [vmem:[#allocation146_spill] sm:$0xff] }
 0x31f   : > { %v9726_v56 = vpop.permute.xlu1 %1637 }
 0x320   : > { %15069 = vst [vmem:[#allocation247_spill] sm:$0xff] %v9726_v56  ;;  %v9729_v53 = vpop.permute.xlu0 %1635  ;;  %v15074_v56 = vld [vmem:[#allocation80_spill] sm:$0xff]  ;;  %v1804_v21 = vsel %vm1741_vm7, %v1801_v54, %v1803_v30  ;;  %v1811_v54 = vrot.slane %v15067_v23, 6 }
 0x321   : > { %1879 = vrot.lane.b32.xlu1 %v1798_v6, %s7529_s10  ;;  %v1953_v6 = vsel %vm1949_vm8, %v7212_v43, %v15073_v22  ;;  %v15080_v22 = vld [vmem:[#allocation20_spill] sm:$0xff] }
 0x322   : > { %1695 = vrot.lane.b32.xlu0 %v1614_v52, %s7525_s28  ;;  %v1994_v52 = vsel %vm1992_vm5, %v1951_v4, %v15074_v56  ;;  %v1996_v39 = vsel %vm1992_vm5, %v1953_v6, %v15077_v18  ;;  %v2036_v56 = vsel %vm2035_vm9, %v1993_v63, %v15080_v22  ;;  %v15081_v4 = vld [vmem:[#allocation21_spill] sm:$0xff]  ;;  %v1805_v18 = vrot.slane %v15058_v25, 6  ;;  %v15082_v6 = vld [vmem:[#allocation22_spill] sm:$0xff] }
 0x323   : > { %v9750_v29 = vpop.permute.xlu1 %1641  ;;  %v2037_v43 = vsel %vm2035_vm9, %v1994_v52, %v15079_v59  ;;  %v2038_v52 = vsel %vm2035_vm9, %v1995_v37, %v15082_v6  ;;  %v2079_v63 = vsel %vm2078_vm10, %v2036_v56, %v15083_v31  ;;  %v15086_v37 = vld [vmem:[#allocation150_spill] sm:$0xff] }
 0x324   : > { %15075 = vst [vmem:[#allocation41_spill] sm:$0xff] %v9750_v29  ;;  %v9758_v41 = vpop.permute.xlu0 %1639  ;;  %v2039_v29 = vsel %vm2035_vm9, %v1996_v39, %v15081_v4  ;;  %v2122_v25 = vsel %vm2121_vm11, %v2079_v63, %v9246_v33  ;;  %v2081_v56 = vsel %vm2078_vm10, %v2038_v52, %v15086_v37  ;;  %v1808_v6 = vsel %vm1741_vm7, %v1805_v18, %v1807_v3  ;;  %v7213_v52 = vld [vmem:[%s7794_s15 + $0x20] sm:$0xff] }
 0x325   : > { %1881 = vrot.lane.b32.xlu1 %v1800_v0, %s7529_s10  ;;  %v15084_v0 = vld [vmem:[#allocation145_spill] sm:$0xff]  ;;  %v2165_v4 = vsel %vm2164_vm12, %v2122_v25, %v9464_v12  ;;  %v2124_v33 = vsel %vm2121_vm11, %v2081_v56, %v9254_v17  ;;  %v15087_v17 = vld [vmem:[#allocation43_spill] sm:$0xff]  ;;  %v1810_v25 = vsel %vm1741_vm7, %v1807_v3, %v1809_v1  ;;  %v15089_v37 = vld [vmem:[#allocation24_spill] sm:$0xff] }
 0x326   : > { %1697 = vrot.lane.b32.xlu0 %v1613_v26, %s7525_s28  ;;  %v2080_v59 = vsel %vm2078_vm10, %v2037_v43, %v15084_v0  ;;  %v15085_v26 = vld [vmem:[#allocation149_spill] sm:$0xff]  ;;  %v2208_v43 = vsel %vm2207_vm13, %v2165_v4, %v9674_v57  ;;  %v2167_v50 = vsel %vm2164_vm12, %v2124_v33, %v9474_v16  ;;  %v1954_v31 = vsel %vm1949_vm8, %v7213_v52, %v15087_v17  ;;  %s7535_s28 = smov [#allocation12]  }
 0x327   : > { %v1824_v39 = vpop.permute.xlu1 %1823  ;;  %v2082_v22 = vsel %vm2078_vm10, %v2039_v29, %v15085_v26  ;;  %v2123_v29 = vsel %vm2121_vm11, %v2080_v59, %v9244_v8  ;;  %v1806_v8 = vsel %vm1741_vm7, %v1803_v30, %v1805_v18  ;;  %v1812_v30 = vsel %vm1741_vm7, %v1809_v1, %v1811_v54 }
 0x328   : > { %v9782_v45 = vpop.permute.xlu0 %1643  ;;  %v2166_v12 = vsel %vm2164_vm12, %v2123_v29, %v9460_v42  ;;  %v2251_v23 = vsel %vm2250_vm14, %v2208_v43, %v1824_v39  ;;  %v2125_v57 = vsel %vm2121_vm11, %v2082_v22, %v9252_v61  ;;  %v2210_v42 = vsel %vm2207_vm13, %v2167_v50, %v9687_v35  ;;  %v15088_v35 = vld [vmem:[#allocation85_spill] sm:$0xff]  ;;  %v15090_v43 = vld [vmem:[#allocation42_spill] sm:$0xff] }
 0x329   : > { %1885 = vrot.lane.b32.xlu1 %v1804_v21, %s7529_s10  ;;  %v2209_v63 = vsel %vm2207_vm13, %v2166_v12, %v9670_v15  ;;  %v2335_v18 = vrot.slane %v2251_v23, 5  ;;  %v1813_v61 = vrot.slane %v9136_v44, 6  ;;  %v1815_v15 = vrot.slane %v9684_v40, 6  ;;  %v7214_v40 = vld [vmem:[%s7794_s15 + $0x28] sm:$0xff] }
 0x32a   : > { %1883 = vrot.lane.b32.xlu0 %v1802_v36, %s7529_s10  ;;  %v1997_v59 = vsel %vm1992_vm5, %v1954_v31, %v15088_v35  ;;  %v2168_v26 = vsel %vm2164_vm12, %v2125_v57, %v9470_v32  ;;  %v15091_v12 = vld [vmem:[#allocation154_spill] sm:$0xff]  ;;  %v15092_v1 = vmov 0.0   ;;  %v1817_v23 = vrot.slane %v9697_v7, 6  ;;  %v15094_v57 = vld [vmem:[#allocation23_spill] sm:$0xff]  ;;  %v15095_v7 = vld [vmem:[#allocation153_spill] sm:$0xff] }
 0x32b   : > { %v1828_v21 = vpop.permute.xlu1 %1827  ;;  %v2040_v56 = vsel %vm2035_vm9, %v1997_v59, %v15089_v37  ;;  %v2211_v4 = vsel %vm2207_vm13, %v2168_v26, %v9680_v11  ;;  %v1816_v50 = vsel %vm1741_vm7, %v1813_v61, %v1815_v15 }
 0x32c   : > { %v1826_v36 = vpop.permute.xlu0 %1825  ;;  %v2253_v16 = vsel %vm2250_vm14, %v2210_v42, %v1828_v21  ;;  %v2083_v32 = vsel %vm2078_vm10, %v2040_v56, %v15091_v12  ;;  %v1819_v21 = vrot.slane %v9319_v49, 6 }
 0x32d   : > { %v2252_v39 = vsel %vm2250_vm14, %v2209_v63, %v1826_v36  ;;  %1889 = vrot.lane.b32.xlu1 %v1808_v6, %s7529_s10  ;;  %v2338_v29 = vrot.slane %v2253_v16, 5  ;;  %v1955_v6 = vsel %vm1949_vm8, %v7214_v40, %v15090_v43  ;;  %v2126_v11 = vsel %vm2121_vm11, %v2083_v32, %v9262_v27  ;;  %v15099_v43 = vld [vmem:[#allocation158_spill] sm:$0xff] }
 0x32e   : > { %v2336_v0 = vrot.slane %v2252_v39, 5  ;;  %1887 = vrot.lane.b32.xlu0 %v1806_v8, %s7529_s10  ;;  %v15093_v8 = vld [vmem:[#allocation84_spill] sm:$0xff]  ;;  %v2169_v17 = vsel %vm2164_vm12, %v2126_v11, %v9484_v46  ;;  %v1814_v27 = vsel %vm1741_vm7, %v1811_v54, %v1813_v61  ;;  %v15096_v54 = vld [vmem:[#allocation45_spill] sm:$0xff]  ;;  %v15097_v61 = vld [vmem:[#allocation87_spill] sm:$0xff] }
 0x32f   : > { %v1830_v22 = vpop.permute.xlu1 %1829  ;;  %v1998_v52 = vsel %vm1992_vm5, %v1955_v6, %v15093_v8  ;;  %v2212_v42 = vsel %vm2207_vm13, %v2169_v17, %v9700_v9  ;;  %v7215_v46 = vld [vmem:[%s7794_s15 + $0x30] sm:$0xff] }
 0x330   : > { %v9830_v33 = vpop.permute.xlu0 %1645  ;;  %v2337_v44 = vsel %vm1533_vm4, %v2335_v18, %v2336_v0  ;;  %v2254_v3 = vsel %vm2250_vm14, %v2211_v4, %v1830_v22  ;;  %v2041_v63 = vsel %vm2035_vm9, %v1998_v52, %v15094_v57  ;;  %v2339_v49 = vsel %vm1533_vm4, %v2336_v0, %v2338_v29 }
 0x331   : > { %6760 = vmatmul.mubr.msk.f32.vlgmr.msra.gmra.mrb[0].mxu0 %vm2418_vm15, %v2337_v44  ;;  %1893 = vrot.lane.b32.xlu1 %v1812_v30, %s7529_s10  ;;  %v2340_v36 = vrot.slane %v2254_v3, 5  ;;  %v2084_v39 = vsel %vm2078_vm10, %v2041_v63, %v15095_v7  ;;  %v1956_v18 = vsel %vm1949_vm8, %v7215_v46, %v15096_v54  ;;  %v1820_v0 = vsel %vm1741_vm7, %v1817_v23, %v1819_v21  ;;  %v345_v46 = vld [vmem:[#allocation6] sm:$0xff] }
 0x332   : > { %1891 = vrot.lane.b32.xlu0 %v1810_v25, %s7529_s10  ;;  %6762 = vmatprep.mubr.msk.f32.mxu0 %vm7528_vm6, %v15092_v1  ;;  %v2127_v9 = vsel %vm2121_vm11, %v2084_v39, %v9260_v55  ;;  %v1999_v35 = vsel %vm1992_vm5, %v1956_v18, %v15097_v61  ;;  %v1818_v22 = vsel %vm1741_vm7, %v1815_v15, %v1817_v23  ;;  %v1821_v25 = vrot.slane %v9333_v51, 6  ;;  %v15098_v55 = vld [vmem:[#allocation26_spill] sm:$0xff]  ;;  %v7216_v51 = vld [vmem:[%s7794_s15 + $0x38] sm:$0xff] }
 0x333   : > { %v1832_v31 = vpop.permute.xlu1 %1831  ;;  %v2170_v59 = vsel %vm2164_vm12, %v2127_v9, %v9480_v13  ;;  %v2042_v37 = vsel %vm2035_vm9, %v1999_v35, %v15098_v55  ;;  %v2341_v40 = vsel %vm1533_vm4, %v2338_v29, %v2340_v36  ;;  %v15100_v15 = vld [vmem:[#allocation44_spill] sm:$0xff]  ;;  %v15101_v29 = vld [vmem:[#allocation86_spill] sm:$0xff]  ;;  %v15102_v23 = vld [vmem:[#allocation25_spill] sm:$0xff] }
 0x334   : > { %v9858_v16 = vpop.permute.xlu0 %1647  ;;  %v2255_v30 = vsel %vm2250_vm14, %v2212_v42, %v1832_v31  ;;  %v2213_v56 = vsel %vm2207_vm13, %v2170_v59, %v9693_v62  ;;  %v2085_v6 = vsel %vm2078_vm10, %v2042_v37, %v15099_v43  ;;  %v1957_v12 = vsel %vm1949_vm8, %v7216_v51, %v15100_v15  ;;  %v15106_v54 = vld [vmem:[#allocation28_spill] sm:$0xff]  ;;  %v15107_v35 = vld [vmem:[#allocation162_spill] sm:$0xff] }
 0x335   : > { %6763 = vmatmul.mubr.msk.f32.gmra.mrb[2].mxu0 %vm2418_vm15, %v2339_v49  ;;  %1897 = vrot.lane.b32.xlu1 %v1816_v50, %s7529_s10  ;;  %v2342_v4 = vrot.slane %v2255_v30, 5  ;;  %v2128_v62 = vsel %vm2121_vm11, %v2085_v6, %v9270_v28  ;;  %v2000_v32 = vsel %vm1992_vm5, %v1957_v12, %v15101_v29  ;;  %v1822_v50 = vsel %vm1741_vm7, %v1819_v21, %v1821_v25  ;;  %v15104_v21 = vld [vmem:[#allocation47_spill] sm:$0xff]  ;;  %v15105_v49 = vld [vmem:[#allocation89_spill] sm:$0xff]  ;;  %v15109_v37 = vld [vmem:[#allocation88_spill] sm:$0xff] }
 0x336   : > { %1895 = vrot.lane.b32.xlu0 %v1814_v27, %s7529_s10  ;;  %6765 = vmatprep.mubr.msk.f32.mxu0 %vm7528_vm6, %v15092_v1  ;;  %v2171_v3 = vsel %vm2164_vm12, %v2128_v62, %v9494_v20  ;;  %v2043_v8 = vsel %vm2035_vm9, %v2000_v32, %v15102_v23  ;;  %v15103_v27 = vld [vmem:[#allocation157_spill] sm:$0xff]  ;;  %v348_v43 = vld [vmem:[#allocation6 + $0x18] sm:$0xff] }
 0x337   : > { %v1834_v26 = vpop.permute.xlu1 %1833  ;;  %v2214_v28 = vsel %vm2207_vm13, %v2171_v3, %v9710_v58  ;;  %v2343_v31 = vsel %vm1533_vm4, %v2340_v36, %v2342_v4  ;;  %v2086_v57 = vsel %vm2078_vm10, %v2043_v8, %v15103_v27  ;;  %v7217_v20 = vld [vmem:[%s7794_s15 + $0x40] sm:$0xff]  ;;  %v15110_v6 = vld [vmem:[#allocation27_spill] sm:$0xff] }
 0x338   : > { %v9885_v44 = vpop.permute.xlu0 %1649  ;;  %v2256_v13 = vsel %vm2250_vm14, %v2213_v56, %v1834_v26  ;;  %v1958_v42 = vsel %vm1949_vm8, %v7217_v20, %v15104_v21  ;;  %v2129_v58 = vsel %vm2121_vm11, %v2086_v57, %v9268_v5  ;;  %v346_v36 = vld [vmem:[#allocation6 + $0x8] sm:$0xff]  ;;  %v347_v55 = vld [vmem:[#allocation6 + $0x10] sm:$0xff]  ;;  %v15113_v23 = vld [vmem:[#allocation91_spill] sm:$0xff] }
 0x339   : > { %6766 = vmatmul.mubr.msk.f32.gmra.mrb[4].mxu0 %vm2418_vm15, %v2341_v40  ;;  %1901 = vrot.lane.b32.xlu1 %v1820_v0, %s7529_s10  ;;  %v2344_v52 = vrot.slane %v2256_v13, 5  ;;  %v2001_v7 = vsel %vm1992_vm5, %v1958_v42, %v15105_v49  ;;  %v2172_v39 = vsel %vm2164_vm12, %v2129_v58, %v9490_v2  ;;  %v7218_v2 = vld [vmem:[%s7794_s15 + $0x48] sm:$0xff]  ;;  %v15116_v49 = vld [vmem:[#allocation48_spill] sm:$0xff] }
 0x33a   : > { %1899 = vrot.lane.b32.xlu0 %v1818_v22, %s7529_s10  ;;  %6768 = vmatprep.mubr.msk.f32.mxu0 %vm7528_vm6, %v15092_v1  ;;  %v2044_v18 = vsel %vm2035_vm9, %v2001_v7, %v15106_v54  ;;  %v2215_v5 = vsel %vm2207_vm13, %v2172_v39, %v9706_v38  ;;  %v15108_v22 = vld [vmem:[#allocation46_spill] sm:$0xff]  ;;  %v15111_v62 = vld [vmem:[#allocation161_spill] sm:$0xff] }
 0x33b   : > { %v1836_v11 = vpop.permute.xlu1 %1835  ;;  %v2345_v61 = vsel %vm1533_vm4, %v2342_v4, %v2344_v52  ;;  %v2087_v59 = vsel %vm2078_vm10, %v2044_v18, %v15107_v35  ;;  %v15112_v3 = vld [vmem:[#allocation49_spill] sm:$0xff]  ;;  %v15114_v27 = vld [vmem:[#allocation30_spill] sm:$0xff] }
 0x33c   : > { %v9910_v17 = vpop.permute.xlu0 %1651  ;;  %v2257_v63 = vsel %vm2250_vm14, %v2214_v28, %v1836_v11  ;;  %v2130_v38 = vsel %vm2121_vm11, %v2087_v59, %v9278_v47  ;;  %v15115_v42 = vld [vmem:[#allocation166_spill] sm:$0xff] }
 0x33d   : > { %6769 = vmatmul.mubr.msk.f32.gmra.mrb[6].mxu0 %vm2418_vm15, %v2343_v31  ;;  %1905 = vrot.lane.b32.xlu1 %v1821_v25, %s7529_s10  ;;  %v2346_v9 = vrot.slane %v2257_v63, 5  ;;  %v1959_v25 = vsel %vm1949_vm8, %v7218_v2, %v15108_v22  ;;  %v2173_v4 = vsel %vm2164_vm12, %v2130_v38, %v9504_v24  ;;  %v7219_v24 = vld [vmem:[%s7794_s15 + $0x50] sm:$0xff]  ;;  %v350_v31 = vld [vmem:[#allocation6 + $0x28] sm:$0xff]  ;;  %v351_v39 = vld [vmem:[#allocation6 + $0x30] sm:$0xff] }
 0x33e   : > { %1903 = vrot.lane.b32.xlu0 %v1822_v50, %s7529_s10  ;;  %6771 = vmatprep.mubr.msk.f32.mxu0 %vm7528_vm6, %v15092_v1  ;;  %v2002_v56 = vsel %vm1992_vm5, %v1959_v25, %v15109_v37  ;;  %v2216_v47 = vsel %vm2207_vm13, %v2173_v4, %v9720_v60  ;;  %v1960_v11 = vsel %vm1949_vm8, %v7219_v24, %v15112_v3  ;;  %v349_v50 = vld [vmem:[#allocation6 + $0x20] sm:$0xff]  ;;  %v15119_v2 = vld [vmem:[#allocation165_spill] sm:$0xff] }
 0x33f   : > { %v1838_v30 = vpop.permute.xlu1 %1837  ;;  %v2045_v13 = vsel %vm2035_vm9, %v2002_v56, %v15110_v6  ;;  %v2347_v12 = vsel %vm1533_vm4, %v2344_v52, %v2346_v9  ;;  %v2003_v8 = vsel %vm1992_vm5, %v1960_v11, %v15113_v23  ;;  %v15120_v38 = vld [vmem:[#allocation51_spill] sm:$0xff]  ;;  %v15121_v37 = vld [vmem:[#allocation205_spill] sm:$0xff]  ;;  %v15126_v11 = vld [vmem:[#allocation170_spill] sm:$0xff] }
 0x340   : > { %v9934_v0 = vpop.permute.xlu0 %1653  ;;  %v2258_v26 = vsel %vm2250_vm14, %v2215_v5, %v1838_v30  ;;  %v2088_v29 = vsel %vm2078_vm10, %v2045_v13, %v15111_v62  ;;  %v2046_v57 = vsel %vm2035_vm9, %v2003_v8, %v15114_v27  ;;  %v15117_v30 = vld [vmem:[#allocation90_spill] sm:$0xff]  ;;  %v353_v56 = vld [vmem:[#allocation6 + $0x40] sm:$0xff]  ;;  %v15122_v4 = vld [vmem:[#allocation93_spill] sm:$0xff] }
 0x341   : > { %6772 = vmatmul.mubr.msk.f32.gmra.mrb[8].mxu0 %vm2418_vm15, %v2345_v61  ;;  %2781 = vperm.xlu1 %7163, %v346_v36   ;;  %v2348_v51 = vrot.slane %v2258_v26, 5  ;;  %v2131_v60 = vsel %vm2121_vm11, %v2088_v29, %v9276_v14  ;;  %v2089_v58 = vsel %vm2078_vm10, %v2046_v57, %v15115_v42  ;;  %v352_v5 = vld [vmem:[#allocation6 + $0x38] sm:$0xff]  ;;  %v355_v27 = vld [vmem:[#allocation6 + $0x50] sm:$0xff]  ;;  %v15129_v57 = vld [vmem:[#allocation92_spill] sm:$0xff] }
 0x342   : > { %6774 = vmatprep.mubr.msk.f32.mxu0 %vm7528_vm6, %v15092_v1  ;;  %2776 = vperm.xlu0 %7162, %v345_v46   ;;  %v2174_v28 = vsel %vm2164_vm12, %v2131_v60, %v9500_v34  ;;  %v7220_v34 = vld [vmem:[%s7794_s15 + $0x58] sm:$0xff]  ;;  %v7222_v23 = vld [vmem:[%s7794_s15 + $0x68] sm:$0xff] }
 0x343   : > { %v1840_v40 = vpop.permute.xlu1 %1839  ;;  %v2217_v14 = vsel %vm2207_vm13, %v2174_v28, %v9716_v10  ;;  %v2349_v21 = vsel %vm1533_vm4, %v2346_v9, %v2348_v51  ;;  %v1961_v7 = vsel %vm1949_vm8, %v7220_v34, %v15116_v49  ;;  %v2132_v10 = vsel %vm2121_vm11, %v2089_v58, %v9286_v48  ;;  %v15118_v9 = vld [vmem:[#allocation29_spill] sm:$0xff]  ;;  %v15125_v62 = vld [vmem:[#allocation247_spill] sm:$0xff]  ;;  %v15127_v8 = vld [vmem:[#allocation50_spill] sm:$0xff] }
 0x344   : > { %v9956_v15 = vpop.permute.xlu0 %1655  ;;  %v2259_v32 = vsel %vm2250_vm14, %v2216_v47, %v1840_v40  ;;  %v2004_v46 = vsel %vm1992_vm5, %v1961_v7, %v15117_v30  ;;  %v2175_v54 = vsel %vm2164_vm12, %v2132_v10, %v9514_v19  ;;  %v7221_v19 = vld [vmem:[%s7794_s15 + $0x60] sm:$0xff]  ;;  %v1963_v28 = vsel %vm1949_vm8, %v7222_v23, %v15127_v8  ;;  %v356_v58 = vld [vmem:[#allocation6 + $0x58] sm:$0xff] }
 0x345   : > { %6775 = vmatmul.mubr.msk.f32.gmra.mrb[10].mxu0 %vm2418_vm15, %v2347_v12  ;;  %2786 = vperm.xlu1 %7163, %v347_v55   ;;  %v2350_v63 = vrot.slane %v2259_v32, 5  ;;  %v2047_v61 = vsel %vm2035_vm9, %v2004_v46, %v15118_v9  ;;  %v2218_v48 = vsel %vm2207_vm13, %v2175_v54, %v9729_v53  ;;  %v1962_v55 = vsel %vm1949_vm8, %v7221_v19, %v15120_v38  ;;  %v354_v47 = vld [vmem:[#allocation6 + $0x48] sm:$0xff]  ;;  %v15137_v38 = vld [vmem:[#allocation34_spill] sm:$0xff] }
 0x346   : > { %6777 = vmatprep.mubr.msk.f32.mxu0 %vm7528_vm6, %v15092_v1  ;;  %2791 = vperm.xlu0 %7162, %v348_v43   ;;  %v2090_v22 = vsel %vm2078_vm10, %v2047_v61, %v15119_v2  ;;  %v2005_v40 = vsel %vm1992_vm5, %v1962_v55, %v15122_v4  ;;  %v15123_v43 = vld [vmem:[#allocation143_spill] sm:$0xff]  ;;  %v15132_v30 = vld [vmem:[#allocation169_spill] sm:$0xff]  ;;  %v15134_v61 = vld [vmem:[#allocation206_spill] sm:$0xff] }
 0x347   : > { %v1842_v52 = vpop.permute.xlu1 %1841  ;;  %v2351_v26 = vsel %vm1533_vm4, %v2348_v51, %v2350_v63  ;;  %v2133_v53 = vsel %vm2121_vm11, %v2090_v22, %v15121_v37  ;;  %v15124_v51 = vld [vmem:[#allocation32_spill] sm:$0xff]  ;;  %v15138_v37 = vld [vmem:[#allocation41_spill] sm:$0xff]  ;;  %v360_v8 = vld [vmem:[#allocation6 + $0x78] sm:$0xff] }
 0x348   : > { %v9978_v20 = vpop.permute.xlu0 %1657  ;;  %v2260_v36 = vsel %vm2250_vm14, %v2217_v14, %v1842_v52  ;;  %v2176_v6 = vsel %vm2164_vm12, %v2133_v53, %v15123_v43  ;;  %v2048_v12 = vsel %vm2035_vm9, %v2005_v40, %v15124_v51  ;;  %v15128_v52 = vld [vmem:[#allocation207_spill] sm:$0xff]  ;;  %v2006_v14 = vsel %vm1992_vm5, %v1963_v28, %v15129_v57  ;;  %v15136_v2 = vld [vmem:[#allocation144_spill] sm:$0xff]  ;;  %v15139_v43 = vld [vmem:[#allocation174_spill] sm:$0xff] }
 0x349   : > { %6778 = vmatmul.mubr.msk.f32.gmra.mrb[12].mxu0 %vm2418_vm15, %v2349_v21  ;;  %2796 = vperm.xlu1 %7163, %v349_v50   ;;  %v2352_v35 = vrot.slane %v2260_v36, 5  ;;  %v2219_v29 = vsel %vm2207_vm13, %v2176_v6, %v15125_v62  ;;  %v2091_v60 = vsel %vm2078_vm10, %v2048_v12, %v15126_v11  ;;  %v15131_v36 = vld [vmem:[#allocation31_spill] sm:$0xff]  ;;  %v358_v19 = vld [vmem:[#allocation6 + $0x68] sm:$0xff] }
 0x34a   : > { %6780 = vmatprep.mubr.msk.f32.mxu0 %vm7528_vm6, %v15092_v1  ;;  %2801 = vperm.xlu0 %7162, %v350_v31   ;;  %v2134_v31 = vsel %vm2121_vm11, %v2091_v60, %v15128_v52  ;;  %v2049_v34 = vsel %vm2035_vm9, %v2006_v14, %v15131_v36  ;;  %v15140_v51 = vld [vmem:[#allocation52_spill] sm:$0xff]  ;;  %v15141_v62 = vld [vmem:[#allocation209_spill] sm:$0xff]  ;;  %v15143_v60 = vld [vmem:[#allocation151_spill] sm:$0xff] }
 0x34b   : > { %v1844_v18 = vpop.permute.xlu1 %1843  ;;  %v2353_v3 = vsel %vm1533_vm4, %v2350_v63, %v2352_v35  ;;  %v15130_v63 = vld [vmem:[#allocation147_spill] sm:$0xff]  ;;  %v2092_v46 = vsel %vm2078_vm10, %v2049_v34, %v15132_v30  ;;  %v15144_v28 = vld [vmem:[#allocation33_spill] sm:$0xff] }
 0x34c   : > { %v10000_v59 = vpop.permute.xlu0 %1659  ;;  %v2261_v25 = vsel %vm2250_vm14, %v2218_v48, %v1844_v18  ;;  %v2177_v21 = vsel %vm2164_vm12, %v2134_v31, %v15130_v63  ;;  %v7223_v18 = vld [vmem:[%s7794_s15 + $0x70] sm:$0xff]  ;;  %v15145_v63 = vld [vmem:[#allocation173_spill] sm:$0xff] }
 0x34d   : > { %6781 = vmatmul.mubr.msk.f32.gmra.mrb[14].mxu0 %vm2418_vm15, %v2351_v26  ;;  %2806 = vperm.xlu1 %7163, %v351_v39   ;;  %v2354_v32 = vrot.slane %v2261_v25, 5  ;;  %v2220_v49 = vsel %vm2207_vm13, %v2177_v21, %v9758_v41  ;;  %v2135_v41 = vsel %vm2121_vm11, %v2092_v46, %v15134_v61  ;;  %v357_v48 = vld [vmem:[#allocation6 + $0x60] sm:$0xff] }
 0x34e   : > { %6783 = vmatprep.mubr.msk.f32.mxu0 %vm7528_vm6, %v15092_v1  ;;  %2811 = vperm.xlu0 %7162, %v352_v5   ;;  %v15133_v5 = vld [vmem:[#allocation53_spill] sm:$0xff]  ;;  %v2178_v22 = vsel %vm2164_vm12, %v2135_v41, %v15136_v2  ;;  %v15146_v36 = vld [vmem:[#allocation55_spill] sm:$0xff]  ;;  %v15149_v46 = vld [vmem:[#allocation148_spill] sm:$0xff] }
 0x34f   : > { %v1846_v13 = vpop.permute.xlu1 %1845  ;;  %v2355_v39 = vsel %vm1533_vm4, %v2352_v35, %v2354_v32  ;;  %v1964_v9 = vsel %vm1949_vm8, %v7223_v18, %v15133_v5  ;;  %v15135_v35 = vld [vmem:[#allocation95_spill] sm:$0xff]  ;;  %v2221_v53 = vsel %vm2207_vm13, %v2178_v22, %v15138_v37  ;;  %v362_v5 = vld [vmem:[#allocation6 + $0x88] sm:$0xff]  ;;  %v15151_v2 = vld [vmem:[#allocation178_spill] sm:$0xff] }
 0x350   : > { %v10022_v24 = vpop.permute.xlu0 %1661  ;;  %v2262_v50 = vsel %vm2250_vm14, %v2219_v29, %v1846_v13  ;;  %v2007_v26 = vsel %vm1992_vm5, %v1964_v9, %v15135_v35  ;;  %v15150_v9 = vld [vmem:[#allocation36_spill] sm:$0xff]  ;;  %v15153_v37 = vld [vmem:[#allocation211_spill] sm:$0xff] }
 0x351   : > { %6784 = vmatmul.mubr.msk.f32.gmra.mrb[16].mxu0 %vm2418_vm15, %v2353_v3  ;;  %2816 = vperm.xlu1 %7163, %v353_v56   ;;  %v2356_v7 = vrot.slane %v2262_v50, 5  ;;  %v2050_v55 = vsel %vm2035_vm9, %v2007_v26, %v15137_v38  ;;  %v15142_v3 = vld [vmem:[#allocation94_spill] sm:$0xff] }
 0x352   : > { %6786 = vmatprep.mubr.msk.f32.mxu0 %vm7528_vm6, %v15092_v1  ;;  %2821 = vperm.xlu0 %7162, %v354_v47   ;;  %v2093_v6 = vsel %vm2078_vm10, %v2050_v55, %v15139_v43  ;;  %v7224_v47 = vld [vmem:[%s7794_s15 + $0x78] sm:$0xff]  ;;  %v15152_v38 = vld [vmem:[#allocation54_spill] sm:$0xff] }
 0x353   : > { %v1848_v42 = vpop.permute.xlu1 %1847  ;;  %v2357_v40 = vsel %vm1533_vm4, %v2354_v32, %v2356_v7  ;;  %v1965_v12 = vsel %vm1949_vm8, %v7224_v47, %v15140_v51  ;;  %v2136_v29 = vsel %vm2121_vm11, %v2093_v6, %v15141_v62  ;;  %v359_v32 = vld [vmem:[#allocation6 + $0x70] sm:$0xff]  ;;  %v15155_v43 = vld [vmem:[#allocation155_spill] sm:$0xff] }
 0x354   : > { %v10044_v10 = vpop.permute.xlu0 %1663  ;;  %v2263_v54 = vsel %vm2250_vm14, %v2220_v49, %v1848_v42  ;;  %v2008_v11 = vsel %vm1992_vm5, %v1965_v12, %v15142_v3  ;;  %v2179_v50 = vsel %vm2164_vm12, %v2136_v29, %v15143_v60  ;;  %v15147_v49 = vld [vmem:[#allocation208_spill] sm:$0xff]  ;;  %v364_v47 = vld [vmem:[#allocation6 + $0x98] sm:$0xff] }
 0x355   : > { %6787 = vmatmul.mubr.msk.f32.gmra.mrb[18].mxu0 %vm2418_vm15, %v2355_v39  ;;  %2826 = vperm.xlu1 %7163, %v355_v27   ;;  %v2358_v56 = vrot.slane %v2263_v54, 5  ;;  %v2051_v52 = vsel %vm2035_vm9, %v2008_v11, %v15144_v28  ;;  %v2222_v31 = vsel %vm2207_vm13, %v2179_v50, %v9782_v45  ;;  %v15148_v39 = vld [vmem:[#allocation97_spill] sm:$0xff]  ;;  %v15156_v51 = vld [vmem:[#allocation35_spill] sm:$0xff] }
 0x356   : > { %6789 = vmatprep.mubr.msk.f32.mxu0 %vm7528_vm6, %v15092_v1  ;;  %2831 = vperm.xlu0 %7162, %v356_v58   ;;  %v2094_v21 = vsel %vm2078_vm10, %v2051_v52, %v15145_v63  ;;  %v7225_v58 = vld [vmem:[%s7794_s15 + $0x80] sm:$0xff] }
 0x357   : > { %v1850_v25 = vpop.permute.xlu1 %1849  ;;  %v2359_v14 = vsel %vm1533_vm4, %v2356_v7, %v2358_v56  ;;  %v1966_v34 = vsel %vm1949_vm8, %v7225_v58, %v15146_v36  ;;  %v2137_v45 = vsel %vm2121_vm11, %v2094_v21, %v15147_v49  ;;  %v361_v7 = vld [vmem:[#allocation6 + $0x80] sm:$0xff]  ;;  %v15157_v11 = vld [vmem:[#allocation177_spill] sm:$0xff]  ;;  %v15159_v52 = vld [vmem:[#allocation210_spill] sm:$0xff] }
 0x358   : > { %v10066_v4 = vpop.permute.xlu0 %1665  ;;  %v2264_v13 = vsel %vm2250_vm14, %v2221_v53, %v1850_v25  ;;  %v2009_v30 = vsel %vm1992_vm5, %v1966_v34, %v15148_v39  ;;  %v2180_v54 = vsel %vm2164_vm12, %v2137_v45, %v15149_v46  ;;  %v363_v53 = vld [vmem:[#allocation6 + $0x90] sm:$0xff]  ;;  %v15161_v63 = vld [vmem:[#allocation152_spill] sm:$0xff] }
 0x359   : > { %6790 = vmatmul.mubr.msk.f32.gmra.mrb[20].mxu0 %vm2418_vm15, %v2357_v40  ;;  %2836 = vperm.xlu1 %7163, %v357_v48   ;;  %v2360_v27 = vrot.slane %v2264_v13, 5  ;;  %v2052_v61 = vsel %vm2035_vm9, %v2009_v30, %v15150_v9  ;;  %v2223_v41 = vsel %vm2207_vm13, %v2180_v54, %v9830_v33  ;;  %v366_v58 = vld [vmem:[#allocation6 + $0xa8] sm:$0xff]  ;;  %v15163_v30 = vld [vmem:[#allocation182_spill] sm:$0xff] }
 0x35a   : > { %6792 = vmatprep.mubr.msk.f32.mxu0 %vm7528_vm6, %v15092_v1  ;;  %2841 = vperm.xlu0 %7162, %v358_v19   ;;  %v2095_v22 = vsel %vm2078_vm10, %v2052_v61, %v15151_v2  ;;  %v7226_v19 = vld [vmem:[%s7794_s15 + $0x88] sm:$0xff]  ;;  %v15162_v36 = vld [vmem:[#allocation120_spill] sm:$0xff] }
 0x35b   : > { %v1852_v23 = vpop.permute.xlu1 %1851  ;;  %v2361_v26 = vsel %vm1533_vm4, %v2358_v56, %v2360_v27  ;;  %v1967_v55 = vsel %vm1949_vm8, %v7226_v19, %v15152_v38  ;;  %v2138_v33 = vsel %vm2121_vm11, %v2095_v22, %v15153_v37  ;;  %v15154_v56 = vld [vmem:[#allocation96_spill] sm:$0xff]  ;;  %v15165_v61 = vld [vmem:[#allocation213_spill] sm:$0xff]  ;;  %v15167_v2 = vld [vmem:[#allocation159_spill] sm:$0xff] }
 0x35c   : > { %v10088_v57 = vpop.permute.xlu0 %1667  ;;  %v2265_v42 = vsel %vm2250_vm14, %v2222_v31, %v1852_v23  ;;  %v2010_v40 = vsel %vm1992_vm5, %v1967_v55, %v15154_v56  ;;  %v2181_v6 = vsel %vm2164_vm12, %v2138_v33, %v15155_v43  ;;  %v7227_v23 = vld [vmem:[%s7794_s15 + $0x90] sm:$0xff]  ;;  %v15168_v38 = vld [vmem:[#allocation37_spill] sm:$0xff] }
 0x35d   : > { %6793 = vmatmul.mubr.msk.f32.gmra.mrb[22].mxu0 %vm2418_vm15, %v2359_v14  ;;  %2846 = vperm.xlu1 %7163, %v359_v32   ;;  %v2362_v48 = vrot.slane %v2265_v42, 5  ;;  %v2053_v12 = vsel %vm2035_vm9, %v2010_v40, %v15156_v51  ;;  %v2224_v62 = vsel %vm2207_vm13, %v2181_v6, %v9858_v16  ;;  %v365_v31 = vld [vmem:[#allocation6 + $0xa0] sm:$0xff]  ;;  %v368_v19 = vld [vmem:[#allocation6 + $0xb8] sm:$0xff]  ;;  %v15169_v40 = vld [vmem:[#allocation181_spill] sm:$0xff] }
 0x35e   : > { %6795 = vmatprep.mubr.msk.f32.mxu0 %vm7528_vm6, %v15092_v1  ;;  %2851 = vperm.xlu0 %7162, %v360_v8   ;;  %v2096_v60 = vsel %vm2078_vm10, %v2053_v12, %v15157_v11  ;;  %v15158_v8 = vld [vmem:[#allocation57_spill] sm:$0xff]  ;;  %v15171_v12 = vld [vmem:[#allocation212_spill] sm:$0xff] }
 0x35f   : > { %v1854_v18 = vpop.permute.xlu1 %1853  ;;  %v2363_v3 = vsel %vm1533_vm4, %v2360_v27, %v2362_v48  ;;  %v1968_v28 = vsel %vm1949_vm8, %v7227_v23, %v15158_v8  ;;  %v2139_v16 = vsel %vm2121_vm11, %v2096_v60, %v15159_v52  ;;  %v15160_v27 = vld [vmem:[#allocation99_spill] sm:$0xff]  ;;  %v15173_v11 = vld [vmem:[#allocation156_spill] sm:$0xff]  ;;  %v15174_v8 = vld [vmem:[#allocation122_spill] sm:$0xff] }
 0x360   : > { %v10110_v35 = vpop.permute.xlu0 %1669  ;;  %v2266_v25 = vsel %vm2250_vm14, %v2223_v41, %v1854_v18  ;;  %v2011_v14 = vsel %vm1992_vm5, %v1968_v28, %v15160_v27  ;;  %v2182_v21 = vsel %vm2164_vm12, %v2139_v16, %v15161_v63  ;;  %v7228_v18 = vld [vmem:[%s7794_s15 + $0x98] sm:$0xff]  ;;  %v367_v41 = vld [vmem:[#allocation6 + $0xb0] sm:$0xff] }
 0x361   : > { %6796 = vmatmul.mubr.msk.f32.gmra.mrb[24].mxu0 %vm2418_vm15, %v2361_v26  ;;  %2856 = vperm.xlu1 %7163, %v361_v7   ;;  %v2364_v29 = vrot.slane %v2266_v25, 5  ;;  %v2054_v34 = vsel %vm2035_vm9, %v2011_v14, %v15162_v36  ;;  %v2225_v49 = vsel %vm2207_vm13, %v2182_v21, %v9885_v44  ;;  %v370_v23 = vld [vmem:[#allocation6 + $0xc8] sm:$0xff] }
 0x362   : > { %6798 = vmatprep.mubr.msk.f32.mxu0 %vm7528_vm6, %v15092_v1  ;;  %2861 = vperm.xlu0 %7162, %v362_v5   ;;  %v2097_v46 = vsel %vm2078_vm10, %v2054_v34, %v15163_v30  ;;  %v15164_v5 = vld [vmem:[#allocation56_spill] sm:$0xff]  ;;  %v15177_v34 = vld [vmem:[#allocation215_spill] sm:$0xff] }
 0x363   : > { %v1856_v13 = vpop.permute.xlu1 %1855  ;;  %v2365_v39 = vsel %vm1533_vm4, %v2362_v48, %v2364_v29  ;;  %v1969_v9 = vsel %vm1949_vm8, %v7228_v18, %v15164_v5  ;;  %v2140_v44 = vsel %vm2121_vm11, %v2097_v46, %v15165_v61  ;;  %v15166_v48 = vld [vmem:[#allocation98_spill] sm:$0xff]  ;;  %v15175_v14 = vld [vmem:[#allocation184_spill] sm:$0xff]  ;;  %v15180_v5 = vld [vmem:[#allocation121_spill] sm:$0xff] }
 0x364   : > { %v10132_v32 = vpop.permute.xlu0 %1671  ;;  %v2267_v50 = vsel %vm2250_vm14, %v2224_v62, %v1856_v13  ;;  %v2012_v26 = vsel %vm1992_vm5, %v1969_v9, %v15166_v48  ;;  %v2183_v22 = vsel %vm2164_vm12, %v2140_v44, %v15167_v2  ;;  %v7229_v13 = vld [vmem:[%s7794_s15 + $0xa0] sm:$0xff]  ;;  %v369_v62 = vld [vmem:[#allocation6 + $0xc0] sm:$0xff]  ;;  %v372_v18 = vld [vmem:[#allocation6 + $0xd8] sm:$0xff] }
 0x365   : > { %6799 = vmatmul.mubr.msk.f32.gmra.mrb[26].mxu0 %vm2418_vm15, %v2363_v3  ;;  %2866 = vperm.xlu1 %7163, %v363_v53   ;;  %v2366_v45 = vrot.slane %v2267_v50, 5  ;;  %v2055_v55 = vsel %vm2035_vm9, %v2012_v26, %v15168_v38  ;;  %v2226_v37 = vsel %vm2207_vm13, %v2183_v22, %v9910_v17  ;;  %v15179_v30 = vld [vmem:[#allocation160_spill] sm:$0xff]  ;;  %v15181_v26 = vld [vmem:[#allocation183_spill] sm:$0xff] }
 0x366   : > { %6801 = vmatprep.mubr.msk.f32.mxu0 %vm7528_vm6, %v15092_v1  ;;  %2871 = vperm.xlu0 %7162, %v364_v47   ;;  %v2098_v43 = vsel %vm2078_vm10, %v2055_v55, %v15169_v40  ;;  %v15170_v47 = vld [vmem:[#allocation59_spill] sm:$0xff]  ;;  %v15183_v55 = vld [vmem:[#allocation214_spill] sm:$0xff]  ;;  %v15185_v40 = vld [vmem:[#allocation236_spill] sm:$0xff] }
 0x367   : > { %v1858_v42 = vpop.permute.xlu1 %1857  ;;  %v2367_v56 = vsel %vm1533_vm4, %v2364_v29, %v2366_v45  ;;  %v1970_v51 = vsel %vm1949_vm8, %v7229_v13, %v15170_v47  ;;  %v2141_v17 = vsel %vm2121_vm11, %v2098_v43, %v15171_v12  ;;  %v15172_v29 = vld [vmem:[#allocation101_spill] sm:$0xff]  ;;  %v15186_v47 = vld [vmem:[#allocation124_spill] sm:$0xff] }
 0x368   : > { %v10154_v7 = vpop.permute.xlu0 %1673  ;;  %v2268_v54 = vsel %vm2250_vm14, %v2225_v49, %v1858_v42  ;;  %v2013_v3 = vsel %vm1992_vm5, %v1970_v51, %v15172_v29  ;;  %v2184_v60 = vsel %vm2164_vm12, %v2141_v17, %v15173_v11  ;;  %v7230_v42 = vld [vmem:[%s7794_s15 + $0xa8] sm:$0xff]  ;;  %v374_v13 = vld [vmem:[#allocation6 + $0xe8] sm:$0xff] }
 0x369   : > { %6802 = vmatmul.mubr.msk.f32.gmra.mrb[28].mxu0 %vm2418_vm15, %v2365_v39  ;;  %2876 = vperm.xlu1 %7163, %v365_v31   ;;  %v2368_v33 = vrot.slane %v2268_v54, 5  ;;  %v2056_v28 = vsel %vm2035_vm9, %v2013_v3, %v15174_v8  ;;  %v2227_v52 = vsel %vm2207_vm13, %v2184_v60, %v9934_v0  ;;  %v371_v49 = vld [vmem:[#allocation6 + $0xd0] sm:$0xff] }
 0x36a   : > { %6804 = vmatprep.mubr.msk.f32.mxu0 %vm7528_vm6, %v15092_v1  ;;  %2881 = vperm.xlu0 %7162, %v366_v58   ;;  %v2099_v63 = vsel %vm2078_vm10, %v2056_v28, %v15175_v14  ;;  %v15176_v58 = vld [vmem:[#allocation58_spill] sm:$0xff]  ;;  %v15189_v28 = vld [vmem:[#allocation217_spill] sm:$0xff]  ;;  %v15191_v14 = vld [vmem:[#allocation163_spill] sm:$0xff] }
 0x36b   : > { %v1860_v25 = vpop.permute.xlu1 %1859  ;;  %v2369_v27 = vsel %vm1533_vm4, %v2366_v45, %v2368_v33  ;;  %v1971_v36 = vsel %vm1949_vm8, %v7230_v42, %v15176_v58  ;;  %v2142_v0 = vsel %vm2121_vm11, %v2099_v63, %v15177_v34  ;;  %v15178_v45 = vld [vmem:[#allocation100_spill] sm:$0xff]  ;;  %v15187_v3 = vld [vmem:[#allocation186_spill] sm:$0xff]  ;;  %v15192_v58 = vld [vmem:[#allocation123_spill] sm:$0xff] }
 0x36c   : > { %v10176_v53 = vpop.permute.xlu0 %1675  ;;  %v2269_v6 = vsel %vm2250_vm14, %v2226_v37, %v1860_v25  ;;  %v2014_v39 = vsel %vm1992_vm5, %v1971_v36, %v15178_v45  ;;  %v2185_v46 = vsel %vm2164_vm12, %v2142_v0, %v15179_v30  ;;  %v7231_v25 = vld [vmem:[%s7794_s15 + $0xb0] sm:$0xff] }
 0x36d   : > { %6805 = vmatmul.mubr.msk.f32.gmra.mrb[30].mxu0 %vm2418_vm15, %v2367_v56  ;;  %2886 = vperm.xlu1 %7163, %v367_v41   ;;  %v2370_v16 = vrot.slane %v2269_v6, 5  ;;  %v2057_v9 = vsel %vm2035_vm9, %v2014_v39, %v15180_v5  ;;  %v2228_v61 = vsel %vm2207_vm13, %v2185_v46, %v9956_v15  ;;  %v373_v37 = vld [vmem:[#allocation6 + $0xe0] sm:$0xff]  ;;  %v376_v42 = vld [vmem:[#allocation6 + $0xf8] sm:$0xff]  ;;  %v15193_v39 = vld [vmem:[#allocation185_spill] sm:$0xff] }
 0x36e   : > { %6807 = vmatprep.mubr.msk.f32.mxu0 %vm7528_vm6, %v15092_v1  ;;  %2891 = vperm.xlu0 %7162, %v368_v19   ;;  %v2100_v2 = vsel %vm2078_vm10, %v2057_v9, %v15181_v26  ;;  %v15182_v19 = vld [vmem:[#allocation61_spill] sm:$0xff]  ;;  %v15195_v9 = vld [vmem:[#allocation216_spill] sm:$0xff] }
 0x36f   : > { %v1862_v50 = vpop.permute.xlu1 %1861  ;;  %v2371_v48 = vsel %vm1533_vm4, %v2368_v33, %v2370_v16  ;;  %v1972_v38 = vsel %vm1949_vm8, %v7231_v25, %v15182_v19  ;;  %v2143_v15 = vsel %vm2121_vm11, %v2100_v2, %v15183_v55  ;;  %v15184_v33 = vld [vmem:[#allocation103_spill] sm:$0xff]  ;;  %v15197_v26 = vld [vmem:[#allocation237_spill] sm:$0xff]  ;;  %v15198_v19 = vld [vmem:[#allocation126_spill] sm:$0xff] }
 0x370   : > { %v10198_v31 = vpop.permute.xlu0 %1677  ;;  %v2270_v21 = vsel %vm2250_vm14, %v2227_v52, %v1862_v50  ;;  %v2015_v56 = vsel %vm1992_vm5, %v1972_v38, %v15184_v33  ;;  %v2186_v43 = vsel %vm2164_vm12, %v2143_v15, %v15185_v40  ;;  %v7232_v50 = vld [vmem:[%s7794_s15 + $0xb8] sm:$0xff]  ;;  %v375_v52 = vld [vmem:[#allocation6 + $0xf0] sm:$0xff] }
 0x371   : > { %6808 = vmatmul.mubr.msk.f32.gmra.mrb[32].mxu0 %vm2418_vm15, %v2369_v27  ;;  %2896 = vperm.xlu1 %7163, %v369_v62   ;;  %v2372_v44 = vrot.slane %v2270_v21, 5  ;;  %v2058_v51 = vsel %vm2035_vm9, %v2015_v56, %v15186_v47  ;;  %v2229_v12 = vsel %vm2207_vm13, %v2186_v43, %v9978_v20  ;;  %v378_v25 = vld [vmem:[#allocation6 + $0x108] sm:$0xff] }
 0x372   : > { %6810 = vmatprep.mubr.msk.f32.mxu0 %vm7528_vm6, %v15092_v1  ;;  %2901 = vperm.xlu0 %7162, %v370_v23   ;;  %v2101_v11 = vsel %vm2078_vm10, %v2058_v51, %v15187_v3  ;;  %v15188_v23 = vld [vmem:[#allocation60_spill] sm:$0xff]  ;;  %v15201_v51 = vld [vmem:[#allocation219_spill] sm:$0xff] }
 0x373   : > { %v1864_v54 = vpop.permute.xlu1 %1863  ;;  %v2373_v29 = vsel %vm1533_vm4, %v2370_v16, %v2372_v44  ;;  %v1973_v8 = vsel %vm1949_vm8, %v7232_v50, %v15188_v23  ;;  %v2144_v20 = vsel %vm2121_vm11, %v2101_v11, %v15189_v28  ;;  %v15190_v16 = vld [vmem:[#allocation102_spill] sm:$0xff]  ;;  %v15199_v56 = vld [vmem:[#allocation188_spill] sm:$0xff]  ;;  %v15204_v23 = vld [vmem:[#allocation125_spill] sm:$0xff] }
 0x374   : > { %v10220_v41 = vpop.permute.xlu0 %1679  ;;  %v2271_v22 = vsel %vm2250_vm14, %v2228_v61, %v1864_v54  ;;  %v2016_v27 = vsel %vm1992_vm5, %v1973_v8, %v15190_v16  ;;  %v2187_v63 = vsel %vm2164_vm12, %v2144_v20, %v15191_v14  ;;  %v7233_v54 = vld [vmem:[%s7794_s15 + $0xc0] sm:$0xff]  ;;  %v377_v61 = vld [vmem:[#allocation6 + $0x100] sm:$0xff]  ;;  %v380_v50 = vld [vmem:[#allocation6 + $0x118] sm:$0xff] }
 0x375   : > { %6811 = vmatmul.mubr.msk.f32.gmra.mrb[34].mxu0 %vm2418_vm15, %v2371_v48  ;;  %2906 = vperm.xlu1 %7163, %v371_v49   ;;  %v2374_v17 = vrot.slane %v2271_v22, 5  ;;  %v2059_v36 = vsel %vm2035_vm9, %v2016_v27, %v15192_v58  ;;  %v2230_v34 = vsel %vm2207_vm13, %v2187_v63, %v10000_v59  ;;  %v15203_v3 = vld [vmem:[#allocation164_spill] sm:$0xff]  ;;  %v15205_v27 = vld [vmem:[#allocation187_spill] sm:$0xff] }
 0x376   : > { %6813 = vmatprep.mubr.msk.f32.mxu0 %vm7528_vm6, %v15092_v1  ;;  %2911 = vperm.xlu0 %7162, %v372_v18   ;;  %v2102_v30 = vsel %vm2078_vm10, %v2059_v36, %v15193_v39  ;;  %v15194_v18 = vld [vmem:[#allocation63_spill] sm:$0xff]  ;;  %v15207_v36 = vld [vmem:[#allocation218_spill] sm:$0xff] }
 0x377   : > { %v1866_v6 = vpop.permute.xlu1 %1865  ;;  %v2375_v45 = vsel %vm1533_vm4, %v2372_v44, %v2374_v17  ;;  %v1974_v5 = vsel %vm1949_vm8, %v7233_v54, %v15194_v18  ;;  %v2145_v59 = vsel %vm2121_vm11, %v2102_v30, %v15195_v9  ;;  %v15196_v44 = vld [vmem:[#allocation105_spill] sm:$0xff]  ;;  %v15209_v39 = vld [vmem:[#allocation238_spill] sm:$0xff]  ;;  %v15210_v18 = vld [vmem:[#allocation128_spill] sm:$0xff] }
 0x378   : > { %v10242_v62 = vpop.permute.xlu0 %1681  ;;  %v2272_v60 = vsel %vm2250_vm14, %v2229_v12, %v1866_v6  ;;  %v2017_v48 = vsel %vm1992_vm5, %v1974_v5, %v15196_v44  ;;  %v2188_v2 = vsel %vm2164_vm12, %v2145_v59, %v15197_v26  ;;  %v7234_v6 = vld [vmem:[%s7794_s15 + $0xc8] sm:$0xff]  ;;  %v382_v54 = vld [vmem:[#allocation6 + $0x128] sm:$0xff] }
 0x379   : > { %6814 = vmatmul.mubr.msk.f32.gmra.mrb[36].mxu0 %vm2418_vm15, %v2373_v29  ;;  %2916 = vperm.xlu1 %7163, %v373_v37   ;;  %v2376_v0 = vrot.slane %v2272_v60, 5  ;;  %v2060_v38 = vsel %vm2035_vm9, %v2017_v48, %v15198_v19  ;;  %v2231_v55 = vsel %vm2207_vm13, %v2188_v2, %v10022_v24  ;;  %v379_v12 = vld [vmem:[#allocation6 + $0x110] sm:$0xff] }
 0x37a   : > { %6816 = vmatprep.mubr.msk.f32.mxu0 %vm7528_vm6, %v15092_v1  ;;  %2921 = vperm.xlu0 %7162, %v374_v13   ;;  %v2103_v40 = vsel %vm2078_vm10, %v2060_v38, %v15199_v56  ;;  %v15200_v13 = vld [vmem:[#allocation62_spill] sm:$0xff]  ;;  %v15213_v38 = vld [vmem:[#allocation221_spill] sm:$0xff]  ;;  %v15215_v56 = vld [vmem:[#allocation167_spill] sm:$0xff] }
 0x37b   : > { %v1868_v21 = vpop.permute.xlu1 %1867  ;;  %v2377_v33 = vsel %vm1533_vm4, %v2374_v17, %v2376_v0  ;;  %v1975_v47 = vsel %vm1949_vm8, %v7234_v6, %v15200_v13  ;;  %v2146_v24 = vsel %vm2121_vm11, %v2103_v40, %v15201_v51  ;;  %v15202_v17 = vld [vmem:[#allocation104_spill] sm:$0xff]  ;;  %v15211_v48 = vld [vmem:[#allocation190_spill] sm:$0xff]  ;;  %v15216_v13 = vld [vmem:[#allocation127_spill] sm:$0xff] }
 0x37c   : > { %v10264_v49 = vpop.permute.xlu0 %1683  ;;  %v2273_v46 = vsel %vm2250_vm14, %v2230_v34, %v1868_v21  ;;  %v2018_v29 = vsel %vm1992_vm5, %v1975_v47, %v15202_v17  ;;  %v2189_v11 = vsel %vm2164_vm12, %v2146_v24, %v15203_v3  ;;  %v7235_v21 = vld [vmem:[%s7794_s15 + $0xd0] sm:$0xff] }
 0x37d   : > { %6817 = vmatmul.mubr.msk.f32.gmra.mrb[38].mxu0 %vm2418_vm15, %v2375_v45  ;;  %2926 = vperm.xlu1 %7163, %v375_v52   ;;  %v2378_v15 = vrot.slane %v2273_v46, 5  ;;  %v2061_v8 = vsel %vm2035_vm9, %v2018_v29, %v15204_v23  ;;  %v2232_v28 = vsel %vm2207_vm13, %v2189_v11, %v10044_v10  ;;  %v381_v34 = vld [vmem:[#allocation6 + $0x120] sm:$0xff]  ;;  %v384_v6 = vld [vmem:[#allocation6 + $0x138] sm:$0xff]  ;;  %v15217_v29 = vld [vmem:[#allocation189_spill] sm:$0xff] }
 0x37e   : > { %6819 = vmatprep.mubr.msk.f32.mxu0 %vm7528_vm6, %v15092_v1  ;;  %2931 = vperm.xlu0 %7162, %v376_v42   ;;  %v2104_v14 = vsel %vm2078_vm10, %v2061_v8, %v15205_v27  ;;  %v15206_v42 = vld [vmem:[#allocation65_spill] sm:$0xff]  ;;  %v15219_v8 = vld [vmem:[#allocation220_spill] sm:$0xff]  ;;  %v15221_v27 = vld [vmem:[#allocation239_spill] sm:$0xff] }
 0x37f   : > { %v1870_v22 = vpop.permute.xlu1 %1869  ;;  %v2379_v16 = vsel %vm1533_vm4, %v2376_v0, %v2378_v15  ;;  %v1976_v58 = vsel %vm1949_vm8, %v7235_v21, %v15206_v42  ;;  %v2147_v10 = vsel %vm2121_vm11, %v2104_v14, %v15207_v36  ;;  %v15208_v0 = vld [vmem:[#allocation107_spill] sm:$0xff]  ;;  %v15222_v21 = vld [vmem:[#allocation130_spill] sm:$0xff] }
 0x380   : > { %v10286_v37 = vpop.permute.xlu0 %1685  ;;  %v2274_v43 = vsel %vm2250_vm14, %v2231_v55, %v1870_v22  ;;  %v2019_v45 = vsel %vm1992_vm5, %v1976_v58, %v15208_v0  ;;  %v2190_v30 = vsel %vm2164_vm12, %v2147_v10, %v15209_v39  ;;  %v7236_v22 = vld [vmem:[%s7794_s15 + $0xd8] sm:$0xff]  ;;  %v383_v55 = vld [vmem:[#allocation6 + $0x130] sm:$0xff] }
 0x381   : > { %6820 = vmatmul.mubr.msk.f32.gmra.mrb[40].mxu0 %vm2418_vm15, %v2377_v33  ;;  %2936 = vperm.xlu1 %7163, %v377_v61   ;;  %v2380_v20 = vrot.slane %v2274_v43, 5  ;;  %v2062_v5 = vsel %vm2035_vm9, %v2019_v45, %v15210_v18  ;;  %v2233_v9 = vsel %vm2207_vm13, %v2190_v30, %v10066_v4  ;;  %v15223_v0 = vld [vmem:[#allocation192_spill] sm:$0xff]  ;;  %v7238_v30 = vld [vmem:[%s7794_s15 + $0xe8] sm:$0xff] }
 0x382   : > { %6822 = vmatprep.mubr.msk.f32.mxu0 %vm7528_vm6, %v15092_v1  ;;  %2941 = vperm.xlu0 %7162, %v378_v25   ;;  %v2105_v26 = vsel %vm2078_vm10, %v2062_v5, %v15211_v48  ;;  %v15212_v25 = vld [vmem:[#allocation64_spill] sm:$0xff]  ;;  %v15225_v18 = vld [vmem:[#allocation223_spill] sm:$0xff] }
 0x383   : > { %v1872_v60 = vpop.permute.xlu1 %1871  ;;  %v2381_v44 = vsel %vm1533_vm4, %v2378_v15, %v2380_v20  ;;  %v1977_v19 = vsel %vm1949_vm8, %v7236_v22, %v15212_v25  ;;  %v2148_v4 = vsel %vm2121_vm11, %v2105_v26, %v15213_v38  ;;  %v15214_v15 = vld [vmem:[#allocation106_spill] sm:$0xff]  ;;  %v15226_v5 = vld [vmem:[#allocation108_spill] sm:$0xff]  ;;  %v15228_v26 = vld [vmem:[#allocation129_spill] sm:$0xff] }
 0x384   : > { %v10308_v52 = vpop.permute.xlu0 %1687  ;;  %v2275_v63 = vsel %vm2250_vm14, %v2232_v28, %v1872_v60  ;;  %v2020_v33 = vsel %vm1992_vm5, %v1977_v19, %v15214_v15  ;;  %v2191_v40 = vsel %vm2164_vm12, %v2148_v4, %v15215_v56  ;;  %v7237_v60 = vld [vmem:[%s7794_s15 + $0xe0] sm:$0xff]  ;;  %v385_v28 = vld [vmem:[#allocation6 + $0x140] sm:$0xf] }
 0x385   : > { %6823 = vmatmul.mubr.msk.f32.gmra.mrb[42].mxu0 %vm2418_vm15, %v2379_v16  ;;  %2946 = vperm.xlu1 %7163, %v379_v12   ;;  %v2382_v59 = vrot.slane %v2275_v63, 5  ;;  %v2063_v47 = vsel %vm2035_vm9, %v2020_v33, %v15216_v13  ;;  %v2234_v51 = vsel %vm2207_vm13, %v2191_v40, %v10088_v57  ;;  %v15229_v4 = vld [vmem:[#allocation191_spill] sm:$0xff]  ;;  %v15230_v56 = vld [vmem:[#allocation69_spill] sm:$0xff] }
 0x386   : > { %6825 = vmatprep.mubr.msk.f32.mxu0 %vm7528_vm6, %v15092_v1  ;;  %2951 = vperm.xlu0 %7162, %v380_v50   ;;  %v2106_v3 = vsel %vm2078_vm10, %v2063_v47, %v15217_v29  ;;  %v15218_v50 = vld [vmem:[#allocation67_spill] sm:$0xff]  ;;  %v15233_v47 = vld [vmem:[#allocation240_spill] sm:$0xff] }
 0x387   : > { %v1874_v46 = vpop.permute.xlu1 %1873  ;;  %v2383_v17 = vsel %vm1533_vm4, %v2380_v20, %v2382_v59  ;;  %v1978_v23 = vsel %vm1949_vm8, %v7237_v60, %v15218_v50  ;;  %v2149_v57 = vsel %vm2121_vm11, %v2106_v3, %v15219_v8  ;;  %v15220_v20 = vld [vmem:[#allocation109_spill] sm:$0xff]  ;;  %v7239_v33 = vld [vmem:[%s7794_s15 + $0xf0] sm:$0xff] }
 0x388   : > { %v10330_v61 = vpop.permute.xlu0 %1689  ;;  %v2276_v2 = vsel %vm2250_vm14, %v2233_v9, %v1874_v46  ;;  %v2021_v16 = vsel %vm1992_vm5, %v1978_v23, %v15220_v20  ;;  %v2192_v14 = vsel %vm2164_vm12, %v2149_v57, %v15221_v27  ;;  %v15224_v46 = vld [vmem:[#allocation66_spill] sm:$0xff]  ;;  %v1980_v40 = vsel %vm1949_vm8, %v7239_v33, %v15230_v56  ;;  %v15236_v20 = vld [vmem:[#allocation68_spill] sm:$0xff]  ;;  %v15237_v27 = vld [vmem:[#allocation225_spill] sm:$0xff] }
 0x389   : > { %6826 = vmatmul.mubr.msk.f32.gmra.mrb[44].mxu0 %vm2418_vm15, %v2381_v44  ;;  %2956 = vperm.xlu1 %7163, %v381_v34   ;;  %v2384_v24 = vrot.slane %v2276_v2, 5  ;;  %v2064_v42 = vsel %vm2035_vm9, %v2021_v16, %v15222_v21  ;;  %v2235_v58 = vsel %vm2207_vm13, %v2192_v14, %v10110_v35  ;;  %v15235_v23 = vld [vmem:[#allocation194_spill] sm:$0xff]  ;;  %v15239_v21 = vld [vmem:[#allocation171_spill] sm:$0xff] }
 0x38a   : > { %6828 = vmatprep.mubr.msk.f32.mxu0 %vm7528_vm6, %v15092_v1  ;;  %2961 = vperm.xlu0 %7162, %v382_v54   ;;  %v2107_v45 = vsel %vm2078_vm10, %v2064_v42, %v15223_v0  ;;  %v1979_v54 = vsel %vm1949_vm8, %v7238_v30, %v15224_v46  ;;  %v15238_v14 = vld [vmem:[#allocation110_spill] sm:$0xff]  ;;  %v15241_v30 = vld [vmem:[#allocation193_spill] sm:$0xff] }
 0x38b   : > { %v1876_v43 = vpop.permute.xlu1 %1875  ;;  %v2385_v34 = vsel %vm1533_vm4, %v2382_v59, %v2384_v24  ;;  %v2150_v35 = vsel %vm2121_vm11, %v2107_v45, %v15225_v18  ;;  %v2022_v9 = vsel %vm1992_vm5, %v1979_v54, %v15226_v5  ;;  %v15227_v59 = vld [vmem:[#allocation168_spill] sm:$0xff] }
 0x38c   : > { %v10352_v12 = vpop.permute.xlu0 %1691  ;;  %v2277_v11 = vsel %vm2250_vm14, %v2234_v51, %v1876_v43  ;;  %v2193_v44 = vsel %vm2164_vm12, %v2150_v35, %v15227_v59  ;;  %v2065_v2 = vsel %vm2035_vm9, %v2022_v9, %v15228_v26  ;;  %v15231_v43 = vld [vmem:[#allocation222_spill] sm:$0xff]  ;;  %v15242_v35 = vld [vmem:[#allocation71_spill] sm:$0xff]  ;;  %v15243_v9 = vld [vmem:[#allocation224_spill] sm:$0xff] }
 0x38d   : > { %6829 = vmatmul.mubr.msk.f32.gmra.mrb[46].mxu0 %vm2418_vm15, %v2383_v17  ;;  %2966 = vperm.xlu1 %7163, %v383_v55   ;;  %v2386_v36 = vrot.slane %v2277_v11, 5  ;;  %v2236_v22 = vsel %vm2207_vm13, %v2193_v44, %v10132_v32  ;;  %v2108_v55 = vsel %vm2078_vm10, %v2065_v2, %v15229_v4  ;;  %v15234_v17 = vld [vmem:[#allocation132_spill] sm:$0xff]  ;;  %v15244_v44 = vld [vmem:[#allocation113_spill] sm:$0xff] }
 0x38e   : > { %6831 = vmatprep.mubr.msk.f32.mxu0 %vm7528_vm6, %v15092_v1  ;;  %2971 = vperm.xlu0 %7162, %v384_v6   ;;  %v2151_v32 = vsel %vm2121_vm11, %v2108_v55, %v15231_v43  ;;  %v15232_v6 = vld [vmem:[#allocation111_spill] sm:$0xff]  ;;  %v7241_v18 = vld [vmem:[%s7794_s15 + $0x100] sm:$0xff] }
 0x38f   : > { %v1878_v63 = vpop.permute.xlu1 %1877  ;;  %v2387_v38 = vsel %vm1533_vm4, %v2384_v24, %v2386_v36  ;;  %v2023_v13 = vsel %vm1992_vm5, %v1980_v40, %v15232_v6  ;;  %v2194_v51 = vsel %vm2164_vm12, %v2151_v32, %v15233_v47  ;;  %v1982_v5 = vsel %vm1949_vm8, %v7241_v18, %v15242_v35  ;;  %v15245_v26 = vld [vmem:[#allocation241_spill] sm:$0xff]  ;;  %v15248_v43 = vld [vmem:[#allocation70_spill] sm:$0xff]  ;;  %v15249_v6 = vld [vmem:[#allocation227_spill] sm:$0xff] }
 0x390   : > { %v10374_v10 = vpop.permute.xlu0 %1693  ;;  %v2278_v39 = vsel %vm2250_vm14, %v2235_v58, %v1878_v63  ;;  %v2066_v29 = vsel %vm2035_vm9, %v2023_v13, %v15234_v17  ;;  %v2237_v3 = vsel %vm2207_vm13, %v2194_v51, %v10154_v7  ;;  %v15240_v58 = vld [vmem:[#allocation131_spill] sm:$0xff]  ;;  %v15260_v35 = vld [vmem:[#allocation72_spill] sm:$0xff] }
 0x391   : > { %6832 = vmatmul.mubr.msk.f32.gmra.mrb[48].mxu0 %vm2418_vm15, %v2385_v34  ;;  %2976 = vperm.xlu1 %7163, %v385_v28   ;;  %v2388_v25 = vrot.slane %v2278_v39, 5  ;;  %v2109_v8 = vsel %vm2078_vm10, %v2066_v29, %v15235_v23  ;;  %v7240_v28 = vld [vmem:[%s7794_s15 + $0xf8] sm:$0xff]  ;;  %v7242_v40 = vld [vmem:[%s7794_s15 + $0x108] sm:$0xff] }
 0x392   : > { %6834 = vmatprep.mubr.msk.f32.mxu0 %vm7528_vm6, %v15092_v1  ;;  %v1981_v16 = vsel %vm1949_vm8, %v7240_v28, %v15236_v20  ;;  %v2152_v7 = vsel %vm2121_vm11, %v2109_v8, %v15237_v27  ;;  %v1983_v32 = vsel %vm1949_vm8, %v7242_v40, %v15248_v43  ;;  %v15252_v29 = vld [vmem:[#allocation133_spill] sm:$0xff]  ;;  %v15253_v8 = vld [vmem:[#allocation195_spill] sm:$0xff] }
 0x393   : > { %v1880_v48 = vpop.permute.xlu1 %1879  ;;  %v2389_v50 = vsel %vm1533_vm4, %v2386_v36, %v2388_v25  ;;  %v2024_v63 = vsel %vm1992_vm5, %v1981_v16, %v15238_v14  ;;  %v2195_v42 = vsel %vm2164_vm12, %v2152_v7, %v15239_v21  ;;  %v7243_v20 = vld [vmem:[%s7794_s15 + $0x110] sm:$0xff]  ;;  %v15254_v16 = vld [vmem:[#allocation73_spill] sm:$0xff] }
 0x394   : > { %v10396_v19 = vpop.permute.xlu0 %1695  ;;  %v2279_v15 = vsel %vm2250_vm14, %v2236_v22, %v1880_v48  ;;  %v2067_v36 = vsel %vm2035_vm9, %v2024_v63, %v15240_v58  ;;  %v2238_v34 = vsel %vm2207_vm13, %v2195_v42, %v10176_v53  ;;  %v2025_v48 = vsel %vm1992_vm5, %v1982_v5, %v15244_v44  ;;  %v15246_v22 = vld [vmem:[#allocation134_spill] sm:$0xff]  ;;  %v7244_v18 = vld [vmem:[%s7794_s15 + $0x118] sm:$0xff] }
 0x395   : > { %6835 = vmatmul.mubr.msk.f32.gmra.mrb[50].mxu0 %vm2418_vm15, %v2387_v38  ;;  %v2390_v11 = vrot.slane %v2279_v15, 5  ;;  %v2110_v46 = vsel %vm2078_vm10, %v2067_v36, %v15241_v30  ;;  %v15247_v15 = vld [vmem:[#allocation196_spill] sm:$0xff]  ;;  %v1984_v27 = vsel %vm1949_vm8, %v7243_v20, %v15254_v16  ;;  %v15255_v7 = vld [vmem:[#allocation226_spill] sm:$0xff]  ;;  %v1985_v5 = vsel %vm1949_vm8, %v7244_v18, %v15260_v35  ;;  %v15266_v40 = vld [vmem:[#allocation75_spill] sm:$0xff] }
 0x396   : > { %6837 = vmatprep.mubr.msk.f32.mxu0 %vm7528_vm6, %v15092_v1  ;;  %v2153_v59 = vsel %vm2121_vm11, %v2110_v46, %v15243_v9  ;;  %v15257_v42 = vld [vmem:[#allocation242_spill] sm:$0xff]  ;;  %v15258_v36 = vld [vmem:[#allocation136_spill] sm:$0xff]  ;;  %v15261_v9 = vld [vmem:[#allocation229_spill] sm:$0xff] }
 0x397   : > { %v1882_v24 = vpop.permute.xlu1 %1881  ;;  %v2391_v39 = vsel %vm1533_vm4, %v2388_v25, %v2390_v11  ;;  %v2196_v2 = vsel %vm2164_vm12, %v2153_v59, %v15245_v26  ;;  %v2068_v25 = vsel %vm2035_vm9, %v2025_v48, %v15246_v22  ;;  %v15259_v30 = vld [vmem:[#allocation198_spill] sm:$0xff]  ;;  %v15263_v48 = vld [vmem:[#allocation175_spill] sm:$0xff] }
 0x398   : > { %v10418_v60 = vpop.permute.xlu0 %1697  ;;  %v2280_v57 = vsel %vm2250_vm14, %v2237_v3, %v1882_v24  ;;  %v2239_v38 = vsel %vm2207_vm13, %v2196_v2, %v10198_v31  ;;  %v2111_v33 = vsel %vm2078_vm10, %v2068_v25, %v15247_v15  ;;  %v15250_v31 = vld [vmem:[#allocation112_spill] sm:$0xff]  ;;  %v15264_v2 = vld [vmem:[#allocation135_spill] sm:$0xff]  ;;  %v15279_v18 = vld [vmem:[#allocation230_spill] sm:$0xff] }
 0x399   : > { %6838 = vmatmul.mubr.msk.f32.gmra.mrb[52].mxu0 %vm2418_vm15, %v2389_v50  ;;  %v2392_v0 = vrot.slane %v2280_v57, 5  ;;  %v2154_v13 = vsel %vm2121_vm11, %v2111_v33, %v15249_v6  ;;  %v2026_v51 = vsel %vm1992_vm5, %v1983_v32, %v15250_v31  ;;  %v15251_v24 = vld [vmem:[#allocation172_spill] sm:$0xff]  ;;  %v15269_v31 = vld [vmem:[#allocation243_spill] sm:$0xff] }
 0x39a   : > { %6840 = vmatprep.mubr.msk.f32.mxu0 %vm7528_vm6, %v15092_v1  ;;  %v2197_v17 = vsel %vm2164_vm12, %v2154_v13, %v15251_v24  ;;  %v2069_v3 = vsel %vm2035_vm9, %v2026_v51, %v15252_v29  ;;  %v15267_v32 = vld [vmem:[#allocation228_spill] sm:$0xff]  ;;  %v15270_v24 = vld [vmem:[#allocation138_spill] sm:$0xff]  ;;  %v15273_v16 = vld [vmem:[#allocation231_spill] sm:$0xff] }
 0x39b   : > { %v1886_v53 = vpop.permute.xlu1 %1885  ;;  %v2393_v55 = vsel %vm1533_vm4, %v2390_v11, %v2392_v0  ;;  %v2240_v11 = vsel %vm2207_vm13, %v2197_v17, %v10220_v41  ;;  %v2112_v57 = vsel %vm2078_vm10, %v2069_v3, %v15253_v8  ;;  %v15256_v41 = vld [vmem:[#allocation115_spill] sm:$0xff] }
 0x39c   : > { %v1884_v45 = vpop.permute.xlu0 %1883  ;;  %v2282_v56 = vsel %vm2250_vm14, %v2239_v38, %v1886_v53  ;;  %v2155_v14 = vsel %vm2121_vm11, %v2112_v57, %v15255_v7  ;;  %v2027_v21 = vsel %vm1992_vm5, %v1984_v27, %v15256_v41  ;;  %v7246_v57 = vld [vmem:[%s7794_s15 + $0x128] sm:$0xff] }
 0x39d   : > { %v2281_v54 = vsel %vm2250_vm14, %v2238_v34, %v1884_v45  ;;  %6841 = vmatmul.mubr.msk.f32.gmra.mrb[54].mxu0 %vm2418_vm15, %v2391_v39  ;;  %v2396_v50 = vrot.slane %v2282_v56, 5  ;;  %v2198_v58 = vsel %vm2164_vm12, %v2155_v14, %v15257_v42  ;;  %v2070_v34 = vsel %vm2035_vm9, %v2027_v21, %v15258_v36  ;;  %v7245_v56 = vld [vmem:[%s7794_s15 + $0x120] sm:$0xff] }
 0x39e   : > { %6843 = vmatprep.mubr.msk.f32.mxu0 %vm7528_vm6, %v15092_v1  ;;  %v2394_v4 = vrot.slane %v2281_v54, 5  ;;  %v2113_v46 = vsel %vm2078_vm10, %v2070_v34, %v15259_v30  ;;  %v1986_v43 = vsel %vm1949_vm8, %v7245_v56, %v15266_v40  ;;  %v15276_v21 = vld [vmem:[#allocation137_spill] sm:$0xff]  ;;  %v7247_v30 = vld [vmem:[%s7794_s15 + $0x130] sm:$0xff] }
 0x39f   : > { %v1890_v63 = vpop.permute.xlu1 %1889  ;;  %v2156_v59 = vsel %vm2121_vm11, %v2113_v46, %v15261_v9  ;;  %v15278_v46 = vld [vmem:[#allocation77_spill] sm:$0xff] }
 0x3a0   : > { %v1888_v47 = vpop.permute.xlu0 %1887  ;;  %v2395_v23 = vsel %vm1533_vm4, %v2392_v0, %v2394_v4  ;;  %v2241_v0 = vsel %vm2207_vm13, %v2198_v58, %v10242_v62  ;;  %v2397_v39 = vsel %vm1533_vm4, %v2394_v4, %v2396_v50  ;;  %v15262_v62 = vld [vmem:[#allocation114_spill] sm:$0xff]  ;;  %v2199_v26 = vsel %vm2164_vm12, %v2156_v59, %v15263_v48  ;;  %v15281_v59 = vld [vmem:[#allocation244_spill] sm:$0xff] }
 0x3a1   : > { %6844 = vmatmul.mubr.msk.f32.gmra.mrb[56].mxu0 %vm2418_vm15, %v2393_v55  ;;  %v2283_v28 = vsel %vm2250_vm14, %v2240_v11, %v1888_v47  ;;  %v2284_v54 = vsel %vm2250_vm14, %v2241_v0, %v1890_v63  ;;  %v2028_v44 = vsel %vm1992_vm5, %v1985_v5, %v15262_v62  ;;  %v2242_v25 = vsel %vm2207_vm13, %v2199_v26, %v10264_v49  ;;  %v15265_v55 = vld [vmem:[#allocation197_spill] sm:$0xff]  ;;  %v15275_v63 = vld [vmem:[#allocation176_spill] sm:$0xff]  ;;  %v15277_v0 = vld [vmem:[#allocation199_spill] sm:$0xff] }
 0x3a2   : > { %6846 = vmatprep.mubr.msk.f32.mxu0 %vm7528_vm6, %v15092_v1  ;;  %v2398_v45 = vrot.slane %v2283_v28, 5  ;;  %v2071_v22 = vsel %vm2035_vm9, %v2028_v44, %v15264_v2  ;;  %v2400_v38 = vrot.slane %v2284_v54, 5  ;;  %v15268_v49 = vld [vmem:[#allocation117_spill] sm:$0xff]  ;;  %v15272_v28 = vld [vmem:[#allocation74_spill] sm:$0xff]  ;;  %v1988_v54 = vsel %vm1949_vm8, %v7247_v30, %v15278_v46  ;;  %v15282_v62 = vld [vmem:[#allocation140_spill] sm:$0xff] }
 0x3a3   : > { %v2114_v15 = vsel %vm2078_vm10, %v2071_v22, %v15265_v55  ;;  %v1894_v13 = vpop.permute.xlu1 %1893  ;;  %v2029_v47 = vsel %vm1992_vm5, %v1986_v43, %v15268_v49  ;;  %v1987_v20 = vsel %vm1949_vm8, %v7246_v57, %v15272_v28  ;;  %v15283_v22 = vld [vmem:[#allocation202_spill] sm:$0xff]  ;;  %v15284_v55 = vld [vmem:[#allocation76_spill] sm:$0xff] }
 0x3a4   : > { %v1892_v53 = vpop.permute.xlu0 %1891  ;;  %v2399_v4 = vsel %vm1533_vm4, %v2396_v50, %v2398_v45  ;;  %v2157_v6 = vsel %vm2121_vm11, %v2114_v15, %v15267_v32  ;;  %v2072_v17 = vsel %vm2035_vm9, %v2029_v47, %v15270_v24  ;;  %v2401_v11 = vsel %vm1533_vm4, %v2398_v45, %v2400_v38  ;;  %v15271_v50 = vld [vmem:[#allocation200_spill] sm:$0xff]  ;;  %v15287_v32 = vld [vmem:[#allocation179_spill] sm:$0xff]  ;;  %v15289_v24 = vld [vmem:[#allocation201_spill] sm:$0xff] }
 0x3a5   : > { %6847 = vmatmul.mubr.msk.f32.gmra.mrb[58].mxu0 %vm2418_vm15, %v2395_v23  ;;  %v2285_v33 = vsel %vm2250_vm14, %v2242_v25, %v1892_v53  ;;  %v2200_v51 = vsel %vm2164_vm12, %v2157_v6, %v15269_v31  ;;  %v2115_v23 = vsel %vm2078_vm10, %v2072_v17, %v15271_v50  ;;  %v15299_v46 = vld [vmem:[#allocation180_spill] sm:$0xff] }
 0x3a6   : > { %6849 = vmatprep.mubr.msk.f32.mxu0 %vm7528_vm6, %v15092_v1  ;;  %v2243_v29 = vsel %vm2207_vm13, %v2200_v51, %v10286_v37  ;;  %v2402_v3 = vrot.slane %v2285_v33, 5  ;;  %v2158_v27 = vsel %vm2121_vm11, %v2115_v23, %v15273_v16  ;;  %v15274_v37 = vld [vmem:[#allocation116_spill] sm:$0xff]  ;;  %v15285_v33 = vld [vmem:[#allocation233_spill] sm:$0xff] }
 0x3a7   : > { %v2286_v8 = vsel %vm2250_vm14, %v2243_v29, %v1894_v13  ;;  %v2030_v14 = vsel %vm1992_vm5, %v1987_v20, %v15274_v37  ;;  %v2201_v41 = vsel %vm2164_vm12, %v2158_v27, %v15275_v63  ;;  %v1898_v5 = vpop.permute.xlu1 %1897  ;;  %v15288_v13 = vld [vmem:[#allocation139_spill] sm:$0xff]  ;;  %v15291_v23 = vld [vmem:[#allocation232_spill] sm:$0xff]  ;;  %v15293_v20 = vld [vmem:[#allocation245_spill] sm:$0xff] }
 0x3a8   : > { %v1896_v7 = vpop.permute.xlu0 %1895  ;;  %v2073_v42 = vsel %vm2035_vm9, %v2030_v14, %v15276_v21  ;;  %v2244_v58 = vsel %vm2207_vm13, %v2201_v41, %v10308_v52  ;;  %v2404_v36 = vrot.slane %v2286_v8, 5  ;;  %v2403_v34 = vsel %vm1533_vm4, %v2400_v38, %v2402_v3  ;;  %v15280_v52 = vld [vmem:[#allocation119_spill] sm:$0xff]  ;;  %v15294_v27 = vld [vmem:[#allocation142_spill] sm:$0xff]  ;;  %v15295_v41 = vld [vmem:[#allocation204_spill] sm:$0xff] }
 0x3a9   : > { %6850 = vmatmul.mubr.msk.f32.gmra.mrb[60].mxu0 %vm2418_vm15, %v2397_v39  ;;  %v2116_v45 = vsel %vm2078_vm10, %v2073_v42, %v15277_v0  ;;  %v2287_v39 = vsel %vm2250_vm14, %v2244_v58, %v1896_v7  ;;  %v2031_v9 = vsel %vm1992_vm5, %v1988_v54, %v15280_v52  ;;  %v7250_v58 = vld [vmem:[%s7794_s15 + $0x148] sm:$0xff] }
 0x3aa   : > { %6852 = vmatprep.mubr.msk.f32.mxu0 %vm7528_vm6, %v15092_v1  ;;  %v2159_v35 = vsel %vm2121_vm11, %v2116_v45, %v15279_v18  ;;  %v2074_v44 = vsel %vm2035_vm9, %v2031_v9, %v15282_v62  ;;  %v2406_v26 = vrot.slane %v2287_v39, 5  ;;  %v2405_v2 = vsel %vm1533_vm4, %v2402_v3, %v2404_v36  ;;  %v7249_v3 = vld [vmem:[%s7794_s15 + $0x140] sm:$0xff]  ;;  %v15297_v0 = vld [vmem:[#allocation235_spill] sm:$0xff] }
 0x3ab   : > { %v2202_v53 = vsel %vm2164_vm12, %v2159_v35, %v15281_v59  ;;  %v2117_v25 = vsel %vm2078_vm10, %v2074_v44, %v15283_v22  ;;  %v1902_v57 = vpop.permute.xlu1 %1901  ;;  %v15300_v18 = vld [vmem:[#allocation141_spill] sm:$0xff]  ;;  %v15301_v59 = vld [vmem:[#allocation203_spill] sm:$0xff]  ;;  %v15302_v44 = vld [vmem:[#allocation234_spill] sm:$0xff] }
 0x3ac   : > { %v2245_v48 = vsel %vm2207_vm13, %v2202_v53, %v10330_v61  ;;  %v2160_v56 = vsel %vm2121_vm11, %v2117_v25, %v15285_v33  ;;  %v1900_v40 = vpop.permute.xlu0 %1899  ;;  %v15286_v61 = vld [vmem:[#allocation118_spill] sm:$0xff]  ;;  %v2407_v51 = vsel %vm1533_vm4, %v2404_v36, %v2406_v26 }
 0x3ad   : > { %6853 = vmatmul.mubr.msk.f32.gmra.mrb[62].mxu0 %vm2418_vm15, %v2399_v4  ;;  %v2288_v38 = vsel %vm2250_vm14, %v2245_v48, %v1898_v5  ;;  %v7248_v4 = vld [vmem:[%s7794_s15 + $0x138] sm:$0xff]  ;;  %v2203_v6 = vsel %vm2164_vm12, %v2160_v56, %v15287_v32  ;;  %v15296_v36 = vld [vmem:[#allocation78_spill] sm:$0xff]  ;;  %s7055_s15 = smul.u32 5248, %s7588_s22  ;;  %s6430_s22 = scalar_lea.sflag [#allocation5], %s7790_s29 }
 0x3ae   : > { %6855 = vmatprep.mubr.msk.f32.mxu0 %vm7528_vm6, %v15092_v1  ;;  %v1989_v15 = vsel %vm1949_vm8, %v7248_v4, %v15284_v55  ;;  %v2246_v47 = vsel %vm2207_vm13, %v2203_v6, %v10352_v12  ;;  %v2408_v31 = vrot.slane %v2288_v38, 5  ;;  %v15292_v12 = vld [vmem:[#allocation18_spill] sm:$0xff] }
 0x3af   : > { %v2032_v43 = vsel %vm1992_vm5, %v1989_v15, %v15286_v61  ;;  %v2289_v29 = vsel %vm2250_vm14, %v2246_v47, %v1900_v40  ;;  %s14448_s8 = scalar_lea.hbm %s14512_s5, %s7055_s15 }
 0x3b0   : > { %v2075_v49 = vsel %vm2035_vm9, %v2032_v43, %v15288_v13  ;;  %v2410_v14 = vrot.slane %v2289_v29, 5  ;;  %v2409_v63 = vsel %vm1533_vm4, %v2406_v26, %v2408_v31  ;;  %v1904_v39 = vpop.permute.xlu0 %1903  ;;  %v1906_v26 = vpop.permute.xlu1 %1905 }
 0x3b1   : > { %6856 = vmatmul.mubr.msk.f32.gmra.mrb[64].mxu0 %vm2418_vm15, %v2401_v11  ;;  %v2118_v17 = vsel %vm2078_vm10, %v2075_v49, %v15289_v24  ;;  %v15290_v11 = vld [vmem:[#allocation79_spill] sm:$0xff] }
 0x3b2   : > { %6858 = vmatprep.mubr.msk.f32.mxu0 %vm7528_vm6, %v15092_v1  ;;  %v1990_v50 = vsel %vm1949_vm8, %v7249_v3, %v15290_v11  ;;  %v2161_v8 = vsel %vm2121_vm11, %v2118_v17, %v15291_v23  ;;  %v2411_v9 = vsel %vm1533_vm4, %v2408_v31, %v2410_v14 }
 0x3b3   : > { %v2033_v28 = vsel %vm1992_vm5, %v1990_v50, %v15292_v12  ;;  %v2204_v16 = vsel %vm2164_vm12, %v2161_v8, %v15293_v20 }
 0x3b4   : > { %v2076_v7 = vsel %vm2035_vm9, %v2033_v28, %v15294_v27  ;;  %v2247_v37 = vsel %vm2207_vm13, %v2204_v16, %v10374_v10  ;;  %v15298_v10 = vld [vmem:[#allocation17_spill] sm:$0xff] }
 0x3b5   : > { %6859 = vmatmul.mubr.msk.f32.gmra.mrb[66].mxu0 %vm2418_vm15, %v2403_v34  ;;  %v2119_v21 = vsel %vm2078_vm10, %v2076_v7, %v15295_v41  ;;  %v2290_v42 = vsel %vm2250_vm14, %v2247_v37, %v1902_v57  ;;  %v1991_v34 = vsel %vm1949_vm8, %v7250_v58, %v15296_v36  ;;  %vm3099_vm8 = vcmask 60416  }
 0x3b6   : > { %6861 = vmatprep.mubr.msk.f32.mxu0 %vm7528_vm6, %v15092_v1  ;;  %v2162_v45 = vsel %vm2121_vm11, %v2119_v21, %v15297_v0  ;;  %v2034_v30 = vsel %vm1992_vm5, %v1991_v34, %v15298_v10  ;;  %v2412_v52 = vrot.slane %v2290_v42, 5 }
 0x3b7   : > { %v2205_v54 = vsel %vm2164_vm12, %v2162_v45, %v15299_v46  ;;  %v2077_v35 = vsel %vm2035_vm9, %v2034_v30, %v15300_v18  ;;  %vm5313_vm9 = vcmask 392192  }
 0x3b8   : > { %v2248_v5 = vsel %vm2207_vm13, %v2205_v54, %v10396_v19  ;;  %v2120_v53 = vsel %vm2078_vm10, %v2077_v35, %v15301_v59  ;;  %v2413_v38 = vsel %vm1533_vm4, %v2410_v14, %v2412_v52 }
 0x3b9   : > { %6862 = vmatmul.mubr.msk.f32.gmra.mrb[68].mxu0 %vm2418_vm15, %v2405_v2  ;;  %v2291_v62 = vsel %vm2250_vm14, %v2248_v5, %v1904_v39  ;;  %v2163_v48 = vsel %vm2121_vm11, %v2120_v53, %v15302_v44  ;;  %v15303_v2 = vld [vmem:[#allocation246_spill] sm:$0xff]  ;;  %vm5356_vm11 = vcmask 457728  }
 0x3ba   : > { %6864 = vmatprep.mubr.msk.f32.mxu0 %vm7528_vm6, %v15092_v1  ;;  %v2206_v19 = vsel %vm2164_vm12, %v2163_v48, %v15303_v2  ;;  %v2414_v25 = vrot.slane %v2291_v62, 5 }
 0x3bb   : > { %v2249_v22 = vsel %vm2207_vm13, %v2206_v19, %v10418_v60  ;;  %vm5399_vm13 = vcmask 523264  }
 0x3bc   : > { %v2292_v4 = vsel %vm2250_vm14, %v2249_v22, %v1906_v26  ;;  %v2415_v15 = vsel %vm1533_vm4, %v2412_v52, %v2414_v25 }
 0x3bd   : > { %6865 = vmatmul.mubr.msk.f32.gmra.mrb[70].mxu0 %vm2418_vm15, %v2407_v51  ;;  %v2416_v55 = vrot.slane %v2292_v4, 5 }
 0x3be   : > { %6867 = vmatprep.mubr.msk.f32.mxu0 %vm7528_vm6, %v15092_v1 }
 0x3bf   : > { %v2417_v60 = vsel %vm1533_vm4, %v2414_v25, %v2416_v55 }
 0x3c0   : > { %v10672_v43 = vpop.permute.xlu1 %2781 }
 0x3c1   : > { %6868 = vmatmul.mubr.msk.f32.gmra.mrb[72].mxu0 %vm2418_vm15, %v2409_v63  ;;  %v10666_v33 = vpop.permute.xlu0 %2776  ;;  %15305 = vst [vmem:[#allocation39_spill] sm:$0xff] %v10672_v43 }
 0x3c2   : > { %6870 = vmatprep.mubr.msk.f32.mxu0 %vm7528_vm6, %v15092_v1  ;;  %15304 = vst [vmem:[#allocation38_spill] sm:$0xff] %v10666_v33 }
 0x3c4   : > { %v10682_v24 = vpop.permute.xlu1 %2786 }
 0x3c5   : > { %6871 = vmatmul.mubr.msk.f32.gmra.mrb[74].mxu0 %vm2418_vm15, %v2411_v9  ;;  %15306 = vst [vmem:[#allocation40_spill] sm:$0xff] %v10682_v24  ;;  %v10692_v20 = vpop.permute.xlu0 %2791 }
 0x3c6   : > { %6873 = vmatprep.mubr.msk.f32.mxu0 %vm7528_vm6, %v15092_v1  ;;  %15307 = vst [vmem:[#allocation80_spill] sm:$0xff] %v10692_v20 }
 0x3c8   : > { %v10701_v21 = vpop.permute.xlu1 %2796 }
 0x3c9   : > { %6874 = vmatmul.mubr.msk.f32.gmra.mrb[76].mxu0 %vm2418_vm15, %v2413_v38  ;;  %15308 = vst [vmem:[#allocation81_spill] sm:$0xff] %v10701_v21  ;;  %v10710_v30 = vpop.permute.xlu0 %2801 }
 0x3ca   : > { %6876 = vmatprep.mubr.msk.f32.mxu0 %vm7528_vm6, %v15092_v1  ;;  %15309 = vst [vmem:[#allocation82_spill] sm:$0xff] %v10710_v30 }
 0x3cc   : > { %v10719_v53 = vpop.permute.xlu1 %2806 }
 0x3cd   : > { %6877 = vmatmul.mubr.msk.f32.gmra.mrb[78].mxu0 %vm2418_vm15, %v2415_v15  ;;  %15310 = vst [vmem:[#allocation83_spill] sm:$0xff] %v10719_v53  ;;  %v10728_v38 = vpop.permute.xlu0 %2811 }
 0x3ce   : > { %6879 = vmatprep.mubr.msk.f32.mxu0 %vm7528_vm6, %v15092_v1  ;;  %15311 = vst [vmem:[#allocation19_spill] sm:$0xff] %v10728_v38 }
 0x3d1   : > { %6880 = vmatmul.mubr.msk.f32.gmra.mrb[80].mxu0 %vm2418_vm15, %v2417_v60  ;;  %vm5567_vm15 = vcmask 588800  }
 0x3d2   : > { %6900 = vmatprep.mubr.msk.f32.mxu0 %vm7528_vm6, %v15092_v1 }
 0x404   : > { %v10668_v56 = vpop.f32.mrb[0].mxu0 }
 0x405   : > { %v2979_v40 = vmul.f32 %v10666_v33, %v10668_v56  ;;  %v6761_v61 = vpop.f32.mrb[1].mxu0 }
 0x407   : > { %v3108_v6 = vmul.f32 %v2979_v40, %v10668_v56  ;;  %v3020_v47 = vsel %vm1992_vm5, %v2979_v40, 0.0 }
 0x408   : > { %v10674_v32 = vpop.f32.mrb[2].mxu0 }
 0x409   : > { %v2980_v13 = vmul.f32 %v10672_v43, %v10674_v32  ;;  %v6764_v49 = vpop.f32.mrb[3].mxu0  ;;  %v3149_v3 = vsel %vm1992_vm5, %v3108_v6, 0.0 }
 0x40a   : > { %v10737_v49 = vpop.permute.xlu1 %2816 }
 0x40b   : > { %v3021_v31 = vsel %vm1992_vm5, %v2980_v13, 0.0  ;;  %v3109_v51 = vmul.f32 %v2980_v13, %v10674_v32  ;;  %15312 = vst [vmem:[#allocation20_spill] sm:$0xff] %v10737_v49 }
 0x40c   : > { %v3022_v17 = vadd.f32 %v3021_v31, %v3020_v47  ;;  %v10684_v29 = vpop.f32.mrb[4].mxu0 }
 0x40d   : > { %v3150_v11 = vsel %vm1992_vm5, %v3109_v51, 0.0  ;;  %v2981_v50 = vmul.f32 %v10682_v24, %v10684_v29  ;;  %v6767_v23 = vpop.f32.mrb[5].mxu0 }
 0x40e   : > { %v3151_v8 = vadd.f32 %v3150_v11, %v3149_v3 }
 0x40f   : > { %v3023_v57 = vsel %vm1992_vm5, %v2981_v50, 0.0  ;;  %v3110_v12 = vmul.f32 %v2981_v50, %v10684_v29 }
 0x410   : > { %v3024_v28 = vadd.f32 %v3023_v57, %v3022_v17  ;;  %v10694_v16 = vpop.f32.mrb[6].mxu0 }
 0x411   : > { %v3152_v27 = vsel %vm1992_vm5, %v3110_v12, 0.0  ;;  %v2982_v7 = vmul.f32 %v10692_v20, %v10694_v16  ;;  %v6770_v37 = vpop.f32.mrb[7].mxu0 }
 0x412   : > { %v3153_v14 = vadd.f32 %v3152_v27, %v3151_v8  ;;  %v10746_v8 = vpop.permute.xlu0 %2821 }
 0x413   : > { %v3025_v63 = vsel %vm1992_vm5, %v2982_v7, 0.0  ;;  %v3111_v41 = vmul.f32 %v2982_v7, %v10694_v16  ;;  %15313 = vst [vmem:[#allocation21_spill] sm:$0xff] %v10746_v8 }
 0x414   : > { %v3026_v42 = vadd.f32 %v3025_v63, %v3024_v28  ;;  %v10703_v58 = vpop.f32.mrb[8].mxu0 }
 0x415   : > { %v3154_v36 = vsel %vm1992_vm5, %v3111_v41, 0.0  ;;  %v2983_v34 = vmul.f32 %v10701_v21, %v10703_v58  ;;  %v6773_v0 = vpop.f32.mrb[9].mxu0  ;;  %v10755_v41 = vpop.permute.xlu1 %2826 }
 0x416   : > { %v3155_v45 = vadd.f32 %v3154_v36, %v3153_v14  ;;  %15314 = vst [vmem:[#allocation22_spill] sm:$0xff] %v10755_v41 }
 0x417   : > { %v3027_v39 = vsel %vm1992_vm5, %v2983_v34, 0.0  ;;  %v3112_v10 = vmul.f32 %v2983_v34, %v10703_v58 }
 0x418   : > { %v3028_v46 = vadd.f32 %v3027_v39, %v3026_v42  ;;  %v10712_v54 = vpop.f32.mrb[10].mxu0 }
 0x419   : > { %v3156_v18 = vsel %vm1992_vm5, %v3112_v10, 0.0  ;;  %v2984_v35 = vmul.f32 %v10710_v30, %v10712_v54  ;;  %v6776_v5 = vpop.f32.mrb[11].mxu0 }
 0x41a   : > { %v3157_v52 = vadd.f32 %v3156_v18, %v3155_v45  ;;  %v10764_v18 = vpop.permute.xlu0 %2831 }
 0x41b   : > { %v3029_v9 = vsel %vm1992_vm5, %v2984_v35, 0.0  ;;  %v3113_v59 = vmul.f32 %v2984_v35, %v10712_v54  ;;  %15315 = vst [vmem:[#allocation146_spill] sm:$0xff] %v10764_v18 }
 0x41c   : > { %v3030_v62 = vadd.f32 %v3029_v9, %v3028_v46  ;;  %v10721_v44 = vpop.f32.mrb[12].mxu0 }
 0x41d   : > { %v3158_v48 = vsel %vm1992_vm5, %v3113_v59, 0.0  ;;  %v2985_v26 = vmul.f32 %v10719_v53, %v10721_v44  ;;  %v6779_v2 = vpop.f32.mrb[13].mxu0 }
 0x41e   : > { %v3159_v19 = vadd.f32 %v3158_v48, %v3157_v52  ;;  %v10773_v2 = vpop.permute.xlu1 %2836 }
 0x41f   : > { %v3031_v22 = vsel %vm1992_vm5, %v2985_v26, 0.0  ;;  %v3114_v25 = vmul.f32 %v2985_v26, %v10721_v44  ;;  %15316 = vst [vmem:[#allocation145_spill] sm:$0xff] %v10773_v2 }
 0x420   : > { %v3032_v4 = vadd.f32 %v3031_v22, %v3030_v62  ;;  %v10730_v55 = vpop.f32.mrb[14].mxu0 }
 0x421   : > { %v3160_v15 = vsel %vm1992_vm5, %v3114_v25, 0.0  ;;  %v2986_v60 = vmul.f32 %v10728_v38, %v10730_v55  ;;  %v6782_v40 = vpop.f32.mrb[15].mxu0 }
 0x422   : > { %v3161_v61 = vadd.f32 %v3160_v15, %v3159_v19 }
 0x423   : > { %v3033_v6 = vsel %vm1992_vm5, %v2986_v60, 0.0  ;;  %v3115_v13 = vmul.f32 %v2986_v60, %v10730_v55 }
 0x424   : > { %v3034_v47 = vadd.f32 %v3033_v6, %v3032_v4  ;;  %v10739_v31 = vpop.f32.mrb[16].mxu0  ;;  %v10782_v6 = vpop.permute.xlu0 %2841 }
 0x425   : > { %v3162_v51 = vsel %vm1992_vm5, %v3115_v13, 0.0  ;;  %v2987_v17 = vmul.f32 %v10737_v49, %v10739_v31  ;;  %v6785_v3 = vpop.f32.mrb[17].mxu0  ;;  %15317 = vst [vmem:[#allocation149_spill] sm:$0xff] %v10782_v6 }
 0x426   : > { %v3163_v11 = vadd.f32 %v3162_v51, %v3161_v61 }
 0x427   : > { %v3035_v50 = vsel %vm1992_vm5, %v2987_v17, 0.0  ;;  %v3116_v23 = vmul.f32 %v2987_v17, %v10739_v31 }
 0x428   : > { %v3036_v57 = vadd.f32 %v3035_v50, %v3034_v47  ;;  %v10748_v12 = vpop.f32.mrb[18].mxu0 }
 0x429   : > { %v3164_v28 = vsel %vm1992_vm5, %v3116_v23, 0.0  ;;  %v2988_v27 = vmul.f32 %v10746_v8, %v10748_v12  ;;  %v6788_v7 = vpop.f32.mrb[19].mxu0 }
 0x42a   : > { %v3165_v37 = vadd.f32 %v3164_v28, %v3163_v11 }
 0x42b   : > { %v3037_v14 = vsel %vm1992_vm5, %v2988_v27, 0.0  ;;  %v3117_v63 = vmul.f32 %v2988_v27, %v10748_v12 }
 0x42c   : > { %v3038_v42 = vadd.f32 %v3037_v14, %v3036_v57  ;;  %v10757_v36 = vpop.f32.mrb[20].mxu0  ;;  %v10791_v57 = vpop.permute.xlu1 %2846 }
 0x42d   : > { %v3166_v34 = vsel %vm1992_vm5, %v3117_v63, 0.0  ;;  %v2989_v0 = vmul.f32 %v10755_v41, %v10757_v36  ;;  %v6791_v45 = vpop.f32.mrb[21].mxu0  ;;  %15318 = vst [vmem:[#allocation150_spill] sm:$0xff] %v10791_v57 }
 0x42e   : > { %v3167_v39 = vadd.f32 %v3166_v34, %v3165_v37 }
 0x42f   : > { %v3039_v10 = vsel %vm1992_vm5, %v2989_v0, 0.0  ;;  %v3118_v46 = vmul.f32 %v2989_v0, %v10757_v36  ;;  %v10800_v0 = vpop.permute.xlu0 %2851 }
 0x430   : > { %v3040_v35 = vadd.f32 %v3039_v10, %v3038_v42  ;;  %v10766_v5 = vpop.f32.mrb[22].mxu0  ;;  %15319 = vst [vmem:[#allocation43_spill] sm:$0xff] %v10800_v0 }
 0x431   : > { %v3168_v52 = vsel %vm1992_vm5, %v3118_v46, 0.0  ;;  %v2990_v9 = vmul.f32 %v10764_v18, %v10766_v5  ;;  %v6794_v59 = vpop.f32.mrb[23].mxu0 }
 0x432   : > { %v3169_v62 = vadd.f32 %v3168_v52, %v3167_v39 }
 0x433   : > { %v3041_v48 = vsel %vm1992_vm5, %v2990_v9, 0.0  ;;  %v3119_v26 = vmul.f32 %v2990_v9, %v10766_v5 }
 0x434   : > { %v3042_v19 = vadd.f32 %v3041_v48, %v3040_v35  ;;  %v10775_v22 = vpop.f32.mrb[24].mxu0 }
 0x435   : > { %v3170_v25 = vsel %vm1992_vm5, %v3119_v26, 0.0  ;;  %v2991_v4 = vmul.f32 %v10773_v2, %v10775_v22  ;;  %v6797_v15 = vpop.f32.mrb[25].mxu0 }
 0x436   : > { %v3171_v60 = vadd.f32 %v3170_v25, %v3169_v62  ;;  %v10809_v62 = vpop.permute.xlu1 %2856 }
 0x437   : > { %v3043_v40 = vsel %vm1992_vm5, %v2991_v4, 0.0  ;;  %v3120_v61 = vmul.f32 %v2991_v4, %v10775_v22  ;;  %15320 = vst [vmem:[#allocation85_spill] sm:$0xff] %v10809_v62 }
 0x438   : > { %v3044_v13 = vadd.f32 %v3043_v40, %v3042_v19  ;;  %v10784_v47 = vpop.f32.mrb[26].mxu0 }
 0x439   : > { %v3172_v51 = vsel %vm1992_vm5, %v3120_v61, 0.0  ;;  %v2992_v17 = vmul.f32 %v10782_v6, %v10784_v47  ;;  %v6800_v3 = vpop.f32.mrb[27].mxu0  ;;  %v10818_v61 = vpop.permute.xlu0 %2861 }
 0x43a   : > { %v3173_v11 = vadd.f32 %v3172_v51, %v3171_v60  ;;  %15321 = vst [vmem:[#allocation24_spill] sm:$0xff] %v10818_v61 }
 0x43b   : > { %v3045_v50 = vsel %vm1992_vm5, %v2992_v17, 0.0  ;;  %v3121_v23 = vmul.f32 %v2992_v17, %v10784_v47 }
 0x43c   : > { %v3046_v28 = vadd.f32 %v3045_v50, %v3044_v13  ;;  %v10793_v27 = vpop.f32.mrb[28].mxu0 }
 0x43d   : > { %v3174_v7 = vsel %vm1992_vm5, %v3121_v23, 0.0  ;;  %v2993_v37 = vmul.f32 %v10791_v57, %v10793_v27  ;;  %v6803_v14 = vpop.f32.mrb[29].mxu0 }
 0x43e   : > { %v3175_v63 = vadd.f32 %v3174_v7, %v3173_v11  ;;  %v10827_v7 = vpop.permute.xlu1 %2866 }
 0x43f   : > { %v3047_v42 = vsel %vm1992_vm5, %v2993_v37, 0.0  ;;  %v3122_v34 = vmul.f32 %v2993_v37, %v10793_v27  ;;  %15322 = vst [vmem:[#allocation42_spill] sm:$0xff] %v10827_v7 }
 0x440   : > { %v3048_v45 = vadd.f32 %v3047_v42, %v3046_v28  ;;  %v10802_v39 = vpop.f32.mrb[30].mxu0 }
 0x441   : > { %v3176_v10 = vsel %vm1992_vm5, %v3122_v34, 0.0  ;;  %v2994_v46 = vmul.f32 %v10800_v0, %v10802_v39  ;;  %v6806_v35 = vpop.f32.mrb[31].mxu0 }
 0x442   : > { %v3177_v52 = vadd.f32 %v3176_v10, %v3175_v63  ;;  %v10836_v35 = vpop.permute.xlu0 %2871 }
 0x443   : > { %v3049_v9 = vsel %vm1992_vm5, %v2994_v46, 0.0  ;;  %v3123_v59 = vmul.f32 %v2994_v46, %v10802_v39  ;;  %15323 = vst [vmem:[#allocation154_spill] sm:$0xff] %v10836_v35 }
 0x444   : > { %v3050_v48 = vadd.f32 %v3049_v9, %v3048_v45  ;;  %v10811_v26 = vpop.f32.mrb[32].mxu0 }
 0x445   : > { %v3178_v19 = vsel %vm1992_vm5, %v3123_v59, 0.0  ;;  %v2995_v25 = vmul.f32 %v10809_v62, %v10811_v26  ;;  %v6809_v4 = vpop.f32.mrb[33].mxu0 }
 0x446   : > { %v3179_v15 = vadd.f32 %v3178_v19, %v3177_v52 }
 0x447   : > { %v3051_v60 = vsel %vm1992_vm5, %v2995_v25, 0.0  ;;  %v3124_v40 = vmul.f32 %v2995_v25, %v10811_v26 }
 0x448   : > { %v3052_v13 = vadd.f32 %v3051_v60, %v3050_v48  ;;  %v10820_v51 = vpop.f32.mrb[34].mxu0  ;;  %v10845_v60 = vpop.permute.xlu1 %2876 }
 0x449   : > { %v3180_v17 = vsel %vm1992_vm5, %v3124_v40, 0.0  ;;  %v2996_v3 = vmul.f32 %v10818_v61, %v10820_v51  ;;  %v6812_v11 = vpop.f32.mrb[35].mxu0  ;;  %15324 = vst [vmem:[#allocation84_spill] sm:$0xff] %v10845_v60 }
 0x44a   : > { %v3181_v50 = vadd.f32 %v3180_v17, %v3179_v15 }
 0x44b   : > { %v3053_v23 = vsel %vm1992_vm5, %v2996_v3, 0.0  ;;  %v3125_v28 = vmul.f32 %v2996_v3, %v10820_v51 }
 0x44c   : > { %v3054_v37 = vadd.f32 %v3053_v23, %v3052_v13  ;;  %v10829_v14 = vpop.f32.mrb[36].mxu0  ;;  %v10852_v23 = vld [vmem:[#allocation2 + $0x10] sm:$0xff] }
 0x44d   : > { %v3182_v63 = vsel %vm1992_vm5, %v3125_v28, 0.0  ;;  %v2997_v42 = vmul.f32 %v10827_v7, %v10829_v14  ;;  %v6815_v34 = vpop.f32.mrb[37].mxu0  ;;  %15325 = vst [vmem:[#allocation23_spill] sm:$0xff] %v10852_v23 }
 0x44e   : > { %v3183_v45 = vadd.f32 %v3182_v63, %v3181_v50  ;;  %v3496_v50 = vld [vmem:[#allocation2 + $0x8] sm:$0xff]  ;;  %v14582_v63 = vrot.slane %v10852_v23, 1 }
 0x44f   : > { %v3055_v10 = vsel %vm1992_vm5, %v2997_v42, 0.0  ;;  %v3126_v46 = vmul.f32 %v2997_v42, %v10829_v14 }
 0x450   : > { %v3056_v52 = vadd.f32 %v3055_v10, %v3054_v37  ;;  %v10838_v9 = vpop.f32.mrb[38].mxu0  ;;  %v3593_v37 = vrot.slane %v3496_v50, 1 }
 0x451   : > { %v3184_v59 = vsel %vm1992_vm5, %v3126_v46, 0.0  ;;  %v2998_v48 = vmul.f32 %v10836_v35, %v10838_v9  ;;  %v6818_v19 = vpop.f32.mrb[39].mxu0 }
 0x452   : > { %v3185_v25 = vadd.f32 %v3184_v59, %v3183_v45  ;;  %v10857_v45 = vpop.permute.xlu0 %2881 }
 0x453   : > { %v3057_v4 = vsel %vm1992_vm5, %v2998_v48, 0.0  ;;  %v3127_v15 = vmul.f32 %v2998_v48, %v10838_v9  ;;  %15326 = vst [vmem:[#allocation153_spill] sm:$0xff] %v10857_v45 }
 0x454   : > { %v3058_v40 = vadd.f32 %v3057_v4, %v3056_v52  ;;  %v10847_v13 = vpop.f32.mrb[40].mxu0  ;;  %v3596_v52 = vsel %vm433_vm0, %v3593_v37, %v14582_v63 }
 0x455   : > { %v3186_v17 = vsel %vm1992_vm5, %v3127_v15, 0.0  ;;  %v2999_v3 = vmul.f32 %v10845_v60, %v10847_v13  ;;  %v6821_v11 = vpop.f32.mrb[41].mxu0  ;;  %3677 = vrot.lane.b32.xlu1 %v3596_v52, %s7520_s26 }
 0x456   : > { %v3187_v28 = vadd.f32 %v3186_v17, %v3185_v25  ;;  %v10879_v52 = vpop.permute.xlu0 %2891 }
 0x457   : > { %v3059_v42 = vsel %vm1992_vm5, %v2999_v3, 0.0  ;;  %v3128_v34 = vmul.f32 %v2999_v3, %v10847_v13  ;;  %15328 = vst [vmem:[#allocation87_spill] sm:$0xff] %v10879_v52 }
 0x458   : > { %v3060_v10 = vadd.f32 %v3059_v42, %v3058_v40  ;;  %v10859_v46 = vpop.f32.mrb[42].mxu0  ;;  %v10870_v40 = vpop.permute.xlu1 %2886 }
 0x459   : > { %v3188_v59 = vsel %vm1992_vm5, %v3128_v34, 0.0  ;;  %v3000_v48 = vmul.f32 %v10857_v45, %v10859_v46  ;;  %v6824_v19 = vpop.f32.mrb[43].mxu0  ;;  %15327 = vst [vmem:[#allocation45_spill] sm:$0xff] %v10870_v40 }
 0x45a   : > { %v3189_v25 = vadd.f32 %v3188_v59, %v3187_v28 }
 0x45b   : > { %v3061_v4 = vsel %vm1992_vm5, %v3000_v48, 0.0  ;;  %v3129_v15 = vmul.f32 %v3000_v48, %v10859_v46 }
 0x45c   : > { %v3062_v17 = vadd.f32 %v3061_v4, %v3060_v10  ;;  %v10872_v3 = vpop.f32.mrb[44].mxu0 }
 0x45d   : > { %v3190_v11 = vsel %vm1992_vm5, %v3129_v15, 0.0  ;;  %v3001_v50 = vmul.f32 %v10870_v40, %v10872_v3  ;;  %v6827_v42 = vpop.f32.mrb[45].mxu0 }
 0x45e   : > { %v3191_v34 = vadd.f32 %v3190_v11, %v3189_v25  ;;  %v3495_v11 = vld [vmem:[#allocation2] sm:$0xff]  ;;  %v10888_v42 = vpop.permute.xlu1 %2896 }
 0x45f   : > { %v3063_v19 = vsel %vm1992_vm5, %v3001_v50, 0.0  ;;  %v3130_v28 = vmul.f32 %v3001_v50, %v10872_v3  ;;  %15329 = vst [vmem:[#allocation26_spill] sm:$0xff] %v10888_v42 }
 0x460   : > { %v3064_v59 = vadd.f32 %v3063_v19, %v3062_v17  ;;  %v10881_v48 = vpop.f32.mrb[46].mxu0  ;;  %v3592_v17 = vrot.slane %v3495_v11, 1 }
 0x461   : > { %v3192_v10 = vsel %vm1992_vm5, %v3130_v28, 0.0  ;;  %v3002_v4 = vmul.f32 %v10879_v52, %v10881_v48  ;;  %v6830_v15 = vpop.f32.mrb[47].mxu0 }
 0x462   : > { %v3193_v63 = vadd.f32 %v3192_v10, %v3191_v34  ;;  %v3594_v34 = vsel %vm433_vm0, %v3592_v17, %v3593_v37  ;;  %v10899_v15 = vpop.permute.xlu0 %2901 }
 0x463   : > { %v3065_v1 = vsel %vm1992_vm5, %v3002_v4, 0.0  ;;  %v3131_v25 = vmul.f32 %v3002_v4, %v10881_v48  ;;  %3675 = vrot.lane.b32.xlu0 %v3594_v34, %s7520_s26  ;;  %15330 = vst [vmem:[#allocation158_spill] sm:$0xff] %v10899_v15 }
 0x464   : > { %v3066_v50 = vadd.f32 %v3065_v1, %v3064_v59  ;;  %v10890_v23 = vpop.f32.mrb[48].mxu0 }
 0x465   : > { %v3194_v19 = vsel %vm1992_vm5, %v3131_v25, 0.0  ;;  %v3003_v28 = vmul.f32 %v10888_v42, %v10890_v23  ;;  %v6833_v40 = vpop.f32.mrb[49].mxu0 }
 0x466   : > { %v3195_v52 = vadd.f32 %v3194_v19, %v3193_v63  ;;  %v10908_v19 = vpop.permute.xlu1 %2906 }
 0x467   : > { %v3067_v10 = vsel %vm1992_vm5, %v3003_v28, 0.0  ;;  %v3132_v4 = vmul.f32 %v3003_v28, %v10890_v23  ;;  %15331 = vst [vmem:[#allocation44_spill] sm:$0xff] %v10908_v19 }
 0x468   : > { %v3068_v1 = vadd.f32 %v3067_v10, %v3066_v50  ;;  %v10901_v59 = vpop.f32.mrb[50].mxu0 }
 0x469   : > { %v3196_v25 = vsel %vm1992_vm5, %v3132_v4, 0.0  ;;  %v3004_v11 = vmul.f32 %v10899_v15, %v10901_v59  ;;  %v6836_v40 = vpop.f32.mrb[51].mxu0 }
 0x46a   : > { %v3197_v63 = vadd.f32 %v3196_v25, %v3195_v52  ;;  %v10917_v25 = vpop.permute.xlu0 %2911 }
 0x46b   : > { %v3069_v37 = vsel %vm1992_vm5, %v3004_v11, 0.0  ;;  %v3133_v17 = vmul.f32 %v3004_v11, %v10901_v59  ;;  %15332 = vst [vmem:[#allocation86_spill] sm:$0xff] %v10917_v25 }
 0x46c   : > { %v3070_v28 = vadd.f32 %v3069_v37, %v3068_v1  ;;  %v10910_v34 = vpop.f32.mrb[52].mxu0 }
 0x46d   : > { %v3198_v50 = vsel %vm1992_vm5, %v3133_v17, 0.0  ;;  %v3005_v10 = vmul.f32 %v10908_v19, %v10910_v34  ;;  %v6839_v4 = vpop.f32.mrb[53].mxu0 }
 0x46e   : > { %v3199_v42 = vadd.f32 %v3198_v50, %v3197_v63  ;;  %v10926_v50 = vpop.permute.xlu1 %2916 }
 0x46f   : > { %v3071_v15 = vsel %vm1992_vm5, %v3005_v10, 0.0  ;;  %v3134_v52 = vmul.f32 %v3005_v10, %v10910_v34  ;;  %15333 = vst [vmem:[#allocation25_spill] sm:$0xff] %v10926_v50 }
 0x470   : > { %v3072_v40 = vadd.f32 %v3071_v15, %v3070_v28  ;;  %v10919_v11 = vpop.f32.mrb[54].mxu0 }
 0x471   : > { %v3200_v1 = vsel %vm1992_vm5, %v3134_v52, 0.0  ;;  %v3006_v37 = vmul.f32 %v10917_v25, %v10919_v11  ;;  %v6842_v17 = vpop.f32.mrb[55].mxu0 }
 0x472   : > { %v3201_v45 = vadd.f32 %v3200_v1, %v3199_v42  ;;  %v10935_v1 = vpop.permute.xlu0 %2921 }
 0x473   : > { %v3073_v19 = vsel %vm1992_vm5, %v3006_v37, 0.0  ;;  %v3135_v63 = vmul.f32 %v3006_v37, %v10919_v11  ;;  %15334 = vst [vmem:[#allocation157_spill] sm:$0xff] %v10935_v1 }
 0x474   : > { %v3074_v4 = vadd.f32 %v3073_v19, %v3072_v40  ;;  %v10928_v10 = vpop.f32.mrb[56].mxu0 }
 0x475   : > { %v3202_v15 = vsel %vm1992_vm5, %v3135_v63, 0.0  ;;  %v3007_v28 = vmul.f32 %v10926_v50, %v10928_v10  ;;  %v6845_v52 = vpop.f32.mrb[57].mxu0 }
 0x476   : > { %v3203_v60 = vadd.f32 %v3202_v15, %v3201_v45  ;;  %v10944_v15 = vpop.permute.xlu1 %2926 }
 0x477   : > { %v3075_v25 = vsel %vm1992_vm5, %v3007_v28, 0.0  ;;  %v3136_v42 = vmul.f32 %v3007_v28, %v10928_v10  ;;  %15335 = vst [vmem:[#allocation47_spill] sm:$0xff] %v10944_v15 }
 0x478   : > { %v3076_v17 = vadd.f32 %v3075_v25, %v3074_v4  ;;  %v10937_v37 = vpop.f32.mrb[58].mxu0 }
 0x479   : > { %v3204_v19 = vsel %vm1992_vm5, %v3136_v42, 0.0  ;;  %v3008_v40 = vmul.f32 %v10935_v1, %v10937_v37  ;;  %v6848_v63 = vpop.f32.mrb[59].mxu0 }
 0x47a   : > { %v3205_v35 = vadd.f32 %v3204_v19, %v3203_v60  ;;  %v10953_v19 = vpop.permute.xlu0 %2931 }
 0x47b   : > { %v3077_v50 = vsel %vm1992_vm5, %v3008_v40, 0.0  ;;  %v3137_v45 = vmul.f32 %v3008_v40, %v10937_v37  ;;  %15336 = vst [vmem:[#allocation89_spill] sm:$0xff] %v10953_v19 }
 0x47c   : > { %v3078_v52 = vadd.f32 %v3077_v50, %v3076_v17  ;;  %v10946_v28 = vpop.f32.mrb[60].mxu0 }
 0x47d   : > { %v3206_v25 = vsel %vm1992_vm5, %v3137_v45, 0.0  ;;  %v3009_v4 = vmul.f32 %v10944_v15, %v10946_v28  ;;  %v6851_v42 = vpop.f32.mrb[61].mxu0 }
 0x47e   : > { %v3207_v7 = vadd.f32 %v3206_v25, %v3205_v35  ;;  %v10962_v25 = vpop.permute.xlu1 %2936 }
 0x47f   : > { %v3079_v1 = vsel %vm1992_vm5, %v3009_v4, 0.0  ;;  %v3138_v60 = vmul.f32 %v3009_v4, %v10946_v28  ;;  %15337 = vst [vmem:[#allocation28_spill] sm:$0xff] %v10962_v25 }
 0x480   : > { %v3080_v63 = vadd.f32 %v3079_v1, %v3078_v52  ;;  %v10955_v40 = vpop.f32.mrb[62].mxu0 }
 0x481   : > { %v3208_v50 = vsel %vm1992_vm5, %v3138_v60, 0.0  ;;  %v3010_v17 = vmul.f32 %v10953_v19, %v10955_v40  ;;  %v6854_v45 = vpop.f32.mrb[63].mxu0 }
 0x482   : > { %v3209_v61 = vadd.f32 %v3208_v50, %v3207_v7  ;;  %v10971_v50 = vpop.permute.xlu0 %2941 }
 0x483   : > { %v3081_v15 = vsel %vm1992_vm5, %v3010_v17, 0.0  ;;  %v3139_v35 = vmul.f32 %v3010_v17, %v10955_v40  ;;  %15338 = vst [vmem:[#allocation162_spill] sm:$0xff] %v10971_v50 }
 0x484   : > { %v3082_v42 = vadd.f32 %v3081_v15, %v3080_v63  ;;  %v10964_v4 = vpop.f32.mrb[64].mxu0 }
 0x485   : > { %v3210_v1 = vsel %vm1992_vm5, %v3139_v35, 0.0  ;;  %v3011_v52 = vmul.f32 %v10962_v25, %v10964_v4  ;;  %v6857_v60 = vpop.f32.mrb[65].mxu0 }
 0x486   : > { %v3211_v62 = vadd.f32 %v3210_v1, %v3209_v61  ;;  %v10980_v1 = vpop.permute.xlu1 %2946 }
 0x487   : > { %v3083_v19 = vsel %vm1992_vm5, %v3011_v52, 0.0  ;;  %v3140_v7 = vmul.f32 %v3011_v52, %v10964_v4  ;;  %15339 = vst [vmem:[#allocation46_spill] sm:$0xff] %v10980_v1 }
 0x488   : > { %v3084_v45 = vadd.f32 %v3083_v19, %v3082_v42  ;;  %v10973_v17 = vpop.f32.mrb[66].mxu0 }
 0x489   : > { %v3212_v15 = vsel %vm1992_vm5, %v3140_v7, 0.0  ;;  %v3012_v63 = vmul.f32 %v10971_v50, %v10973_v17  ;;  %v6860_v35 = vpop.f32.mrb[67].mxu0 }
 0x48a   : > { %v3213_v0 = vadd.f32 %v3212_v15, %v3211_v62  ;;  %v10989_v15 = vpop.permute.xlu0 %2951 }
 0x48b   : > { %v3085_v25 = vsel %vm1992_vm5, %v3012_v63, 0.0  ;;  %v3141_v61 = vmul.f32 %v3012_v63, %v10973_v17  ;;  %15340 = vst [vmem:[#allocation88_spill] sm:$0xff] %v10989_v15 }
 0x48c   : > { %v3086_v60 = vadd.f32 %v3085_v25, %v3084_v45  ;;  %v10982_v52 = vpop.f32.mrb[68].mxu0 }
 0x48d   : > { %v3214_v19 = vsel %vm1992_vm5, %v3141_v61, 0.0  ;;  %v3013_v42 = vmul.f32 %v10980_v1, %v10982_v52  ;;  %v6863_v7 = vpop.f32.mrb[69].mxu0 }
 0x48e   : > { %v3215_v57 = vadd.f32 %v3214_v19, %v3213_v0  ;;  %v10998_v19 = vpop.permute.xlu1 %2956 }
 0x48f   : > { %v3087_v50 = vsel %vm1992_vm5, %v3013_v42, 0.0  ;;  %v3142_v62 = vmul.f32 %v3013_v42, %v10982_v52  ;;  %15341 = vst [vmem:[#allocation27_spill] sm:$0xff] %v10998_v19 }
 0x490   : > { %v3088_v35 = vadd.f32 %v3087_v50, %v3086_v60  ;;  %v10991_v63 = vpop.f32.mrb[70].mxu0 }
 0x491   : > { %v3216_v25 = vsel %vm1992_vm5, %v3142_v62, 0.0  ;;  %v3014_v45 = vmul.f32 %v10989_v15, %v10991_v63  ;;  %v6866_v61 = vpop.f32.mrb[71].mxu0 }
 0x492   : > { %v3217_v6 = vadd.f32 %v3216_v25, %v3215_v57  ;;  %v11007_v25 = vpop.permute.xlu0 %2961 }
 0x493   : > { %v3089_v1 = vsel %vm1992_vm5, %v3014_v45, 0.0  ;;  %v3143_v0 = vmul.f32 %v3014_v45, %v10991_v63  ;;  %15342 = vst [vmem:[#allocation161_spill] sm:$0xff] %v11007_v25 }
 0x494   : > { %v3090_v7 = vadd.f32 %v3089_v1, %v3088_v35  ;;  %v11000_v42 = vpop.f32.mrb[72].mxu0 }
 0x495   : > { %v3218_v50 = vsel %vm1992_vm5, %v3143_v0, 0.0  ;;  %v3015_v60 = vmul.f32 %v10998_v19, %v11000_v42  ;;  %v6869_v62 = vpop.f32.mrb[73].mxu0 }
 0x496   : > { %v3219_v2 = vadd.f32 %v3218_v50, %v3217_v6  ;;  %v11016_v50 = vpop.permute.xlu1 %2966 }
 0x497   : > { %v3091_v15 = vsel %vm1992_vm5, %v3015_v60, 0.0  ;;  %v3144_v57 = vmul.f32 %v3015_v60, %v11000_v42  ;;  %15343 = vst [vmem:[#allocation49_spill] sm:$0xff] %v11016_v50 }
 0x498   : > { %v3092_v61 = vadd.f32 %v3091_v15, %v3090_v7  ;;  %v11009_v45 = vpop.f32.mrb[74].mxu0 }
 0x499   : > { %v3220_v1 = vsel %vm1992_vm5, %v3144_v57, 0.0  ;;  %v3016_v35 = vmul.f32 %v11007_v25, %v11009_v45  ;;  %v6872_v0 = vpop.f32.mrb[75].mxu0 }
 0x49a   : > { %v3221_v18 = vadd.f32 %v3220_v1, %v3219_v2  ;;  %v11025_v1 = vpop.permute.xlu0 %2971 }
 0x49b   : > { %v3093_v19 = vsel %vm1992_vm5, %v3016_v35, 0.0  ;;  %v3145_v6 = vmul.f32 %v3016_v35, %v11009_v45  ;;  %15344 = vst [vmem:[#allocation91_spill] sm:$0xff] %v11025_v1 }
 0x49c   : > { %v3094_v62 = vadd.f32 %v3093_v19, %v3092_v61  ;;  %v11018_v60 = vpop.f32.mrb[76].mxu0 }
 0x49d   : > { %v3222_v15 = vsel %vm1992_vm5, %v3145_v6, 0.0  ;;  %v3017_v7 = vmul.f32 %v11016_v50, %v11018_v60  ;;  %v6875_v57 = vpop.f32.mrb[77].mxu0 }
 0x49e   : > { %v3223_v41 = vadd.f32 %v3222_v15, %v3221_v18  ;;  %v11034_v15 = vpop.permute.xlu1 %2976 }
 0x49f   : > { %v3095_v25 = vsel %vm1992_vm5, %v3017_v7, 0.0  ;;  %v3146_v2 = vmul.f32 %v3017_v7, %v11018_v60  ;;  %15345 = vst [vmem:[#allocation30_spill] sm:$0xff] %v11034_v15 }
 0x4a0   : > { %v3096_v0 = vadd.f32 %v3095_v25, %v3094_v62  ;;  %v11027_v35 = vpop.f32.mrb[78].mxu0 }
 0x4a1   : > { %v3224_v19 = vsel %vm1992_vm5, %v3146_v2, 0.0  ;;  %v3018_v61 = vmul.f32 %v11025_v1, %v11027_v35  ;;  %v6878_v6 = vpop.f32.mrb[79].mxu0 }
 0x4a2   : > { %v3225_v8 = vadd.f32 %v3224_v19, %v3223_v41 }
 0x4a3   : > { %v3097_v50 = vsel %vm1992_vm5, %v3018_v61, 0.0  ;;  %v3147_v18 = vmul.f32 %v3018_v61, %v11027_v35 }
 0x4a4   : > { %v3098_v57 = vadd.f32 %v3097_v50, %v3096_v0  ;;  %v11036_v7 = vpop.f32.mrb[80].mxu0 }
 0x4a5   : > { %v3226_v25 = vsel %vm1992_vm5, %v3147_v18, 0.0  ;;  %v3019_v62 = vmul.f32 %v11034_v15, %v11036_v7  ;;  %v6881_v2 = vpop.f32.mrb[81].mxu0 }
 0x4a6   : > { %v3227_v49 = vadd.f32 %v3226_v25, %v3225_v8 }
 0x4a7   : > { %v3100_v6 = vsel %vm3099_vm8, %v3019_v62, 0.0  ;;  %v3148_v41 = vmul.f32 %v3019_v62, %v11036_v7 }
 0x4a8   : > { %v3101_v19 = vadd.f32 %v3100_v6, %v3098_v57 }
 0x4a9   : > { %v3228_v61 = vsel %vm3099_vm8, %v3148_v41, 0.0 }
 0x4aa   : > { %v3102_v1 = vrot.slane %v3101_v19, 4  ;;  %v3229_v38 = vadd.f32 %v3228_v61, %v3227_v49 }
 0x4ac   : > { %v3103_v50 = vadd.f32 %v3102_v1, %v3101_v19  ;;  %v3230_v0 = vrot.slane %v3229_v38, 4 }
 0x4ae   : > { %v3104_v53 = vrot.slane %v3103_v50, 2  ;;  %v3231_v30 = vadd.f32 %v3230_v0, %v3229_v38 }
 0x4b0   : > { %v3105_v21 = vadd.f32 %v3104_v53, %v3103_v50  ;;  %v3232_v18 = vrot.slane %v3231_v30, 2 }
 0x4b2   : > { %v3106_v20 = vrot.slane %v3105_v21, 1  ;;  %v3233_v24 = vadd.f32 %v3232_v18, %v3231_v30 }
 0x4b4   : > { %v3107_v43 = vadd.f32 %v3106_v20, %v3105_v21  ;;  %v3234_v2 = vrot.slane %v3233_v24, 1 }
 0x4b6   : > { %v3235_v8 = vadd.f32 %v3234_v2, %v3233_v24  ;;  %v11044_v25 = vmul.f32 0.00390625, %v3107_v43 }
 0x4b8   : > { %v3237_v33 = vmul.f32 0.00390625, %v3235_v8  ;;  %v3238_v57 = vmul.f32 %v11044_v25, %v11044_v25  ;;  %v3281_v49 = vsub.f32 %v11036_v7, %v11044_v25  ;;  %v3241_v1 = vsub.f32 %v10668_v56, %v11044_v25 }
 0x4b9   : > { %v3242_v53 = vsub.f32 %v10674_v32, %v11044_v25  ;;  %v3243_v20 = vsub.f32 %v10684_v29, %v11044_v25  ;;  %v3244_v43 = vsub.f32 %v10694_v16, %v11044_v25  ;;  %v3245_v24 = vsub.f32 %v10703_v58, %v11044_v25 }
 0x4ba   : > { %v3239_v21 = vsub.f32 %v3237_v33, %v3238_v57  ;;  %v3246_v30 = vsub.f32 %v10712_v54, %v11044_v25  ;;  %v3247_v38 = vsub.f32 %v10721_v44, %v11044_v25  ;;  %v3248_v56 = vsub.f32 %v10730_v55, %v11044_v25 }
 0x4bb   : > { %v3249_v32 = vsub.f32 %v10739_v31, %v11044_v25  ;;  %v3250_v29 = vsub.f32 %v10748_v12, %v11044_v25  ;;  %v3251_v16 = vsub.f32 %v10757_v36, %v11044_v25  ;;  %v3252_v33 = vsub.f32 %v10766_v5, %v11044_v25 }
 0x4bc   : > { %v3240_v58 = vmax.f32 %v3239_v21, 0.0  ;;  %v3253_v54 = vsub.f32 %v10775_v22, %v11044_v25  ;;  %v3254_v44 = vsub.f32 %v10784_v47, %v11044_v25  ;;  %v3255_v55 = vsub.f32 %v10793_v27, %v11044_v25 }
 0x4bd   : > { %v3256_v31 = vsub.f32 %v10802_v39, %v11044_v25  ;;  %v3257_v12 = vsub.f32 %v10811_v26, %v11044_v25  ;;  %v3258_v36 = vsub.f32 %v10820_v51, %v11044_v25  ;;  %v3259_v5 = vsub.f32 %v10829_v14, %v11044_v25 }
 0x4be   : > { %v3282_v7 = vadd.f32 1e-05, %v3240_v58  ;;  %v3260_v22 = vsub.f32 %v10838_v9, %v11044_v25  ;;  %v3261_v47 = vsub.f32 %v10847_v13, %v11044_v25  ;;  %v3262_v27 = vsub.f32 %v10859_v46, %v11044_v25 }
 0x4bf   : > { %v3263_v39 = vsub.f32 %v10872_v3, %v11044_v25  ;;  %v3264_v26 = vsub.f32 %v10881_v48, %v11044_v25  ;;  %v3265_v51 = vsub.f32 %v10890_v23, %v11044_v25  ;;  %v3266_v14 = vsub.f32 %v10901_v59, %v11044_v25 }
 0x4c0   : > { %7164 = vrsqrt.f32 %v3282_v7  ;;  %v3267_v9 = vsub.f32 %v10910_v34, %v11044_v25  ;;  %v3268_v13 = vsub.f32 %v10919_v11, %v11044_v25  ;;  %v3269_v46 = vsub.f32 %v10928_v10, %v11044_v25 }
 0x4c1   : > { %v3270_v3 = vsub.f32 %v10937_v37, %v11044_v25  ;;  %v3271_v48 = vsub.f32 %v10946_v28, %v11044_v25  ;;  %v3272_v23 = vsub.f32 %v10955_v40, %v11044_v25  ;;  %v3273_v59 = vsub.f32 %v10964_v4, %v11044_v25 }
 0x4c2   : > { %v3274_v34 = vsub.f32 %v10973_v17, %v11044_v25  ;;  %v3275_v11 = vsub.f32 %v10982_v52, %v11044_v25  ;;  %v3276_v10 = vsub.f32 %v10991_v63, %v11044_v25  ;;  %v3277_v37 = vsub.f32 %v11000_v42, %v11044_v25 }
 0x4c3   : > { %v3278_v28 = vsub.f32 %v11009_v45, %v11044_v25  ;;  %v3279_v40 = vsub.f32 %v11018_v60, %v11044_v25  ;;  %v3280_v4 = vsub.f32 %v11027_v35, %v11044_v25 }
 0x4ca   : > { %v7165_v62 = vpop.eup %7164 }
 0x4cb   : > { %v3324_v17 = vmul.f32 %v7165_v62, %v3281_v49  ;;  %v11130_v6 = vmul.f32 %v7165_v62, %v3241_v1  ;;  %v11132_v52 = vmul.f32 %v7165_v62, %v3242_v53  ;;  %v11134_v41 = vmul.f32 %v7165_v62, %v3243_v20 }
 0x4cc   : > { %v11136_v63 = vmul.f32 %v7165_v62, %v3244_v43  ;;  %v11138_v42 = vmul.f32 %v7165_v62, %v3245_v24  ;;  %v11140_v19 = vmul.f32 %v7165_v62, %v3246_v30  ;;  %v11142_v45 = vmul.f32 %v7165_v62, %v3247_v38 }
 0x4cd   : > { %15346 = vst [vmem:[#allocation166_spill] sm:$0xff] %v11130_v6  ;;  %15347 = vst [vmem:[#allocation48_spill] sm:$0xff] %v11132_v52  ;;  %v3365_v60 = vmul.f32 0.2, %v3324_v17  ;;  %v11144_v61 = vmul.f32 %v7165_v62, %v3248_v56  ;;  %v11146_v35 = vmul.f32 %v7165_v62, %v3249_v32  ;;  %v11148_v50 = vmul.f32 %v7165_v62, %v3250_v29 }
 0x4ce   : > { %15348 = vst [vmem:[#allocation90_spill] sm:$0xff] %v11134_v41  ;;  %v11150_v0 = vmul.f32 %v7165_v62, %v3251_v16  ;;  %v11152_v18 = vmul.f32 %v7165_v62, %v3252_v33  ;;  %v11154_v2 = vmul.f32 %v7165_v62, %v3253_v54  ;;  %v11156_v8 = vmul.f32 %v7165_v62, %v3254_v44 }
 0x4cf   : > { %v3406_v25 = vmax.f32 %v3324_v17, %v3365_v60  ;;  %v11158_v57 = vmul.f32 %v7165_v62, %v3255_v55  ;;  %v11160_v49 = vmul.f32 %v7165_v62, %v3256_v31  ;;  %v11162_v1 = vmul.f32 %v7165_v62, %v3257_v12 }
 0x4d0   : > { %v11164_v53 = vmul.f32 %v7165_v62, %v3258_v36  ;;  %v11166_v20 = vmul.f32 %v7165_v62, %v3259_v5  ;;  %v11168_v43 = vmul.f32 %v7165_v62, %v3260_v22  ;;  %v11170_v24 = vmul.f32 %v7165_v62, %v3261_v47 }
 0x4d1   : > { %v3447_v21 = vmul.f32 %v3406_v25, %v11034_v15  ;;  %v11173_v30 = vmul.f32 %v7165_v62, %v3262_v27  ;;  %v11175_v38 = vmul.f32 %v7165_v62, %v3263_v39  ;;  %v11177_v56 = vmul.f32 %v7165_v62, %v3264_v26 }
 0x4d2   : > { %v11179_v32 = vmul.f32 %v7165_v62, %v3265_v51  ;;  %v11181_v29 = vmul.f32 %v7165_v62, %v3266_v14  ;;  %v11183_v16 = vmul.f32 %v7165_v62, %v3267_v9  ;;  %v11185_v33 = vmul.f32 %v7165_v62, %v3268_v13 }
 0x4d3   : > { %3494 = vst.msk [vmem:[#allocation2 + $0x158] sm:$0xf] %vm3099_vm8, %v3447_v21  ;;  %v11188_v58 = vmul.f32 %v7165_v62, %v3269_v46  ;;  %v11190_v54 = vmul.f32 %v7165_v62, %v3270_v3  ;;  %v11192_v44 = vmul.f32 %v7165_v62, %v3271_v48  ;;  %v11194_v55 = vmul.f32 %v7165_v62, %v3272_v23 }
 0x4d4   : > { %15349 = vst [vmem:[#allocation29_spill] sm:$0xff] %v11183_v16  ;;  %v11196_v31 = vmul.f32 %v7165_v62, %v3273_v59  ;;  %v11198_v12 = vmul.f32 %v7165_v62, %v3274_v34  ;;  %v11200_v36 = vmul.f32 %v7165_v62, %v3275_v11  ;;  %v11202_v5 = vmul.f32 %v7165_v62, %v3276_v10 }
 0x4d5   : > { %15350 = vst [vmem:[#allocation165_spill] sm:$0xff] %v11188_v58  ;;  %15351 = vst [vmem:[#allocation51_spill] sm:$0xff] %v11190_v54  ;;  %v11204_v7 = vmul.f32 %v7165_v62, %v3277_v37  ;;  %v11206_v22 = vmul.f32 %v7165_v62, %v3278_v28  ;;  %v11208_v47 = vmul.f32 %v7165_v62, %v3279_v40  ;;  %v11213_v39 = vmul.f32 0.2, %v11130_v6 }
 0x4d6   : > { %15352 = vst [vmem:[#allocation205_spill] sm:$0xff] %v11194_v55  ;;  %15353 = vst [vmem:[#allocation93_spill] sm:$0xff] %v11196_v31  ;;  %v11210_v27 = vmul.f32 %v7165_v62, %v3280_v4  ;;  %v11216_v26 = vmul.f32 0.2, %v11132_v52  ;;  %v11219_v51 = vmul.f32 0.2, %v11134_v41 }
 0x4d7   : > { %15354 = vst [vmem:[#allocation143_spill] sm:$0xff] %v11200_v36  ;;  %15355 = vst [vmem:[#allocation32_spill] sm:$0xff] %v11202_v5  ;;  %v11222_v14 = vmul.f32 0.2, %v11136_v63  ;;  %v11225_v9 = vmul.f32 0.2, %v11138_v42 }
 0x4d8   : > { %15356 = vst [vmem:[#allocation247_spill] sm:$0xff] %v11206_v22  ;;  %15357 = vst [vmem:[#allocation170_spill] sm:$0xff] %v11208_v47  ;;  %v11228_v13 = vmul.f32 0.2, %v11140_v19  ;;  %v11231_v46 = vmul.f32 0.2, %v11142_v45 }
 0x4d9   : > { %15358 = vst [vmem:[#allocation50_spill] sm:$0xff] %v11213_v39  ;;  %15359 = vst [vmem:[#allocation207_spill] sm:$0xff] %v11216_v26  ;;  %v11234_v3 = vmul.f32 0.2, %v11144_v61  ;;  %v11237_v48 = vmul.f32 0.2, %v11146_v35  ;;  %v3369_v25 = vmax.f32 %v11136_v63, %v11222_v14  ;;  %v3370_v23 = vmax.f32 %v11138_v42, %v11225_v9 }
 0x4da   : > { %15360 = vst [vmem:[#allocation92_spill] sm:$0xff] %v11219_v51  ;;  %v11242_v59 = vmul.f32 0.2, %v11148_v50  ;;  %v11245_v34 = vmul.f32 0.2, %v11150_v0  ;;  %v3371_v14 = vmax.f32 %v11140_v19, %v11228_v13  ;;  %v3372_v9 = vmax.f32 %v11142_v45, %v11231_v46 }
 0x4db   : > { %v11248_v11 = vmul.f32 0.2, %v11152_v18  ;;  %v11253_v37 = vmul.f32 0.2, %v11154_v2  ;;  %v11256_v28 = vmul.f32 0.2, %v11156_v8  ;;  %v3373_v13 = vmax.f32 %v11144_v61, %v11234_v3 }
 0x4dc   : > { %v11259_v40 = vmul.f32 0.2, %v11158_v57  ;;  %v11264_v62 = vmul.f32 0.2, %v11160_v49  ;;  %v11267_v17 = vmul.f32 0.2, %v11162_v1  ;;  %v3374_v46 = vmax.f32 %v11146_v35, %v11237_v48 }
 0x4dd   : > { %v11270_v60 = vmul.f32 0.2, %v11164_v53  ;;  %v11275_v21 = vmul.f32 0.2, %v11166_v20  ;;  %v11278_v10 = vmul.f32 0.2, %v11168_v43  ;;  %v3375_v3 = vmax.f32 %v11148_v50, %v11242_v59 }
 0x4de   : > { %v11281_v4 = vmul.f32 0.2, %v11170_v24  ;;  %v11286_v15 = vmul.f32 0.2, %v11173_v30  ;;  %v11289_v51 = vmul.f32 0.2, %v11175_v38  ;;  %v3376_v48 = vmax.f32 %v11150_v0, %v11245_v34 }
 0x4df   : > { %v11292_v63 = vmul.f32 0.2, %v11177_v56  ;;  %v11297_v41 = vmul.f32 0.2, %v11179_v32  ;;  %v11300_v26 = vmul.f32 0.2, %v11181_v29  ;;  %v3378_v50 = vmax.f32 %v11154_v2, %v11253_v37 }
 0x4e0   : > { %v11303_v42 = vmul.f32 0.2, %v11183_v16  ;;  %v11308_v52 = vmul.f32 0.2, %v11185_v33  ;;  %v11311_v39 = vmul.f32 0.2, %v11188_v58  ;;  %v3379_v59 = vmax.f32 %v11156_v8, %v11256_v28 }
 0x4e1   : > { %v11314_v19 = vmul.f32 0.2, %v11190_v54  ;;  %v11319_v6 = vmul.f32 0.2, %v11192_v44  ;;  %v11322_v16 = vmul.f32 0.2, %v11194_v55  ;;  %v3382_v0 = vmax.f32 %v11162_v1, %v11267_v17 }
 0x4e2   : > { %v11325_v45 = vmul.f32 0.2, %v11196_v31  ;;  %v11330_v58 = vmul.f32 0.2, %v11198_v12  ;;  %v11333_v54 = vmul.f32 0.2, %v11200_v36  ;;  %v3383_v34 = vmax.f32 %v11164_v53, %v11270_v60 }
 0x4e3   : > { %v11336_v61 = vmul.f32 0.2, %v11202_v5  ;;  %v11341_v55 = vmul.f32 0.2, %v11204_v7  ;;  %v11344_v31 = vmul.f32 0.2, %v11206_v22  ;;  %v3377_v5 = vmax.f32 %v11152_v18, %v11248_v11 }
 0x4e4   : > { %v11347_v35 = vmul.f32 0.2, %v11208_v47  ;;  %v11352_v36 = vmul.f32 0.2, %v11210_v27  ;;  %v3380_v22 = vmax.f32 %v11158_v57, %v11259_v40  ;;  %v3381_v47 = vmax.f32 %v11160_v49, %v11264_v62  ;;  %v15370_v62 = vld [vmem:[#allocation38_spill] sm:$0xff]  ;;  %v15383_v28 = vld [vmem:[#allocation81_spill] sm:$0xff] }
 0x4e5   : > { %v3384_v18 = vmax.f32 %v11166_v20, %v11275_v21  ;;  %v3385_v2 = vmax.f32 %v11168_v43, %v11278_v10  ;;  %v3386_v8 = vmax.f32 %v11170_v24, %v11281_v4  ;;  %v3387_v57 = vmax.f32 %v11173_v30, %v11286_v15  ;;  %v15361_v43 = vld [vmem:[#allocation29_spill] sm:$0xff]  ;;  %v15374_v21 = vld [vmem:[#allocation39_spill] sm:$0xff]  ;;  %v15384_v4 = vld [vmem:[#allocation82_spill] sm:$0xff] }
 0x4e6   : > { %v3388_v49 = vmax.f32 %v11175_v38, %v11289_v51  ;;  %v3389_v1 = vmax.f32 %v11177_v56, %v11292_v63  ;;  %v3390_v53 = vmax.f32 %v11179_v32, %v11297_v41  ;;  %v3391_v20 = vmax.f32 %v11181_v29, %v11300_v26  ;;  %v15362_v15 = vld [vmem:[#allocation165_spill] sm:$0xff]  ;;  %v15363_v38 = vld [vmem:[#allocation51_spill] sm:$0xff]  ;;  %v15375_v63 = vld [vmem:[#allocation48_spill] sm:$0xff] }
 0x4e7   : > { %v3392_v11 = vmax.f32 %v15361_v43, %v11303_v42  ;;  %v3393_v24 = vmax.f32 %v11185_v33, %v11308_v52  ;;  %v3394_v30 = vmax.f32 %v15362_v15, %v11311_v39  ;;  %v3395_v51 = vmax.f32 %v15363_v38, %v11314_v19  ;;  %v15364_v41 = vld [vmem:[#allocation205_spill] sm:$0xff]  ;;  %v15366_v52 = vld [vmem:[#allocation143_spill] sm:$0xff]  ;;  %v15367_v39 = vld [vmem:[#allocation32_spill] sm:$0xff] }
 0x4e8   : > { %v3396_v56 = vmax.f32 %v11192_v44, %v11319_v6  ;;  %v3397_v32 = vmax.f32 %v15364_v41, %v11322_v16  ;;  %v15365_v29 = vld [vmem:[#allocation93_spill] sm:$0xff]  ;;  %v3399_v10 = vmax.f32 %v11198_v12, %v11330_v58  ;;  %v15368_v6 = vld [vmem:[#allocation247_spill] sm:$0xff]  ;;  %v15369_v16 = vld [vmem:[#allocation170_spill] sm:$0xff]  ;;  %v3411_v37 = vmul.f32 %v3370_v23, %v15383_v28 }
 0x4e9   : > { %v3398_v26 = vmax.f32 %v15365_v29, %v11325_v45  ;;  %v15371_v58 = vld [vmem:[#allocation166_spill] sm:$0xff]  ;;  %v15376_v42 = vld [vmem:[#allocation207_spill] sm:$0xff]  ;;  %v15378_v43 = vld [vmem:[#allocation40_spill] sm:$0xff]  ;;  %v3412_v33 = vmul.f32 %v3371_v14, %v15384_v4 }
 0x4ea   : > { %v15372_v12 = vld [vmem:[#allocation50_spill] sm:$0xff]  ;;  %v15377_v19 = vmax.f32 %v15375_v63, %v15376_v42  ;;  %v15380_v38 = vld [vmem:[#allocation92_spill] sm:$0xff]  ;;  %v15392_v28 = vld [vmem:[#allocation149_spill] sm:$0xff]  ;;  %3458 = vst.msk [vmem:[#allocation2 + $0x38] sm:$0xff] %vm1992_vm5, %v3411_v37 }
 0x4eb   : > { %v15373_v17 = vmax.f32 %v15371_v58, %v15372_v12  ;;  %v15379_v15 = vld [vmem:[#allocation90_spill] sm:$0xff]  ;;  %v15382_v44 = vld [vmem:[#allocation80_spill] sm:$0xff]  ;;  %v15385_v58 = vld [vmem:[#allocation83_spill] sm:$0xff]  ;;  %v3420_v14 = vmul.f32 %v3379_v59, %v15392_v28  ;;  %3459 = vst.msk [vmem:[#allocation2 + $0x40] sm:$0xff] %vm1992_vm5, %v3412_v33 }
 0x4ec   : > { %v3408_v45 = vmul.f32 %v15377_v19, %v15374_v21  ;;  %v15381_v41 = vmax.f32 %v15379_v15, %v15380_v38  ;;  %v3410_v40 = vmul.f32 %v3369_v25, %v15382_v44  ;;  %v3413_v12 = vmul.f32 %v3372_v9, %v15385_v58  ;;  %v15387_v42 = vld [vmem:[#allocation20_spill] sm:$0xff]  ;;  %v15389_v15 = vld [vmem:[#allocation22_spill] sm:$0xff]  ;;  %v15391_v44 = vld [vmem:[#allocation145_spill] sm:$0xff] }
 0x4ed   : > { %v3407_v60 = vmul.f32 %v15373_v17, %v15370_v62  ;;  %v15386_v17 = vld [vmem:[#allocation19_spill] sm:$0xff]  ;;  %v3415_v19 = vmul.f32 %v3374_v46, %v15387_v42  ;;  %v15388_v62 = vld [vmem:[#allocation21_spill] sm:$0xff]  ;;  %v3417_v38 = vmul.f32 %v3376_v48, %v15389_v15  ;;  %v3419_v23 = vmul.f32 %v3378_v50, %v15391_v44  ;;  %v15393_v9 = vld [vmem:[#allocation150_spill] sm:$0xff]  ;;  %3467 = vst.msk [vmem:[#allocation2 + $0x80] sm:$0xff] %vm1992_vm5, %v3420_v14 }
 0x4ee   : > { %v3409_v29 = vmul.f32 %v15381_v41, %v15378_v43  ;;  %3455 = vst.msk [vmem:[#allocation2 + $0x20] sm:$0xff] %vm1992_vm5, %v3408_v45  ;;  %v3414_v63 = vmul.f32 %v3373_v13, %v15386_v17  ;;  %v3416_v21 = vmul.f32 %v3375_v3, %v15388_v62  ;;  %v15390_v41 = vld [vmem:[#allocation146_spill] sm:$0xff]  ;;  %3457 = vst.msk [vmem:[#allocation2 + $0x30] sm:$0xff] %vm1992_vm5, %v3410_v40  ;;  %v15394_v46 = vld [vmem:[#allocation43_spill] sm:$0xff] }
 0x4ef   : > { %3454 = vst.msk [vmem:[#allocation2 + $0x18] sm:$0xff] %vm1992_vm5, %v3407_v60  ;;  %v3418_v25 = vmul.f32 %v3377_v5, %v15390_v41  ;;  %v3421_v13 = vmul.f32 %v3380_v22, %v15393_v9  ;;  %v3422_v3 = vmul.f32 %v3381_v47, %v15394_v46  ;;  %v15395_v60 = vld [vmem:[#allocation85_spill] sm:$0xff]  ;;  %v15396_v45 = vld [vmem:[#allocation24_spill] sm:$0xff]  ;;  %3460 = vst.msk [vmem:[#allocation2 + $0x48] sm:$0xff] %vm1992_vm5, %v3413_v12 }
 0x4f0   : > { %3456 = vst.msk [vmem:[#allocation2 + $0x28] sm:$0xff] %vm1992_vm5, %v3409_v29  ;;  %v3423_v48 = vmul.f32 %v3382_v0, %v15395_v60  ;;  %v3424_v5 = vmul.f32 %v3383_v34, %v15396_v45  ;;  %3461 = vst.msk [vmem:[#allocation2 + $0x50] sm:$0xff] %vm1992_vm5, %v3414_v63  ;;  %v15397_v50 = vld [vmem:[#allocation42_spill] sm:$0xff]  ;;  %v15399_v40 = vld [vmem:[#allocation84_spill] sm:$0xff] }
 0x4f1   : > { %3462 = vst.msk [vmem:[#allocation2 + $0x58] sm:$0xff] %vm1992_vm5, %v3415_v19  ;;  %3463 = vst.msk [vmem:[#allocation2 + $0x60] sm:$0xff] %vm1992_vm5, %v3416_v21  ;;  %v3425_v59 = vmul.f32 %v3384_v18, %v15397_v50  ;;  %v15398_v37 = vld [vmem:[#allocation154_spill] sm:$0xff]  ;;  %v3427_v22 = vmul.f32 %v3386_v8, %v15399_v40  ;;  %v15400_v29 = vld [vmem:[#allocation153_spill] sm:$0xff] }
 0x4f2   : > { %v3426_v33 = vmul.f32 %v3385_v2, %v15398_v37  ;;  %v3428_v47 = vmul.f32 %v3387_v57, %v15400_v29  ;;  %3464 = vst.msk [vmem:[#allocation2 + $0x68] sm:$0xff] %vm1992_vm5, %v3417_v38  ;;  %3465 = vst.msk [vmem:[#allocation2 + $0x70] sm:$0xff] %vm1992_vm5, %v3418_v25  ;;  %v15401_v0 = vld [vmem:[#allocation45_spill] sm:$0xff]  ;;  %v15402_v12 = vld [vmem:[#allocation87_spill] sm:$0xff] }
 0x4f3   : > { %3466 = vst.msk [vmem:[#allocation2 + $0x78] sm:$0xff] %vm1992_vm5, %v3419_v23  ;;  %v3429_v34 = vmul.f32 %v3388_v49, %v15401_v0  ;;  %v3430_v21 = vmul.f32 %v3389_v1, %v15402_v12  ;;  %v15403_v63 = vld [vmem:[#allocation26_spill] sm:$0xff]  ;;  %3468 = vst.msk [vmem:[#allocation2 + $0x88] sm:$0xff] %vm1992_vm5, %v3421_v13  ;;  %v15405_v8 = vld [vmem:[#allocation44_spill] sm:$0xff] }
 0x4f4   : > { %v3431_v18 = vmul.f32 %v3390_v53, %v15403_v63  ;;  %v15404_v19 = vld [vmem:[#allocation158_spill] sm:$0xff]  ;;  %3469 = vst.msk [vmem:[#allocation2 + $0x90] sm:$0xff] %vm1992_vm5, %v3422_v3  ;;  %3470 = vst.msk [vmem:[#allocation2 + $0x98] sm:$0xff] %vm1992_vm5, %v3423_v48  ;;  %v3433_v57 = vmul.f32 %v3392_v11, %v15405_v8  ;;  %v15407_v23 = vld [vmem:[#allocation25_spill] sm:$0xff] }
 0x4f5   : > { %v3432_v2 = vmul.f32 %v3391_v20, %v15404_v19  ;;  %3471 = vst.msk [vmem:[#allocation2 + $0xa0] sm:$0xff] %vm1992_vm5, %v3424_v5  ;;  %v15406_v38 = vld [vmem:[#allocation86_spill] sm:$0xff]  ;;  %v3435_v49 = vmul.f32 %v3394_v30, %v15407_v23  ;;  %v15408_v14 = vld [vmem:[#allocation157_spill] sm:$0xff]  ;;  %3472 = vst.msk [vmem:[#allocation2 + $0xa8] sm:$0xff] %vm1992_vm5, %v3425_v59 }
 0x4f6   : > { %v3434_v25 = vmul.f32 %v3393_v24, %v15406_v38  ;;  %v3436_v1 = vmul.f32 %v3395_v51, %v15408_v14  ;;  %3473 = vst.msk [vmem:[#allocation2 + $0xb0] sm:$0xff] %vm1992_vm5, %v3426_v33  ;;  %3474 = vst.msk [vmem:[#allocation2 + $0xb8] sm:$0xff] %vm1992_vm5, %v3427_v22  ;;  %v15409_v53 = vld [vmem:[#allocation47_spill] sm:$0xff]  ;;  %v15410_v13 = vld [vmem:[#allocation89_spill] sm:$0xff] }
 0x4f7   : > { %3475 = vst.msk [vmem:[#allocation2 + $0xc0] sm:$0xff] %vm1992_vm5, %v3428_v47  ;;  %v3437_v20 = vmul.f32 %v3396_v56, %v15409_v53  ;;  %v3438_v3 = vmul.f32 %v3397_v32, %v15410_v13  ;;  %v15411_v48 = vld [vmem:[#allocation28_spill] sm:$0xff]  ;;  %v15412_v5 = vld [vmem:[#allocation162_spill] sm:$0xff]  ;;  %3476 = vst.msk [vmem:[#allocation2 + $0xc8] sm:$0xff] %vm1992_vm5, %v3429_v34  ;;  %v15414_v56 = vmax.f32 %v15366_v52, %v11333_v54 }
 0x4f8   : > { %v3439_v11 = vmul.f32 %v3398_v26, %v15411_v48  ;;  %v3440_v24 = vmul.f32 %v3399_v10, %v15412_v5  ;;  %3477 = vst.msk [vmem:[#allocation2 + $0xd0] sm:$0xff] %vm1992_vm5, %v3430_v21  ;;  %3478 = vst.msk [vmem:[#allocation2 + $0xd8] sm:$0xff] %vm1992_vm5, %v3431_v18  ;;  %v11481_v30 = vld [vmem:[#allocation2 + $0x18] sm:$0xff]  ;;  %v11483_v51 = vld [vmem:[#allocation2 + $0x20] sm:$0xff]  ;;  %v15416_v10 = vmax.f32 %v15367_v39, %v11336_v61 }
 0x4f9   : > { %3479 = vst.msk [vmem:[#allocation2 + $0xe0] sm:$0xff] %vm1992_vm5, %v3432_v2  ;;  %v15413_v59 = vld [vmem:[#allocation46_spill] sm:$0xff]  ;;  %v15415_v26 = vld [vmem:[#allocation88_spill] sm:$0xff]  ;;  %v15417_v22 = vld [vmem:[#allocation27_spill] sm:$0xff]  ;;  %v15418_v47 = vmax.f32 %v11204_v7, %v11341_v55  ;;  %v15420_v18 = vmax.f32 %v15368_v6, %v11344_v31  ;;  %v3597_v54 = vrot.slane %v11481_v30, 1  ;;  %v3599_v61 = vrot.slane %v11483_v51, 1 }
 0x4fa   : > { %v3441_v32 = vmul.f32 %v15414_v56, %v15413_v59  ;;  %v3442_v33 = vmul.f32 %v15416_v10, %v15415_v26  ;;  %v15419_v21 = vld [vmem:[#allocation161_spill] sm:$0xff]  ;;  %3480 = vst.msk [vmem:[#allocation2 + $0xe8] sm:$0xff] %vm1992_vm5, %v3433_v57  ;;  %3481 = vst.msk [vmem:[#allocation2 + $0xf0] sm:$0xff] %vm1992_vm5, %v3434_v25  ;;  %v15422_v55 = vmax.f32 %v15369_v16, %v11347_v35  ;;  %v15423_v39 = vld [vmem:[#allocation91_spill] sm:$0xff] }
 0x4fb   : > { %v3443_v34 = vmul.f32 %v15418_v47, %v15417_v22  ;;  %v3444_v2 = vmul.f32 %v15420_v18, %v15419_v21  ;;  %3482 = vst.msk [vmem:[#allocation2 + $0xf8] sm:$0xff] %vm1992_vm5, %v3435_v49  ;;  %3483 = vst.msk [vmem:[#allocation2 + $0x100] sm:$0xff] %vm1992_vm5, %v3436_v1  ;;  %v15421_v52 = vld [vmem:[#allocation49_spill] sm:$0xff]  ;;  %v15424_v31 = vmax.f32 %v11210_v27, %v11352_v36  ;;  %v11519_v57 = vld [vmem:[#allocation2 + $0x28] sm:$0xff] }
 0x4fc   : > { %v3445_v7 = vmul.f32 %v15422_v55, %v15421_v52  ;;  %3484 = vst.msk [vmem:[#allocation2 + $0x108] sm:$0xff] %vm1992_vm5, %v3437_v20  ;;  %3485 = vst.msk [vmem:[#allocation2 + $0x110] sm:$0xff] %vm1992_vm5, %v3438_v3  ;;  %v11521_v25 = vld [vmem:[#allocation2 + $0x30] sm:$0xff]  ;;  %v3600_v36 = vsel %vm433_vm0, %v3597_v54, %v3599_v61  ;;  %v15426_v27 = vld [vmem:[#allocation23_spill] sm:$0xff]  ;;  %v3601_v49 = vrot.slane %v11519_v57, 1 }
 0x4fd   : > { %v3446_v6 = vmul.f32 %v15424_v31, %v15423_v39  ;;  %3486 = vst.msk [vmem:[#allocation2 + $0x118] sm:$0xff] %vm1992_vm5, %v3439_v11  ;;  %3487 = vst.msk [vmem:[#allocation2 + $0x120] sm:$0xff] %vm1992_vm5, %v3440_v24  ;;  %v15427_v35 = vrot.slane %v15426_v27, 1  ;;  %v3603_v1 = vrot.slane %v11521_v25, 1  ;;  %3681 = vrot.lane.b32.xlu1 %v3600_v36, %s7520_s26  ;;  %v11537_v20 = vld [vmem:[#allocation2 + $0x38] sm:$0xff]  ;;  %v11539_v3 = vld [vmem:[#allocation2 + $0x40] sm:$0xff] }
 0x4fe   : > { %15425 = vst [vmem:[#allocation147_spill] sm:$0xff] %v11519_v57  ;;  %3488 = vst.msk [vmem:[#allocation2 + $0x128] sm:$0xff] %vm1992_vm5, %v3441_v32  ;;  %v3602_v24 = vsel %vm433_vm0, %v3599_v61, %v3601_v49  ;;  %v3605_v56 = vrot.slane %v11537_v20, 1  ;;  %v3607_v32 = vrot.slane %v11539_v3, 1  ;;  %v11547_v10 = vld [vmem:[#allocation2 + $0x48] sm:$0xff]  ;;  %v11559_v61 = vld [vmem:[#allocation2 + $0x60] sm:$0xff] }
 0x4ff   : > { %3489 = vst.msk [vmem:[#allocation2 + $0x130] sm:$0xff] %vm1992_vm5, %v3442_v33  ;;  %3490 = vst.msk [vmem:[#allocation2 + $0x138] sm:$0xff] %vm1992_vm5, %v3443_v34  ;;  %v3598_v16 = vsel %vm433_vm0, %v15427_v35, %v3597_v54  ;;  %v3604_v11 = vsel %vm433_vm0, %v3601_v49, %v3603_v1  ;;  %v11549_v33 = vld [vmem:[#allocation2 + $0x50] sm:$0xff]  ;;  %v3609_v18 = vrot.slane %v11547_v10, 1  ;;  %v11557_v54 = vld [vmem:[#allocation2 + $0x58] sm:$0xff]  ;;  %v3818_v46 = vrot.slane %v11547_v10, 2 }
 0x500   : > { %3491 = vst.msk [vmem:[#allocation2 + $0x140] sm:$0xff] %vm1992_vm5, %v3444_v2  ;;  %3492 = vst.msk [vmem:[#allocation2 + $0x148] sm:$0xff] %vm1992_vm5, %v3445_v7  ;;  %3679 = vrot.lane.b32.xlu0 %v3598_v16, %s7520_s26  ;;  %v3608_v47 = vsel %vm433_vm0, %v3605_v56, %v3607_v32  ;;  %v3606_v34 = vsel %vm433_vm0, %v3603_v1, %v3605_v56  ;;  %v3611_v2 = vrot.slane %v11549_v33, 1  ;;  %v3613_v31 = vrot.slane %v11557_v54, 1  ;;  %v11567_v36 = vld [vmem:[#allocation2 + $0x68] sm:$0xff]  ;;  %v11569_v27 = vld [vmem:[#allocation2 + $0x70] sm:$0xff] }
 0x501   : > { %3493 = vst.msk [vmem:[#allocation2 + $0x150] sm:$0xff] %vm1992_vm5, %v3446_v6  ;;  %3685 = vrot.lane.b32.xlu1 %v3604_v11, %s7520_s26  ;;  %v3610_v7 = vsel %vm433_vm0, %v3607_v32, %v3609_v18  ;;  %v3615_v6 = vrot.slane %v11559_v61, 1  ;;  %v3617_v49 = vrot.slane %v11567_v36, 1  ;;  %v3619_v1 = vrot.slane %v11569_v27, 1  ;;  %v11577_v11 = vld [vmem:[#allocation2 + $0x78] sm:$0xff]  ;;  %v7252_v50 = vld [vmem:[#allocation2] sm:$0xff] }
 0x502   : > { %v3612_v55 = vsel %vm433_vm0, %v3609_v18, %v3611_v2  ;;  %v3614_v16 = vsel %vm433_vm0, %v3611_v2, %v3613_v31  ;;  %v11587_v18 = vld [vmem:[#allocation2 + $0x88] sm:$0xff]  ;;  %v11589_v2 = vld [vmem:[#allocation2 + $0x90] sm:$0xff]  ;;  %v3822_v28 = vrot.slane %v11557_v54, 2  ;;  %v3826_v41 = vrot.slane %v11567_v36, 2 }
 0x503   : > { %v3616_v35 = vsel %vm433_vm0, %v3613_v31, %v3615_v6  ;;  %v3620_v56 = vsel %vm433_vm0, %v3617_v49, %v3619_v1  ;;  %v3618_v32 = vsel %vm433_vm0, %v3615_v6, %v3617_v49  ;;  %v3625_v31 = vrot.slane %v11587_v18, 1  ;;  %v11718_v45 = vld [vmem:[#allocation2 + $0x10] sm:$0xff] }
 0x504   : > { %3683 = vrot.lane.b32.xlu0 %v3602_v24, %s7520_s26  ;;  %v11579_v24 = vld [vmem:[#allocation2 + $0x80] sm:$0xff]  ;;  %v3627_v6 = vrot.slane %v11589_v2, 1  ;;  %v3804_v60 = vrot.slane %v11718_v45, 2  ;;  %v3830_v62 = vrot.slane %v11577_v11, 2  ;;  %v3834_v17 = vrot.slane %v11587_v18, 2 }
 0x505   : > { %3689 = vrot.lane.b32.xlu1 %v3608_v47, %s7520_s26  ;;  %v3621_v47 = vrot.slane %v11577_v11, 1 }
 0x506   : > { %v3628_v49 = vsel %vm433_vm0, %v3625_v31, %v3627_v6 }
 0x508   : > { %3687 = vrot.lane.b32.xlu0 %v3606_v34, %s7520_s26  ;;  %v3623_v34 = vrot.slane %v11579_v24, 1 }
 0x509   : > { %3693 = vrot.lane.b32.xlu1 %v3612_v55, %s7520_s26 }
 0x50a   : > { %v3624_v55 = vsel %vm433_vm0, %v3621_v47, %v3623_v34 }
 0x50c   : > { %3691 = vrot.lane.b32.xlu0 %v3610_v7, %s7520_s26  ;;  %v3622_v7 = vsel %vm433_vm0, %v3619_v1, %v3621_v47  ;;  %v11607_v47 = vld [vmem:[#allocation2 + $0xa8] sm:$0xff] }
 0x50d   : > { %3697 = vrot.lane.b32.xlu1 %v3616_v35, %s7520_s26  ;;  %v11597_v35 = vld [vmem:[#allocation2 + $0x98] sm:$0xff]  ;;  %v3633_v52 = vrot.slane %v11607_v47, 1 }
 0x50e   : > { %v3838_v18 = vrot.slane %v11597_v35, 2 }
 0x510   : > { %3695 = vrot.lane.b32.xlu0 %v3614_v16, %s7520_s26  ;;  %v11599_v16 = vld [vmem:[#allocation2 + $0xa0] sm:$0xff] }
 0x511   : > { %3701 = vrot.lane.b32.xlu1 %v3620_v56, %s7520_s26  ;;  %v3626_v56 = vsel %vm433_vm0, %v3623_v34, %v3625_v31  ;;  %v3631_v1 = vrot.slane %v11599_v16, 1  ;;  %v11617_v31 = vld [vmem:[#allocation2 + $0xb8] sm:$0xff] }
 0x512   : > { %v3637_v22 = vrot.slane %v11617_v31, 1 }
 0x513   : > { %v3634_v21 = vsel %vm433_vm0, %v3631_v1, %v3633_v52 }
 0x514   : > { %3699 = vrot.lane.b32.xlu0 %v3618_v32, %s7520_s26  ;;  %v3629_v32 = vrot.slane %v11597_v35, 1  ;;  %v3842_v35 = vrot.slane %v11607_v47, 2  ;;  %v3846_v47 = vrot.slane %v11617_v31, 2 }
 0x515   : > { %3705 = vrot.lane.b32.xlu1 %v3624_v55, %s7520_s26  ;;  %v11609_v55 = vld [vmem:[#allocation2 + $0xb0] sm:$0xff] }
 0x516   : > { %v3630_v39 = vsel %vm433_vm0, %v3627_v6, %v3629_v32  ;;  %v3635_v34 = vrot.slane %v11609_v55, 1 }
 0x518   : > { %3703 = vrot.lane.b32.xlu0 %v3622_v7, %s7520_s26  ;;  %v3632_v7 = vsel %vm433_vm0, %v3629_v32, %v3631_v1  ;;  %v11627_v32 = vld [vmem:[#allocation2 + $0xc8] sm:$0xff]  ;;  %v3638_v26 = vsel %vm433_vm0, %v3635_v34, %v3637_v22  ;;  %v11637_v1 = vld [vmem:[#allocation2 + $0xd8] sm:$0xff] }
 0x519   : > { %3709 = vrot.lane.b32.xlu1 %v3628_v49, %s7520_s26  ;;  %v11619_v49 = vld [vmem:[#allocation2 + $0xc0] sm:$0xff]  ;;  %v3641_v59 = vrot.slane %v11627_v32, 1  ;;  %v3645_v48 = vrot.slane %v11637_v1, 1  ;;  %v3850_v31 = vrot.slane %v11627_v32, 2  ;;  %v3854_v32 = vrot.slane %v11637_v1, 2 }
 0x51a   : > { %v3639_v6 = vrot.slane %v11619_v49, 1 }
 0x51c   : > { %3707 = vrot.lane.b32.xlu0 %v3626_v56, %s7520_s26  ;;  %v3636_v56 = vsel %vm433_vm0, %v3633_v52, %v3635_v34  ;;  %v3642_v5 = vsel %vm433_vm0, %v3639_v6, %v3641_v59  ;;  %v11647_v34 = vld [vmem:[#allocation2 + $0xe8] sm:$0xff] }
 0x51d   : > { %3713 = vrot.lane.b32.xlu1 %v3632_v7, %s7520_s26  ;;  %v11629_v7 = vld [vmem:[#allocation2 + $0xd0] sm:$0xff]  ;;  %v3649_v53 = vrot.slane %v11647_v34, 1  ;;  %v3858_v1 = vrot.slane %v11647_v34, 2 }
 0x51e   : > { %v3643_v52 = vrot.slane %v11629_v7, 1 }
 0x520   : > { %3711 = vrot.lane.b32.xlu0 %v3630_v39, %s7520_s26  ;;  %v3640_v39 = vsel %vm433_vm0, %v3637_v22, %v3639_v6  ;;  %v3646_v13 = vsel %vm433_vm0, %v3643_v52, %v3645_v48  ;;  %v11657_v6 = vld [vmem:[#allocation2 + $0xf8] sm:$0xff] }
 0x521   : > { %3717 = vrot.lane.b32.xlu1 %v3636_v56, %s7520_s26  ;;  %v11639_v56 = vld [vmem:[#allocation2 + $0xe0] sm:$0xff]  ;;  %v3653_v23 = vrot.slane %v11657_v6, 1  ;;  %v3862_v34 = vrot.slane %v11657_v6, 2 }
 0x522   : > { %v3647_v22 = vrot.slane %v11639_v56, 1 }
 0x524   : > { %3715 = vrot.lane.b32.xlu0 %v3634_v21, %s7520_s26  ;;  %v3644_v21 = vsel %vm433_vm0, %v3641_v59, %v3643_v52  ;;  %v3650_v14 = vsel %vm433_vm0, %v3647_v22, %v3649_v53  ;;  %v11667_v52 = vld [vmem:[#allocation2 + $0x108] sm:$0xff] }
 0x525   : > { %3721 = vrot.lane.b32.xlu1 %v3640_v39, %s7520_s26  ;;  %v11649_v39 = vld [vmem:[#allocation2 + $0xf0] sm:$0xff]  ;;  %v3657_v8 = vrot.slane %v11667_v52, 1  ;;  %v3866_v6 = vrot.slane %v11667_v52, 2 }
 0x526   : > { %v3651_v59 = vrot.slane %v11649_v39, 1 }
 0x528   : > { %3719 = vrot.lane.b32.xlu0 %v3638_v26, %s7520_s26  ;;  %v3648_v26 = vsel %vm433_vm0, %v3645_v48, %v3647_v22  ;;  %v3654_v38 = vsel %vm433_vm0, %v3651_v59, %v3653_v23  ;;  %v11677_v22 = vld [vmem:[#allocation2 + $0x118] sm:$0xff] }
 0x529   : > { %3725 = vrot.lane.b32.xlu1 %v3644_v21, %s7520_s26  ;;  %v11659_v21 = vld [vmem:[#allocation2 + $0x100] sm:$0xff]  ;;  %v3661_v63 = vrot.slane %v11677_v22, 1  ;;  %v3870_v52 = vrot.slane %v11677_v22, 2 }
 0x52a   : > { %v3655_v48 = vrot.slane %v11659_v21, 1 }
 0x52c   : > { %3723 = vrot.lane.b32.xlu0 %v3642_v5, %s7520_s26  ;;  %v3652_v5 = vsel %vm433_vm0, %v3649_v53, %v3651_v59  ;;  %v3658_v19 = vsel %vm433_vm0, %v3655_v48, %v3657_v8  ;;  %v11687_v59 = vld [vmem:[#allocation2 + $0x128] sm:$0xff] }
 0x52d   : > { %3729 = vrot.lane.b32.xlu1 %v3648_v26, %s7520_s26  ;;  %v11669_v26 = vld [vmem:[#allocation2 + $0x110] sm:$0xff]  ;;  %v3665_v0 = vrot.slane %v11687_v59, 1  ;;  %v3874_v22 = vrot.slane %v11687_v59, 2 }
 0x52e   : > { %v3659_v53 = vrot.slane %v11669_v26, 1 }
 0x530   : > { %3727 = vrot.lane.b32.xlu0 %v3646_v13, %s7520_s26  ;;  %v3656_v13 = vsel %vm433_vm0, %v3653_v23, %v3655_v48  ;;  %v3662_v12 = vsel %vm433_vm0, %v3659_v53, %v3661_v63  ;;  %v11697_v48 = vld [vmem:[#allocation2 + $0x138] sm:$0xff] }
 0x531   : > { %3733 = vrot.lane.b32.xlu1 %v3652_v5, %s7520_s26  ;;  %v11679_v5 = vld [vmem:[#allocation2 + $0x120] sm:$0xff]  ;;  %v3669_v40 = vrot.slane %v11697_v48, 1  ;;  %v3878_v59 = vrot.slane %v11697_v48, 2 }
 0x532   : > { %v3663_v23 = vrot.slane %v11679_v5, 1 }
 0x534   : > { %3731 = vrot.lane.b32.xlu0 %v3650_v14, %s7520_s26  ;;  %v3660_v14 = vsel %vm433_vm0, %v3657_v8, %v3659_v53  ;;  %v3666_v29 = vsel %vm433_vm0, %v3663_v23, %v3665_v0  ;;  %v11707_v53 = vld [vmem:[#allocation2 + $0x148] sm:$0xff] }
 0x535   : > { %3737 = vrot.lane.b32.xlu1 %v3656_v13, %s7520_s26  ;;  %v11689_v13 = vld [vmem:[#allocation2 + $0x130] sm:$0xff]  ;;  %v3673_v37 = vrot.slane %v11707_v53, 1  ;;  %v12000_v48 = vrot.slane %v11707_v53, 2 }
 0x536   : > { %v3667_v8 = vrot.slane %v11689_v13, 1 }
 0x537   : > { %15463 = vst [vmem:[#allocation98_spill] sm:$0xff] %v12000_v48 }
 0x538   : > { %3735 = vrot.lane.b32.xlu0 %v3654_v38, %s7520_s26  ;;  %v3664_v38 = vsel %vm433_vm0, %v3661_v63, %v3663_v23 }
 0x539   : > { %3741 = vrot.lane.b32.xlu1 %v3660_v14, %s7520_s26  ;;  %v11699_v14 = vld [vmem:[#allocation2 + $0x140] sm:$0xff] }
 0x53a   : > { %v3671_v63 = vrot.slane %v11699_v14, 1 }
 0x53c   : > { %3739 = vrot.lane.b32.xlu0 %v3658_v19, %s7520_s26  ;;  %v3668_v19 = vsel %vm433_vm0, %v3665_v0, %v3667_v8  ;;  %v11714_v0 = vld [vmem:[#allocation2 + $0x8] sm:$0xff] }
 0x53d   : > { %3745 = vrot.lane.b32.xlu1 %v3664_v38, %s7520_s26  ;;  %v3670_v38 = vsel %vm433_vm0, %v3667_v8, %v3669_v40  ;;  %v3802_v23 = vrot.slane %v11714_v0, 2 }
 0x540   : > { %3743 = vrot.lane.b32.xlu0 %v3662_v12, %s7520_s26  ;;  %v3672_v12 = vsel %vm433_vm0, %v3669_v40, %v3671_v63  ;;  %v3805_v40 = vsel %vm643_vm1, %v3802_v23, %v3804_v60 }
 0x541   : > { %3749 = vrot.lane.b32.xlu1 %v3668_v19, %s7520_s26  ;;  %v3801_v19 = vrot.slane %v7252_v50, 2 }
 0x543   : > { %v3803_v8 = vsel %vm643_vm1, %v3801_v19, %v3802_v23 }
 0x544   : > { %3747 = vrot.lane.b32.xlu0 %v3666_v29, %s7520_s26  ;;  %v3674_v29 = vsel %vm433_vm0, %v3671_v63, %v3673_v37  ;;  %vm5270_vm0 = vcmask 326656  }
 0x545   : > { %3753 = vrot.lane.b32.xlu1 %v3672_v12, %s7520_s26  ;;  %v3806_v12 = vrot.slane %v11481_v30, 2 }
 0x547   : > { %v11733_v63 = vsel %vm643_vm1, %v3804_v60, %v3806_v12  ;;  %v3816_v60 = vrot.slane %v11539_v3, 2 }
 0x548   : > { %3751 = vrot.lane.b32.xlu0 %v3670_v38, %s7520_s26  ;;  %v3808_v38 = vrot.slane %v11483_v51, 2 }
 0x549   : > { %3757 = vrot.lane.b32.xlu1 %v3673_v37, %s7520_s26  ;;  %v3810_v37 = vrot.slane %v11519_v57, 2  ;;  %v11769_v9 = vsel %vm643_vm1, %v3816_v60, %v3818_v46 }
 0x54a   : > { %v11730_v50 = vsel %vm643_vm1, %v3806_v12, %v3808_v38 }
 0x54b   : > { %v11745_v19 = vsel %vm643_vm1, %v3808_v38, %v3810_v37  ;;  %v3820_v38 = vrot.slane %v11549_v33, 2 }
 0x54c   : > { %3755 = vrot.lane.b32.xlu0 %v3674_v29, %s7520_s26  ;;  %v3812_v29 = vrot.slane %v11521_v25, 2 }
 0x54d   : > { %3886 = vrot.lane.b32.xlu1 %v3805_v40, %s7522_s12  ;;  %v3814_v40 = vrot.slane %v11537_v20, 2  ;;  %v11781_v44 = vsel %vm643_vm1, %v3820_v38, %v3822_v28 }
 0x54e   : > { %v11742_v23 = vsel %vm643_vm1, %v3810_v37, %v3812_v29  ;;  %v11766_v37 = vsel %vm643_vm1, %v3818_v46, %v3820_v38  ;;  %v3828_v46 = vrot.slane %v11569_v27, 2 }
 0x54f   : > { %v11757_v12 = vsel %vm643_vm1, %v3812_v29, %v3814_v40  ;;  %v3824_v29 = vrot.slane %v11559_v61, 2 }
 0x550   : > { %3884 = vrot.lane.b32.xlu0 %v3803_v8, %s7522_s12  ;;  %v11754_v8 = vsel %vm643_vm1, %v3814_v40, %v3816_v60  ;;  %v11790_v60 = vsel %vm643_vm1, %v3826_v41, %v3828_v46  ;;  %v11805_v42 = vsel %vm643_vm1, %v3828_v46, %v3830_v62 }
 0x551   : > { %3890 = vrot.lane.b32.xlu1 %v11730_v50, %s7522_s12  ;;  %v11778_v40 = vsel %vm643_vm1, %v3822_v28, %v3824_v29  ;;  %v11793_v15 = vsel %vm643_vm1, %v3824_v29, %v3826_v41  ;;  %v3832_v28 = vrot.slane %v11579_v24, 2  ;;  %v3836_v41 = vrot.slane %v11589_v2, 2  ;;  %v11813_v24 = vpop.permute.xlu1 %3677  ;;  %v11815_v29 = vpop.permute.xlu0 %3675 }
 0x552   : > { %15428 = vst [vmem:[#allocation31_spill] sm:$0xff] %v11815_v29  ;;  %v3840_v2 = vrot.slane %v11599_v16, 2  ;;  %v3844_v16 = vrot.slane %v11609_v55, 2  ;;  %v3848_v55 = vrot.slane %v11619_v49, 2  ;;  %v3852_v49 = vrot.slane %v11629_v7, 2 }
 0x553   : > { %v11802_v38 = vsel %vm643_vm1, %v3830_v62, %v3832_v28  ;;  %v11818_v58 = vsel %vm643_vm1, %v3834_v17, %v3836_v41  ;;  %v11821_v62 = vsel %vm643_vm1, %v3832_v28, %v3834_v17  ;;  %v11837_v17 = vsel %vm643_vm1, %v3836_v41, %v3838_v18 }
 0x554   : > { %3888 = vrot.lane.b32.xlu0 %v11733_v63, %s7522_s12  ;;  %15429 = vst [vmem:[#allocation169_spill] sm:$0xff] %v11818_v58  ;;  %v11834_v43 = vsel %vm643_vm1, %v3838_v18, %v3840_v2  ;;  %v11853_v41 = vsel %vm643_vm1, %v3840_v2, %v3842_v35  ;;  %v11869_v2 = vsel %vm643_vm1, %v3844_v16, %v3846_v47  ;;  %v3856_v7 = vrot.slane %v11639_v56, 2 }
 0x555   : > { %3894 = vrot.lane.b32.xlu1 %v11742_v23, %s7522_s12  ;;  %15430 = vst [vmem:[#allocation53_spill] sm:$0xff] %v11834_v43  ;;  %15433 = vst [vmem:[#allocation144_spill] sm:$0xff] %v11853_v41  ;;  %v3860_v56 = vrot.slane %v11649_v39, 2  ;;  %v3864_v39 = vrot.slane %v11659_v21, 2  ;;  %v3868_v21 = vrot.slane %v11669_v26, 2  ;;  %v3872_v26 = vrot.slane %v11679_v5, 2 }
 0x556   : > { %15435 = vst [vmem:[#allocation41_spill] sm:$0xff] %v11869_v2  ;;  %v3876_v5 = vrot.slane %v11689_v13, 2  ;;  %v3880_v13 = vrot.slane %v11699_v14, 2 }
 0x558   : > { %3892 = vrot.lane.b32.xlu0 %v11745_v19, %s7522_s12 }
 0x559   : > { %3898 = vrot.lane.b32.xlu1 %v11754_v8, %s7522_s12 }
 0x55c   : > { %3896 = vrot.lane.b32.xlu0 %v11757_v12, %s7522_s12 }
 0x55d   : > { %3902 = vrot.lane.b32.xlu1 %v11766_v37, %s7522_s12 }
 0x560   : > { %3900 = vrot.lane.b32.xlu0 %v11769_v9, %s7522_s12 }
 0x561   : > { %3906 = vrot.lane.b32.xlu1 %v11778_v40, %s7522_s12 }
 0x564   : > { %3904 = vrot.lane.b32.xlu0 %v11781_v44, %s7522_s12 }
 0x565   : > { %3910 = vrot.lane.b32.xlu1 %v11790_v60, %s7522_s12 }
 0x568   : > { %3908 = vrot.lane.b32.xlu0 %v11793_v15, %s7522_s12 }
 0x569   : > { %3914 = vrot.lane.b32.xlu1 %v11802_v38, %s7522_s12 }
 0x56c   : > { %3912 = vrot.lane.b32.xlu0 %v11805_v42, %s7522_s12 }
 0x56d   : > { %3918 = vrot.lane.b32.xlu1 %v11818_v58, %s7522_s12  ;;  %v11850_v58 = vsel %vm643_vm1, %v3842_v35, %v3844_v16  ;;  %v11885_v16 = vsel %vm643_vm1, %v3848_v55, %v3850_v31 }
 0x56e   : > { %15432 = vst [vmem:[#allocation95_spill] sm:$0xff] %v11850_v58  ;;  %15437 = vst [vmem:[#allocation52_spill] sm:$0xff] %v11885_v16 }
 0x56f   : > { %v11829_v46 = vpop.permute.xlu1 %3681 }
 0x570   : > { %3916 = vrot.lane.b32.xlu0 %v11821_v62, %s7522_s12 }
 0x571   : > { %3922 = vrot.lane.b32.xlu1 %v11834_v43, %s7522_s12 }
 0x572   : > { %v11831_v4 = vpop.permute.xlu0 %3679 }
 0x573   : > { %v11845_v28 = vpop.permute.xlu1 %3685 }
 0x574   : > { %3920 = vrot.lane.b32.xlu0 %v11837_v17, %s7522_s12  ;;  %15431 = vst [vmem:[#allocation206_spill] sm:$0xff] %v11845_v28  ;;  %v11866_v28 = vsel %vm643_vm1, %v3846_v47, %v3848_v55  ;;  %v11901_v55 = vsel %vm643_vm1, %v3852_v49, %v3854_v32 }
 0x575   : > { %3926 = vrot.lane.b32.xlu1 %v11850_v58, %s7522_s12  ;;  %15434 = vst [vmem:[#allocation34_spill] sm:$0xff] %v11866_v28  ;;  %15439 = vst [vmem:[#allocation94_spill] sm:$0xff] %v11901_v55 }
 0x576   : > { %v11847_v29 = vpop.permute.xlu0 %3683 }
 0x577   : > { %v11861_v18 = vpop.permute.xlu1 %3689 }
 0x578   : > { %3924 = vrot.lane.b32.xlu0 %v11853_v41, %s7522_s12  ;;  %v11882_v41 = vsel %vm643_vm1, %v3850_v31, %v3852_v49  ;;  %v11917_v49 = vsel %vm643_vm1, %v3856_v7, %v3858_v1 }
 0x579   : > { %3930 = vrot.lane.b32.xlu1 %v11866_v28, %s7522_s12  ;;  %15436 = vst [vmem:[#allocation174_spill] sm:$0xff] %v11882_v41  ;;  %15442 = vst [vmem:[#allocation173_spill] sm:$0xff] %v11917_v49 }
 0x57a   : > { %v11863_v43 = vpop.permute.xlu0 %3687 }
 0x57b   : > { %v11877_v35 = vpop.permute.xlu1 %3693 }
 0x57c   : > { %3928 = vrot.lane.b32.xlu0 %v11869_v2, %s7522_s12  ;;  %v11898_v2 = vsel %vm643_vm1, %v3854_v32, %v3856_v7  ;;  %v11933_v7 = vsel %vm643_vm1, %v3860_v56, %v3862_v34 }
 0x57d   : > { %3934 = vrot.lane.b32.xlu1 %v11882_v41, %s7522_s12  ;;  %15438 = vst [vmem:[#allocation209_spill] sm:$0xff] %v11898_v2  ;;  %15446 = vst [vmem:[#allocation148_spill] sm:$0xff] %v11933_v7 }
 0x57e   : > { %v11879_v58 = vpop.permute.xlu0 %3691 }
 0x57f   : > { %v11893_v47 = vpop.permute.xlu1 %3697 }
 0x580   : > { %3932 = vrot.lane.b32.xlu0 %v11885_v16, %s7522_s12  ;;  %v11914_v16 = vsel %vm643_vm1, %v3858_v1, %v3860_v56  ;;  %v11949_v56 = vsel %vm643_vm1, %v3864_v39, %v3866_v6 }
 0x581   : > { %3938 = vrot.lane.b32.xlu1 %v11898_v2, %s7522_s12  ;;  %15441 = vst [vmem:[#allocation33_spill] sm:$0xff] %v11914_v16  ;;  %15450 = vst [vmem:[#allocation211_spill] sm:$0xff] %v11949_v56 }
 0x582   : > { %v11895_v28 = vpop.permute.xlu0 %3695 }
 0x583   : > { %v11909_v31 = vpop.permute.xlu1 %3701 }
 0x584   : > { %3936 = vrot.lane.b32.xlu0 %v11901_v55, %s7522_s12  ;;  %15440 = vst [vmem:[#allocation151_spill] sm:$0xff] %v11909_v31  ;;  %v11930_v55 = vsel %vm643_vm1, %v3862_v34, %v3864_v39  ;;  %v11965_v39 = vsel %vm643_vm1, %v3868_v21, %v3870_v52 }
 0x585   : > { %3942 = vrot.lane.b32.xlu1 %v11914_v16, %s7522_s12  ;;  %15445 = vst [vmem:[#allocation97_spill] sm:$0xff] %v11930_v55  ;;  %15454 = vst [vmem:[#allocation177_spill] sm:$0xff] %v11965_v39 }
 0x586   : > { %v11911_v41 = vpop.permute.xlu0 %3699 }
 0x587   : > { %v11925_v32 = vpop.permute.xlu1 %3705 }
 0x588   : > { %3940 = vrot.lane.b32.xlu0 %v11917_v49, %s7522_s12  ;;  %15443 = vst [vmem:[#allocation55_spill] sm:$0xff] %v11925_v32  ;;  %v11946_v49 = vsel %vm643_vm1, %v3866_v6, %v3868_v21  ;;  %v11981_v21 = vsel %vm643_vm1, %v3872_v26, %v3874_v22 }
 0x589   : > { %3946 = vrot.lane.b32.xlu1 %v11930_v55, %s7522_s12  ;;  %15449 = vst [vmem:[#allocation54_spill] sm:$0xff] %v11946_v49  ;;  %15458 = vst [vmem:[#allocation152_spill] sm:$0xff] %v11981_v21 }
 0x58a   : > { %v11927_v2 = vpop.permute.xlu0 %3703 }
 0x58b   : > { %15444 = vst [vmem:[#allocation208_spill] sm:$0xff] %v11927_v2  ;;  %v11941_v1 = vpop.permute.xlu1 %3709 }
 0x58c   : > { %3944 = vrot.lane.b32.xlu0 %v11933_v7, %s7522_s12  ;;  %15447 = vst [vmem:[#allocation36_spill] sm:$0xff] %v11941_v1  ;;  %v11962_v7 = vsel %vm643_vm1, %v3870_v52, %v3872_v26  ;;  %v11997_v26 = vsel %vm643_vm1, %v3876_v5, %v3878_v59 }
 0x58d   : > { %3950 = vrot.lane.b32.xlu1 %v11946_v49, %s7522_s12  ;;  %15453 = vst [vmem:[#allocation35_spill] sm:$0xff] %v11962_v7  ;;  %15462 = vst [vmem:[#allocation213_spill] sm:$0xff] %v11997_v26 }
 0x58e   : > { %v11943_v16 = vpop.permute.xlu0 %3707 }
 0x58f   : > { %15448 = vst [vmem:[#allocation178_spill] sm:$0xff] %v11943_v16  ;;  %v11957_v34 = vpop.permute.xlu1 %3713  ;;  %v12365_v16 = vld [vmem:[#allocation2 + $0x88] sm:$0xff] }
 0x590   : > { %3948 = vrot.lane.b32.xlu0 %v11949_v56, %s7522_s12  ;;  %15451 = vst [vmem:[#allocation96_spill] sm:$0xff] %v11957_v34  ;;  %v11978_v56 = vsel %vm643_vm1, %v3874_v22, %v3876_v5  ;;  %v4697_v34 = vrot.slane %v11549_v33, 5 }
 0x591   : > { %3954 = vrot.lane.b32.xlu1 %v11962_v7, %s7522_s12  ;;  %15457 = vst [vmem:[#allocation99_spill] sm:$0xff] %v11978_v56 }
 0x592   : > { %v11959_v55 = vpop.permute.xlu0 %3711 }
 0x593   : > { %15452 = vst [vmem:[#allocation155_spill] sm:$0xff] %v11959_v55  ;;  %v11973_v6 = vpop.permute.xlu1 %3717  ;;  %v4362_v55 = vrot.slane %v11549_v33, 4 }
 0x594   : > { %3952 = vrot.lane.b32.xlu0 %v11965_v39, %s7522_s12  ;;  %15455 = vst [vmem:[#allocation57_spill] sm:$0xff] %v11973_v6  ;;  %v11994_v39 = vsel %vm643_vm1, %v3878_v59, %v3880_v13  ;;  %v4695_v6 = vrot.slane %v11547_v10, 5 }
 0x595   : > { %3958 = vrot.lane.b32.xlu1 %v11978_v56, %s7522_s12  ;;  %15461 = vst [vmem:[#allocation56_spill] sm:$0xff] %v11994_v39  ;;  %v12012_v56 = vsel %vm643_vm1, %v3880_v13, %v12000_v48 }
 0x596   : > { %v11975_v49 = vpop.permute.xlu0 %3715  ;;  %15466 = vst [vmem:[#allocation181_spill] sm:$0xff] %v12012_v56 }
 0x597   : > { %15456 = vst [vmem:[#allocation210_spill] sm:$0xff] %v11975_v49  ;;  %v11989_v52 = vpop.permute.xlu1 %3721  ;;  %v4902_v49 = vrot.slane %v11547_v10, 6 }
 0x598   : > { %3956 = vrot.lane.b32.xlu0 %v11981_v21, %s7522_s12  ;;  %15459 = vst [vmem:[#allocation120_spill] sm:$0xff] %v11989_v52  ;;  %v4900_v21 = vrot.slane %v11539_v3, 6 }
 0x599   : > { %3962 = vrot.lane.b32.xlu1 %v11994_v39, %s7522_s12 }
 0x59a   : > { %v11991_v7 = vpop.permute.xlu0 %3719 }
 0x59b   : > { %15460 = vst [vmem:[#allocation182_spill] sm:$0xff] %v11991_v7  ;;  %v12006_v14 = vpop.permute.xlu1 %3725 }
 0x59c   : > { %3960 = vrot.lane.b32.xlu0 %v11997_v26, %s7522_s12  ;;  %15464 = vst [vmem:[#allocation159_spill] sm:$0xff] %v12006_v14  ;;  %v4693_v14 = vrot.slane %v11539_v3, 5 }
 0x59d   : > { %3966 = vrot.lane.b32.xlu1 %v12000_v48, %s7522_s12 }
 0x59e   : > { %v12008_v22 = vpop.permute.xlu0 %3723 }
 0x59f   : > { %15465 = vst [vmem:[#allocation37_spill] sm:$0xff] %v12008_v22  ;;  %v12018_v53 = vpop.permute.xlu1 %3729 }
 0x5a0   : > { %3964 = vrot.lane.b32.xlu0 %v12012_v56, %s7522_s12  ;;  %15467 = vst [vmem:[#allocation59_spill] sm:$0xff] %v12018_v53  ;;  %v4147_v53 = vrot.slane %v11521_v25, 3 }
 0x5a1   : > { %4018 = vrot.lane.b32.xlu1 %v11730_v50, %s7524_s6 }
 0x5a2   : > { %v12020_v5 = vpop.permute.xlu0 %3727 }
 0x5a3   : > { %15468 = vst [vmem:[#allocation212_spill] sm:$0xff] %v12020_v5  ;;  %v12026_v59 = vpop.permute.xlu1 %3733 }
 0x5a4   : > { %4016 = vrot.lane.b32.xlu0 %v11733_v63, %s7524_s6  ;;  %15469 = vst [vmem:[#allocation101_spill] sm:$0xff] %v12026_v59  ;;  %v14711_v59 = vrot.slane %v11519_v57, 6 }
 0x5a5   : > { %4022 = vrot.lane.b32.xlu1 %v11742_v23, %s7524_s6 }
 0x5a6   : > { %v12028_v13 = vpop.permute.xlu0 %3731 }
 0x5a7   : > { %15470 = vst [vmem:[#allocation156_spill] sm:$0xff] %v12028_v13  ;;  %v12034_v48 = vpop.permute.xlu1 %3737  ;;  %v4896_v13 = vrot.slane %v11521_v25, 6 }
 0x5a8   : > { %4020 = vrot.lane.b32.xlu0 %v11745_v19, %s7524_s6  ;;  %15471 = vst [vmem:[#allocation122_spill] sm:$0xff] %v12034_v48 }
 0x5a9   : > { %4026 = vrot.lane.b32.xlu1 %v11754_v8, %s7524_s6  ;;  %v3541_v8 = vld [vmem:[#allocation9] sm:$0xff] }
 0x5aa   : > { %v12036_v56 = vpop.permute.xlu0 %3735 }
 0x5ab   : > { %15472 = vst [vmem:[#allocation184_spill] sm:$0xff] %v12036_v56  ;;  %v12042_v50 = vpop.permute.xlu1 %3741 }
 0x5ac   : > { %4024 = vrot.lane.b32.xlu0 %v11757_v12, %s7524_s6  ;;  %15473 = vst [vmem:[#allocation58_spill] sm:$0xff] %v12042_v50  ;;  %v3542_v12 = vld [vmem:[#allocation9 + $0x8] sm:$0xff] }
 0x5ad   : > { %4030 = vrot.lane.b32.xlu1 %v11766_v37, %s7524_s6  ;;  %v7030_v50 = vpack.c.bf16 %v3542_v12, %v3541_v8  ;;  %v4143_v37 = vrot.slane %v11483_v51, 3  ;;  %v15479_v8 = vmov 0.0|0.0  }
 0x5ae   : > { %v12044_v63 = vpop.permute.xlu0 %3739 }
 0x5af   : > { %15474 = vst [vmem:[#allocation215_spill] sm:$0xff] %v12044_v63  ;;  %v12050_v23 = vpop.permute.xlu1 %3745  ;;  %7046 = vmatpush3.bf16.msra.mxu1 %v7030_v50  ;;  %7031 = vmatpush3.bf16.msra.mxu0 %v7030_v50  ;;  %v15482_v50 = vrot.slane %v11519_v57, 3 }
 0x5b0   : > { %4028 = vrot.lane.b32.xlu0 %v11769_v9, %s7524_s6  ;;  %15475 = vst [vmem:[#allocation100_spill] sm:$0xff] %v12050_v23  ;;  %7042 = vmatprep.subr.bf16.mxu1 %v15479_v8  ;;  %v4350_v23 = vrot.slane %v11483_v51, 4  ;;  %v3545_v51 = vld [vmem:[#allocation9 + $0x20] sm:$0xff] }
 0x5b1   : > { %4034 = vrot.lane.b32.xlu1 %v11778_v40, %s7524_s6  ;;  %v3544_v40 = vld [vmem:[#allocation9 + $0x18] sm:$0xff]  ;;  %7032 = vmatprep.subr.bf16.mxu0 %v15479_v8 }
 0x5b2   : > { %v12052_v19 = vpop.permute.xlu0 %3743 }
 0x5b3   : > { %15476 = vst [vmem:[#allocation160_spill] sm:$0xff] %v12052_v19  ;;  %v12058_v63 = vpop.permute.xlu1 %3749  ;;  %v12083_v19 = vrot.slane %v11519_v57, 4 }
 0x5b4   : > { %4032 = vrot.lane.b32.xlu0 %v11781_v44, %s7524_s6  ;;  %15477 = vst [vmem:[#allocation121_spill] sm:$0xff] %v12058_v63  ;;  %v3543_v44 = vld [vmem:[#allocation9 + $0x10] sm:$0xff] }
 0x5b5   : > { %4038 = vrot.lane.b32.xlu1 %v11790_v60, %s7524_s6  ;;  %v7033_v12 = vpack.c.bf16 %v3544_v40, %v3543_v44  ;;  %v4146_v60 = vsel %vm985_vm2, %v4143_v37, %v15482_v50  ;;  %v14707_v44 = vrot.slane %v11481_v30, 4  ;;  %v3546_v40 = vld [vmem:[#allocation9 + $0x28] sm:$0xff] }
 0x5b6   : > { %v12060_v48 = vpop.permute.xlu0 %3747  ;;  %v7036_v50 = vpack.c.bf16 %v3546_v40, %v3545_v51  ;;  %v3547_v51 = vld [vmem:[#allocation9 + $0x30] sm:$0xff]  ;;  %v3548_v40 = vld [vmem:[#allocation9 + $0x38] sm:$0xff] }
 0x5b7   : > { %15478 = vst [vmem:[#allocation183_spill] sm:$0xff] %v12060_v48  ;;  %v12071_v63 = vpop.permute.xlu1 %3753  ;;  %v15483_v48 = vrot.slane %v11481_v30, 3  ;;  %7047 = vmatpush3.bf16.msra.mxu1 %v7033_v12  ;;  %7034 = vmatpush3.bf16.msra.mxu0 %v7033_v12  ;;  %v4351_v12 = vsel %vm1193_vm3, %v14707_v44, %v4350_v23  ;;  %v4689_v44 = vrot.slane %v11521_v25, 5 }
 0x5b8   : > { %4036 = vrot.lane.b32.xlu0 %v11793_v15, %s7524_s6  ;;  %15480 = vst [vmem:[#allocation61_spill] sm:$0xff] %v12071_v63  ;;  %7043 = vmatprep.subr.bf16.mxu1 %v15479_v8 }
 0x5b9   : > { %v4144_v15 = vsel %vm985_vm2, %v15483_v48, %v4143_v37  ;;  %4227 = vrot.lane.b32.xlu1 %v4146_v60, %s7529_s10  ;;  %7035 = vmatprep.subr.bf16.mxu0 %v15479_v8  ;;  %v4353_v37 = vsel %vm1193_vm3, %v4350_v23, %v12083_v19  ;;  %v4354_v60 = vrot.slane %v11521_v25, 4  ;;  %v4898_v25 = vrot.slane %v11537_v20, 6 }
 0x5ba   : > { %v12073_v9 = vpop.permute.xlu0 %3751 }
 0x5bb   : > { %15481 = vst [vmem:[#allocation214_spill] sm:$0xff] %v12073_v9  ;;  %v12090_v63 = vpop.permute.xlu1 %3757  ;;  %7048 = vmatpush3.bf16.msra.mxu1 %v7036_v50  ;;  %7037 = vmatpush3.bf16.msra.mxu0 %v7036_v50  ;;  %v4691_v50 = vrot.slane %v11537_v20, 5 }
 0x5bc   : > { %4225 = vrot.lane.b32.xlu0 %v4144_v15, %s7529_s10  ;;  %15484 = vst [vmem:[#allocation103_spill] sm:$0xff] %v12090_v63  ;;  %v4356_v15 = vrot.slane %v11537_v20, 4  ;;  %7044 = vmatprep.subr.bf16.mxu1 %v15479_v8  ;;  %v7039_v63 = vpack.c.bf16 %v3548_v40, %v3547_v51  ;;  %v15487_v51 = vmov 0.0  }
 0x5bd   : > { %4434 = vrot.lane.b32.xlu1 %v4353_v37, %s7531_s11  ;;  %7038 = vmatprep.subr.bf16.mxu0 %v15479_v8  ;;  %v4355_v37 = vsel %vm1193_vm3, %v12083_v19, %v4354_v60  ;;  %v3549_v8 = vld [vmem:[#allocation9 + $0x40] sm:$0xff] }
 0x5be   : > { %v12092_v48 = vpop.permute.xlu0 %3755  ;;  %v4357_v9 = vsel %vm1193_vm3, %v4354_v60, %v4356_v15  ;;  %v4692_v60 = vsel %vm1533_vm4, %v4689_v44, %v4691_v50 }
 0x5bf   : > { %15485 = vst [vmem:[#allocation236_spill] sm:$0xff] %v12092_v48  ;;  %v12105_v48 = vpop.permute.xlu1 %3886  ;;  %7049 = vmatpush3.bf16.msra.mxu1 %v7039_v63  ;;  %7040 = vmatpush3.bf16.msra.mxu0 %v7039_v63 }
 0x5c0   : > { %4432 = vrot.lane.b32.xlu0 %v4351_v12, %s7531_s11  ;;  %v14709_v12 = vrot.slane %v11519_v57, 5  ;;  %7045 = vmatprep.subr.mxu1 %v15487_v51 }
 0x5c1   : > { %4566 = vrot.lane.b32.xlu1 %v4357_v9, %s7532_s16  ;;  %6898 = vmatprep.subr.mxu0 %v15487_v51 }
 0x5c2   : > { %v12107_v23 = vpop.permute.xlu0 %3884  ;;  %v4690_v63 = vsel %vm1533_vm4, %v14709_v12, %v4689_v44  ;;  %v4897_v44 = vsel %vm1741_vm7, %v14711_v59, %v4896_v13  ;;  %v15488_v12 = vrot.slane %v11519_v57, 3  ;;  %v4358_v59 = vrot.slane %v11539_v3, 4 }
 0x5c3   : > { %15486 = vst [vmem:[#allocation124_spill] sm:$0xff] %v12107_v23  ;;  %v12119_v40 = vpop.permute.xlu1 %3890  ;;  %7050 = vmatpush3.msra.mxu1 %v3549_v8  ;;  %6899 = vmatpush3.msra.mxu0 %v3549_v8  ;;  %v4151_v23 = vrot.slane %v11539_v3, 3 }
 0x5c4   : > { %4564 = vrot.lane.b32.xlu0 %v4355_v37, %s7532_s16  ;;  %v4148_v26 = vsel %vm985_vm2, %v15488_v12, %v4147_v53 }
 0x5c5   : > { %4773 = vrot.lane.b32.xlu1 %v4692_v60, %s7533_s23 }
 0x5c6   : > { %v12121_v56 = vpop.permute.xlu0 %3888 }
 0x5c7   : > { %v12132_v39 = vpop.permute.xlu1 %3894 }
 0x5c8   : > { %4771 = vrot.lane.b32.xlu0 %v4690_v63, %s7533_s23  ;;  %v4899_v63 = vsel %vm1741_vm7, %v4896_v13, %v4898_v25  ;;  %v4149_v13 = vrot.slane %v11537_v20, 3 }
 0x5c9   : > { %4978 = vrot.lane.b32.xlu1 %v4897_v44, %s7534_s17  ;;  %v4359_v44 = vsel %vm1193_vm3, %v4356_v15, %v4358_v59 }
 0x5ca   : > { %v12134_v5 = vpop.permute.xlu0 %3892  ;;  %v4150_v7 = vsel %vm985_vm2, %v4147_v53, %v4149_v13 }
 0x5cb   : > { %v12145_v8 = vpop.permute.xlu1 %3898 }
 0x5cc   : > { %4229 = vrot.lane.b32.xlu0 %v4148_v26, %s7529_s10  ;;  %v4694_v26 = vsel %vm1533_vm4, %v4691_v50, %v4693_v14  ;;  %v4360_v50 = vrot.slane %v11547_v10, 4 }
 0x5cd   : > { %4436 = vrot.lane.b32.xlu1 %v4355_v37, %s7531_s11 }
 0x5ce   : > { %v12147_v60 = vpop.permute.xlu0 %3896 }
 0x5cf   : > { %v12154_v12 = vpop.permute.xlu1 %3902 }
 0x5d0   : > { %4980 = vrot.lane.b32.xlu0 %v4899_v63, %s7534_s17  ;;  %v4901_v63 = vsel %vm1741_vm7, %v4898_v25, %v4900_v21 }
 0x5d1   : > { %4775 = vrot.lane.b32.xlu1 %v4694_v26, %s7533_s23  ;;  %v4361_v26 = vsel %vm1193_vm3, %v4358_v59, %v4360_v50 }
 0x5d2   : > { %v12156_v22 = vpop.permute.xlu0 %3900 }
 0x5d3   : > { %v12164_v52 = vpop.permute.xlu1 %3906 }
 0x5d4   : > { %4568 = vrot.lane.b32.xlu0 %v4359_v44, %s7532_s16 }
 0x5d5   : > { %4982 = vrot.lane.b32.xlu1 %v4901_v63, %s7534_s17  ;;  %v4696_v63 = vsel %vm1533_vm4, %v4693_v14, %v4695_v6 }
 0x5d6   : > { %v12166_v37 = vpop.permute.xlu0 %3904 }
 0x5d7   : > { %v12173_v15 = vpop.permute.xlu1 %3910 }
 0x5d8   : > { %4231 = vrot.lane.b32.xlu0 %v4150_v7, %s7529_s10  ;;  %15489 = vst [vmem:[#allocation186_spill] sm:$0xff] %v12173_v15  ;;  %v4152_v7 = vsel %vm985_vm2, %v4149_v13, %v4151_v23 }
 0x5d9   : > { %4570 = vrot.lane.b32.xlu1 %v4361_v26, %s7532_s16 }
 0x5da   : > { %v12175_v20 = vpop.permute.xlu0 %3908 }
 0x5db   : > { %v12182_v53 = vpop.permute.xlu1 %3914 }
 0x5dc   : > { %4438 = vrot.lane.b32.xlu0 %v4357_v9, %s7531_s11  ;;  %15490 = vst [vmem:[#allocation60_spill] sm:$0xff] %v12182_v53  ;;  %v4903_v9 = vsel %vm1741_vm7, %v4900_v21, %v4902_v49  ;;  %v4153_v21 = vrot.slane %v11547_v10, 3  ;;  %v4376_v53 = vrot.slane %v12365_v16, 4 }
 0x5dd   : > { %4233 = vrot.lane.b32.xlu1 %v4152_v7, %s7529_s10  ;;  %v4698_v7 = vsel %vm1533_vm4, %v4695_v6, %v4697_v34  ;;  %v4364_v6 = vrot.slane %v11557_v54, 4 }
 0x5de   : > { %v12184_v25 = vpop.permute.xlu0 %3912 }
 0x5df   : > { %15491 = vst [vmem:[#allocation217_spill] sm:$0xff] %v12184_v25  ;;  %v12191_v3 = vpop.permute.xlu1 %3918  ;;  %v4918_v25 = vrot.slane %v12365_v16, 6 }
 0x5e0   : > { %4777 = vrot.lane.b32.xlu0 %v4696_v63, %s7533_s23  ;;  %15492 = vst [vmem:[#allocation102_spill] sm:$0xff] %v12191_v3  ;;  %v4363_v63 = vsel %vm1193_vm3, %v4360_v50, %v4362_v55  ;;  %v4904_v3 = vrot.slane %v11549_v33, 6 }
 0x5e1   : > { %4440 = vrot.lane.b32.xlu1 %v4359_v44, %s7531_s11 }
 0x5e2   : > { %v12193_v59 = vpop.permute.xlu0 %3916 }
 0x5e3   : > { %15493 = vst [vmem:[#allocation163_spill] sm:$0xff] %v12193_v59  ;;  %v12200_v14 = vpop.permute.xlu1 %3922 }
 0x5e4   : > { %4984 = vrot.lane.b32.xlu0 %v4903_v9, %s7534_s17  ;;  %15494 = vst [vmem:[#allocation123_spill] sm:$0xff] %v12200_v14  ;;  %v4905_v9 = vsel %vm1741_vm7, %v4902_v49, %v4904_v3  ;;  %v4154_v14 = vsel %vm985_vm2, %v4151_v23, %v4153_v21 }
 0x5e5   : > { %4779 = vrot.lane.b32.xlu1 %v4698_v7, %s7533_s23  ;;  %v4365_v7 = vsel %vm1193_vm3, %v4362_v55, %v4364_v6 }
 0x5e6   : > { %v12202_v13 = vpop.permute.xlu0 %3920 }
 0x5e7   : > { %15495 = vst [vmem:[#allocation185_spill] sm:$0xff] %v12202_v13  ;;  %v12210_v1 = vpop.permute.xlu1 %3926 }
 0x5e8   : > { %4572 = vrot.lane.b32.xlu0 %v4363_v63, %s7532_s16  ;;  %15496 = vst [vmem:[#allocation63_spill] sm:$0xff] %v12210_v1  ;;  %v4155_v1 = vrot.slane %v11549_v33, 3 }
 0x5e9   : > { %4986 = vrot.lane.b32.xlu1 %v4905_v9, %s7534_s17 }
 0x5ea   : > { %v12212_v44 = vpop.permute.xlu0 %3924 }
 0x5eb   : > { %15497 = vst [vmem:[#allocation216_spill] sm:$0xff] %v12212_v44  ;;  %v12219_v50 = vpop.permute.xlu1 %3930  ;;  %v4699_v44 = vrot.slane %v11557_v54, 5 }
 0x5ec   : > { %4235 = vrot.lane.b32.xlu0 %v4154_v14, %s7529_s10  ;;  %15498 = vst [vmem:[#allocation105_spill] sm:$0xff] %v12219_v50  ;;  %v4156_v14 = vsel %vm985_vm2, %v4153_v21, %v4155_v1  ;;  %v4906_v50 = vrot.slane %v11557_v54, 6 }
 0x5ed   : > { %4574 = vrot.lane.b32.xlu1 %v4365_v7, %s7532_s16  ;;  %v4700_v9 = vsel %vm1533_vm4, %v4697_v34, %v4699_v44 }
 0x5ee   : > { %v12221_v10 = vpop.permute.xlu0 %3928 }
 0x5ef   : > { %15499 = vst [vmem:[#allocation237_spill] sm:$0xff] %v12221_v10  ;;  %v12228_v49 = vpop.permute.xlu1 %3934 }
 0x5f0   : > { %4442 = vrot.lane.b32.xlu0 %v4361_v26, %s7531_s11  ;;  %15500 = vst [vmem:[#allocation126_spill] sm:$0xff] %v12228_v49  ;;  %v4907_v26 = vsel %vm1741_vm7, %v4904_v3, %v4906_v50  ;;  %v4701_v49 = vrot.slane %v11559_v61, 5  ;;  %v4157_v3 = vrot.slane %v11557_v54, 3 }
 0x5f1   : > { %4237 = vrot.lane.b32.xlu1 %v4156_v14, %s7529_s10 }
 0x5f2   : > { %v12230_v23 = vpop.permute.xlu0 %3932  ;;  %v4702_v14 = vsel %vm1533_vm4, %v4699_v44, %v4701_v49  ;;  %v4368_v44 = vrot.slane %v11567_v36, 4 }
 0x5f3   : > { %15501 = vst [vmem:[#allocation188_spill] sm:$0xff] %v12230_v23  ;;  %v12237_v33 = vpop.permute.xlu1 %3938  ;;  %v4366_v23 = vrot.slane %v11559_v61, 4 }
 0x5f4   : > { %4781 = vrot.lane.b32.xlu0 %v4700_v9, %s7533_s23  ;;  %15502 = vst [vmem:[#allocation62_spill] sm:$0xff] %v12237_v33  ;;  %v4908_v33 = vrot.slane %v11559_v61, 6 }
 0x5f5   : > { %4444 = vrot.lane.b32.xlu1 %v4363_v63, %s7531_s11  ;;  %v4367_v9 = vsel %vm1193_vm3, %v4364_v6, %v4366_v23 }
 0x5f6   : > { %v12239_v55 = vpop.permute.xlu0 %3936 }
 0x5f7   : > { %15503 = vst [vmem:[#allocation219_spill] sm:$0xff] %v12239_v55  ;;  %v12246_v34 = vpop.permute.xlu1 %3942 }
 0x5f8   : > { %4988 = vrot.lane.b32.xlu0 %v4907_v26, %s7534_s17  ;;  %15504 = vst [vmem:[#allocation104_spill] sm:$0xff] %v12246_v34  ;;  %v4909_v26 = vsel %vm1741_vm7, %v4906_v50, %v4908_v33  ;;  %v4158_v34 = vsel %vm985_vm2, %v4155_v1, %v4157_v3 }
 0x5f9   : > { %4783 = vrot.lane.b32.xlu1 %v4702_v14, %s7533_s23  ;;  %v4369_v14 = vsel %vm1193_vm3, %v4366_v23, %v4368_v44 }
 0x5fa   : > { %v12248_v21 = vpop.permute.xlu0 %3940 }
 0x5fb   : > { %15505 = vst [vmem:[#allocation164_spill] sm:$0xff] %v12248_v21  ;;  %v12256_v55 = vpop.permute.xlu1 %3946 }
 0x5fc   : > { %4576 = vrot.lane.b32.xlu0 %v4367_v9, %s7532_s16  ;;  %15506 = vst [vmem:[#allocation125_spill] sm:$0xff] %v12256_v55  ;;  %v4159_v55 = vrot.slane %v11559_v61, 3 }
 0x5fd   : > { %4990 = vrot.lane.b32.xlu1 %v4909_v26, %s7534_s17 }
 0x5fe   : > { %v12258_v63 = vpop.permute.xlu0 %3944 }
 0x5ff   : > { %15507 = vst [vmem:[#allocation187_spill] sm:$0xff] %v12258_v63  ;;  %v12265_v6 = vpop.permute.xlu1 %3950  ;;  %v4703_v63 = vrot.slane %v11567_v36, 5 }
 0x600   : > { %4239 = vrot.lane.b32.xlu0 %v4158_v34, %s7529_s10  ;;  %15508 = vst [vmem:[#allocation65_spill] sm:$0xff] %v12265_v6  ;;  %v4160_v34 = vsel %vm985_vm2, %v4157_v3, %v4159_v55  ;;  %v4910_v6 = vrot.slane %v11567_v36, 6 }
 0x601   : > { %4578 = vrot.lane.b32.xlu1 %v4369_v14, %s7532_s16  ;;  %v4704_v26 = vsel %vm1533_vm4, %v4701_v49, %v4703_v63 }
 0x602   : > { %v12267_v54 = vpop.permute.xlu0 %3948 }
 0x603   : > { %15509 = vst [vmem:[#allocation218_spill] sm:$0xff] %v12267_v54  ;;  %v12274_v1 = vpop.permute.xlu1 %3954  ;;  %v12334_v54 = vld [vmem:[#allocation2 + $0x80] sm:$0xff] }
 0x604   : > { %4446 = vrot.lane.b32.xlu0 %v4365_v7, %s7531_s11  ;;  %15510 = vst [vmem:[#allocation107_spill] sm:$0xff] %v12274_v1  ;;  %v4911_v7 = vsel %vm1741_vm7, %v4908_v33, %v4910_v6  ;;  %v4705_v1 = vrot.slane %v11569_v27, 5  ;;  %v4161_v33 = vrot.slane %v11567_v36, 3  ;;  %15519 = vst [vmem:[#allocation189_spill] sm:$0xff] %v12334_v54  ;;  %v4374_v21 = vrot.slane %v12334_v54, 4 }
 0x605   : > { %4241 = vrot.lane.b32.xlu1 %v4160_v34, %s7529_s10 }
 0x606   : > { %v12276_v50 = vpop.permute.xlu0 %3952  ;;  %v4706_v34 = vsel %vm1533_vm4, %v4703_v63, %v4705_v1  ;;  %v4372_v63 = vrot.slane %v11577_v11, 4 }
 0x607   : > { %15511 = vst [vmem:[#allocation238_spill] sm:$0xff] %v12276_v50  ;;  %v12283_v61 = vpop.permute.xlu1 %3958  ;;  %v4370_v50 = vrot.slane %v11569_v27, 4 }
 0x608   : > { %4785 = vrot.lane.b32.xlu0 %v4704_v26, %s7533_s23  ;;  %15512 = vst [vmem:[#allocation128_spill] sm:$0xff] %v12283_v61  ;;  %v4912_v61 = vrot.slane %v11569_v27, 6 }
 0x609   : > { %4448 = vrot.lane.b32.xlu1 %v4367_v9, %s7531_s11  ;;  %v4371_v26 = vsel %vm1193_vm3, %v4368_v44, %v4370_v50 }
 0x60a   : > { %v12285_v23 = vpop.permute.xlu0 %3956 }
 0x60b   : > { %15513 = vst [vmem:[#allocation190_spill] sm:$0xff] %v12285_v23  ;;  %v12292_v49 = vpop.permute.xlu1 %3962 }
 0x60c   : > { %4992 = vrot.lane.b32.xlu0 %v4911_v7, %s7534_s17  ;;  %15514 = vst [vmem:[#allocation64_spill] sm:$0xff] %v12292_v49  ;;  %v4913_v7 = vsel %vm1741_vm7, %v4910_v6, %v4912_v61  ;;  %v4162_v49 = vsel %vm985_vm2, %v4159_v55, %v4161_v33 }
 0x60d   : > { %4787 = vrot.lane.b32.xlu1 %v4706_v34, %s7533_s23  ;;  %v4373_v34 = vsel %vm1193_vm3, %v4370_v50, %v4372_v63 }
 0x60e   : > { %v12294_v3 = vpop.permute.xlu0 %3960 }
 0x60f   : > { %15515 = vst [vmem:[#allocation221_spill] sm:$0xff] %v12294_v3  ;;  %v12302_v23 = vpop.permute.xlu1 %3966  ;;  %v4914_v3 = vrot.slane %v11577_v11, 6 }
 0x610   : > { %4580 = vrot.lane.b32.xlu0 %v4371_v26, %s7532_s16  ;;  %15516 = vst [vmem:[#allocation106_spill] sm:$0xff] %v12302_v23  ;;  %v4163_v23 = vrot.slane %v11569_v27, 3 }
 0x611   : > { %4994 = vrot.lane.b32.xlu1 %v4913_v7, %s7534_s17 }
 0x612   : > { %v12304_v9 = vpop.permute.xlu0 %3964 }
 0x613   : > { %15517 = vst [vmem:[#allocation167_spill] sm:$0xff] %v12304_v9  ;;  %v12311_v44 = vpop.permute.xlu1 %4018  ;;  %v4707_v9 = vrot.slane %v11577_v11, 5 }
 0x614   : > { %4243 = vrot.lane.b32.xlu0 %v4162_v49, %s7529_s10  ;;  %v4164_v49 = vsel %vm985_vm2, %v4161_v33, %v4163_v23  ;;  %v4375_v33 = vsel %vm1193_vm3, %v4372_v63, %v4374_v21  ;;  %v4916_v63 = vrot.slane %v12334_v54, 6 }
 0x615   : > { %4582 = vrot.lane.b32.xlu1 %v4373_v34, %s7532_s16  ;;  %v4708_v7 = vsel %vm1533_vm4, %v4705_v1, %v4707_v9 }
 0x616   : > { %v12313_v36 = vpop.permute.xlu0 %4016  ;;  %v4919_v2 = vsel %vm1741_vm7, %v4916_v63, %v4918_v25 }
 0x617   : > { %15518 = vst [vmem:[#allocation127_spill] sm:$0xff] %v12313_v36  ;;  %v12320_v55 = vpop.permute.xlu1 %4022 }
 0x618   : > { %4450 = vrot.lane.b32.xlu0 %v4369_v14, %s7531_s11  ;;  %v4915_v14 = vsel %vm1741_vm7, %v4912_v61, %v4914_v3  ;;  %v4709_v61 = vrot.slane %v12334_v54, 5 }
 0x619   : > { %4245 = vrot.lane.b32.xlu1 %v4164_v49, %s7529_s10  ;;  %v12344_v49 = vld [vmem:[#allocation2 + $0x78] sm:$0xff] }
 0x61a   : > { %v12322_v6 = vpop.permute.xlu0 %4020  ;;  %15520 = vst [vmem:[#allocation67_spill] sm:$0xff] %v12344_v49  ;;  %v4710_v36 = vsel %vm1533_vm4, %v4707_v9, %v4709_v61 }
 0x61b   : > { %v12329_v27 = vpop.permute.xlu1 %4026 }
 0x61c   : > { %4789 = vrot.lane.b32.xlu0 %v4708_v7, %s7533_s23  ;;  %v4165_v7 = vrot.slane %v12344_v49, 3  ;;  %v4711_v49 = vrot.slane %v12365_v16, 5 }
 0x61d   : > { %4452 = vrot.lane.b32.xlu1 %v4371_v26, %s7531_s11 }
 0x61e   : > { %v12331_v50 = vpop.permute.xlu0 %4024  ;;  %v4166_v10 = vsel %vm985_vm2, %v4163_v23, %v4165_v7 }
 0x61f   : > { %v12339_v1 = vpop.permute.xlu1 %4030 }
 0x620   : > { %4996 = vrot.lane.b32.xlu0 %v4915_v14, %s7534_s17 }
 0x621   : > { %4040 = vrot.lane.b32.xlu1 %v11805_v42, %s7524_s6  ;;  %v4917_v42 = vsel %vm1741_vm7, %v4914_v3, %v4916_v63 }
 0x622   : > { %v12341_v11 = vpop.permute.xlu0 %4028 }
 0x623   : > { %v12351_v26 = vpop.permute.xlu1 %4034 }
 0x624   : > { %4584 = vrot.lane.b32.xlu0 %v4375_v33, %s7532_s16 }
 0x625   : > { %4247 = vrot.lane.b32.xlu1 %v4166_v10, %s7529_s10  ;;  %v12371_v10 = vsel %vm1193_vm3, %v4374_v21, %v4376_v53 }
 0x626   : > { %v12353_v14 = vpop.permute.xlu0 %4032 }
 0x627   : > { %v12360_v13 = vpop.permute.xlu1 %4038 }
 0x628   : > { %4791 = vrot.lane.b32.xlu0 %v4710_v36, %s7533_s23  ;;  %v4167_v36 = vrot.slane %v12334_v54, 3 }
 0x629   : > { %4454 = vrot.lane.b32.xlu1 %v4373_v34, %s7531_s11 }
 0x62a   : > { %v12362_v59 = vpop.permute.xlu0 %4036  ;;  %v4168_v34 = vsel %vm985_vm2, %v4165_v7, %v4167_v36  ;;  %v5103_v7 = vsel %vm1992_vm5, %v11714_v0, %v11813_v24 }
 0x62b   : > { %v4228_v23 = vpop.permute.xlu1 %4227  ;;  %v5145_v31 = vsel %vm2078_vm10, %v5103_v7, %v12105_v48 }
 0x62c   : > { %4998 = vrot.lane.b32.xlu0 %v4917_v42, %s7534_s17  ;;  %v4712_v42 = vsel %vm1533_vm4, %v4709_v61, %v4711_v49  ;;  %v5187_v0 = vsel %vm2164_vm12, %v5145_v31, %v12311_v44 }
 0x62d   : > { %4042 = vrot.lane.b32.xlu1 %v11802_v38, %s7524_s6  ;;  %v12385_v38 = vld [vmem:[#allocation2 + $0x90] sm:$0xff] }
 0x62e   : > { %v4226_v9 = vpop.permute.xlu0 %4225  ;;  %v4378_v15 = vrot.slane %v12385_v38, 4  ;;  %v4713_v57 = vrot.slane %v12385_v38, 5  ;;  %v4920_v44 = vrot.slane %v12385_v38, 6 }
 0x62f   : > { %v4435_v3 = vpop.permute.xlu1 %4434  ;;  %v5229_v48 = vsel %vm2250_vm14, %v5187_v0, %v4226_v9 }
 0x630   : > { %4586 = vrot.lane.b32.xlu0 %v12371_v10, %s7532_s16  ;;  %v12397_v63 = vsel %vm1193_vm3, %v4376_v53, %v4378_v15  ;;  %v4714_v9 = vsel %vm1533_vm4, %v4711_v49, %v4713_v57 }
 0x631   : > { %4249 = vrot.lane.b32.xlu1 %v4168_v34, %s7529_s10 }
 0x632   : > { %v4433_v32 = vpop.permute.xlu0 %4432 }
 0x633   : > { %v4567_v21 = vpop.permute.xlu1 %4566 }
 0x634   : > { %4793 = vrot.lane.b32.xlu0 %v4712_v42, %s7533_s23  ;;  %v4169_v42 = vrot.slane %v12365_v16, 3 }
 0x635   : > { %4456 = vrot.lane.b32.xlu1 %v4375_v33, %s7531_s11 }
 0x636   : > { %v4565_v54 = vpop.permute.xlu0 %4564 }
 0x637   : > { %v4774_v61 = vpop.permute.xlu1 %4773 }
 0x638   : > { %5000 = vrot.lane.b32.xlu0 %v4919_v2, %s7534_s17  ;;  %v5104_v2 = vsel %vm1992_vm5, %v11718_v45, %v11831_v4  ;;  %v5272_v4 = vsel %vm5270_vm0, %v5229_v48, %v4433_v32  ;;  %v12437_v48 = vld [vmem:[#allocation2 + $0x98] sm:$0xff] }
 0x639   : > { %4044 = vrot.lane.b32.xlu1 %v11821_v62, %s7524_s6  ;;  %v5146_v24 = vsel %vm2078_vm10, %v5104_v2, %v12121_v56  ;;  %v5315_v33 = vsel %vm5313_vm9, %v5272_v4, %v4565_v54  ;;  %v4170_v56 = vsel %vm985_vm2, %v4167_v36, %v4169_v42  ;;  %v7258_v54 = vld [vmem:[#allocation2 + $0x18] sm:$0xff] }
 0x63a   : > { %v4772_v34 = vpop.permute.xlu0 %4771  ;;  %v5188_v53 = vsel %vm2164_vm12, %v5146_v24, %v12322_v6  ;;  %v5105_v2 = vsel %vm1992_vm5, %v7258_v54, %v11829_v46  ;;  %v4921_v24 = vsel %vm1741_vm7, %v4918_v25, %v4920_v44 }
 0x63b   : > { %v4979_v45 = vpop.permute.xlu1 %4978  ;;  %v5230_v62 = vsel %vm2250_vm14, %v5188_v53, %v4228_v23  ;;  %v5358_v6 = vsel %vm5356_vm11, %v5315_v33, %v4772_v34 }
 0x63c   : > { %4588 = vrot.lane.b32.xlu0 %v12397_v63, %s7532_s16  ;;  %v5273_v7 = vsel %vm5270_vm0, %v5230_v62, %v4435_v3  ;;  %v12428_v23 = vsel %vm5399_vm13, %v5358_v6, %v4979_v45  ;;  %v5147_v3 = vsel %vm2078_vm10, %v5105_v2, %v12119_v40  ;;  %v4922_v2 = vrot.slane %v12437_v48, 6 }
 0x63d   : > { %4251 = vrot.lane.b32.xlu1 %v4170_v56, %s7529_s10  ;;  %v5316_v32 = vsel %vm5313_vm9, %v5273_v7, %v4567_v21  ;;  %v4380_v21 = vrot.slane %v12437_v48, 4  ;;  %v5189_v53 = vsel %vm2164_vm12, %v5147_v3, %v12320_v55  ;;  %v5485_v46 = vrot.slane %v12428_v23, 5 }
 0x63e   : > { %v4230_v31 = vpop.permute.xlu0 %4229  ;;  %v5359_v36 = vsel %vm5356_vm11, %v5316_v32, %v4774_v61  ;;  %v4715_v56 = vrot.slane %v12437_v48, 5 }
 0x63f   : > { %v4437_v49 = vpop.permute.xlu1 %4436  ;;  %v5231_v40 = vsel %vm2250_vm14, %v5189_v53, %v4230_v31  ;;  %v12454_v33 = vsel %vm1193_vm3, %v4378_v15, %v4380_v21  ;;  %v15521_v31 = vld [vmem:[#allocation169_spill] sm:$0xff]  ;;  %v12480_v53 = vld [vmem:[#allocation2 + $0xa0] sm:$0xff] }
 0x640   : > { %4795 = vrot.lane.b32.xlu0 %v4714_v9, %s7533_s23  ;;  %v5274_v25 = vsel %vm5270_vm0, %v5231_v40, %v4437_v49  ;;  %v4716_v54 = vsel %vm1533_vm4, %v4713_v57, %v4715_v56  ;;  %v7260_v49 = vld [vmem:[#allocation2 + $0x20] sm:$0xff]  ;;  %v4923_v57 = vsel %vm1741_vm7, %v4920_v44, %v4922_v2  ;;  %v4382_v40 = vrot.slane %v12480_v53, 4 }
 0x641   : > { %4458 = vrot.lane.b32.xlu1 %v12371_v10, %s7531_s11  ;;  %v4171_v10 = vrot.slane %v12385_v38, 3 }
 0x642   : > { %v4981_v0 = vpop.permute.xlu0 %4980 }
 0x643   : > { %v5402_v34 = vsel %vm5399_vm13, %v5359_v36, %v4981_v0  ;;  %v4776_v61 = vpop.permute.xlu1 %4775  ;;  %v4172_v32 = vsel %vm985_vm2, %v4169_v42, %v4171_v10  ;;  %v5106_v0 = vsel %vm1992_vm5, %v7260_v49, %v11847_v29 }
 0x644   : > { %v5487_v4 = vrot.slane %v5402_v34, 5  ;;  %5002 = vrot.lane.b32.xlu0 %v4921_v24, %s7534_s17  ;;  %v5148_v42 = vsel %vm2078_vm10, %v5106_v0, %v12134_v5 }
 0x645   : > { %4046 = vrot.lane.b32.xlu1 %v15521_v31, %s7524_s6 }
 0x646   : > { %v4569_v45 = vpop.permute.xlu0 %4568  ;;  %v5488_v62 = vsel %vm1533_vm4, %v5485_v46, %v5487_v4 }
 0x647   : > { %v5317_v55 = vsel %vm5313_vm9, %v5274_v25, %v4569_v45  ;;  %6904 = vmatmul.mubr.msk.f32.vlgmr.msra.gmra.mrb[0].mxu1 %vm5567_vm15, %v5488_v62  ;;  %v4983_v9 = vpop.permute.xlu1 %4982  ;;  %v5190_v25 = vsel %vm2164_vm12, %v5148_v42, %v12331_v50  ;;  %v4173_v45 = vrot.slane %v12437_v48, 3  ;;  %v4717_v50 = vrot.slane %v12480_v53, 5  ;;  %v7262_v62 = vld [vmem:[#allocation2 + $0x28] sm:$0xff] }
 0x648   : > { %4590 = vrot.lane.b32.xlu0 %v12454_v33, %s7532_s16  ;;  %6906 = vmatprep.mubr.msk.f32.mxu1 %vm7528_vm6, %v15487_v51  ;;  %v5360_v7 = vsel %vm5356_vm11, %v5317_v55, %v4776_v61  ;;  %v12493_v61 = vsel %vm1193_vm3, %v4380_v21, %v4382_v40  ;;  %v15522_v55 = vld [vmem:[#allocation206_spill] sm:$0xff] }
 0x649   : > { %v5403_v15 = vsel %vm5399_vm13, %v5360_v7, %v4983_v9  ;;  %4253 = vrot.lane.b32.xlu1 %v4172_v32, %s7529_s10  ;;  %v5107_v31 = vsel %vm1992_vm5, %v7262_v62, %v15522_v55  ;;  %v4174_v32 = vsel %vm985_vm2, %v4171_v10, %v4173_v45  ;;  %v7264_v62 = vld [vmem:[#allocation2 + $0x30] sm:$0xff] }
 0x64a   : > { %v4232_v6 = vpop.permute.xlu0 %4231  ;;  %v5489_v36 = vrot.slane %v5403_v15, 5  ;;  %v5149_v15 = vsel %vm2078_vm10, %v5107_v31, %v12132_v39  ;;  %v5108_v55 = vsel %vm1992_vm5, %v7264_v62, %v11863_v43 }
 0x64b   : > { %v4571_v3 = vpop.permute.xlu1 %4570  ;;  %v5232_v29 = vsel %vm2250_vm14, %v5190_v25, %v4232_v6  ;;  %v4924_v6 = vrot.slane %v12480_v53, 6  ;;  %v5191_v49 = vsel %vm2164_vm12, %v5149_v15, %v12329_v27  ;;  %v12521_v27 = vld [vmem:[#allocation2 + $0xa8] sm:$0xff] }
 0x64c   : > { %4797 = vrot.lane.b32.xlu0 %v4716_v54, %s7533_s23  ;;  %v5490_v24 = vsel %vm1533_vm4, %v5487_v4, %v5489_v36  ;;  %v4718_v54 = vsel %vm1533_vm4, %v4715_v56, %v4717_v50 }
 0x64d   : > { %6907 = vmatmul.mubr.msk.f32.gmra.mrb[2].mxu1 %vm5567_vm15, %v5490_v24  ;;  %4460 = vrot.lane.b32.xlu1 %v12397_v63, %s7531_s11  ;;  %v4925_v56 = vsel %vm1741_vm7, %v4922_v2, %v4924_v6 }
 0x64e   : > { %v4439_v34 = vpop.permute.xlu0 %4438  ;;  %6909 = vmatprep.mubr.msk.f32.mxu1 %vm7528_vm6, %v15487_v51 }
 0x64f   : > { %v5275_v5 = vsel %vm5270_vm0, %v5232_v29, %v4439_v34  ;;  %v4234_v44 = vpop.permute.xlu1 %4233 }
 0x650   : > { %5004 = vrot.lane.b32.xlu0 %v4923_v57, %s7534_s17  ;;  %v5318_v63 = vsel %vm5313_vm9, %v5275_v5, %v4571_v3  ;;  %v5233_v3 = vsel %vm2250_vm14, %v5191_v49, %v4234_v44  ;;  %v4384_v57 = vrot.slane %v12521_v27, 4  ;;  %v4175_v44 = vrot.slane %v12480_v53, 3  ;;  %v12558_v49 = vld [vmem:[#allocation2 + $0xb0] sm:$0xff] }
 0x651   : > { %4048 = vrot.lane.b32.xlu1 %v11837_v17, %s7524_s6 }
 0x652   : > { %v4778_v4 = vpop.permute.xlu0 %4777  ;;  %v12532_v2 = vsel %vm1193_vm3, %v4382_v40, %v4384_v57 }
 0x653   : > { %v5361_v9 = vsel %vm5356_vm11, %v5318_v63, %v4778_v4  ;;  %v4441_v21 = vpop.permute.xlu1 %4440  ;;  %v4719_v4 = vrot.slane %v12521_v27, 5 }
 0x654   : > { %4592 = vrot.lane.b32.xlu0 %v12493_v61, %s7532_s16  ;;  %v5276_v34 = vsel %vm5270_vm0, %v5233_v3, %v4441_v21  ;;  %v5150_v21 = vsel %vm2078_vm10, %v5108_v55, %v12147_v60  ;;  %v7266_v3 = vld [vmem:[#allocation2 + $0x38] sm:$0xff] }
 0x655   : > { %4255 = vrot.lane.b32.xlu1 %v4174_v32, %s7529_s10  ;;  %v4720_v15 = vsel %vm1533_vm4, %v4717_v50, %v4719_v4  ;;  %v5192_v32 = vsel %vm2164_vm12, %v5150_v21, %v12341_v11 }
 0x656   : > { %v4985_v7 = vpop.permute.xlu0 %4984 }
 0x657   : > { %v5404_v17 = vsel %vm5399_vm13, %v5361_v9, %v4985_v7  ;;  %v4780_v24 = vpop.permute.xlu1 %4779  ;;  %v4176_v7 = vsel %vm985_vm2, %v4173_v45, %v4175_v44 }
 0x658   : > { %v5491_v0 = vrot.slane %v5404_v17, 5  ;;  %4799 = vrot.lane.b32.xlu0 %v4718_v54, %s7533_s23  ;;  %v4926_v17 = vrot.slane %v12521_v27, 6 }
 0x659   : > { %4462 = vrot.lane.b32.xlu1 %v12454_v33, %s7531_s11  ;;  %v15523_v33 = vld [vmem:[#allocation53_spill] sm:$0xff] }
 0x65a   : > { %v4573_v39 = vpop.permute.xlu0 %4572  ;;  %v5492_v42 = vsel %vm1533_vm4, %v5489_v36, %v5491_v0  ;;  %v4927_v50 = vsel %vm1741_vm7, %v4924_v6, %v4926_v17  ;;  %v4177_v6 = vrot.slane %v12521_v27, 3 }
 0x65b   : > { %v5319_v10 = vsel %vm5313_vm9, %v5276_v34, %v4573_v39  ;;  %6910 = vmatmul.mubr.msk.f32.gmra.mrb[4].mxu1 %vm5567_vm15, %v5492_v42  ;;  %v4987_v25 = vpop.permute.xlu1 %4986  ;;  %v5109_v34 = vsel %vm1992_vm5, %v7266_v3, %v11861_v18 }
 0x65c   : > { %5006 = vrot.lane.b32.xlu0 %v4925_v56, %s7534_s17  ;;  %6912 = vmatprep.mubr.msk.f32.mxu1 %vm7528_vm6, %v15487_v51  ;;  %v5362_v36 = vsel %vm5356_vm11, %v5319_v10, %v4780_v24  ;;  %v5151_v10 = vsel %vm2078_vm10, %v5109_v34, %v12145_v8 }
 0x65d   : > { %v5405_v5 = vsel %vm5399_vm13, %v5362_v36, %v4987_v25  ;;  %4050 = vrot.lane.b32.xlu1 %v15523_v33, %s7524_s6  ;;  %v4721_v25 = vrot.slane %v12558_v49, 5  ;;  %v5193_v36 = vsel %vm2164_vm12, %v5151_v10, %v12339_v1  ;;  %v4178_v1 = vsel %vm985_vm2, %v4175_v44, %v4177_v6  ;;  %v12597_v44 = vld [vmem:[#allocation2 + $0xb8] sm:$0xff] }
 0x65e   : > { %v4236_v29 = vpop.permute.xlu0 %4235  ;;  %v5493_v63 = vrot.slane %v5405_v5, 5  ;;  %v4723_v3 = vrot.slane %v12597_v44, 5 }
 0x65f   : > { %v4575_v31 = vpop.permute.xlu1 %4574  ;;  %v5234_v43 = vsel %vm2250_vm14, %v5192_v32, %v4236_v29  ;;  %v15524_v29 = vld [vmem:[#allocation144_spill] sm:$0xff] }
 0x660   : > { %4594 = vrot.lane.b32.xlu0 %v12532_v2, %s7532_s16  ;;  %v5494_v40 = vsel %vm1533_vm4, %v5491_v0, %v5493_v63  ;;  %v4386_v0 = vrot.slane %v12558_v49, 4  ;;  %v4724_v10 = vsel %vm1533_vm4, %v4721_v25, %v4723_v3 }
 0x661   : > { %6913 = vmatmul.mubr.msk.f32.gmra.mrb[6].mxu1 %vm5567_vm15, %v5494_v40  ;;  %4257 = vrot.lane.b32.xlu1 %v4176_v7, %s7529_s10 }
 0x662   : > { %v4443_v9 = vpop.permute.xlu0 %4442  ;;  %6915 = vmatprep.mubr.msk.f32.mxu1 %vm7528_vm6, %v15487_v51 }
 0x663   : > { %v5277_v60 = vsel %vm5270_vm0, %v5234_v43, %v4443_v9  ;;  %v4238_v54 = vpop.permute.xlu1 %4237  ;;  %v4928_v9 = vrot.slane %v12558_v49, 6  ;;  %v7268_v43 = vld [vmem:[#allocation2 + $0x40] sm:$0xff] }
 0x664   : > { %4801 = vrot.lane.b32.xlu0 %v4720_v15, %s7533_s23  ;;  %v5320_v11 = vsel %vm5313_vm9, %v5277_v60, %v4575_v31  ;;  %v5235_v5 = vsel %vm2250_vm14, %v5193_v36, %v4238_v54  ;;  %v4722_v31 = vsel %vm1533_vm4, %v4719_v4, %v4721_v25  ;;  %v4388_v4 = vrot.slane %v12597_v44, 4  ;;  %v7269_v36 = vld [vmem:[#allocation2 + $0x48] sm:$0xff] }
 0x665   : > { %4464 = vrot.lane.b32.xlu1 %v12493_v61, %s7531_s11  ;;  %v12573_v61 = vsel %vm1193_vm3, %v4384_v57, %v4386_v0  ;;  %v4929_v15 = vsel %vm1741_vm7, %v4926_v17, %v4928_v9  ;;  %v5110_v60 = vsel %vm1992_vm5, %v7268_v43, %v11879_v58  ;;  %v15525_v58 = vld [vmem:[#allocation95_spill] sm:$0xff] }
 0x666   : > { %v4782_v45 = vpop.permute.xlu0 %4781  ;;  %v5152_v17 = vsel %vm2078_vm10, %v5110_v60, %v12156_v22 }
 0x667   : > { %v5363_v24 = vsel %vm5356_vm11, %v5320_v11, %v4782_v45  ;;  %v4445_v39 = vpop.permute.xlu1 %4444  ;;  %v12610_v11 = vsel %vm1193_vm3, %v4386_v0, %v4388_v4  ;;  %v5194_v34 = vsel %vm2164_vm12, %v5152_v17, %v12353_v14  ;;  %v4930_v14 = vrot.slane %v12597_v44, 6  ;;  %v7271_v17 = vld [vmem:[#allocation2 + $0x50] sm:$0xff] }
 0x668   : > { %5008 = vrot.lane.b32.xlu0 %v4927_v50, %s7534_s17  ;;  %v5278_v8 = vsel %vm5270_vm0, %v5235_v5, %v4445_v39 }
 0x669   : > { %4052 = vrot.lane.b32.xlu1 %v15524_v29, %s7524_s6 }
 0x66a   : > { %v4989_v42 = vpop.permute.xlu0 %4988 }
 0x66b   : > { %v5406_v56 = vsel %vm5399_vm13, %v5363_v24, %v4989_v42  ;;  %v4784_v33 = vpop.permute.xlu1 %4783 }
 0x66c   : > { %v5495_v18 = vrot.slane %v5406_v56, 5  ;;  %4596 = vrot.lane.b32.xlu0 %v12573_v61, %s7532_s16 }
 0x66d   : > { %4259 = vrot.lane.b32.xlu1 %v4178_v1, %s7529_s10 }
 0x66e   : > { %v4577_v62 = vpop.permute.xlu0 %4576  ;;  %v5496_v57 = vsel %vm1533_vm4, %v5493_v63, %v5495_v18 }
 0x66f   : > { %v5321_v55 = vsel %vm5313_vm9, %v5278_v8, %v4577_v62  ;;  %6916 = vmatmul.mubr.msk.f32.gmra.mrb[8].mxu1 %vm5567_vm15, %v5496_v57  ;;  %v4991_v40 = vpop.permute.xlu1 %4990  ;;  %v12637_v62 = vld [vmem:[#allocation2 + $0xc0] sm:$0xff] }
 0x670   : > { %4803 = vrot.lane.b32.xlu0 %v4722_v31, %s7533_s23  ;;  %6918 = vmatprep.mubr.msk.f32.mxu1 %vm7528_vm6, %v15487_v51  ;;  %v5364_v63 = vsel %vm5356_vm11, %v5321_v55, %v4784_v33  ;;  %v4931_v33 = vsel %vm1741_vm7, %v4928_v9, %v4930_v14  ;;  %v4390_v57 = vrot.slane %v12637_v62, 4 }
 0x671   : > { %v5407_v7 = vsel %vm5399_vm13, %v5364_v63, %v4991_v40  ;;  %4466 = vrot.lane.b32.xlu1 %v12532_v2, %s7531_s11  ;;  %v4179_v2 = vrot.slane %v12558_v49, 3 }
 0x672   : > { %v4240_v21 = vpop.permute.xlu0 %4239  ;;  %v5497_v32 = vrot.slane %v5407_v7, 5  ;;  %v15526_v7 = vld [vmem:[#allocation41_spill] sm:$0xff] }
 0x673   : > { %v4579_v54 = vpop.permute.xlu1 %4578  ;;  %v5236_v22 = vsel %vm2250_vm14, %v5194_v34, %v4240_v21  ;;  %v4180_v42 = vsel %vm985_vm2, %v4177_v6, %v4179_v2  ;;  %v4181_v21 = vrot.slane %v12597_v44, 3  ;;  %v5112_v34 = vsel %vm1992_vm5, %v7271_v17, %v11895_v28 }
 0x674   : > { %5010 = vrot.lane.b32.xlu0 %v4929_v15, %s7534_s17  ;;  %v5498_v50 = vsel %vm1533_vm4, %v5495_v18, %v5497_v32  ;;  %v5111_v18 = vsel %vm1992_vm5, %v7269_v36, %v11877_v35  ;;  %v4183_v36 = vrot.slane %v12637_v62, 3 }
 0x675   : > { %6919 = vmatmul.mubr.msk.f32.gmra.mrb[10].mxu1 %vm5567_vm15, %v5498_v50  ;;  %4054 = vrot.lane.b32.xlu1 %v15525_v58, %s7524_s6  ;;  %v5153_v6 = vsel %vm2078_vm10, %v5111_v18, %v12154_v12 }
 0x676   : > { %v4447_v45 = vpop.permute.xlu0 %4446  ;;  %6921 = vmatprep.mubr.msk.f32.mxu1 %vm7528_vm6, %v15487_v51  ;;  %v5195_v55 = vsel %vm2164_vm12, %v5153_v6, %v12351_v26  ;;  %v4391_v26 = vsel %vm1193_vm3, %v4388_v4, %v4390_v57  ;;  %v4182_v4 = vsel %vm985_vm2, %v4179_v2, %v4181_v21  ;;  %v5154_v2 = vsel %vm2078_vm10, %v5112_v34, %v12166_v37 }
 0x677   : > { %v5279_v0 = vsel %vm5270_vm0, %v5236_v22, %v4447_v45  ;;  %v4242_v24 = vpop.permute.xlu1 %4241  ;;  %v4932_v45 = vrot.slane %v12637_v62, 6 }
 0x678   : > { %4598 = vrot.lane.b32.xlu0 %v12610_v11, %s7532_s16  ;;  %v5322_v56 = vsel %vm5313_vm9, %v5279_v0, %v4579_v54  ;;  %v5237_v35 = vsel %vm2250_vm14, %v5195_v55, %v4242_v24  ;;  %v12672_v24 = vld [vmem:[#allocation2 + $0xc8] sm:$0xff] }
 0x679   : > { %4261 = vrot.lane.b32.xlu1 %v4180_v42, %s7529_s10  ;;  %v5196_v42 = vsel %vm2164_vm12, %v5154_v2, %v12362_v59  ;;  %v4727_v59 = vrot.slane %v12672_v24, 5 }
 0x67a   : > { %v4786_v39 = vpop.permute.xlu0 %4785 }
 0x67b   : > { %v5365_v29 = vsel %vm5356_vm11, %v5322_v56, %v4786_v39  ;;  %v4449_v5 = vpop.permute.xlu1 %4448  ;;  %v4392_v39 = vrot.slane %v12672_v24, 4 }
 0x67c   : > { %4805 = vrot.lane.b32.xlu0 %v4724_v10, %s7533_s23  ;;  %v5280_v12 = vsel %vm5270_vm0, %v5237_v35, %v4449_v5 }
 0x67d   : > { %4468 = vrot.lane.b32.xlu1 %v12573_v61, %s7531_s11  ;;  %v4725_v61 = vrot.slane %v12637_v62, 5  ;;  %v12685_v56 = vsel %vm1193_vm3, %v4390_v57, %v4392_v39  ;;  %v4934_v57 = vrot.slane %v12672_v24, 6 }
 0x67e   : > { %v4993_v8 = vpop.permute.xlu0 %4992 }
 0x67f   : > { %v5408_v25 = vsel %vm5399_vm13, %v5365_v29, %v4993_v8  ;;  %v4788_v31 = vpop.permute.xlu1 %4787  ;;  %v4726_v54 = vsel %vm1533_vm4, %v4723_v3, %v4725_v61  ;;  %v4933_v3 = vsel %vm1741_vm7, %v4930_v14, %v4932_v45 }
 0x680   : > { %v5499_v1 = vrot.slane %v5408_v25, 5  ;;  %5012 = vrot.lane.b32.xlu0 %v4931_v33, %s7534_s17  ;;  %v4184_v25 = vsel %vm985_vm2, %v4181_v21, %v4183_v36  ;;  %v4728_v33 = vsel %vm1533_vm4, %v4725_v61, %v4727_v59 }
 0x681   : > { %4056 = vrot.lane.b32.xlu1 %v15526_v7, %s7524_s6 }
 0x682   : > { %v4581_v40 = vpop.permute.xlu0 %4580  ;;  %v5500_v9 = vsel %vm1533_vm4, %v5497_v32, %v5499_v1 }
 0x683   : > { %v5323_v63 = vsel %vm5313_vm9, %v5280_v12, %v4581_v40  ;;  %6922 = vmatmul.mubr.msk.f32.gmra.mrb[12].mxu1 %vm5567_vm15, %v5500_v9  ;;  %v4995_v15 = vpop.permute.xlu1 %4994  ;;  %v12704_v40 = vld [vmem:[#allocation2 + $0xd0] sm:$0xff] }
 0x684   : > { %4600 = vrot.lane.b32.xlu0 %v4391_v26, %s7532_s16  ;;  %6924 = vmatprep.mubr.msk.f32.mxu1 %vm7528_vm6, %v15487_v51  ;;  %v5366_v32 = vsel %vm5356_vm11, %v5323_v63, %v4788_v31  ;;  %v4935_v31 = vsel %vm1741_vm7, %v4932_v45, %v4934_v57  ;;  %v4394_v9 = vrot.slane %v12704_v40, 4  ;;  %v7274_v63 = vld [vmem:[#allocation2 + $0x58] sm:$0xff]  ;;  %v4729_v17 = vrot.slane %v12704_v40, 5 }
 0x685   : > { %v5409_v60 = vsel %vm5399_vm13, %v5366_v32, %v4995_v15  ;;  %4263 = vrot.lane.b32.xlu1 %v4182_v4, %s7529_s10  ;;  %v5113_v21 = vsel %vm1992_vm5, %v7274_v63, %v11893_v47 }
 0x686   : > { %v4244_v43 = vpop.permute.xlu0 %4243  ;;  %v5501_v50 = vrot.slane %v5409_v60, 5  ;;  %v5155_v61 = vsel %vm2078_vm10, %v5113_v21, %v12164_v52  ;;  %v12719_v60 = vsel %vm1193_vm3, %v4392_v39, %v4394_v9  ;;  %v15528_v52 = vrot.slane %v11481_v30, 3  ;;  %v7277_v21 = vld [vmem:[#allocation2 + $0x68] sm:$0xff] }
 0x687   : > { %v4583_v58 = vpop.permute.xlu1 %4582  ;;  %v5238_v28 = vsel %vm2250_vm14, %v5196_v42, %v4244_v43  ;;  %v5197_v7 = vsel %vm2164_vm12, %v5155_v61, %v12360_v13  ;;  %v4730_v42 = vsel %vm1533_vm4, %v4727_v59, %v4729_v17  ;;  %v15533_v61 = vld [vmem:[#allocation151_spill] sm:$0xff] }
 0x688   : > { %4807 = vrot.lane.b32.xlu0 %v4726_v54, %s7533_s23  ;;  %v5502_v0 = vsel %vm1533_vm4, %v5499_v1, %v5501_v50 }
 0x689   : > { %6925 = vmatmul.mubr.msk.f32.gmra.mrb[14].mxu1 %vm5567_vm15, %v5502_v0  ;;  %4470 = vrot.lane.b32.xlu1 %v12610_v11, %s7531_s11  ;;  %v15527_v11 = vld [vmem:[#allocation34_spill] sm:$0xff] }
 0x68a   : > { %v4451_v22 = vpop.permute.xlu0 %4450  ;;  %6927 = vmatprep.mubr.msk.f32.mxu1 %vm7528_vm6, %v15487_v51 }
 0x68b   : > { %v5281_v37 = vsel %vm5270_vm0, %v5238_v28, %v4451_v22  ;;  %v4246_v10 = vpop.permute.xlu1 %4245  ;;  %v15530_v22 = vld [vmem:[#allocation52_spill] sm:$0xff]  ;;  %v4936_v28 = vrot.slane %v12704_v40, 6 }
 0x68c   : > { %5014 = vrot.lane.b32.xlu0 %v4933_v3, %s7534_s17  ;;  %v5324_v18 = vsel %vm5313_vm9, %v5281_v37, %v4583_v58  ;;  %v5239_v43 = vsel %vm2250_vm14, %v5197_v7, %v4246_v10  ;;  %v15529_v58 = vrot.slane %v11481_v30, 4  ;;  %v7275_v37 = vld [vmem:[#allocation2 + $0x60] sm:$0xff]  ;;  %v5115_v7 = vsel %vm1992_vm5, %v7277_v21, %v15533_v61 }
 0x68d   : > { %4058 = vrot.lane.b32.xlu1 %v15527_v11, %s7524_s6  ;;  %v5114_v30 = vsel %vm1992_vm5, %v7275_v37, %v11911_v41 }
 0x68e   : > { %v4790_v14 = vpop.permute.xlu0 %4789  ;;  %v5156_v10 = vsel %vm2078_vm10, %v5114_v30, %v12175_v20 }
 0x68f   : > { %v5367_v29 = vsel %vm5356_vm11, %v5324_v18, %v4790_v14  ;;  %v4453_v5 = vpop.permute.xlu1 %4452  ;;  %v4937_v18 = vsel %vm1741_vm7, %v4934_v57, %v4936_v28 }
 0x690   : > { %4602 = vrot.lane.b32.xlu0 %v12685_v56, %s7532_s16  ;;  %v5282_v47 = vsel %vm5270_vm0, %v5239_v43, %v4453_v5 }
 0x691   : > { %4265 = vrot.lane.b32.xlu1 %v4184_v25, %s7529_s10  ;;  %v12762_v25 = vld [vmem:[#allocation2 + $0xd8] sm:$0xff] }
 0x692   : > { %v4997_v8 = vpop.permute.xlu0 %4996  ;;  %v4731_v63 = vrot.slane %v12762_v25, 5 }
 0x693   : > { %v5410_v6 = vsel %vm5399_vm13, %v5367_v29, %v4997_v8  ;;  %v4041_v1 = vpop.permute.xlu1 %4040 }
 0x694   : > { %v5503_v55 = vrot.slane %v5410_v6, 5  ;;  %4809 = vrot.lane.b32.xlu0 %v4728_v33, %s7533_s23  ;;  %v5198_v14 = vsel %vm2164_vm12, %v5156_v10, %v4041_v1  ;;  %v4396_v33 = vrot.slane %v12762_v25, 4 }
 0x695   : > { %4472 = vrot.lane.b32.xlu1 %v4391_v26, %s7531_s11 }
 0x696   : > { %v4585_v35 = vpop.permute.xlu0 %4584  ;;  %v5504_v12 = vsel %vm1533_vm4, %v5501_v50, %v5503_v55  ;;  %v4185_v50 = vrot.slane %v12672_v24, 3 }
 0x697   : > { %6928 = vmatmul.mubr.msk.f32.gmra.mrb[16].mxu1 %vm5567_vm15, %v5504_v12  ;;  %v4248_v15 = vpop.permute.xlu1 %4247  ;;  %v5325_v26 = vsel %vm5313_vm9, %v5282_v47, %v4585_v35 }
 0x698   : > { %5016 = vrot.lane.b32.xlu0 %v4935_v31, %s7534_s17  ;;  %6930 = vmatprep.mubr.msk.f32.mxu1 %vm7528_vm6, %v15487_v51  ;;  %v4186_v39 = vsel %vm985_vm2, %v4183_v36, %v4185_v50  ;;  %v5240_v11 = vsel %vm2250_vm14, %v5198_v14, %v4248_v15  ;;  %v12773_v31 = vsel %vm1193_vm3, %v4394_v9, %v4396_v33 }
 0x699   : > { %4604 = vrot.lane.b32.xlu1 %v12719_v60, %s7532_s16 }
 0x69a   : > { %v4792_v32 = vpop.permute.xlu0 %4791 }
 0x69b   : > { %v5368_v13 = vsel %vm5356_vm11, %v5325_v26, %v4792_v32  ;;  %v4455_v4 = vpop.permute.xlu1 %4454  ;;  %v4732_v26 = vsel %vm1533_vm4, %v4729_v17, %v4731_v63 }
 0x69c   : > { %4223 = vrot.lane.b32.xlu0 %v15528_v52, %s7529_s10  ;;  %v5283_v41 = vsel %vm5270_vm0, %v5240_v11, %v4455_v4  ;;  %v4187_v4 = vrot.slane %v12704_v40, 3 }
 0x69d   : > { %4430 = vrot.lane.b32.xlu1 %v15529_v58, %s7531_s11 }
 0x69e   : > { %v4999_v54 = vpop.permute.xlu0 %4998 }
 0x69f   : > { %v5411_v45 = vsel %vm5399_vm13, %v5368_v13, %v4999_v54  ;;  %v4043_v0 = vpop.permute.xlu1 %4042  ;;  %v4938_v13 = vrot.slane %v12762_v25, 6 }
 0x6a0   : > { %v5505_v34 = vrot.slane %v5411_v45, 5  ;;  %4060 = vrot.lane.b32.xlu0 %v15530_v22, %s7524_s6  ;;  %v15536_v45 = vld [vmem:[#allocation174_spill] sm:$0xff] }
 0x6a1   : > { %4267 = vrot.lane.b32.xlu1 %v4186_v39, %s7529_s10  ;;  %v4939_v17 = vsel %vm1741_vm7, %v4936_v28, %v4938_v13  ;;  %v12803_v39 = vld [vmem:[#allocation2 + $0xe0] sm:$0xff] }
 0x6a2   : > { %v4587_v2 = vpop.permute.xlu0 %4586  ;;  %v5506_v3 = vsel %vm1533_vm4, %v5503_v55, %v5505_v34  ;;  %v15531_v55 = vld [vmem:[#allocation147_spill] sm:$0xff] }
 0x6a3   : > { %6931 = vmatmul.mubr.msk.f32.gmra.mrb[18].mxu1 %vm5567_vm15, %v5506_v3  ;;  %v4250_v36 = vpop.permute.xlu1 %4249  ;;  %v5326_v20 = vsel %vm5313_vm9, %v5283_v41, %v4587_v2  ;;  %v15532_v1 = vrot.slane %v15531_v55, 5  ;;  %v15534_v15 = vrot.slane %v15531_v55, 6  ;;  %v4188_v3 = vsel %vm985_vm2, %v4185_v50, %v4187_v4  ;;  %v15539_v55 = vld [vmem:[#allocation94_spill] sm:$0xff] }
 0x6a4   : > { %4811 = vrot.lane.b32.xlu0 %v4730_v42, %s7533_s23  ;;  %6933 = vmatprep.mubr.msk.f32.mxu1 %vm7528_vm6, %v15487_v51  ;;  %v4398_v42 = vrot.slane %v12803_v39, 4  ;;  %v4733_v50 = vrot.slane %v12803_v39, 5 }
 0x6a5   : > { %5018 = vrot.lane.b32.xlu1 %v4937_v18, %s7534_s17  ;;  %v15538_v18 = vld [vmem:[#allocation217_spill] sm:$0xff] }
 0x6a6   : > { %v4794_v59 = vpop.permute.xlu0 %4793  ;;  %v12811_v28 = vsel %vm1193_vm3, %v4396_v33, %v4398_v42  ;;  %v4940_v33 = vrot.slane %v12803_v39, 6 }
 0x6a7   : > { %v5369_v29 = vsel %vm5356_vm11, %v5326_v20, %v4794_v59  ;;  %v4457_v5 = vpop.permute.xlu1 %4456  ;;  %v15537_v59 = vld [vmem:[#allocation208_spill] sm:$0xff] }
 0x6a8   : > { %4562 = vrot.lane.b32.xlu0 %v12083_v19, %s7532_s16 }
 0x6a9   : > { %4769 = vrot.lane.b32.xlu1 %v15532_v1, %s7533_s23 }
 0x6aa   : > { %v5001_v8 = vpop.permute.xlu0 %5000 }
 0x6ab   : > { %v5412_v6 = vsel %vm5399_vm13, %v5369_v29, %v5001_v8  ;;  %v4045_v19 = vpop.permute.xlu1 %4044 }
 0x6ac   : > { %v5507_v57 = vrot.slane %v5412_v6, 5  ;;  %4474 = vrot.lane.b32.xlu0 %v12685_v56, %s7531_s11  ;;  %v15535_v56 = vld [vmem:[#allocation186_spill] sm:$0xff]  ;;  %v4734_v6 = vsel %vm1533_vm4, %v4731_v63, %v4733_v50  ;;  %v4941_v63 = vsel %vm1741_vm7, %v4938_v13, %v4940_v33  ;;  %v15541_v13 = vld [vmem:[#allocation67_spill] sm:$0xff] }
 0x6ad   : > { %4976 = vrot.lane.b32.xlu1 %v15534_v15, %s7534_s17  ;;  %v5157_v32 = vsel %vm2078_vm10, %v5115_v7, %v15535_v56  ;;  %v12838_v7 = vld [vmem:[#allocation2 + $0xe8] sm:$0xff] }
 0x6ae   : > { %v4589_v35 = vpop.permute.xlu0 %4588  ;;  %v5508_v12 = vsel %vm1533_vm4, %v5505_v34, %v5507_v57  ;;  %v5199_v9 = vsel %vm2164_vm12, %v5157_v32, %v4043_v0  ;;  %v4400_v15 = vrot.slane %v12838_v7, 4 }
 0x6af   : > { %6934 = vmatmul.mubr.msk.f32.gmra.mrb[20].mxu1 %vm5567_vm15, %v5508_v12  ;;  %v4252_v43 = vpop.permute.xlu1 %4251  ;;  %v5241_v52 = vsel %vm2250_vm14, %v5199_v9, %v4250_v36  ;;  %v7279_v36 = vld [vmem:[#allocation2 + $0x70] sm:$0xff] }
 0x6b0   : > { %4606 = vrot.lane.b32.xlu0 %v12773_v31, %s7532_s16  ;;  %6936 = vmatprep.mubr.msk.f32.mxu1 %vm7528_vm6, %v15487_v51  ;;  %v5284_v54 = vsel %vm5270_vm0, %v5241_v52, %v4457_v5  ;;  %v5116_v11 = vsel %vm1992_vm5, %v7279_v36, %v15537_v59  ;;  %v4735_v52 = vrot.slane %v12838_v7, 5 }
 0x6b1   : > { %4813 = vrot.lane.b32.xlu1 %v4732_v26, %s7533_s23  ;;  %v5327_v34 = vsel %vm5313_vm9, %v5284_v54, %v4589_v35  ;;  %v5158_v41 = vsel %vm2078_vm10, %v5116_v11, %v15538_v18  ;;  %v15540_v26 = vld [vmem:[#allocation55_spill] sm:$0xff]  ;;  %v15542_v54 = vld [vmem:[#allocation60_spill] sm:$0xff] }
 0x6b2   : > { %v4796_v47 = vpop.permute.xlu0 %4795  ;;  %v5200_v20 = vsel %vm2164_vm12, %v5158_v41, %v4045_v19  ;;  %v12874_v11 = vld [vmem:[#allocation2 + $0xf0] sm:$0xff] }
 0x6b3   : > { %v5370_v58 = vsel %vm5356_vm11, %v5327_v34, %v4796_v47  ;;  %v4459_v22 = vpop.permute.xlu1 %4458  ;;  %v5242_v8 = vsel %vm2250_vm14, %v5200_v20, %v4252_v43  ;;  %v12846_v47 = vsel %vm1193_vm3, %v4398_v42, %v4400_v15  ;;  %v15543_v42 = vld [vmem:[#allocation209_spill] sm:$0xff]  ;;  %v4402_v18 = vrot.slane %v12874_v11, 4 }
 0x6b4   : > { %4062 = vrot.lane.b32.xlu0 %v15536_v45, %s7524_s6 }
 0x6b5   : > { %5020 = vrot.lane.b32.xlu1 %v4939_v17, %s7534_s17  ;;  %v4942_v17 = vrot.slane %v12838_v7, 6 }
 0x6b6   : > { %v5003_v0 = vpop.permute.xlu0 %5002 }
 0x6b7   : > { %v5413_v2 = vsel %vm5399_vm13, %v5370_v58, %v5003_v0  ;;  %v4047_v30 = vpop.permute.xlu1 %4046 }
 0x6b8   : > { %v5509_v37 = vrot.slane %v5413_v2, 5  ;;  %4269 = vrot.lane.b32.xlu0 %v4188_v3, %s7529_s10  ;;  %v4736_v2 = vsel %vm1533_vm4, %v4733_v50, %v4735_v52  ;;  %v4191_v3 = vrot.slane %v12803_v39, 3  ;;  %v4943_v50 = vsel %vm1741_vm7, %v4940_v33, %v4942_v17  ;;  %v15544_v33 = vld [vmem:[#allocation178_spill] sm:$0xff] }
 0x6b9   : > { %4608 = vrot.lane.b32.xlu1 %v12811_v28, %s7532_s16 }
 0x6ba   : > { %v4591_v10 = vpop.permute.xlu0 %4590  ;;  %v5510_v14 = vsel %vm1533_vm4, %v5507_v57, %v5509_v37  ;;  %v4189_v57 = vrot.slane %v12762_v25, 3 }
 0x6bb   : > { %6937 = vmatmul.mubr.msk.f32.gmra.mrb[22].mxu1 %vm5567_vm15, %v5510_v14  ;;  %v4254_v29 = vpop.permute.xlu1 %4253 }
 0x6bc   : > { %4476 = vrot.lane.b32.xlu0 %v12719_v60, %s7531_s11  ;;  %6939 = vmatprep.mubr.msk.f32.mxu1 %vm7528_vm6, %v15487_v51  ;;  %v5285_v60 = vsel %vm5270_vm0, %v5242_v8, %v4459_v22  ;;  %v4190_v61 = vsel %vm985_vm2, %v4187_v4, %v4189_v57  ;;  %v5117_v4 = vsel %vm1992_vm5, %v15541_v13, %v15540_v26 }
 0x6bd   : > { %4815 = vrot.lane.b32.xlu1 %v4734_v6, %s7533_s23  ;;  %v5328_v1 = vsel %vm5313_vm9, %v5285_v60, %v4591_v10  ;;  %v5159_v45 = vsel %vm2078_vm10, %v5117_v4, %v15542_v54  ;;  %v4192_v59 = vsel %vm985_vm2, %v4189_v57, %v4191_v3  ;;  %v12882_v8 = vsel %vm1193_vm3, %v4400_v15, %v4402_v18  ;;  %v15545_v57 = vld [vmem:[#allocation189_spill] sm:$0xff] }
 0x6be   : > { %v4798_v5 = vpop.permute.xlu0 %4797  ;;  %v5201_v34 = vsel %vm2164_vm12, %v5159_v45, %v4047_v30  ;;  %v4737_v6 = vrot.slane %v12874_v11, 5  ;;  %v5118_v60 = vsel %vm1992_vm5, %v15545_v57, %v15544_v33  ;;  %v4193_v15 = vrot.slane %v12838_v7, 3  ;;  %v12910_v54 = vld [vmem:[#allocation2 + $0xf8] sm:$0xff] }
 0x6bf   : > { %v5371_v19 = vsel %vm5356_vm11, %v5328_v1, %v4798_v5  ;;  %v4461_v35 = vpop.permute.xlu1 %4460  ;;  %v5243_v0 = vsel %vm2250_vm14, %v5201_v34, %v4254_v29  ;;  %v4404_v45 = vrot.slane %v12910_v54, 4 }
 0x6c0   : > { %4064 = vrot.lane.b32.xlu0 %v15539_v55, %s7524_s6  ;;  %v15546_v55 = vld [vmem:[#allocation163_spill] sm:$0xff]  ;;  %v4194_v4 = vsel %vm985_vm2, %v4191_v3, %v4193_v15  ;;  %v15548_v3 = vld [vmem:[#allocation36_spill] sm:$0xff] }
 0x6c1   : > { %5022 = vrot.lane.b32.xlu1 %v4941_v63, %s7534_s17  ;;  %v5160_v1 = vsel %vm2078_vm10, %v5118_v60, %v15546_v55  ;;  %v4738_v63 = vsel %vm1533_vm4, %v4735_v52, %v4737_v6  ;;  %v12946_v60 = vld [vmem:[#allocation2 + $0x100] sm:$0xff] }
 0x6c2   : > { %v5005_v12 = vpop.permute.xlu0 %5004  ;;  %v4406_v55 = vrot.slane %v12946_v60, 4 }
 0x6c3   : > { %v5414_v21 = vsel %vm5399_vm13, %v5371_v19, %v5005_v12  ;;  %v4049_v32 = vpop.permute.xlu1 %4048 }
 0x6c4   : > { %v5511_v56 = vrot.slane %v5414_v21, 5  ;;  %4271 = vrot.lane.b32.xlu0 %v4190_v61, %s7529_s10  ;;  %v5202_v19 = vsel %vm2164_vm12, %v5160_v1, %v4049_v32  ;;  %v4944_v61 = vrot.slane %v12874_v11, 6 }
 0x6c5   : > { %4610 = vrot.lane.b32.xlu1 %v12846_v47, %s7532_s16 }
 0x6c6   : > { %v4593_v9 = vpop.permute.xlu0 %4592  ;;  %v5512_v43 = vsel %vm1533_vm4, %v5509_v37, %v5511_v56  ;;  %v4945_v52 = vsel %vm1741_vm7, %v4942_v17, %v4944_v61  ;;  %v4739_v17 = vrot.slane %v12910_v54, 5 }
 0x6c7   : > { %6940 = vmatmul.mubr.msk.f32.gmra.mrb[24].mxu1 %vm5567_vm15, %v5512_v43  ;;  %v4256_v58 = vpop.permute.xlu1 %4255 }
 0x6c8   : > { %4478 = vrot.lane.b32.xlu0 %v12773_v31, %s7531_s11  ;;  %6942 = vmatprep.mubr.msk.f32.mxu1 %vm7528_vm6, %v15487_v51  ;;  %v5286_v31 = vsel %vm5270_vm0, %v5243_v0, %v4461_v35  ;;  %v5244_v21 = vsel %vm2250_vm14, %v5202_v19, %v4256_v58 }
 0x6c9   : > { %4817 = vrot.lane.b32.xlu1 %v4736_v2, %s7533_s23  ;;  %v5329_v37 = vsel %vm5313_vm9, %v5286_v31, %v4593_v9  ;;  %v12918_v2 = vsel %vm1193_vm3, %v4402_v18, %v4404_v45  ;;  %v5119_v31 = vsel %vm1992_vm5, %v12365_v16, %v15548_v3  ;;  %v4740_v16 = vsel %vm1533_vm4, %v4737_v6, %v4739_v17  ;;  %v15550_v18 = vld [vmem:[#allocation33_spill] sm:$0xff] }
 0x6ca   : > { %v4800_v22 = vpop.permute.xlu0 %4799 }
 0x6cb   : > { %v5372_v30 = vsel %vm5356_vm11, %v5329_v37, %v4800_v22  ;;  %v4463_v10 = vpop.permute.xlu1 %4462 }
 0x6cc   : > { %4066 = vrot.lane.b32.xlu0 %v15543_v42, %s7524_s6  ;;  %v15549_v42 = vld [vmem:[#allocation102_spill] sm:$0xff] }
 0x6cd   : > { %5024 = vrot.lane.b32.xlu1 %v4943_v50, %s7534_s17  ;;  %v5161_v37 = vsel %vm2078_vm10, %v5119_v31, %v15549_v42  ;;  %v4946_v50 = vrot.slane %v12910_v54, 6  ;;  %v12982_v31 = vld [vmem:[#allocation2 + $0x108] sm:$0xff] }
 0x6ce   : > { %v5007_v14 = vpop.permute.xlu0 %5006  ;;  %v4408_v42 = vrot.slane %v12982_v31, 4 }
 0x6cf   : > { %v5415_v36 = vsel %vm5399_vm13, %v5372_v30, %v5007_v14  ;;  %v4051_v20 = vpop.permute.xlu1 %4050  ;;  %v4947_v6 = vsel %vm1741_vm7, %v4944_v61, %v4946_v50  ;;  %v15551_v61 = vld [vmem:[#allocation155_spill] sm:$0xff] }
 0x6d0   : > { %v5513_v41 = vrot.slane %v5415_v36, 5  ;;  %4273 = vrot.lane.b32.xlu0 %v4192_v59, %s7529_s10  ;;  %v5203_v30 = vsel %vm2164_vm12, %v5161_v37, %v4051_v20  ;;  %v4195_v59 = vrot.slane %v12874_v11, 3 }
 0x6d1   : > { %4612 = vrot.lane.b32.xlu1 %v12882_v8, %s7532_s16 }
 0x6d2   : > { %v4595_v29 = vpop.permute.xlu0 %4594  ;;  %v5514_v5 = vsel %vm1533_vm4, %v5511_v56, %v5513_v41  ;;  %v15547_v56 = vld [vmem:[#allocation173_spill] sm:$0xff]  ;;  %v4196_v57 = vsel %vm985_vm2, %v4193_v15, %v4195_v59  ;;  %v5120_v15 = vsel %vm1992_vm5, %v12385_v38, %v15551_v61 }
 0x6d3   : > { %6943 = vmatmul.mubr.msk.f32.gmra.mrb[26].mxu1 %vm5567_vm15, %v5514_v5  ;;  %v4258_v35 = vpop.permute.xlu1 %4257 }
 0x6d4   : > { %4480 = vrot.lane.b32.xlu0 %v12811_v28, %s7531_s11  ;;  %6945 = vmatprep.mubr.msk.f32.mxu1 %vm7528_vm6, %v15487_v51  ;;  %v5287_v28 = vsel %vm5270_vm0, %v5244_v21, %v4463_v10  ;;  %v5245_v36 = vsel %vm2250_vm14, %v5203_v30, %v4258_v35  ;;  %v12954_v21 = vsel %vm1193_vm3, %v4404_v45, %v4406_v55 }
 0x6d5   : > { %4819 = vrot.lane.b32.xlu1 %v4738_v63, %s7533_s23  ;;  %v5330_v9 = vsel %vm5313_vm9, %v5287_v28, %v4595_v29  ;;  %v4741_v63 = vrot.slane %v12946_v60, 5  ;;  %v15552_v28 = vld [vmem:[#allocation185_spill] sm:$0xff] }
 0x6d6   : > { %v4802_v12 = vpop.permute.xlu0 %4801 }
 0x6d7   : > { %v5373_v32 = vsel %vm5356_vm11, %v5330_v9, %v4802_v12  ;;  %v4465_v43 = vpop.permute.xlu1 %4464  ;;  %v4742_v38 = vsel %vm1533_vm4, %v4739_v17, %v4741_v63 }
 0x6d8   : > { %4068 = vrot.lane.b32.xlu0 %v15547_v56, %s7524_s6  ;;  %v5162_v56 = vsel %vm2078_vm10, %v5120_v15, %v15552_v28  ;;  %v13018_v15 = vld [vmem:[#allocation2 + $0x110] sm:$0xff] }
 0x6d9   : > { %5026 = vrot.lane.b32.xlu1 %v4945_v52, %s7534_s17  ;;  %v4197_v52 = vrot.slane %v12910_v54, 3  ;;  %v4410_v28 = vrot.slane %v13018_v15, 4 }
 0x6da   : > { %v5009_v26 = vpop.permute.xlu0 %5008 }
 0x6db   : > { %v5416_v13 = vsel %vm5399_vm13, %v5373_v32, %v5009_v26  ;;  %v4053_v58 = vpop.permute.xlu1 %4052  ;;  %v4198_v3 = vsel %vm985_vm2, %v4195_v59, %v4197_v52 }
 0x6dc   : > { %v5515_v34 = vrot.slane %v5416_v13, 5  ;;  %4275 = vrot.lane.b32.xlu0 %v4194_v4, %s7529_s10  ;;  %v5204_v9 = vsel %vm2164_vm12, %v5162_v56, %v4053_v58  ;;  %v4948_v13 = vrot.slane %v12946_v60, 6  ;;  %v15553_v4 = vld [vmem:[#allocation148_spill] sm:$0xff] }
 0x6dd   : > { %4614 = vrot.lane.b32.xlu1 %v12918_v2, %s7532_s16 }
 0x6de   : > { %v4597_v22 = vpop.permute.xlu0 %4596  ;;  %v5516_v0 = vsel %vm1533_vm4, %v5513_v41, %v5515_v34  ;;  %v4949_v17 = vsel %vm1741_vm7, %v4946_v50, %v4948_v13  ;;  %v15554_v50 = vld [vmem:[#allocation96_spill] sm:$0xff] }
 0x6df   : > { %6946 = vmatmul.mubr.msk.f32.gmra.mrb[28].mxu1 %vm5567_vm15, %v5516_v0  ;;  %v4260_v10 = vpop.permute.xlu1 %4259  ;;  %v5121_v59 = vsel %vm1992_vm5, %v12437_v48, %v15554_v50 }
 0x6e0   : > { %4482 = vrot.lane.b32.xlu0 %v12846_v47, %s7531_s11  ;;  %6948 = vmatprep.mubr.msk.f32.mxu1 %vm7528_vm6, %v15487_v51  ;;  %v5288_v47 = vsel %vm5270_vm0, %v5245_v36, %v4465_v43  ;;  %v5246_v26 = vsel %vm2250_vm14, %v5204_v9, %v4260_v10  ;;  %v12990_v36 = vsel %vm1193_vm3, %v4406_v55, %v4408_v42 }
 0x6e1   : > { %4821 = vrot.lane.b32.xlu1 %v4740_v16, %s7533_s23  ;;  %v5331_v41 = vsel %vm5313_vm9, %v5288_v47, %v4597_v22  ;;  %v4743_v16 = vrot.slane %v12982_v31, 5  ;;  %v15555_v47 = vld [vmem:[#allocation123_spill] sm:$0xff] }
 0x6e2   : > { %v4804_v14 = vpop.permute.xlu0 %4803 }
 0x6e3   : > { %v5374_v20 = vsel %vm5356_vm11, %v5331_v41, %v4804_v14  ;;  %v4467_v29 = vpop.permute.xlu1 %4466  ;;  %v4744_v48 = vsel %vm1533_vm4, %v4741_v63, %v4743_v16 }
 0x6e4   : > { %4070 = vrot.lane.b32.xlu0 %v15550_v18, %s7524_s6  ;;  %v5163_v18 = vsel %vm2078_vm10, %v5121_v59, %v15555_v47  ;;  %v13054_v59 = vld [vmem:[#allocation2 + $0x118] sm:$0xff] }
 0x6e5   : > { %5028 = vrot.lane.b32.xlu1 %v4947_v6, %s7534_s17  ;;  %v4199_v6 = vrot.slane %v12946_v60, 3  ;;  %v4412_v47 = vrot.slane %v13054_v59, 4 }
 0x6e6   : > { %v5011_v5 = vpop.permute.xlu0 %5010 }
 0x6e7   : > { %v5417_v33 = vsel %vm5399_vm13, %v5374_v20, %v5011_v5  ;;  %v4055_v19 = vpop.permute.xlu1 %4054  ;;  %v4200_v61 = vsel %vm985_vm2, %v4197_v52, %v4199_v6 }
 0x6e8   : > { %v5517_v1 = vrot.slane %v5417_v33, 5  ;;  %4277 = vrot.lane.b32.xlu0 %v4196_v57, %s7529_s10  ;;  %v5205_v41 = vsel %vm2164_vm12, %v5163_v18, %v4055_v19  ;;  %v4950_v33 = vrot.slane %v12982_v31, 6  ;;  %v15556_v57 = vld [vmem:[#allocation97_spill] sm:$0xff] }
 0x6e9   : > { %4616 = vrot.lane.b32.xlu1 %v12954_v21, %s7532_s16 }
 0x6ea   : > { %v4599_v35 = vpop.permute.xlu0 %4598  ;;  %v5518_v12 = vsel %vm1533_vm4, %v5515_v34, %v5517_v1  ;;  %v4951_v63 = vsel %vm1741_vm7, %v4948_v13, %v4950_v33  ;;  %v15557_v13 = vld [vmem:[#allocation210_spill] sm:$0xff] }
 0x6eb   : > { %6949 = vmatmul.mubr.msk.f32.gmra.mrb[30].mxu1 %vm5567_vm15, %v5518_v12  ;;  %v4262_v32 = vpop.permute.xlu1 %4261  ;;  %v5122_v52 = vsel %vm1992_vm5, %v12480_v53, %v15557_v13 }
 0x6ec   : > { %4484 = vrot.lane.b32.xlu0 %v12882_v8, %s7531_s11  ;;  %6951 = vmatprep.mubr.msk.f32.mxu1 %vm7528_vm6, %v15487_v51  ;;  %v5289_v8 = vsel %vm5270_vm0, %v5246_v26, %v4467_v29  ;;  %v5247_v5 = vsel %vm2250_vm14, %v5205_v41, %v4262_v32  ;;  %v13026_v26 = vsel %vm1193_vm3, %v4408_v42, %v4410_v28 }
 0x6ed   : > { %4823 = vrot.lane.b32.xlu1 %v4742_v38, %s7533_s23  ;;  %v5332_v45 = vsel %vm5313_vm9, %v5289_v8, %v4599_v35  ;;  %v4745_v38 = vrot.slane %v13018_v15, 5  ;;  %v15558_v8 = vld [vmem:[#allocation216_spill] sm:$0xff] }
 0x6ee   : > { %v4806_v43 = vpop.permute.xlu0 %4805 }
 0x6ef   : > { %v5375_v34 = vsel %vm5356_vm11, %v5332_v45, %v4806_v43  ;;  %v4469_v58 = vpop.permute.xlu1 %4468  ;;  %v4746_v53 = vsel %vm1533_vm4, %v4743_v16, %v4745_v38 }
 0x6f0   : > { %4072 = vrot.lane.b32.xlu0 %v15553_v4, %s7524_s6  ;;  %v5164_v4 = vsel %vm2078_vm10, %v5122_v52, %v15558_v8 }
 0x6f1   : > { %5030 = vrot.lane.b32.xlu1 %v4949_v17, %s7534_s17  ;;  %v4201_v17 = vrot.slane %v12982_v31, 3 }
 0x6f2   : > { %v5013_v22 = vpop.permute.xlu0 %5012 }
 0x6f3   : > { %v5418_v0 = vsel %vm5399_vm13, %v5375_v34, %v5013_v22  ;;  %v4057_v30 = vpop.permute.xlu1 %4056  ;;  %v4202_v50 = vsel %vm985_vm2, %v4199_v6, %v4201_v17 }
 0x6f4   : > { %v5519_v37 = vrot.slane %v5418_v0, 5  ;;  %4279 = vrot.lane.b32.xlu0 %v4198_v3, %s7529_s10  ;;  %v5206_v45 = vsel %vm2164_vm12, %v5164_v4, %v4057_v30  ;;  %v4952_v0 = vrot.slane %v13018_v15, 6  ;;  %v15559_v3 = vld [vmem:[#allocation211_spill] sm:$0xff] }
 0x6f5   : > { %4618 = vrot.lane.b32.xlu1 %v12990_v36, %s7532_s16 }
 0x6f6   : > { %v4601_v10 = vpop.permute.xlu0 %4600  ;;  %v5520_v14 = vsel %vm1533_vm4, %v5517_v1, %v5519_v37  ;;  %v4953_v16 = vsel %vm1741_vm7, %v4950_v33, %v4952_v0 }
 0x6f7   : > { %6952 = vmatmul.mubr.msk.f32.gmra.mrb[32].mxu1 %vm5567_vm15, %v5520_v14  ;;  %v4264_v20 = vpop.permute.xlu1 %4263 }
 0x6f8   : > { %4486 = vrot.lane.b32.xlu0 %v12918_v2, %s7531_s11  ;;  %6954 = vmatprep.mubr.msk.f32.mxu1 %vm7528_vm6, %v15487_v51  ;;  %v5290_v2 = vsel %vm5270_vm0, %v5247_v5, %v4469_v58  ;;  %v5248_v22 = vsel %vm2250_vm14, %v5206_v45, %v4264_v20  ;;  %v13062_v5 = vsel %vm1193_vm3, %v4410_v28, %v4412_v47 }
 0x6f9   : > { %4825 = vrot.lane.b32.xlu1 %v4744_v48, %s7533_s23  ;;  %v5333_v55 = vsel %vm5313_vm9, %v5290_v2, %v4601_v10  ;;  %v4747_v48 = vrot.slane %v13054_v59, 5 }
 0x6fa   : > { %v4808_v29 = vpop.permute.xlu0 %4807 }
 0x6fb   : > { %v5376_v1 = vsel %vm5356_vm11, %v5333_v55, %v4808_v29  ;;  %v4471_v19 = vpop.permute.xlu1 %4470  ;;  %v4748_v2 = vsel %vm1533_vm4, %v4745_v38, %v4747_v48  ;;  %v4203_v55 = vrot.slane %v13018_v15, 3  ;;  %v13088_v38 = vld [vmem:[#allocation2 + $0x120] sm:$0xff] }
 0x6fc   : > { %4074 = vrot.lane.b32.xlu0 %v15556_v57, %s7524_s6  ;;  %v4954_v57 = vrot.slane %v13054_v59, 6 }
 0x6fd   : > { %5032 = vrot.lane.b32.xlu1 %v4951_v63, %s7534_s17 }
 0x6fe   : > { %v5015_v35 = vpop.permute.xlu0 %5014 }
 0x6ff   : > { %v5419_v12 = vsel %vm5399_vm13, %v5376_v1, %v5015_v35  ;;  %v4059_v9 = vpop.permute.xlu1 %4058  ;;  %v15560_v1 = vld [vmem:[#allocation57_spill] sm:$0xff]  ;;  %v15562_v35 = vld [vmem:[#allocation63_spill] sm:$0xff] }
 0x700   : > { %v5521_v56 = vrot.slane %v5419_v12, 5  ;;  %4281 = vrot.lane.b32.xlu0 %v4200_v61, %s7529_s10 }
 0x701   : > { %4620 = vrot.lane.b32.xlu1 %v13026_v26, %s7532_s16 }
 0x702   : > { %v4603_v32 = vpop.permute.xlu0 %4602  ;;  %v5522_v43 = vsel %vm1533_vm4, %v5519_v37, %v5521_v56 }
 0x703   : > { %6955 = vmatmul.mubr.msk.f32.gmra.mrb[34].mxu1 %vm5567_vm15, %v5522_v43  ;;  %v4266_v34 = vpop.permute.xlu1 %4265  ;;  %v4204_v43 = vsel %vm985_vm2, %v4201_v17, %v4203_v55  ;;  %v15563_v17 = vld [vmem:[#allocation31_spill] sm:$0xff] }
 0x704   : > { %4488 = vrot.lane.b32.xlu0 %v12954_v21, %s7531_s11  ;;  %6957 = vmatprep.mubr.msk.f32.mxu1 %vm7528_vm6, %v15487_v51  ;;  %v5291_v21 = vsel %vm5270_vm0, %v5248_v22, %v4471_v19  ;;  %v5123_v19 = vsel %vm1992_vm5, %v12521_v27, %v15560_v1  ;;  %v4414_v27 = vrot.slane %v13088_v38, 4  ;;  %v15566_v1 = vld [vmem:[#allocation177_spill] sm:$0xff] }
 0x705   : > { %4827 = vrot.lane.b32.xlu1 %v4746_v53, %s7533_s23  ;;  %v5334_v42 = vsel %vm5313_vm9, %v5291_v21, %v4603_v32  ;;  %v5165_v12 = vsel %vm2078_vm10, %v5123_v19, %v15562_v35  ;;  %v4955_v32 = vsel %vm1741_vm7, %v4952_v0, %v4954_v57  ;;  %v4749_v53 = vrot.slane %v13088_v38, 5  ;;  %v7288_v0 = vld [vmem:[#allocation2] sm:$0xff] }
 0x706   : > { %v4810_v58 = vpop.permute.xlu0 %4809  ;;  %v5207_v63 = vsel %vm2164_vm12, %v5165_v12, %v4059_v9  ;;  %v13102_v22 = vsel %vm1193_vm3, %v4412_v47, %v4414_v27  ;;  %v5102_v21 = vsel %vm1992_vm5, %v7288_v0, %v15563_v17 }
 0x707   : > { %v5377_v37 = vsel %vm5356_vm11, %v5334_v42, %v4810_v58  ;;  %v4473_v30 = vpop.permute.xlu1 %4472  ;;  %v15564_v42 = vld [vmem:[#allocation124_spill] sm:$0xff] }
 0x708   : > { %4076 = vrot.lane.b32.xlu0 %v15559_v3, %s7524_s6 }
 0x709   : > { %5034 = vrot.lane.b32.xlu1 %v4953_v16, %s7534_s17 }
 0x70a   : > { %v5017_v10 = vpop.permute.xlu0 %5016 }
 0x70b   : > { %v5420_v14 = vsel %vm5399_vm13, %v5377_v37, %v5017_v10  ;;  %v4605_v41 = vpop.permute.xlu1 %4604  ;;  %v5144_v37 = vsel %vm2078_vm10, %v5102_v21, %v15564_v42  ;;  %v4207_v42 = vrot.slane %v13088_v38, 3 }
 0x70c   : > { %v5523_v18 = vrot.slane %v5420_v14, 5  ;;  %4283 = vrot.lane.b32.xlu0 %v4202_v50, %s7529_s10 }
 0x70d   : > { %4622 = vrot.lane.b32.xlu1 %v13062_v5, %s7532_s16 }
 0x70e   : > { %v4224_v20 = vpop.permute.xlu0 %4223  ;;  %v5524_v29 = vsel %vm1533_vm4, %v5521_v56, %v5523_v18  ;;  %v5249_v56 = vsel %vm2250_vm14, %v5207_v63, %v4266_v34 }
 0x70f   : > { %6958 = vmatmul.mubr.msk.f32.gmra.mrb[36].mxu1 %vm5567_vm15, %v5524_v29  ;;  %v4431_v33 = vpop.permute.xlu1 %4430  ;;  %v5292_v13 = vsel %vm5270_vm0, %v5249_v56, %v4473_v30  ;;  %v15565_v30 = vld [vmem:[#allocation127_spill] sm:$0xff]  ;;  %v4956_v29 = vrot.slane %v13088_v38, 6 }
 0x710   : > { %4490 = vrot.lane.b32.xlu0 %v12990_v36, %s7531_s11  ;;  %6960 = vmatprep.mubr.msk.f32.mxu1 %vm7528_vm6, %v15487_v51  ;;  %v15561_v36 = vld [vmem:[#allocation54_spill] sm:$0xff]  ;;  %v5335_v9 = vsel %vm5313_vm9, %v5292_v13, %v4605_v41  ;;  %v5186_v10 = vsel %vm2164_vm12, %v5144_v37, %v15565_v30  ;;  %v4750_v41 = vsel %vm1533_vm4, %v4747_v48, %v4749_v53  ;;  %v15569_v30 = vld [vmem:[#allocation35_spill] sm:$0xff] }
 0x711   : > { %4829 = vrot.lane.b32.xlu1 %v4748_v2, %s7533_s23  ;;  %v5228_v50 = vsel %vm2250_vm14, %v5186_v10, %v4224_v20 }
 0x712   : > { %v13071_v6 = vpop.permute.xlu0 %4060  ;;  %v5271_v2 = vsel %vm5270_vm0, %v5228_v50, %v4431_v33  ;;  %v4957_v33 = vsel %vm1741_vm7, %v4954_v57, %v4956_v29 }
 0x713   : > { %v4268_v61 = vpop.permute.xlu1 %4267 }
 0x714   : > { %4078 = vrot.lane.b32.xlu0 %v15561_v36, %s7524_s6 }
 0x715   : > { %5036 = vrot.lane.b32.xlu1 %v4955_v32, %s7534_s17  ;;  %v15567_v32 = vld [vmem:[#allocation182_spill] sm:$0xff] }
 0x716   : > { %v4812_v28 = vpop.permute.xlu0 %4811 }
 0x717   : > { %v5378_v52 = vsel %vm5356_vm11, %v5335_v9, %v4812_v28  ;;  %v5019_v8 = vpop.permute.xlu1 %5018  ;;  %v13135_v28 = vld [vmem:[#allocation2 + $0x128] sm:$0xff]  ;;  %v15568_v9 = vld [vmem:[#allocation237_spill] sm:$0xff] }
 0x718   : > { %4285 = vrot.lane.b32.xlu0 %v4204_v43, %s7529_s10  ;;  %v13099_v45 = vsel %vm5399_vm13, %v5378_v52, %v5019_v8  ;;  %v4416_v56 = vrot.slane %v13135_v28, 4  ;;  %v5124_v43 = vsel %vm1992_vm5, %v12558_v49, %v15567_v32  ;;  %v4958_v21 = vrot.slane %v13135_v28, 6 }
 0x719   : > { %v5525_v3 = vrot.slane %v13099_v45, 5  ;;  %4624 = vrot.lane.b32.xlu1 %v13102_v22, %s7532_s16  ;;  %v5166_v52 = vsel %vm2078_vm10, %v5124_v43, %v15568_v9 }
 0x71a   : > { %v13096_v4 = vpop.f32.mrb[0].mxu1  ;;  %v4563_v34 = vpop.permute.xlu0 %4562  ;;  %v5208_v57 = vsel %vm2164_vm12, %v5166_v52, %v13071_v6  ;;  %v13153_v49 = vsel %vm1193_vm3, %v4414_v27, %v4416_v56 }
 0x71b   : > { %v6905_v58 = vpop.f32.mrb[1].mxu1  ;;  %v4770_v14 = vpop.permute.xlu1 %4769  ;;  %v5526_v16 = vsel %vm1533_vm4, %v5523_v18, %v5525_v3  ;;  %v5314_v18 = vsel %vm5313_vm9, %v5271_v2, %v4563_v34  ;;  %v5250_v45 = vsel %vm2250_vm14, %v5208_v57, %v4268_v61 }
 0x71c   : > { %4492 = vrot.lane.b32.xlu0 %v13026_v26, %s7531_s11  ;;  %6961 = vmatmul.mubr.msk.f32.gmra.mrb[38].mxu1 %vm5567_vm15, %v5526_v16  ;;  %v4205_v26 = vrot.slane %v13054_v59, 3  ;;  %v5357_v20 = vsel %vm5356_vm11, %v5314_v18, %v4770_v14  ;;  %v4751_v58 = vrot.slane %v13135_v28, 5 }
 0x71d   : > { %4831 = vrot.lane.b32.xlu1 %v4750_v41, %s7533_s23  ;;  %6963 = vmatprep.mubr.msk.f32.mxu1 %vm7528_vm6, %v15487_v51 }
 0x71e   : > { %v4475_v47 = vpop.permute.xlu0 %4474  ;;  %v4206_v63 = vsel %vm985_vm2, %v4203_v55, %v4205_v26  ;;  %v4752_v27 = vsel %vm1533_vm4, %v4749_v53, %v4751_v58  ;;  %v15571_v53 = vld [vmem:[#allocation105_spill] sm:$0xff]  ;;  %v4208_v18 = vsel %vm985_vm2, %v4205_v26, %v4207_v42 }
 0x71f   : > { %v4977_v19 = vpop.permute.xlu1 %4976  ;;  %v5293_v0 = vsel %vm5270_vm0, %v5250_v45, %v4475_v47  ;;  %v15573_v45 = vld [vmem:[#allocation37_spill] sm:$0xff] }
 0x720   : > { %4080 = vrot.lane.b32.xlu0 %v15566_v1, %s7524_s6  ;;  %v13130_v48 = vpop.f32.mrb[2].mxu1  ;;  %v5400_v36 = vsel %vm5399_vm13, %v5357_v20, %v4977_v19  ;;  %v4959_v1 = vsel %vm1741_vm7, %v4956_v29, %v4958_v21  ;;  %v13181_v20 = vld [vmem:[#allocation2 + $0x130] sm:$0xff] }
 0x721   : > { %v6908_v12 = vpop.f32.mrb[3].mxu1  ;;  %v5484_v13 = vrot.slane %v5400_v36, 5  ;;  %5038 = vrot.lane.b32.xlu1 %v4957_v33, %s7534_s17  ;;  %v4960_v57 = vrot.slane %v13181_v20, 6 }
 0x722   : > { %v4607_v35 = vpop.permute.xlu0 %4606  ;;  %v4753_v12 = vrot.slane %v13181_v20, 5 }
 0x723   : > { %v5486_v55 = vsel %vm1533_vm4, %v5484_v13, %v5485_v46  ;;  %v4814_v8 = vpop.permute.xlu1 %4813  ;;  %v5336_v23 = vsel %vm5313_vm9, %v5293_v0, %v4607_v35 }
 0x724   : > { %4287 = vrot.lane.b32.xlu0 %v4206_v63, %s7529_s10  ;;  %6901 = vmatmul.mubr.msk.f32.vlgmr.msra.gmra.mrb[82].mxu0 %vm5567_vm15, %v5486_v55  ;;  %v5379_v46 = vsel %vm5356_vm11, %v5336_v23, %v4814_v8  ;;  %v4754_v52 = vsel %vm1533_vm4, %v4751_v58, %v4753_v12  ;;  %v4209_v55 = vrot.slane %v13135_v28, 3 }
 0x725   : > { %4626 = vrot.lane.b32.xlu1 %v13153_v49, %s7532_s16 }
 0x726   : > { %v4063_v34 = vpop.permute.xlu0 %4062 }
 0x727   : > { %v5021_v6 = vpop.permute.xlu1 %5020 }
 0x728   : > { %4494 = vrot.lane.b32.xlu0 %v13062_v5, %s7531_s11  ;;  %v5422_v61 = vsel %vm5399_vm13, %v5379_v46, %v5021_v6  ;;  %v15570_v5 = vld [vmem:[#allocation120_spill] sm:$0xff] }
 0x729   : > { %v5527_v37 = vrot.slane %v5422_v61, 5  ;;  %4833 = vrot.lane.b32.xlu1 %v4752_v27, %s7533_s23  ;;  %v5125_v10 = vsel %vm1992_vm5, %v12597_v44, %v15570_v5  ;;  %v4418_v44 = vrot.slane %v13181_v20, 4  ;;  %v15574_v46 = vld [vmem:[#allocation188_spill] sm:$0xff]  ;;  %v4961_v61 = vsel %vm1741_vm7, %v4958_v21, %v4960_v57  ;;  %v13219_v27 = vld [vmem:[#allocation2 + $0x138] sm:$0xff] }
 0x72a   : > { %v4270_v17 = vpop.permute.xlu0 %4269  ;;  %v5167_v47 = vsel %vm2078_vm10, %v5125_v10, %v15571_v53 }
 0x72b   : > { %v4609_v14 = vpop.permute.xlu1 %4608  ;;  %v5528_v50 = vsel %vm1533_vm4, %v5525_v3, %v5527_v37  ;;  %v5209_v19 = vsel %vm2164_vm12, %v5167_v47, %v4063_v34  ;;  %v13192_v26 = vsel %vm1193_vm3, %v4416_v56, %v4418_v44  ;;  %v5126_v34 = vsel %vm1992_vm5, %v12637_v62, %v15573_v45 }
 0x72c   : > { %4082 = vrot.lane.b32.xlu0 %v15569_v30, %s7524_s6  ;;  %6964 = vmatmul.mubr.msk.f32.gmra.mrb[40].mxu1 %vm5567_vm15, %v5528_v50  ;;  %v5251_v3 = vsel %vm2250_vm14, %v5209_v19, %v4270_v17  ;;  %v5168_v58 = vsel %vm2078_vm10, %v5126_v34, %v15574_v46  ;;  %v4210_v17 = vsel %vm985_vm2, %v4207_v42, %v4209_v55  ;;  %v4420_v30 = vrot.slane %v13219_v27, 4 }
 0x72d   : > { %5040 = vrot.lane.b32.xlu1 %v4959_v1, %s7534_s17  ;;  %6966 = vmatprep.mubr.msk.f32.mxu1 %vm7528_vm6, %v15487_v51  ;;  %v4962_v19 = vrot.slane %v13219_v27, 6 }
 0x72e   : > { %v13173_v16 = vpop.f32.mrb[4].mxu1  ;;  %v4477_v41 = vpop.permute.xlu0 %4476  ;;  %v13230_v42 = vsel %vm1193_vm3, %v4418_v44, %v4420_v30 }
 0x72f   : > { %v6911_v2 = vpop.f32.mrb[5].mxu1  ;;  %v5294_v36 = vsel %vm5270_vm0, %v5251_v3, %v4477_v41  ;;  %v4816_v29 = vpop.permute.xlu1 %4815  ;;  %v4211_v3 = vrot.slane %v13181_v20, 3 }
 0x730   : > { %4289 = vrot.lane.b32.xlu0 %v4208_v18, %s7529_s10  ;;  %v5337_v33 = vsel %vm5313_vm9, %v5294_v36, %v4609_v14  ;;  %v4755_v14 = vrot.slane %v13219_v27, 5 }
 0x731   : > { %4628 = vrot.lane.b32.xlu1 %v13192_v26, %s7532_s16  ;;  %v5380_v63 = vsel %vm5356_vm11, %v5337_v33, %v4816_v29  ;;  %v15576_v29 = vld [vmem:[#allocation159_spill] sm:$0xff] }
 0x732   : > { %v4065_v35 = vpop.permute.xlu0 %4064  ;;  %v4756_v44 = vsel %vm1533_vm4, %v4753_v12, %v4755_v14 }
 0x733   : > { %v5023_v32 = vpop.permute.xlu1 %5022  ;;  %v5210_v5 = vsel %vm2164_vm12, %v5168_v58, %v4065_v35  ;;  %v5127_v35 = vsel %vm1992_vm5, %v12672_v24, %v15576_v29 }
 0x734   : > { %4496 = vrot.lane.b32.xlu0 %v13102_v22, %s7531_s11  ;;  %v13201_v43 = vpop.f32.mrb[6].mxu1  ;;  %v5423_v13 = vsel %vm5399_vm13, %v5380_v63, %v5023_v32  ;;  %v15572_v22 = vld [vmem:[#allocation152_spill] sm:$0xff]  ;;  %v15577_v32 = vld [vmem:[#allocation126_spill] sm:$0xff] }
 0x735   : > { %v6914_v56 = vpop.f32.mrb[7].mxu1  ;;  %v5529_v8 = vrot.slane %v5423_v13, 5  ;;  %4835 = vrot.lane.b32.xlu1 %v4754_v52, %s7533_s23  ;;  %v5169_v12 = vsel %vm2078_vm10, %v5127_v35, %v15577_v32  ;;  %v13257_v52 = vld [vmem:[#allocation2 + $0x140] sm:$0xff] }
 0x736   : > { %v4272_v9 = vpop.permute.xlu0 %4271  ;;  %v4212_v56 = vsel %vm985_vm2, %v4209_v55, %v4211_v3  ;;  %v4757_v46 = vrot.slane %v13257_v52, 5 }
 0x737   : > { %v4611_v0 = vpop.permute.xlu1 %4610  ;;  %v5530_v23 = vsel %vm1533_vm4, %v5527_v37, %v5529_v8  ;;  %v5252_v62 = vsel %vm2250_vm14, %v5210_v5, %v4272_v9  ;;  %v4963_v9 = vsel %vm1741_vm7, %v4960_v57, %v4962_v19 }
 0x738   : > { %4084 = vrot.lane.b32.xlu0 %v15572_v22, %s7524_s6  ;;  %6967 = vmatmul.mubr.msk.f32.gmra.mrb[42].mxu1 %vm5567_vm15, %v5530_v23  ;;  %v4422_v22 = vrot.slane %v13257_v52, 4 }
 0x739   : > { %5042 = vrot.lane.b32.xlu1 %v4961_v61, %s7534_s17  ;;  %6969 = vmatprep.mubr.msk.f32.mxu1 %vm7528_vm6, %v15487_v51 }
 0x73a   : > { %v4479_v6 = vpop.permute.xlu0 %4478  ;;  %v13270_v23 = vsel %vm1193_vm3, %v4420_v30, %v4422_v22  ;;  %v4964_v30 = vrot.slane %v13257_v52, 6 }
 0x73b   : > { %v5295_v37 = vsel %vm5270_vm0, %v5252_v62, %v4479_v6  ;;  %v4818_v21 = vpop.permute.xlu1 %4817  ;;  %v4758_v62 = vsel %vm1533_vm4, %v4755_v14, %v4757_v46 }
 0x73c   : > { %4291 = vrot.lane.b32.xlu0 %v4210_v17, %s7529_s10  ;;  %v5338_v50 = vsel %vm5313_vm9, %v5295_v37, %v4611_v0  ;;  %v4213_v37 = vrot.slane %v13219_v27, 3 }
 0x73d   : > { %4630 = vrot.lane.b32.xlu1 %v13230_v42, %s7532_s16  ;;  %v5381_v53 = vsel %vm5356_vm11, %v5338_v50, %v4818_v21 }
 0x73e   : > { %v4067_v10 = vpop.permute.xlu0 %4066 }
 0x73f   : > { %v5025_v47 = vpop.permute.xlu1 %5024  ;;  %v5211_v45 = vsel %vm2164_vm12, %v5169_v12, %v4067_v10  ;;  %v15578_v10 = vld [vmem:[#allocation213_spill] sm:$0xff] }
 0x740   : > { %4498 = vrot.lane.b32.xlu0 %v13153_v49, %s7531_s11  ;;  %v5424_v2 = vsel %vm5399_vm13, %v5381_v53, %v5025_v47  ;;  %v15575_v49 = vld [vmem:[#allocation99_spill] sm:$0xff] }
 0x741   : > { %v5531_v36 = vrot.slane %v5424_v2, 5  ;;  %4837 = vrot.lane.b32.xlu1 %v4756_v44, %s7533_s23  ;;  %v15580_v2 = vld [vmem:[#allocation219_spill] sm:$0xff]  ;;  %v4214_v44 = vsel %vm985_vm2, %v4211_v3, %v4213_v37 }
 0x742   : > { %v13239_v41 = vpop.f32.mrb[8].mxu1  ;;  %v4274_v1 = vpop.permute.xlu0 %4273 }
 0x743   : > { %v6917_v18 = vpop.f32.mrb[9].mxu1  ;;  %v4613_v33 = vpop.permute.xlu1 %4612  ;;  %v5532_v63 = vsel %vm1533_vm4, %v5529_v8, %v5531_v36  ;;  %v5253_v24 = vsel %vm2250_vm14, %v5211_v45, %v4274_v1 }
 0x744   : > { %4086 = vrot.lane.b32.xlu0 %v15575_v49, %s7524_s6  ;;  %6970 = vmatmul.mubr.msk.f32.gmra.mrb[44].mxu1 %vm5567_vm15, %v5532_v63  ;;  %v4965_v18 = vsel %vm1741_vm7, %v4962_v19, %v4964_v30  ;;  %v13295_v49 = vld [vmem:[#allocation2 + $0x148] sm:$0xff] }
 0x745   : > { %5044 = vrot.lane.b32.xlu1 %v4963_v9, %s7534_s17  ;;  %6972 = vmatprep.mubr.msk.f32.mxu1 %vm7528_vm6, %v15487_v51  ;;  %v4424_v29 = vrot.slane %v13295_v49, 4  ;;  %v4759_v12 = vrot.slane %v13295_v49, 5 }
 0x746   : > { %v4481_v13 = vpop.permute.xlu0 %4480 }
 0x747   : > { %v5296_v8 = vsel %vm5270_vm0, %v5253_v24, %v4481_v13  ;;  %v4820_v57 = vpop.permute.xlu1 %4819  ;;  %v13308_v32 = vsel %vm1193_vm3, %v4422_v22, %v4424_v29  ;;  %v4966_v22 = vrot.slane %v13295_v49, 6 }
 0x748   : > { %4293 = vrot.lane.b32.xlu0 %v4212_v56, %s7529_s10  ;;  %v13267_v34 = vpop.f32.mrb[10].mxu1  ;;  %v5339_v58 = vsel %vm5313_vm9, %v5296_v8, %v4613_v33  ;;  %v4760_v8 = vsel %vm1533_vm4, %v4757_v46, %v4759_v12 }
 0x749   : > { %v6920_v0 = vpop.f32.mrb[11].mxu1  ;;  %4632 = vrot.lane.b32.xlu1 %v13270_v23, %s7532_s16  ;;  %v5382_v6 = vsel %vm5356_vm11, %v5339_v58, %v4820_v57  ;;  %v4215_v57 = vrot.slane %v13257_v52, 3  ;;  %v15582_v58 = vld [vmem:[#allocation59_spill] sm:$0xff] }
 0x74a   : > { %v4069_v55 = vpop.permute.xlu0 %4068  ;;  %v15581_v0 = vld [vmem:[#allocation56_spill] sm:$0xff] }
 0x74b   : > { %v5027_v61 = vpop.permute.xlu1 %5026 }
 0x74c   : > { %4500 = vrot.lane.b32.xlu0 %v13192_v26, %s7531_s11  ;;  %v5425_v17 = vsel %vm5399_vm13, %v5382_v6, %v5027_v61  ;;  %v15579_v26 = vld [vmem:[#allocation212_spill] sm:$0xff]  ;;  %v5129_v6 = vsel %vm1992_vm5, %v12762_v25, %v15582_v58 }
 0x74d   : > { %v5533_v21 = vrot.slane %v5425_v17, 5  ;;  %4839 = vrot.lane.b32.xlu1 %v4758_v62, %s7533_s23  ;;  %v5128_v50 = vsel %vm1992_vm5, %v12704_v40, %v15579_v26 }
 0x74e   : > { %v4276_v5 = vpop.permute.xlu0 %4275  ;;  %v5170_v14 = vsel %vm2078_vm10, %v5128_v50, %v15580_v2  ;;  %v4967_v50 = vsel %vm1741_vm7, %v4964_v30, %v4966_v22 }
 0x74f   : > { %v4615_v53 = vpop.permute.xlu1 %4614  ;;  %v5534_v47 = vsel %vm1533_vm4, %v5531_v36, %v5533_v21  ;;  %v5212_v35 = vsel %vm2164_vm12, %v5170_v14, %v4069_v55 }
 0x750   : > { %4088 = vrot.lane.b32.xlu0 %v15578_v10, %s7524_s6  ;;  %6973 = vmatmul.mubr.msk.f32.gmra.mrb[46].mxu1 %vm5567_vm15, %v5534_v47  ;;  %v5254_v40 = vsel %vm2250_vm14, %v5212_v35, %v4276_v5  ;;  %v15583_v5 = vld [vmem:[#allocation62_spill] sm:$0xff] }
 0x751   : > { %5046 = vrot.lane.b32.xlu1 %v4965_v18, %s7534_s17  ;;  %6975 = vmatprep.mubr.msk.f32.mxu1 %vm7528_vm6, %v15487_v51  ;;  %v5171_v62 = vsel %vm2078_vm10, %v5129_v6, %v15583_v5 }
 0x752   : > { %v4483_v1 = vpop.permute.xlu0 %4482 }
 0x753   : > { %v5297_v36 = vsel %vm5270_vm0, %v5254_v40, %v4483_v1  ;;  %v4822_v19 = vpop.permute.xlu1 %4821 }
 0x754   : > { %4295 = vrot.lane.b32.xlu0 %v4214_v44, %s7529_s10  ;;  %v5340_v13 = vsel %vm5313_vm9, %v5297_v36, %v4615_v53  ;;  %v4216_v53 = vsel %vm985_vm2, %v4213_v37, %v4215_v57 }
 0x755   : > { %4634 = vrot.lane.b32.xlu1 %v13308_v32, %s7532_s16  ;;  %v5383_v9 = vsel %vm5356_vm11, %v5340_v13, %v4822_v19  ;;  %v15584_v13 = vld [vmem:[#allocation181_spill] sm:$0xff] }
 0x756   : > { %v13305_v33 = vpop.f32.mrb[12].mxu1  ;;  %v4071_v3 = vpop.permute.xlu0 %4070 }
 0x757   : > { %v6923_v63 = vpop.f32.mrb[13].mxu1  ;;  %v5029_v56 = vpop.permute.xlu1 %5028  ;;  %v5213_v25 = vsel %vm2164_vm12, %v5171_v62, %v4071_v3  ;;  %v4217_v3 = vrot.slane %v13295_v49, 3 }
 0x758   : > { %4502 = vrot.lane.b32.xlu0 %v13230_v42, %s7531_s11  ;;  %v5426_v45 = vsel %vm5399_vm13, %v5383_v9, %v5029_v56  ;;  %v13324_v42 = vld [vmem:[#allocation2 + $0x150] sm:$0xff] }
 0x759   : > { %v5535_v55 = vrot.slane %v5426_v45, 5  ;;  %4841 = vrot.lane.b32.xlu1 %v4760_v8, %s7533_s23  ;;  %v4426_v47 = vrot.slane %v13324_v42, 4  ;;  %v4761_v37 = vrot.slane %v13324_v42, 5  ;;  %v15585_v9 = vld [vmem:[#allocation156_spill] sm:$0xff] }
 0x75a   : > { %v4278_v24 = vpop.permute.xlu0 %4277  ;;  %v5130_v56 = vsel %vm1992_vm5, %v12803_v39, %v15585_v9  ;;  %v15586_v8 = vld [vmem:[#allocation164_spill] sm:$0xff] }
 0x75b   : > { %v4617_v61 = vpop.permute.xlu1 %4616  ;;  %v5536_v46 = vsel %vm1533_vm4, %v5533_v21, %v5535_v55  ;;  %v5255_v21 = vsel %vm2250_vm14, %v5213_v25, %v4278_v24  ;;  %v13346_v30 = vsel %vm1193_vm3, %v4424_v29, %v4426_v47  ;;  %v4762_v19 = vsel %vm1533_vm4, %v4759_v12, %v4761_v37 }
 0x75c   : > { %4090 = vrot.lane.b32.xlu0 %v15581_v0, %s7524_s6  ;;  %v13329_v17 = vpop.f32.mrb[14].mxu1  ;;  %6976 = vmatmul.mubr.msk.f32.gmra.mrb[48].mxu1 %vm5567_vm15, %v5536_v46  ;;  %v4968_v29 = vrot.slane %v13324_v42, 6  ;;  %v5172_v0 = vsel %vm2078_vm10, %v5130_v56, %v15586_v8  ;;  %v4218_v46 = vsel %vm985_vm2, %v4215_v57, %v4217_v3  ;;  %v15589_v56 = vld [vmem:[#allocation104_spill] sm:$0xff] }
 0x75d   : > { %v6926_v26 = vpop.f32.mrb[15].mxu1  ;;  %5048 = vrot.lane.b32.xlu1 %v4967_v50, %s7534_s17  ;;  %6978 = vmatprep.mubr.msk.f32.mxu1 %vm7528_vm6, %v15487_v51  ;;  %v4012_v50 = vrot.slane %v13324_v42, 2 }
 0x75e   : > { %v4485_v10 = vpop.permute.xlu0 %4484 }
 0x75f   : > { %v5298_v2 = vsel %vm5270_vm0, %v5255_v21, %v4485_v10  ;;  %v4824_v14 = vpop.permute.xlu1 %4823 }
 0x760   : > { %4297 = vrot.lane.b32.xlu0 %v4216_v53, %s7529_s10  ;;  %v5341_v18 = vsel %vm5313_vm9, %v5298_v2, %v4617_v61  ;;  %v4969_v61 = vsel %vm1741_vm7, %v4966_v22, %v4968_v29 }
 0x761   : > { %4636 = vrot.lane.b32.xlu1 %v13346_v30, %s7532_s16  ;;  %v5384_v44 = vsel %vm5356_vm11, %v5341_v18, %v4824_v14  ;;  %v15587_v18 = vld [vmem:[#allocation98_spill] sm:$0xff] }
 0x762   : > { %v4073_v1 = vpop.permute.xlu0 %4072 }
 0x763   : > { %v5031_v35 = vpop.permute.xlu1 %5030  ;;  %v5214_v39 = vsel %vm2164_vm12, %v5172_v0, %v4073_v1 }
 0x764   : > { %4504 = vrot.lane.b32.xlu0 %v13270_v23, %s7531_s11  ;;  %v5427_v40 = vsel %vm5399_vm13, %v5384_v44, %v5031_v35  ;;  %v13362_v23 = vld [vmem:[#allocation2 + $0x158] sm:$0xff]  ;;  %v4013_v44 = vsel %vm643_vm1, %v15587_v18, %v4012_v50  ;;  %v4219_v35 = vrot.slane %v13324_v42, 3 }
 0x765   : > { %v5537_v63 = vrot.slane %v5427_v40, 5  ;;  %4843 = vrot.lane.b32.xlu1 %v4762_v19, %s7533_s23  ;;  %v13376_v5 = vrot.slane %v13362_v23, 4  ;;  %v4763_v26 = vrot.slane %v13362_v23, 5  ;;  %v4970_v2 = vrot.slane %v13362_v23, 6 }
 0x766   : > { %v4280_v36 = vpop.permute.xlu0 %4279  ;;  %v4220_v0 = vsel %vm985_vm2, %v4217_v3, %v4219_v35 }
 0x767   : > { %v4619_v45 = vpop.permute.xlu1 %4618  ;;  %v5538_v12 = vsel %vm1533_vm4, %v5535_v55, %v5537_v63  ;;  %v5256_v55 = vsel %vm2250_vm14, %v5214_v39, %v4280_v36  ;;  %v13387_v57 = vsel %vm1193_vm3, %v4426_v47, %v13376_v5  ;;  %v4764_v1 = vsel %vm1533_vm4, %v4761_v37, %v4763_v26  ;;  %v15588_v36 = vld [vmem:[#allocation101_spill] sm:$0xff] }
 0x768   : > { %4092 = vrot.lane.b32.xlu0 %v15584_v13, %s7524_s6  ;;  %6979 = vmatmul.mubr.msk.f32.gmra.mrb[50].mxu1 %vm5567_vm15, %v5538_v12  ;;  %v5131_v19 = vsel %vm1992_vm5, %v12838_v7, %v15588_v36  ;;  %v4971_v8 = vsel %vm1741_vm7, %v4968_v29, %v4970_v2  ;;  %v4014_v39 = vrot.slane %v13362_v23, 2 }
 0x769   : > { %5050 = vrot.lane.b32.xlu1 %v4969_v61, %s7534_s17  ;;  %6981 = vmatprep.mubr.msk.f32.mxu1 %vm7528_vm6, %v15487_v51 }
 0x76a   : > { %v13367_v24 = vpop.f32.mrb[16].mxu1  ;;  %v4487_v58 = vpop.permute.xlu0 %4486 }
 0x76b   : > { %v6929_v6 = vpop.f32.mrb[17].mxu1  ;;  %v5299_v62 = vsel %vm5270_vm0, %v5256_v55, %v4487_v58  ;;  %v4826_v10 = vpop.permute.xlu1 %4825 }
 0x76c   : > { %4299 = vrot.lane.b32.xlu0 %v4218_v46, %s7529_s10  ;;  %v5342_v53 = vsel %vm5313_vm9, %v5299_v62, %v4619_v45  ;;  %v5173_v45 = vsel %vm2078_vm10, %v5131_v19, %v15589_v56 }
 0x76d   : > { %4638 = vrot.lane.b32.xlu1 %v13387_v57, %s7532_s16  ;;  %v5385_v25 = vsel %vm5356_vm11, %v5342_v53, %v4826_v10  ;;  %v13436_v53 = vld [vmem:[#allocation2 + $0x168] sm:$0xff] }
 0x76e   : > { %v4075_v22 = vpop.permute.xlu0 %4074 }
 0x76f   : > { %v5033_v21 = vpop.permute.xlu1 %5032  ;;  %v5215_v7 = vsel %vm2164_vm12, %v5173_v45, %v4075_v22 }
 0x770   : > { %4506 = vrot.lane.b32.xlu0 %v13308_v32, %s7531_s11  ;;  %v5428_v47 = vsel %vm5399_vm13, %v5385_v25, %v5033_v21  ;;  %v13405_v32 = vld [vmem:[#allocation2 + $0x160] sm:$0xff] }
 0x771   : > { %v5539_v40 = vrot.slane %v5428_v47, 5  ;;  %4845 = vrot.lane.b32.xlu1 %v4764_v1, %s7533_s23  ;;  %v4558_v58 = vrot.slane %v13405_v32, 4  ;;  %v4765_v3 = vrot.slane %v13405_v32, 5  ;;  %v4972_v22 = vrot.slane %v13405_v32, 6 }
 0x772   : > { %v4282_v14 = vpop.permute.xlu0 %4281  ;;  %v4221_v1 = vrot.slane %v13362_v23, 3 }
 0x773   : > { %v4621_v13 = vpop.permute.xlu1 %4620  ;;  %v5540_v37 = vsel %vm1533_vm4, %v5537_v63, %v5539_v40  ;;  %v5257_v63 = vsel %vm2250_vm14, %v5215_v7, %v4282_v14  ;;  %v4559_v29 = vsel %vm1193_vm3, %v13376_v5, %v4558_v58  ;;  %v4766_v47 = vsel %vm1533_vm4, %v4763_v26, %v4765_v3 }
 0x774   : > { %4094 = vrot.lane.b32.xlu0 %v4013_v44, %s7524_s6  ;;  %6982 = vmatmul.mubr.msk.f32.gmra.mrb[52].mxu1 %vm5567_vm15, %v5540_v37  ;;  %v4015_v14 = vsel %vm643_vm1, %v4012_v50, %v4014_v39  ;;  %v15590_v44 = vld [vmem:[#allocation184_spill] sm:$0xff]  ;;  %v4973_v56 = vsel %vm1741_vm7, %v4970_v2, %v4972_v22  ;;  %v4222_v45 = vsel %vm985_vm2, %v4219_v35, %v4221_v1 }
 0x775   : > { %5052 = vrot.lane.b32.xlu1 %v4971_v8, %s7534_s17  ;;  %6984 = vmatprep.mubr.msk.f32.mxu1 %vm7528_vm6, %v15487_v51  ;;  %v5132_v32 = vsel %vm1992_vm5, %v12874_v11, %v15590_v44 }
 0x776   : > { %v13410_v9 = vpop.f32.mrb[18].mxu1  ;;  %v4489_v42 = vpop.permute.xlu0 %4488 }
 0x777   : > { %v6932_v12 = vpop.f32.mrb[19].mxu1  ;;  %v5300_v6 = vsel %vm5270_vm0, %v5257_v63, %v4489_v42  ;;  %v4828_v61 = vpop.permute.xlu1 %4827 }
 0x778   : > { %4301 = vrot.lane.b32.xlu0 %v4220_v0, %s7529_s10  ;;  %v5343_v55 = vsel %vm5313_vm9, %v5300_v6, %v4621_v13  ;;  %v15591_v13 = vld [vmem:[#allocation187_spill] sm:$0xff]  ;;  %v4767_v12 = vrot.slane %v13436_v53, 5 }
 0x779   : > { %4640 = vrot.lane.b32.xlu1 %v4559_v29, %s7532_s16  ;;  %v5386_v62 = vsel %vm5356_vm11, %v5343_v55, %v4828_v61  ;;  %v5174_v50 = vsel %vm2078_vm10, %v5132_v32, %v15591_v13 }
 0x77a   : > { %v4077_v46 = vpop.permute.xlu0 %4076  ;;  %v4768_v7 = vsel %vm1533_vm4, %v4765_v3, %v4767_v12 }
 0x77b   : > { %v5035_v10 = vpop.permute.xlu1 %5034  ;;  %v5216_v42 = vsel %vm2164_vm12, %v5174_v50, %v4077_v46 }
 0x77c   : > { %4508 = vrot.lane.b32.xlu0 %v13346_v30, %s7531_s11  ;;  %v5429_v25 = vsel %vm5399_vm13, %v5386_v62, %v5035_v10  ;;  %v4560_v30 = vrot.slane %v13436_v53, 4 }
 0x77d   : > { %v5541_v18 = vrot.slane %v5429_v25, 5  ;;  %4847 = vrot.lane.b32.xlu1 %v4766_v47, %s7533_s23  ;;  %v15593_v25 = vld [vmem:[#allocation125_spill] sm:$0xff] }
 0x77e   : > { %v4284_v21 = vpop.permute.xlu0 %4283 }
 0x77f   : > { %v4623_v36 = vpop.permute.xlu1 %4622  ;;  %v5542_v26 = vsel %vm1533_vm4, %v5539_v40, %v5541_v18  ;;  %v5258_v11 = vsel %vm2250_vm14, %v5216_v42, %v4284_v21  ;;  %v4561_v40 = vsel %vm1193_vm3, %v4558_v58, %v4560_v30  ;;  %v4974_v58 = vrot.slane %v13436_v53, 6 }
 0x780   : > { %4096 = vrot.lane.b32.xlu0 %v4015_v14, %s7524_s6  ;;  %6985 = vmatmul.mubr.msk.f32.gmra.mrb[54].mxu1 %vm5567_vm15, %v5542_v26 }
 0x781   : > { %5054 = vrot.lane.b32.xlu1 %v4973_v56, %s7534_s17  ;;  %6987 = vmatprep.mubr.msk.f32.mxu1 %vm7528_vm6, %v15487_v51  ;;  %v4975_v55 = vsel %vm1741_vm7, %v4972_v22, %v4974_v58 }
 0x782   : > { %v13448_v19 = vpop.f32.mrb[20].mxu1  ;;  %v4491_v23 = vpop.permute.xlu0 %4490 }
 0x783   : > { %v6935_v37 = vpop.f32.mrb[21].mxu1  ;;  %v5301_v8 = vsel %vm5270_vm0, %v5258_v11, %v4491_v23  ;;  %v4830_v2 = vpop.permute.xlu1 %4829  ;;  %v15594_v23 = vld [vmem:[#allocation215_spill] sm:$0xff] }
 0x784   : > { %4303 = vrot.lane.b32.xlu0 %v4222_v45, %s7529_s10  ;;  %v5344_v35 = vsel %vm5313_vm9, %v5301_v8, %v4623_v36  ;;  %v5134_v37 = vsel %vm1992_vm5, %v12946_v60, %v15594_v23  ;;  %v15595_v45 = vld [vmem:[#allocation218_spill] sm:$0xff] }
 0x785   : > { %4642 = vrot.lane.b32.xlu1 %v4561_v40, %s7532_s16  ;;  %v5387_v63 = vsel %vm5356_vm11, %v5344_v35, %v4830_v2  ;;  %v5176_v42 = vsel %vm2078_vm10, %v5134_v37, %v15595_v45 }
 0x786   : > { %v4079_v0 = vpop.permute.xlu0 %4078 }
 0x787   : > { %v5037_v6 = vpop.permute.xlu1 %5036 }
 0x788   : > { %4510 = vrot.lane.b32.xlu0 %v13387_v57, %s7531_s11  ;;  %v5430_v61 = vsel %vm5399_vm13, %v5387_v63, %v5037_v6  ;;  %v15592_v57 = vld [vmem:[#allocation122_spill] sm:$0xff] }
 0x789   : > { %v5543_v29 = vrot.slane %v5430_v61, 5  ;;  %4849 = vrot.lane.b32.xlu1 %v4768_v7, %s7533_s23  ;;  %v5133_v62 = vsel %vm1992_vm5, %v12910_v54, %v15592_v57 }
 0x78a   : > { %v4286_v46 = vpop.permute.xlu0 %4285  ;;  %v5175_v21 = vsel %vm2078_vm10, %v5133_v62, %v15593_v25 }
 0x78b   : > { %v4625_v3 = vpop.permute.xlu1 %4624  ;;  %v5544_v53 = vsel %vm1533_vm4, %v5541_v18, %v5543_v29 }
 0x78c   : > { %4098 = vrot.lane.b32.xlu0 %v4014_v39, %s7524_s6  ;;  %6988 = vmatmul.mubr.msk.f32.gmra.mrb[56].mxu1 %vm5567_vm15, %v5544_v53  ;;  %v5217_v39 = vsel %vm2164_vm12, %v5175_v21, %v4079_v0  ;;  %s7436_s6 = scalar_lea.vmem %s14450_s24, 5248 }
 0x78d   : > { %5056 = vrot.lane.b32.xlu1 %v4975_v55, %s7534_s17  ;;  %v5259_v54 = vsel %vm2250_vm14, %v5217_v39, %v4286_v46  ;;  %6990 = vmatprep.mubr.msk.f32.mxu1 %vm7528_vm6, %v15487_v51  ;;  %v15596_v46 = vld [vmem:[#allocation58_spill] sm:$0xff]  ;;  %p7437_p3 = scmp.ne.s32.totalorder %s14450_s24, %s7436_s6 }
 0x78e   : > { %v13479_v10 = vpop.f32.mrb[22].mxu1  ;;  %v4493_v47 = vpop.permute.xlu0 %4492 }
 0x78f   : > { %v6938_v14 = vpop.f32.mrb[23].mxu1  ;;  %v5302_v22 = vsel %vm5270_vm0, %v5259_v54, %v4493_v47  ;;  %v4832_v18 = vpop.permute.xlu1 %4831  ;;  %p7438_p5 = pnand %p7437_p3, %p7735_p10 }
 0x790   : > { %4305 = vrot.lane.b32.xlu0 %v4221_v1, %s7529_s10  ;;  %v5345_v32 = vsel %vm5313_vm9, %v5302_v22, %v4625_v3  ;;  %v15597_v3 = vld [vmem:[#allocation65_spill] sm:$0xff]  ;;  %s7440_s10 = sshll.u32 %s7535_s28, 4  ;;  %s7441_s10 = int_to_ptr.vmem [resolvable:$false] %s7440_s10 }
 0x791   : > { %4644 = vrot.lane.b32.xlu1 %v4560_v30, %s7532_s16  ;;  %v5388_v36 = vsel %vm5356_vm11, %v5345_v32, %v4832_v18  ;;  %p7439_p7 = pneg %p7438_p5  ;;  %p7443_p12 = scmp.lt.s32.totalorder %s14450_s24, %s7441_s10 }
 0x792   : > { %v4081_v44 = vpop.permute.xlu0 %4080 }
 0x793   : > { %v5039_v26 = vpop.permute.xlu1 %5038 }
 0x794   : > { %4512 = vrot.lane.b32.xlu0 %v13376_v5, %s7531_s11  ;;  %v5431_v1 = vsel %vm5399_vm13, %v5388_v36, %v5039_v26  ;;  %s7442_s11 = scalar_lea.vmem %s7441_s10, 10496 }
 0x795   : > { %v5545_v50 = vrot.slane %v5431_v1, 5  ;;  %5058 = vrot.lane.b32.xlu1 %v4974_v58, %s7534_s17  ;;  %v15598_v1 = vld [vmem:[#allocation160_spill] sm:$0xff]  ;;  %p7444_p1 = scmp.lt.s32.totalorder %s7442_s11, %s7436_s6 }
 0x796   : > { %v4288_v13 = vpop.permute.xlu0 %4287 }
 0x797   : > { %v4627_v5 = vpop.permute.xlu1 %4626  ;;  %v5546_v30 = vsel %vm1533_vm4, %v5543_v29, %v5545_v50  ;;  %v5135_v29 = vsel %vm1992_vm5, %v12982_v31, %v15596_v46  ;;  %p7445_p2 = por %p7444_p1, %p7443_p12 }
 0x798   : > { %4851 = vrot.lane.b32.xlu0 %v4767_v12, %s7533_s23  ;;  %6991 = vmatmul.mubr.msk.f32.gmra.mrb[58].mxu1 %vm5567_vm15, %v5546_v30  ;;  %v5218_v12 = vsel %vm2164_vm12, %v5176_v42, %v4081_v44  ;;  %v5177_v53 = vsel %vm2078_vm10, %v5135_v29, %v15597_v3 }
 0x799   : > { %6993 = vmatprep.mubr.msk.f32.mxu1 %vm7528_vm6, %v15487_v51  ;;  %v5260_v8 = vsel %vm2250_vm14, %v5218_v12, %v4288_v13  ;;  %v5136_v13 = vsel %vm1992_vm5, %v13018_v15, %v15598_v1  ;;  %p7446_p13 = pnand %p7445_p2, %p7439_p7 }
 0x79a   : > { %v13503_v56 = vpop.f32.mrb[24].mxu1  ;;  %v4495_v11 = vpop.permute.xlu0 %4494 }
 0x79b   : > { %v6941_v40 = vpop.f32.mrb[25].mxu1  ;;  %v5303_v60 = vsel %vm5270_vm0, %v5260_v8, %v4495_v11  ;;  %v4834_v2 = vpop.permute.xlu1 %4833 }
 0x79c   : > { %v5346_v35 = vsel %vm5313_vm9, %v5303_v60, %v4627_v5  ;;  %v15599_v5 = vld [vmem:[#allocation238_spill] sm:$0xff] }
 0x79d   : > { %v5389_v7 = vsel %vm5356_vm11, %v5346_v35, %v4834_v2  ;;  %v5178_v30 = vsel %vm2078_vm10, %v5136_v13, %v15599_v5 }
 0x79e   : > { %v4083_v0 = vpop.permute.xlu0 %4082 }
 0x79f   : > { %v5041_v58 = vpop.permute.xlu1 %5040  ;;  %v5219_v47 = vsel %vm2164_vm12, %v5177_v53, %v4083_v0 }
 0x7a0   : > { %v5432_v63 = vsel %vm5399_vm13, %v5389_v7, %v5041_v58 }
 0x7a1   : > { %v5547_v61 = vrot.slane %v5432_v63, 5  ;;  %v15600_v63 = vld [vmem:[#allocation100_spill] sm:$0xff] }
 0x7a2   : > { %v4290_v6 = vpop.permute.xlu0 %4289 }
 0x7a3   : > { %v4629_v55 = vpop.permute.xlu1 %4628  ;;  %v5548_v62 = vsel %vm1533_vm4, %v5545_v50, %v5547_v61  ;;  %v5261_v14 = vsel %vm2250_vm14, %v5219_v47, %v4290_v6  ;;  %v5137_v6 = vsel %vm1992_vm5, %v13054_v59, %v15600_v63 }
 0x7a4   : > { %6994 = vmatmul.mubr.msk.f32.gmra.mrb[60].mxu1 %vm5567_vm15, %v5548_v62 }
 0x7a5   : > { %6996 = vmatprep.mubr.msk.f32.mxu1 %vm7528_vm6, %v15487_v51 }
 0x7a6   : > { %v13520_v57 = vpop.f32.mrb[26].mxu1  ;;  %v4497_v25 = vpop.permute.xlu0 %4496 }
 0x7a7   : > { %v6944_v21 = vpop.f32.mrb[27].mxu1  ;;  %v5304_v31 = vsel %vm5270_vm0, %v5261_v14, %v4497_v25  ;;  %v4836_v39 = vpop.permute.xlu1 %4835 }
 0x7a8   : > { %v5347_v22 = vsel %vm5313_vm9, %v5304_v31, %v4629_v55  ;;  %v15601_v55 = vld [vmem:[#allocation107_spill] sm:$0xff] }
 0x7a9   : > { %v5390_v18 = vsel %vm5356_vm11, %v5347_v22, %v4836_v39  ;;  %v5179_v62 = vsel %vm2078_vm10, %v5137_v6, %v15601_v55 }
 0x7aa   : > { %v4085_v54 = vpop.permute.xlu0 %4084 }
 0x7ab   : > { %v5043_v44 = vpop.permute.xlu1 %5042  ;;  %v5220_v11 = vsel %vm2164_vm12, %v5178_v30, %v4085_v54 }
 0x7ac   : > { %v5433_v32 = vsel %vm5399_vm13, %v5390_v18, %v5043_v44 }
 0x7ad   : > { %v5549_v26 = vrot.slane %v5433_v32, 5  ;;  %v15602_v32 = vld [vmem:[#allocation183_spill] sm:$0xff] }
 0x7ae   : > { %v4292_v36 = vpop.permute.xlu0 %4291 }
 0x7af   : > { %v4631_v50 = vpop.permute.xlu1 %4630  ;;  %v5550_v37 = vsel %vm1533_vm4, %v5547_v61, %v5549_v26  ;;  %v5262_v40 = vsel %vm2250_vm14, %v5220_v11, %v4292_v36  ;;  %v5138_v36 = vsel %vm1992_vm5, %v13088_v38, %v15602_v32 }
 0x7b0   : > { %6997 = vmatmul.mubr.msk.f32.gmra.mrb[62].mxu1 %vm5567_vm15, %v5550_v37 }
 0x7b1   : > { %6999 = vmatprep.mubr.msk.f32.mxu1 %vm7528_vm6, %v15487_v51 }
 0x7b2   : > { %v13537_v23 = vpop.f32.mrb[28].mxu1  ;;  %v4499_v45 = vpop.permute.xlu0 %4498 }
 0x7b3   : > { %v6947_v42 = vpop.f32.mrb[29].mxu1  ;;  %v5305_v15 = vsel %vm5270_vm0, %v5262_v40, %v4499_v45  ;;  %v4838_v12 = vpop.permute.xlu1 %4837 }
 0x7b4   : > { %v5348_v60 = vsel %vm5313_vm9, %v5305_v15, %v4631_v50  ;;  %v15603_v50 = vld [vmem:[#allocation190_spill] sm:$0xff] }
 0x7b5   : > { %v5391_v2 = vsel %vm5356_vm11, %v5348_v60, %v4838_v12  ;;  %v5180_v37 = vsel %vm2078_vm10, %v5138_v36, %v15603_v50 }
 0x7b6   : > { %v4087_v8 = vpop.permute.xlu0 %4086 }
 0x7b7   : > { %v5045_v0 = vpop.permute.xlu1 %5044  ;;  %v5221_v25 = vsel %vm2164_vm12, %v5179_v62, %v4087_v8 }
 0x7b8   : > { %v5434_v35 = vsel %vm5399_vm13, %v5391_v2, %v5045_v0 }
 0x7b9   : > { %v5551_v58 = vrot.slane %v5434_v35, 5  ;;  %v15604_v35 = vld [vmem:[#allocation121_spill] sm:$0xff] }
 0x7ba   : > { %v4294_v7 = vpop.permute.xlu0 %4293 }
 0x7bb   : > { %v4633_v61 = vpop.permute.xlu1 %4632  ;;  %v5552_v29 = vsel %vm1533_vm4, %v5549_v26, %v5551_v58  ;;  %v5263_v21 = vsel %vm2250_vm14, %v5221_v25, %v4294_v7  ;;  %v5139_v7 = vsel %vm1992_vm5, %v13135_v28, %v15604_v35 }
 0x7bc   : > { %7000 = vmatmul.mubr.msk.f32.gmra.mrb[64].mxu1 %vm5567_vm15, %v5552_v29 }
 0x7bd   : > { %7002 = vmatprep.mubr.msk.f32.mxu1 %vm7528_vm6, %v15487_v51 }
 0x7be   : > { %v13554_v46 = vpop.f32.mrb[30].mxu1  ;;  %v4501_v3 = vpop.permute.xlu0 %4500 }
 0x7bf   : > { %v6950_v53 = vpop.f32.mrb[31].mxu1  ;;  %v5306_v59 = vsel %vm5270_vm0, %v5263_v21, %v4501_v3  ;;  %v4840_v47 = vpop.permute.xlu1 %4839 }
 0x7c0   : > { %v5349_v31 = vsel %vm5313_vm9, %v5306_v59, %v4633_v61  ;;  %v15605_v61 = vld [vmem:[#allocation128_spill] sm:$0xff] }
 0x7c1   : > { %v5392_v39 = vsel %vm5356_vm11, %v5349_v31, %v4840_v47  ;;  %v5181_v29 = vsel %vm2078_vm10, %v5139_v7, %v15605_v61  ;;  %v15609_v7 = vld [vmem:[#allocation64_spill] sm:$0xff] }
 0x7c2   : > { %v4089_v14 = vpop.permute.xlu0 %4088 }
 0x7c3   : > { %v5047_v54 = vpop.permute.xlu1 %5046  ;;  %v5222_v45 = vsel %vm2164_vm12, %v5180_v37, %v4089_v14 }
 0x7c4   : > { %v5435_v22 = vsel %vm5399_vm13, %v5392_v39, %v5047_v54 }
 0x7c5   : > { %v5553_v44 = vrot.slane %v5435_v22, 5  ;;  %v15606_v22 = vld [vmem:[#allocation214_spill] sm:$0xff] }
 0x7c6   : > { %v4296_v18 = vpop.permute.xlu0 %4295 }
 0x7c7   : > { %v4635_v26 = vpop.permute.xlu1 %4634  ;;  %v5554_v13 = vsel %vm1533_vm4, %v5551_v58, %v5553_v44  ;;  %v5264_v42 = vsel %vm2250_vm14, %v5222_v45, %v4296_v18  ;;  %v5140_v18 = vsel %vm1992_vm5, %v13181_v20, %v15606_v22 }
 0x7c8   : > { %7003 = vmatmul.mubr.msk.f32.gmra.mrb[66].mxu1 %vm5567_vm15, %v5554_v13 }
 0x7c9   : > { %7005 = vmatprep.mubr.msk.f32.mxu1 %vm7528_vm6, %v15487_v51 }
 0x7ca   : > { %v13571_v1 = vpop.f32.mrb[32].mxu1  ;;  %v4503_v5 = vpop.permute.xlu0 %4502 }
 0x7cb   : > { %v6953_v30 = vpop.f32.mrb[33].mxu1  ;;  %v5307_v38 = vsel %vm5270_vm0, %v5264_v42, %v4503_v5  ;;  %v4842_v11 = vpop.permute.xlu1 %4841 }
 0x7cc   : > { %v5350_v15 = vsel %vm5313_vm9, %v5307_v38, %v4635_v26  ;;  %v15607_v26 = vld [vmem:[#allocation221_spill] sm:$0xff] }
 0x7cd   : > { %v5393_v12 = vsel %vm5356_vm11, %v5350_v15, %v4842_v11  ;;  %v5182_v13 = vsel %vm2078_vm10, %v5140_v18, %v15607_v26  ;;  %v15612_v18 = vld [vmem:[#allocation236_spill] sm:$0xff] }
 0x7ce   : > { %v4091_v40 = vpop.permute.xlu0 %4090 }
 0x7cf   : > { %v5049_v8 = vpop.permute.xlu1 %5048  ;;  %v5223_v3 = vsel %vm2164_vm12, %v5181_v29, %v4091_v40 }
 0x7d0   : > { %v5436_v60 = vsel %vm5399_vm13, %v5393_v12, %v5049_v8 }
 0x7d1   : > { %v5555_v0 = vrot.slane %v5436_v60, 5  ;;  %v15608_v60 = vld [vmem:[#allocation61_spill] sm:$0xff] }
 0x7d2   : > { %v4298_v2 = vpop.permute.xlu0 %4297 }
 0x7d3   : > { %v4637_v58 = vpop.permute.xlu1 %4636  ;;  %v5556_v6 = vsel %vm1533_vm4, %v5553_v44, %v5555_v0  ;;  %v5265_v53 = vsel %vm2250_vm14, %v5223_v3, %v4298_v2  ;;  %v5141_v2 = vsel %vm1992_vm5, %v13219_v27, %v15608_v60 }
 0x7d4   : > { %7006 = vmatmul.mubr.msk.f32.gmra.mrb[68].mxu1 %vm5567_vm15, %v5556_v6 }
 0x7d5   : > { %7008 = vmatprep.mubr.msk.f32.mxu1 %vm7528_vm6, %v15487_v51 }
 0x7d6   : > { %v13588_v63 = vpop.f32.mrb[34].mxu1  ;;  %v4505_v55 = vpop.permute.xlu0 %4504 }
 0x7d7   : > { %v6956_v62 = vpop.f32.mrb[35].mxu1  ;;  %v5308_v28 = vsel %vm5270_vm0, %v5265_v53, %v4505_v55  ;;  %v4844_v25 = vpop.permute.xlu1 %4843 }
 0x7d8   : > { %v5351_v59 = vsel %vm5313_vm9, %v5308_v28, %v4637_v58  ;;  %v5183_v58 = vsel %vm2078_vm10, %v5141_v2, %v15609_v7 }
 0x7d9   : > { %v5394_v47 = vsel %vm5356_vm11, %v5351_v59, %v4844_v25  ;;  %v15610_v25 = vld [vmem:[#allocation39_spill] sm:$0xff] }
 0x7da   : > { %v4093_v21 = vpop.permute.xlu0 %4092 }
 0x7db   : > { %v5051_v14 = vpop.permute.xlu1 %5050  ;;  %v5224_v5 = vsel %vm2164_vm12, %v5182_v13, %v4093_v21  ;;  %v5921_v21 = vmul.f32 %v13096_v4, %v15610_v25 }
 0x7dc   : > { %v5437_v31 = vsel %vm5399_vm13, %v5394_v47, %v5051_v14 }
 0x7dd   : > { %v5557_v54 = vrot.slane %v5437_v31, 5 }
 0x7de   : > { %v4300_v39 = vpop.permute.xlu0 %4299 }
 0x7df   : > { %v4639_v44 = vpop.permute.xlu1 %4638  ;;  %v5558_v36 = vsel %vm1533_vm4, %v5555_v0, %v5557_v54  ;;  %v5266_v30 = vsel %vm2250_vm14, %v5224_v5, %v4300_v39  ;;  %v15611_v39 = vld [vmem:[#allocation40_spill] sm:$0xff] }
 0x7e0   : > { %7009 = vmatmul.mubr.msk.f32.gmra.mrb[70].mxu1 %vm5567_vm15, %v5558_v36  ;;  %v6049_v36 = vmul.f32 %v5921_v21, %v13096_v4 }
 0x7e1   : > { %7011 = vmatprep.mubr.msk.f32.mxu1 %vm7528_vm6, %v15487_v51 }
 0x7e2   : > { %v13605_v32 = vpop.f32.mrb[36].mxu1  ;;  %v4507_v50 = vpop.permute.xlu0 %4506 }
 0x7e3   : > { %v6959_v37 = vpop.f32.mrb[37].mxu1  ;;  %v5309_v20 = vsel %vm5270_vm0, %v5266_v30, %v4507_v50  ;;  %v4846_v45 = vpop.permute.xlu1 %4845  ;;  %v15614_v30 = vld [vmem:[#allocation80_spill] sm:$0xff] }
 0x7e4   : > { %v5352_v38 = vsel %vm5313_vm9, %v5309_v20, %v4639_v44  ;;  %v5142_v44 = vsel %vm1992_vm5, %v13257_v52, %v15612_v18  ;;  %v15613_v37 = vld [vmem:[#allocation167_spill] sm:$0xff]  ;;  %v5923_v20 = vmul.f32 %v13173_v16, %v15614_v30 }
 0x7e5   : > { %v5395_v11 = vsel %vm5356_vm11, %v5352_v38, %v4846_v45  ;;  %v5184_v5 = vsel %vm2078_vm10, %v5142_v44, %v15613_v37  ;;  %v15615_v45 = vld [vmem:[#allocation38_spill] sm:$0xff]  ;;  %v15619_v44 = vld [vmem:[#allocation83_spill] sm:$0xff] }
 0x7e6   : > { %v4095_v42 = vpop.permute.xlu0 %4094 }
 0x7e7   : > { %v5053_v40 = vpop.permute.xlu1 %5052  ;;  %v5225_v61 = vsel %vm2164_vm12, %v5183_v58, %v4095_v42  ;;  %v6090_v58 = vsel %vm1992_vm5, %v6049_v36, 0.0  ;;  %v5926_v36 = vmul.f32 %v13267_v34, %v15619_v44 }
 0x7e8   : > { %v5438_v15 = vsel %vm5399_vm13, %v5395_v11, %v5053_v40  ;;  %v5962_v11 = vsel %vm1992_vm5, %v5921_v21, 0.0 }
 0x7e9   : > { %v5559_v8 = vrot.slane %v5438_v15, 5 }
 0x7ea   : > { %v4302_v12 = vpop.permute.xlu0 %4301 }
 0x7eb   : > { %v4641_v0 = vpop.permute.xlu1 %4640  ;;  %v5560_v35 = vsel %vm1533_vm4, %v5557_v54, %v5559_v8  ;;  %v5267_v29 = vsel %vm2250_vm14, %v5225_v61, %v4302_v12  ;;  %v5922_v54 = vmul.f32 %v13130_v48, %v15611_v39  ;;  %v15616_v12 = vld [vmem:[#allocation81_spill] sm:$0xff] }
 0x7ec   : > { %7012 = vmatmul.mubr.msk.f32.gmra.mrb[72].mxu1 %vm5567_vm15, %v5560_v35  ;;  %v15617_v35 = vld [vmem:[#allocation103_spill] sm:$0xff] }
 0x7ed   : > { %7014 = vmatprep.mubr.msk.f32.mxu1 %vm7528_vm6, %v15487_v51  ;;  %v6050_v40 = vmul.f32 %v5922_v54, %v13130_v48  ;;  %v5143_v7 = vsel %vm1992_vm5, %v13295_v49, %v15617_v35  ;;  %v5966_v49 = vsel %vm1992_vm5, %v5923_v20, 0.0 }
 0x7ee   : > { %v4509_v6 = vpop.permute.xlu0 %4508 }
 0x7ef   : > { %v5310_v55 = vsel %vm5270_vm0, %v5267_v29, %v4509_v6  ;;  %v4848_v62 = vpop.permute.xlu1 %4847  ;;  %v13631_v27 = vpop.f32.mrb[38].mxu1 }
 0x7f0   : > { %v6962_v53 = vpop.f32.mrb[39].mxu1  ;;  %v5353_v28 = vsel %vm5313_vm9, %v5310_v55, %v4641_v0  ;;  %v5964_v55 = vsel %vm1992_vm5, %v5922_v54, 0.0  ;;  %v15620_v54 = vld [vmem:[#allocation19_spill] sm:$0xff] }
 0x7f1   : > { %v5396_v59 = vsel %vm5356_vm11, %v5353_v28, %v4848_v62  ;;  %v6051_v62 = vmul.f32 %v5923_v20, %v13173_v16 }
 0x7f2   : > { %v4097_v3 = vpop.permute.xlu0 %4096 }
 0x7f3   : > { %v5055_v47 = vpop.permute.xlu1 %5054  ;;  %v5226_v15 = vsel %vm2164_vm12, %v5184_v5, %v4097_v3  ;;  %v15618_v3 = vld [vmem:[#allocation82_spill] sm:$0xff] }
 0x7f4   : > { %v13638_v14 = vsel %vm5399_vm13, %v5396_v59, %v5055_v47  ;;  %v5925_v53 = vmul.f32 %v13239_v41, %v15618_v3  ;;  %v6092_v59 = vsel %vm1992_vm5, %v6050_v40, 0.0  ;;  %v15621_v5 = vld [vmem:[#allocation106_spill] sm:$0xff] }
 0x7f5   : > { %v5561_v22 = vrot.slane %v13638_v14, 5 }
 0x7f6   : > { %v4304_v31 = vpop.permute.xlu0 %4303 }
 0x7f7   : > { %v4643_v26 = vpop.permute.xlu1 %4642  ;;  %v13647_v13 = vpop.f32.mrb[82].mxu0  ;;  %v5562_v50 = vsel %vm1533_vm4, %v5559_v8, %v5561_v22  ;;  %v5924_v8 = vmul.f32 %v13201_v43, %v15616_v12  ;;  %v5268_v60 = vsel %vm2250_vm14, %v5226_v15, %v4304_v31  ;;  %v6094_v15 = vsel %vm1992_vm5, %v6051_v62, 0.0 }
 0x7f8   : > { %v5920_v42 = vmul.f32 %v13647_v13, %v15615_v45  ;;  %v6902_v52 = vpop.f32.mrb[83].mxu0  ;;  %7015 = vmatmul.mubr.msk.f32.gmra.mrb[74].mxu1 %vm5567_vm15, %v5562_v50  ;;  %v5927_v50 = vmul.f32 %v13305_v33, %v15620_v54  ;;  %v6054_v62 = vmul.f32 %v5926_v36, %v13267_v34 }
 0x7f9   : > { %7017 = vmatprep.mubr.msk.f32.mxu1 %vm7528_vm6, %v15487_v51  ;;  %v6052_v18 = vmul.f32 %v5924_v8, %v13201_v43 }
 0x7fa   : > { %v4511_v38 = vpop.permute.xlu0 %4510  ;;  %v5961_v2 = vsel %vm1992_vm5, %v5920_v42, 0.0  ;;  %v6048_v0 = vmul.f32 %v5920_v42, %v13647_v13  ;;  %v5185_v42 = vsel %vm2078_vm10, %v5143_v7, %v15621_v5 }
 0x7fb   : > { %v5963_v6 = vadd.f32 %v5962_v11, %v5961_v2  ;;  %v5311_v61 = vsel %vm5270_vm0, %v5268_v60, %v4511_v38  ;;  %v4850_v29 = vpop.permute.xlu1 %4849  ;;  %v5968_v60 = vsel %vm1992_vm5, %v5924_v8, 0.0  ;;  %v6053_v2 = vmul.f32 %v5925_v53, %v13239_v41 }
 0x7fc   : > { %v6089_v28 = vsel %vm1992_vm5, %v6048_v0, 0.0  ;;  %v5354_v37 = vsel %vm5313_vm9, %v5311_v61, %v4643_v26  ;;  %v6055_v8 = vmul.f32 %v5927_v50, %v13305_v33 }
 0x7fd   : > { %v5965_v47 = vadd.f32 %v5964_v55, %v5963_v6  ;;  %v6091_v31 = vadd.f32 %v6090_v58, %v6089_v28  ;;  %v5397_v11 = vsel %vm5356_vm11, %v5354_v37, %v4850_v29  ;;  %v15622_v58 = vld [vmem:[#allocation20_spill] sm:$0xff]  ;;  %v6096_v29 = vsel %vm1992_vm5, %v6052_v18, 0.0  ;;  %v15623_v18 = vld [vmem:[#allocation21_spill] sm:$0xff] }
 0x7fe   : > { %v4099_v21 = vpop.permute.xlu0 %4098  ;;  %v5928_v7 = vmul.f32 %v13329_v17, %v15622_v58  ;;  %v5970_v28 = vsel %vm1992_vm5, %v5925_v53, 0.0  ;;  %v6098_v5 = vsel %vm1992_vm5, %v6053_v2, 0.0  ;;  %v5929_v53 = vmul.f32 %v13367_v24, %v15623_v18 }
 0x7ff   : > { %v5967_v38 = vadd.f32 %v5966_v49, %v5965_v47  ;;  %v6093_v52 = vadd.f32 %v6092_v59, %v6091_v31  ;;  %v5057_v20 = vpop.permute.xlu1 %5056  ;;  %v13690_v40 = vpop.f32.mrb[40].mxu1  ;;  %v5227_v47 = vsel %vm2164_vm12, %v5185_v42, %v4099_v21  ;;  %v6102_v2 = vsel %vm1992_vm5, %v6055_v8, 0.0 }
 0x800   : > { %v5440_v0 = vsel %vm5399_vm13, %v5397_v11, %v5057_v20  ;;  %v6965_v26 = vpop.f32.mrb[41].mxu1  ;;  %v6056_v20 = vmul.f32 %v5928_v7, %v13329_v17  ;;  %v5978_v8 = vsel %vm1992_vm5, %v5929_v53, 0.0 }
 0x801   : > { %v5969_v6 = vadd.f32 %v5968_v60, %v5967_v38  ;;  %v6095_v61 = vadd.f32 %v6094_v15, %v6093_v52  ;;  %v5563_v55 = vrot.slane %v5440_v0, 5  ;;  %v5972_v38 = vsel %vm1992_vm5, %v5926_v36, 0.0  ;;  %v15624_v15 = vld [vmem:[#allocation22_spill] sm:$0xff] }
 0x802   : > { %v4306_v35 = vpop.permute.xlu0 %4305  ;;  %v5974_v36 = vsel %vm1992_vm5, %v5927_v50, 0.0  ;;  %v5930_v60 = vmul.f32 %v13410_v9, %v15624_v15  ;;  %v6104_v50 = vsel %vm1992_vm5, %v6056_v20, 0.0 }
 0x803   : > { %v5971_v59 = vadd.f32 %v5970_v28, %v5969_v6  ;;  %v6097_v49 = vadd.f32 %v6096_v29, %v6095_v61  ;;  %v4645_v31 = vpop.permute.xlu1 %4644  ;;  %v5564_v37 = vsel %vm1533_vm4, %v5561_v22, %v5563_v55  ;;  %v5269_v52 = vsel %vm2250_vm14, %v5227_v47, %v4306_v35  ;;  %v15625_v29 = vld [vmem:[#allocation146_spill] sm:$0xff] }
 0x804   : > { %7018 = vmatmul.mubr.msk.f32.gmra.mrb[76].mxu1 %vm5567_vm15, %v5564_v37  ;;  %v6100_v22 = vsel %vm1992_vm5, %v6054_v62, 0.0  ;;  %v5976_v6 = vsel %vm1992_vm5, %v5928_v7, 0.0  ;;  %v6057_v61 = vmul.f32 %v5929_v53, %v13367_v24  ;;  %v5931_v28 = vmul.f32 %v13448_v19, %v15625_v29 }
 0x805   : > { %v5973_v21 = vadd.f32 %v5972_v38, %v5971_v59  ;;  %v6099_v42 = vadd.f32 %v6098_v5, %v6097_v49  ;;  %7020 = vmatprep.mubr.msk.f32.mxu1 %vm7528_vm6, %v15487_v51  ;;  %v6058_v37 = vmul.f32 %v5930_v60, %v13410_v9  ;;  %v15626_v5 = vld [vmem:[#allocation145_spill] sm:$0xff] }
 0x806   : > { %v4513_v11 = vpop.permute.xlu0 %4512  ;;  %v5932_v7 = vmul.f32 %v13479_v10, %v15626_v5  ;;  %v6106_v20 = vsel %vm1992_vm5, %v6057_v61, 0.0 }
 0x807   : > { %v5312_v14 = vsel %vm5270_vm0, %v5269_v52, %v4513_v11  ;;  %v5975_v0 = vadd.f32 %v5974_v36, %v5973_v21  ;;  %v6101_v35 = vadd.f32 %v6100_v22, %v6099_v42  ;;  %v5059_v26 = vpop.permute.xlu1 %5058  ;;  %v5980_v42 = vsel %vm1992_vm5, %v5930_v60, 0.0  ;;  %v15627_v22 = vld [vmem:[#allocation149_spill] sm:$0xff] }
 0x808   : > { %v5355_v51 = vsel %vm5313_vm9, %v5312_v14, %v4645_v31  ;;  %v6059_v14 = vmul.f32 %v5931_v28, %v13448_v19  ;;  %v5933_v53 = vmul.f32 %v13503_v56, %v15627_v22 }
 0x809   : > { %v5977_v59 = vadd.f32 %v5976_v6, %v5975_v0  ;;  %v6103_v49 = vadd.f32 %v6102_v2, %v6101_v35  ;;  %v5982_v6 = vsel %vm1992_vm5, %v5931_v28, 0.0 }
 0x80a   : > { %v4852_v62 = vpop.permute.xlu0 %4851 }
 0x80b   : > { %v5398_v47 = vsel %vm5356_vm11, %v5355_v51, %v4852_v62  ;;  %v5979_v52 = vadd.f32 %v5978_v8, %v5977_v59  ;;  %v6105_v11 = vadd.f32 %v6104_v50, %v6103_v49  ;;  %v13733_v31 = vpop.f32.mrb[42].mxu1  ;;  %v6060_v51 = vmul.f32 %v5932_v7, %v13479_v10  ;;  %v15628_v62 = vld [vmem:[#allocation150_spill] sm:$0xff] }
 0x80c   : > { %v5441_v38 = vsel %vm5399_vm13, %v5398_v47, %v5059_v26  ;;  %v6968_v36 = vpop.f32.mrb[43].mxu1  ;;  %v6108_v26 = vsel %vm1992_vm5, %v6058_v37, 0.0  ;;  %v5934_v61 = vmul.f32 %v13520_v57, %v15628_v62  ;;  %v6110_v59 = vsel %vm1992_vm5, %v6059_v14, 0.0 }
 0x80d   : > { %v5565_v21 = vrot.slane %v5441_v38, 5  ;;  %v5981_v2 = vadd.f32 %v5980_v42, %v5979_v52  ;;  %v6107_v0 = vadd.f32 %v6106_v20, %v6105_v11  ;;  %v5984_v49 = vsel %vm1992_vm5, %v5932_v7, 0.0 }
 0x80e   : > { %v6061_v47 = vmul.f32 %v5933_v53, %v13503_v56  ;;  %v6112_v38 = vsel %vm1992_vm5, %v6060_v51, 0.0  ;;  %v5986_v52 = vsel %vm1992_vm5, %v5933_v53, 0.0  ;;  %v6062_v11 = vmul.f32 %v5934_v61, %v13520_v57 }
 0x80f   : > { %v5566_v35 = vsel %vm1533_vm4, %v5563_v55, %v5565_v21  ;;  %v6109_v60 = vadd.f32 %v6108_v26, %v6107_v0  ;;  %v5983_v50 = vadd.f32 %v5982_v6, %v5981_v2  ;;  %v15629_v55 = vld [vmem:[#allocation43_spill] sm:$0xff]  ;;  %v15630_v21 = vld [vmem:[#allocation85_spill] sm:$0xff]  ;;  %v5988_v36 = vsel %vm1992_vm5, %v5934_v61, 0.0  ;;  %v15631_v0 = vld [vmem:[#allocation24_spill] sm:$0xff] }
 0x810   : > { %7021 = vmatmul.mubr.msk.f32.gmra.mrb[78].mxu1 %vm5567_vm15, %v5566_v35  ;;  %v5935_v8 = vmul.f32 %v13537_v23, %v15629_v55  ;;  %v5936_v20 = vmul.f32 %v13554_v46, %v15630_v21  ;;  %v6114_v7 = vsel %vm1992_vm5, %v6061_v47, 0.0  ;;  %v5937_v35 = vmul.f32 %v13571_v1, %v15631_v0 }
 0x811   : > { %v5985_v37 = vadd.f32 %v5984_v49, %v5983_v50  ;;  %v6111_v28 = vadd.f32 %v6110_v59, %v6109_v60  ;;  %v6116_v53 = vsel %vm1992_vm5, %v6062_v11, 0.0  ;;  %v15632_v50 = vld [vmem:[#allocation42_spill] sm:$0xff] }
 0x812   : > { %v6063_v2 = vmul.f32 %v5935_v8, %v13537_v23  ;;  %v5990_v51 = vsel %vm1992_vm5, %v5935_v8, 0.0  ;;  %v6064_v60 = vmul.f32 %v5936_v20, %v13554_v46  ;;  %v5938_v59 = vmul.f32 %v13588_v63, %v15632_v50 }
 0x813   : > { %v5987_v42 = vadd.f32 %v5986_v52, %v5985_v37  ;;  %v6113_v14 = vadd.f32 %v6112_v38, %v6111_v28  ;;  %v5992_v28 = vsel %vm1992_vm5, %v5936_v20, 0.0  ;;  %v6065_v38 = vmul.f32 %v5937_v35, %v13571_v1  ;;  %v15633_v52 = vld [vmem:[#allocation154_spill] sm:$0xff] }
 0x814   : > { %v6118_v61 = vsel %vm1992_vm5, %v6063_v2, 0.0  ;;  %v5939_v11 = vmul.f32 %v13605_v32, %v15633_v52  ;;  %v5996_v50 = vsel %vm1992_vm5, %v5938_v59, 0.0 }
 0x815   : > { %v5989_v26 = vadd.f32 %v5988_v36, %v5987_v42  ;;  %v6115_v6 = vadd.f32 %v6114_v7, %v6113_v14  ;;  %v6120_v7 = vsel %vm1992_vm5, %v6064_v60, 0.0  ;;  %v5994_v36 = vsel %vm1992_vm5, %v5937_v35, 0.0 }
 0x816   : > { %v6122_v20 = vsel %vm1992_vm5, %v6065_v38, 0.0  ;;  %v6067_v52 = vmul.f32 %v5939_v11, %v13605_v32 }
 0x817   : > { %v5991_v49 = vadd.f32 %v5990_v51, %v5989_v26  ;;  %v6117_v47 = vadd.f32 %v6116_v53, %v6115_v6  ;;  %v13767_v37 = vpop.f32.mrb[44].mxu1  ;;  %v6066_v26 = vmul.f32 %v5938_v59, %v13588_v63  ;;  %v15634_v6 = vld [vmem:[#allocation84_spill] sm:$0xff] }
 0x818   : > { %v6971_v42 = vpop.f32.mrb[45].mxu1  ;;  %v5940_v53 = vmul.f32 %v13631_v27, %v15634_v6  ;;  %v15636_v6 = vld [vmem:[#allocation45_spill] sm:$0xff]  ;;  %v6126_v59 = vsel %vm1992_vm5, %v6067_v52, 0.0 }
 0x819   : > { %v5993_v8 = vadd.f32 %v5992_v28, %v5991_v49  ;;  %v6119_v14 = vadd.f32 %v6118_v61, %v6117_v47  ;;  %v15635_v42 = vld [vmem:[#allocation153_spill] sm:$0xff]  ;;  %v6124_v35 = vsel %vm1992_vm5, %v6066_v26, 0.0  ;;  %v5998_v61 = vsel %vm1992_vm5, %v5939_v11, 0.0 }
 0x81a   : > { %v5941_v49 = vmul.f32 %v13690_v40, %v15635_v42  ;;  %v6068_v28 = vmul.f32 %v5940_v53, %v13631_v27  ;;  %v15637_v42 = vld [vmem:[#allocation87_spill] sm:$0xff] }
 0x81b   : > { %v5995_v2 = vadd.f32 %v5994_v36, %v5993_v8  ;;  %v6121_v51 = vadd.f32 %v6120_v7, %v6119_v14  ;;  %v5942_v8 = vmul.f32 %v13733_v31, %v15636_v6  ;;  %v6000_v7 = vsel %vm1992_vm5, %v5940_v53, 0.0 }
 0x81c   : > { %v6069_v36 = vmul.f32 %v5941_v49, %v13690_v40  ;;  %v6128_v11 = vsel %vm1992_vm5, %v6068_v28, 0.0 }
 0x81d   : > { %v5997_v47 = vadd.f32 %v5996_v50, %v5995_v2  ;;  %v6123_v60 = vadd.f32 %v6122_v20, %v6121_v51  ;;  %v5943_v50 = vmul.f32 %v13767_v37, %v15637_v42  ;;  %v6002_v51 = vsel %vm1992_vm5, %v5941_v49, 0.0 }
 0x81e   : > { %v6070_v20 = vmul.f32 %v5942_v8, %v13733_v31  ;;  %v6130_v52 = vsel %vm1992_vm5, %v6069_v36, 0.0  ;;  %v6004_v53 = vsel %vm1992_vm5, %v5942_v8, 0.0 }
 0x81f   : > { %v5999_v14 = vadd.f32 %v5998_v61, %v5997_v47  ;;  %v6125_v38 = vadd.f32 %v6124_v35, %v6123_v60  ;;  %v6071_v35 = vmul.f32 %v5943_v50, %v13767_v37  ;;  %v15638_v61 = vld [vmem:[#allocation26_spill] sm:$0xff] }
 0x820   : > { %v6132_v49 = vsel %vm1992_vm5, %v6070_v20, 0.0 }
 0x821   : > { %v6001_v2 = vadd.f32 %v6000_v7, %v5999_v14  ;;  %v6127_v26 = vadd.f32 %v6126_v59, %v6125_v38  ;;  %v6006_v7 = vsel %vm1992_vm5, %v5943_v50, 0.0  ;;  %v6134_v36 = vsel %vm1992_vm5, %v6071_v35, 0.0 }
 0x823   : > { %v6003_v6 = vadd.f32 %v6002_v51, %v6001_v2  ;;  %v6129_v47 = vadd.f32 %v6128_v11, %v6127_v26  ;;  %v13797_v60 = vpop.f32.mrb[46].mxu1 }
 0x824   : > { %v5944_v14 = vmul.f32 %v13797_v60, %v15638_v61  ;;  %v6974_v38 = vpop.f32.mrb[47].mxu1 }
 0x825   : > { %v6131_v59 = vadd.f32 %v6130_v52, %v6129_v47  ;;  %v6005_v28 = vadd.f32 %v6004_v53, %v6003_v6  ;;  %v15639_v6 = vld [vmem:[#allocation158_spill] sm:$0xff] }
 0x826   : > { %v6072_v2 = vmul.f32 %v5944_v14, %v13797_v60  ;;  %v6008_v8 = vsel %vm1992_vm5, %v5944_v14, 0.0 }
 0x827   : > { %v6133_v26 = vadd.f32 %v6132_v49, %v6131_v59  ;;  %v6007_v11 = vadd.f32 %v6006_v7, %v6005_v28  ;;  %v15640_v28 = vld [vmem:[#allocation44_spill] sm:$0xff] }
 0x828   : > { %v6136_v0 = vsel %vm1992_vm5, %v6072_v2, 0.0 }
 0x829   : > { %v6135_v51 = vadd.f32 %v6134_v36, %v6133_v26  ;;  %v6009_v42 = vadd.f32 %v6008_v8, %v6007_v11 }
 0x82b   : > { %v6137_v61 = vadd.f32 %v6136_v0, %v6135_v51 }
 0x82f   : > { %v13810_v38 = vpop.f32.mrb[48].mxu1 }
 0x830   : > { %v5945_v20 = vmul.f32 %v13810_v38, %v15639_v6  ;;  %v6977_v47 = vpop.f32.mrb[49].mxu1 }
 0x832   : > { %v6010_v50 = vsel %vm1992_vm5, %v5945_v20, 0.0  ;;  %v6073_v52 = vmul.f32 %v5945_v20, %v13810_v38 }
 0x833   : > { %v6011_v53 = vadd.f32 %v6010_v50, %v6009_v42  ;;  %v15641_v42 = vld [vmem:[#allocation86_spill] sm:$0xff] }
 0x834   : > { %v6138_v35 = vsel %vm1992_vm5, %v6073_v52, 0.0 }
 0x835   : > { %v6139_v59 = vadd.f32 %v6138_v35, %v6137_v61 }
 0x83b   : > { %v13817_v14 = vpop.f32.mrb[50].mxu1 }
 0x83c   : > { %v5946_v49 = vmul.f32 %v13817_v14, %v15640_v28  ;;  %v6980_v0 = vpop.f32.mrb[51].mxu1 }
 0x83e   : > { %v6012_v7 = vsel %vm1992_vm5, %v5946_v49, 0.0  ;;  %v6074_v2 = vmul.f32 %v5946_v49, %v13817_v14 }
 0x83f   : > { %v6013_v26 = vadd.f32 %v6012_v7, %v6011_v53  ;;  %v15642_v53 = vld [vmem:[#allocation25_spill] sm:$0xff] }
 0x840   : > { %v6140_v11 = vsel %vm1992_vm5, %v6074_v2, 0.0 }
 0x841   : > { %v6141_v36 = vadd.f32 %v6140_v11, %v6139_v59 }
 0x847   : > { %v13824_v8 = vpop.f32.mrb[52].mxu1 }
 0x848   : > { %v5947_v51 = vmul.f32 %v13824_v8, %v15641_v42  ;;  %v6983_v61 = vpop.f32.mrb[53].mxu1 }
 0x84a   : > { %v6014_v20 = vsel %vm1992_vm5, %v5947_v51, 0.0  ;;  %v6075_v47 = vmul.f32 %v5947_v51, %v13824_v8 }
 0x84b   : > { %v6015_v50 = vadd.f32 %v6014_v20, %v6013_v26  ;;  %v15643_v26 = vld [vmem:[#allocation157_spill] sm:$0xff] }
 0x84c   : > { %v6142_v52 = vsel %vm1992_vm5, %v6075_v47, 0.0 }
 0x84d   : > { %v6143_v35 = vadd.f32 %v6142_v52, %v6141_v36 }
 0x853   : > { %v13831_v0 = vpop.f32.mrb[54].mxu1 }
 0x854   : > { %v5948_v49 = vmul.f32 %v13831_v0, %v15642_v53  ;;  %v6986_v59 = vpop.f32.mrb[55].mxu1 }
 0x856   : > { %v6016_v7 = vsel %vm1992_vm5, %v5948_v49, 0.0  ;;  %v6076_v2 = vmul.f32 %v5948_v49, %v13831_v0 }
 0x857   : > { %v6017_v11 = vadd.f32 %v6016_v7, %v6015_v50  ;;  %v15644_v50 = vld [vmem:[#allocation47_spill] sm:$0xff] }
 0x858   : > { %v6144_v61 = vsel %vm1992_vm5, %v6076_v2, 0.0 }
 0x859   : > { %v6145_v42 = vadd.f32 %v6144_v61, %v6143_v35 }
 0x85f   : > { %v13838_v28 = vpop.f32.mrb[56].mxu1 }
 0x860   : > { %v5949_v51 = vmul.f32 %v13838_v28, %v15643_v26  ;;  %v6989_v36 = vpop.f32.mrb[57].mxu1 }
 0x862   : > { %v6018_v20 = vsel %vm1992_vm5, %v5949_v51, 0.0  ;;  %v6077_v47 = vmul.f32 %v5949_v51, %v13838_v28 }
 0x863   : > { %v6019_v52 = vadd.f32 %v6018_v20, %v6017_v11  ;;  %v15645_v11 = vld [vmem:[#allocation89_spill] sm:$0xff] }
 0x864   : > { %v6146_v59 = vsel %vm1992_vm5, %v6077_v47, 0.0 }
 0x865   : > { %v6147_v53 = vadd.f32 %v6146_v59, %v6145_v42 }
 0x86b   : > { %v13845_v6 = vpop.f32.mrb[58].mxu1 }
 0x86c   : > { %v5950_v49 = vmul.f32 %v13845_v6, %v15644_v50  ;;  %v6992_v35 = vpop.f32.mrb[59].mxu1 }
 0x86e   : > { %v6020_v7 = vsel %vm1992_vm5, %v5950_v49, 0.0  ;;  %v6078_v2 = vmul.f32 %v5950_v49, %v13845_v6 }
 0x86f   : > { %v6021_v61 = vadd.f32 %v6020_v7, %v6019_v52  ;;  %v15646_v52 = vld [vmem:[#allocation28_spill] sm:$0xff] }
 0x870   : > { %v6148_v36 = vsel %vm1992_vm5, %v6078_v2, 0.0 }
 0x871   : > { %v6149_v26 = vadd.f32 %v6148_v36, %v6147_v53 }
 0x877   : > { %v13852_v21 = vpop.f32.mrb[60].mxu1 }
 0x878   : > { %v5951_v51 = vmul.f32 %v13852_v21, %v15645_v11  ;;  %v6995_v42 = vpop.f32.mrb[61].mxu1 }
 0x87a   : > { %v6022_v20 = vsel %vm1992_vm5, %v5951_v51, 0.0  ;;  %v6079_v47 = vmul.f32 %v5951_v51, %v13852_v21 }
 0x87b   : > { %v6023_v59 = vadd.f32 %v6022_v20, %v6021_v61  ;;  %v15647_v61 = vld [vmem:[#allocation162_spill] sm:$0xff] }
 0x87c   : > { %v6150_v35 = vsel %vm1992_vm5, %v6079_v47, 0.0 }
 0x87d   : > { %v6151_v50 = vadd.f32 %v6150_v35, %v6149_v26 }
 0x883   : > { %v13859_v55 = vpop.f32.mrb[62].mxu1 }
 0x884   : > { %v5952_v49 = vmul.f32 %v13859_v55, %v15646_v52  ;;  %v6998_v53 = vpop.f32.mrb[63].mxu1 }
 0x886   : > { %v6024_v7 = vsel %vm1992_vm5, %v5952_v49, 0.0  ;;  %v6080_v2 = vmul.f32 %v5952_v49, %v13859_v55 }
 0x887   : > { %v6025_v36 = vadd.f32 %v6024_v7, %v6023_v59  ;;  %v15648_v59 = vld [vmem:[#allocation46_spill] sm:$0xff] }
 0x888   : > { %v6152_v42 = vsel %vm1992_vm5, %v6080_v2, 0.0 }
 0x889   : > { %v6153_v11 = vadd.f32 %v6152_v42, %v6151_v50 }
 0x88f   : > { %v13866_v62 = vpop.f32.mrb[64].mxu1 }
 0x890   : > { %v5953_v51 = vmul.f32 %v13866_v62, %v15647_v61  ;;  %v7001_v26 = vpop.f32.mrb[65].mxu1 }
 0x892   : > { %v6026_v20 = vsel %vm1992_vm5, %v5953_v51, 0.0  ;;  %v6081_v47 = vmul.f32 %v5953_v51, %v13866_v62 }
 0x893   : > { %v6027_v35 = vadd.f32 %v6026_v20, %v6025_v36  ;;  %v15649_v36 = vld [vmem:[#allocation88_spill] sm:$0xff] }
 0x894   : > { %v6154_v53 = vsel %vm1992_vm5, %v6081_v47, 0.0 }
 0x895   : > { %v6155_v52 = vadd.f32 %v6154_v53, %v6153_v11 }
 0x89b   : > { %v13873_v22 = vpop.f32.mrb[66].mxu1 }
 0x89c   : > { %v5954_v49 = vmul.f32 %v13873_v22, %v15648_v59  ;;  %v7004_v50 = vpop.f32.mrb[67].mxu1 }
 0x89e   : > { %v6028_v7 = vsel %vm1992_vm5, %v5954_v49, 0.0  ;;  %v6082_v2 = vmul.f32 %v5954_v49, %v13873_v22 }
 0x89f   : > { %v6029_v42 = vadd.f32 %v6028_v7, %v6027_v35  ;;  %v15650_v35 = vld [vmem:[#allocation27_spill] sm:$0xff] }
 0x8a0   : > { %v6156_v26 = vsel %vm1992_vm5, %v6082_v2, 0.0 }
 0x8a1   : > { %v6157_v61 = vadd.f32 %v6156_v26, %v6155_v52 }
 0x8a7   : > { %v13880_v5 = vpop.f32.mrb[68].mxu1 }
 0x8a8   : > { %v5955_v51 = vmul.f32 %v13880_v5, %v15649_v36  ;;  %v7007_v11 = vpop.f32.mrb[69].mxu1 }
 0x8aa   : > { %v6030_v20 = vsel %vm1992_vm5, %v5955_v51, 0.0  ;;  %v6083_v47 = vmul.f32 %v5955_v51, %v13880_v5 }
 0x8ab   : > { %v6031_v53 = vadd.f32 %v6030_v20, %v6029_v42  ;;  %v15651_v42 = vld [vmem:[#allocation161_spill] sm:$0xff] }
 0x8ac   : > { %v6158_v50 = vsel %vm1992_vm5, %v6083_v47, 0.0 }
 0x8ad   : > { %v6159_v59 = vadd.f32 %v6158_v50, %v6157_v61 }
 0x8b3   : > { %v13887_v29 = vpop.f32.mrb[70].mxu1 }
 0x8b4   : > { %v5956_v49 = vmul.f32 %v13887_v29, %v15650_v35  ;;  %v7010_v52 = vpop.f32.mrb[71].mxu1 }
 0x8b6   : > { %v6032_v7 = vsel %vm1992_vm5, %v5956_v49, 0.0  ;;  %v6084_v2 = vmul.f32 %v5956_v49, %v13887_v29 }
 0x8b7   : > { %v6033_v26 = vadd.f32 %v6032_v7, %v6031_v53  ;;  %v15652_v53 = vld [vmem:[#allocation49_spill] sm:$0xff] }
 0x8b8   : > { %v6160_v11 = vsel %vm1992_vm5, %v6084_v2, 0.0 }
 0x8b9   : > { %v6161_v36 = vadd.f32 %v6160_v11, %v6159_v59 }
 0x8bf   : > { %v13894_v15 = vpop.f32.mrb[72].mxu1 }
 0x8c0   : > { %v5957_v51 = vmul.f32 %v13894_v15, %v15651_v42  ;;  %v7013_v61 = vpop.f32.mrb[73].mxu1 }
 0x8c2   : > { %v6034_v20 = vsel %vm1992_vm5, %v5957_v51, 0.0  ;;  %v6085_v47 = vmul.f32 %v5957_v51, %v13894_v15 }
 0x8c3   : > { %v6035_v50 = vadd.f32 %v6034_v20, %v6033_v26  ;;  %v15653_v26 = vld [vmem:[#allocation91_spill] sm:$0xff] }
 0x8c4   : > { %v6162_v52 = vsel %vm1992_vm5, %v6085_v47, 0.0 }
 0x8c5   : > { %v6163_v35 = vadd.f32 %v6162_v52, %v6161_v36 }
 0x8cb   : > { %v13901_v18 = vpop.f32.mrb[74].mxu1 }
 0x8cc   : > { %v5958_v49 = vmul.f32 %v13901_v18, %v15652_v53  ;;  %v7016_v59 = vpop.f32.mrb[75].mxu1 }
 0x8ce   : > { %v6036_v7 = vsel %vm1992_vm5, %v5958_v49, 0.0  ;;  %v6086_v2 = vmul.f32 %v5958_v49, %v13901_v18 }
 0x8cf   : > { %v6037_v11 = vadd.f32 %v6036_v7, %v6035_v50  ;;  %v15654_v50 = vld [vmem:[#allocation30_spill] sm:$0xff] }
 0x8d0   : > { %v6164_v61 = vsel %vm1992_vm5, %v6086_v2, 0.0 }
 0x8d1   : > { %v6165_v42 = vadd.f32 %v6164_v61, %v6163_v35 }
 0x8d7   : > { %v13908_v58 = vpop.f32.mrb[76].mxu1 }
 0x8d8   : > { %v5959_v51 = vmul.f32 %v13908_v58, %v15653_v26  ;;  %v7019_v36 = vpop.f32.mrb[77].mxu1 }
 0x8da   : > { %v6038_v20 = vsel %vm1992_vm5, %v5959_v51, 0.0  ;;  %v6087_v47 = vmul.f32 %v5959_v51, %v13908_v58 }
 0x8db   : > { %v6039_v52 = vadd.f32 %v6038_v20, %v6037_v11 }
 0x8dc   : > { %v6166_v59 = vsel %vm1992_vm5, %v6087_v47, 0.0 }
 0x8dd   : > { %v6167_v53 = vadd.f32 %v6166_v59, %v6165_v42 }
 0x8e3   : > { %v13915_v54 = vpop.f32.mrb[78].mxu1 }
 0x8e4   : > { %v5960_v49 = vmul.f32 %v13915_v54, %v15654_v50  ;;  %v7022_v35 = vpop.f32.mrb[79].mxu1 }
 0x8e6   : > { %v6040_v7 = vsel %vm3099_vm8, %v5960_v49, 0.0  ;;  %v6088_v2 = vmul.f32 %v5960_v49, %v13915_v54 }
 0x8e7   : > { %v6041_v61 = vadd.f32 %v6040_v7, %v6039_v52 }
 0x8e8   : > { %v6168_v36 = vsel %vm3099_vm8, %v6088_v2, 0.0 }
 0x8e9   : > { %v6042_v26 = vrot.slane %v6041_v61, 4  ;;  %v6169_v44 = vadd.f32 %v6168_v36, %v6167_v53 }
 0x8eb   : > { %v6043_v51 = vadd.f32 %v6042_v26, %v6041_v61  ;;  %v6170_v11 = vrot.slane %v6169_v44, 4 }
 0x8ed   : > { %v6044_v20 = vrot.slane %v6043_v51, 2  ;;  %v6171_v47 = vadd.f32 %v6170_v11, %v6169_v44 }
 0x8ef   : > { %v6045_v42 = vadd.f32 %v6044_v20, %v6043_v51  ;;  %v6172_v59 = vrot.slane %v6171_v47, 2 }
 0x8f1   : > { %v6046_v3 = vrot.slane %v6045_v42, 1  ;;  %v6173_v12 = vadd.f32 %v6172_v59, %v6171_v47 }
 0x8f3   : > { %v6047_v30 = vadd.f32 %v6046_v3, %v6045_v42  ;;  %v6174_v39 = vrot.slane %v6173_v12, 1 }
 0x8f5   : > { %v6175_v35 = vadd.f32 %v6174_v39, %v6173_v12  ;;  %v13922_v25 = vmul.f32 0.00390625, %v6047_v30 }
 0x8f7   : > { %v6177_v45 = vmul.f32 0.00390625, %v6175_v35  ;;  %v6178_v52 = vmul.f32 %v13922_v25, %v13922_v25  ;;  %v6221_v53 = vsub.f32 %v13915_v54, %v13922_v25  ;;  %v6181_v26 = vsub.f32 %v13647_v13, %v13922_v25 }
 0x8f8   : > { %v6182_v44 = vsub.f32 %v13096_v4, %v13922_v25  ;;  %v6183_v3 = vsub.f32 %v13130_v48, %v13922_v25  ;;  %v6184_v39 = vsub.f32 %v13173_v16, %v13922_v25  ;;  %v6185_v30 = vsub.f32 %v13201_v43, %v13922_v25 }
 0x8f9   : > { %v6179_v12 = vsub.f32 %v6177_v45, %v6178_v52  ;;  %v6186_v49 = vsub.f32 %v13239_v41, %v13922_v25  ;;  %v6187_v54 = vsub.f32 %v13267_v34, %v13922_v25  ;;  %v6188_v13 = vsub.f32 %v13305_v33, %v13922_v25 }
 0x8fa   : > { %v6189_v4 = vsub.f32 %v13329_v17, %v13922_v25  ;;  %v6190_v48 = vsub.f32 %v13367_v24, %v13922_v25  ;;  %v6191_v16 = vsub.f32 %v13410_v9, %v13922_v25  ;;  %v6192_v43 = vsub.f32 %v13448_v19, %v13922_v25 }
 0x8fb   : > { %v6180_v45 = vmax.f32 %v6179_v12, 0.0  ;;  %v6193_v41 = vsub.f32 %v13479_v10, %v13922_v25  ;;  %v6194_v34 = vsub.f32 %v13503_v56, %v13922_v25  ;;  %v6195_v33 = vsub.f32 %v13520_v57, %v13922_v25 }
 0x8fc   : > { %v6196_v17 = vsub.f32 %v13537_v23, %v13922_v25  ;;  %v6197_v24 = vsub.f32 %v13554_v46, %v13922_v25  ;;  %v6198_v9 = vsub.f32 %v13571_v1, %v13922_v25  ;;  %v6199_v19 = vsub.f32 %v13588_v63, %v13922_v25 }
 0x8fd   : > { %v6222_v7 = vadd.f32 1e-05, %v6180_v45  ;;  %v6200_v10 = vsub.f32 %v13605_v32, %v13922_v25  ;;  %v6201_v56 = vsub.f32 %v13631_v27, %v13922_v25  ;;  %v6202_v57 = vsub.f32 %v13690_v40, %v13922_v25 }
 0x8fe   : > { %v6203_v23 = vsub.f32 %v13733_v31, %v13922_v25  ;;  %v6204_v46 = vsub.f32 %v13767_v37, %v13922_v25  ;;  %v6205_v1 = vsub.f32 %v13797_v60, %v13922_v25  ;;  %v6206_v63 = vsub.f32 %v13810_v38, %v13922_v25 }
 0x8ff   : > { %7166 = vrsqrt.f32 %v6222_v7  ;;  %v6207_v32 = vsub.f32 %v13817_v14, %v13922_v25  ;;  %v6208_v27 = vsub.f32 %v13824_v8, %v13922_v25  ;;  %v6209_v40 = vsub.f32 %v13831_v0, %v13922_v25 }
 0x900   : > { %v6210_v31 = vsub.f32 %v13838_v28, %v13922_v25  ;;  %v6211_v37 = vsub.f32 %v13845_v6, %v13922_v25  ;;  %v6212_v60 = vsub.f32 %v13852_v21, %v13922_v25  ;;  %v6213_v38 = vsub.f32 %v13859_v55, %v13922_v25 }
 0x901   : > { %v6214_v14 = vsub.f32 %v13866_v62, %v13922_v25  ;;  %v6215_v8 = vsub.f32 %v13873_v22, %v13922_v25  ;;  %v6216_v0 = vsub.f32 %v13880_v5, %v13922_v25  ;;  %v6217_v28 = vsub.f32 %v13887_v29, %v13922_v25 }
 0x902   : > { %v6218_v6 = vsub.f32 %v13894_v15, %v13922_v25  ;;  %v6219_v21 = vsub.f32 %v13901_v18, %v13922_v25  ;;  %v6220_v55 = vsub.f32 %v13908_v58, %v13922_v25 }
 0x909   : > { %v7167_v2 = vpop.eup %7166 }
 0x90a   : > { %v6264_v62 = vmul.f32 %v7167_v2, %v6221_v53  ;;  %v14008_v61 = vmul.f32 %v7167_v2, %v6181_v26  ;;  %v14010_v22 = vmul.f32 %v7167_v2, %v6182_v44  ;;  %v14012_v36 = vmul.f32 %v7167_v2, %v6183_v3 }
 0x90b   : > { %v14015_v5 = vmul.f32 %v7167_v2, %v6184_v39  ;;  %v14017_v29 = vmul.f32 %v7167_v2, %v6185_v30  ;;  %v14019_v15 = vmul.f32 %v7167_v2, %v6186_v49  ;;  %v14021_v51 = vmul.f32 %v7167_v2, %v6187_v54 }
 0x90c   : > { %15655 = vst [vmem:[#allocation220_spill] sm:$0xff] %v14008_v61  ;;  %15656 = vst [vmem:[#allocation109_spill] sm:$0xff] %v14010_v22  ;;  %v6305_v18 = vmul.f32 0.2, %v6264_v62  ;;  %v14023_v11 = vmul.f32 %v7167_v2, %v6188_v13  ;;  %v14025_v25 = vmul.f32 %v7167_v2, %v6189_v4  ;;  %v14027_v58 = vmul.f32 %v7167_v2, %v6190_v48 }
 0x90d   : > { %15657 = vst [vmem:[#allocation239_spill] sm:$0xff] %v14012_v36  ;;  %v14029_v20 = vmul.f32 %v7167_v2, %v6191_v16  ;;  %v14031_v47 = vmul.f32 %v7167_v2, %v6192_v43  ;;  %v14033_v42 = vmul.f32 %v7167_v2, %v6193_v41  ;;  %v14035_v59 = vmul.f32 %v7167_v2, %v6194_v34 }
 0x90e   : > { %v6346_v35 = vmax.f32 %v6264_v62, %v6305_v18  ;;  %v14037_v52 = vmul.f32 %v7167_v2, %v6195_v33  ;;  %v14039_v53 = vmul.f32 %v7167_v2, %v6196_v17  ;;  %v14041_v26 = vmul.f32 %v7167_v2, %v6197_v24 }
 0x90f   : > { %v14043_v44 = vmul.f32 %v7167_v2, %v6198_v9  ;;  %v14045_v3 = vmul.f32 %v7167_v2, %v6199_v19  ;;  %v14047_v39 = vmul.f32 %v7167_v2, %v6200_v10  ;;  %v14049_v30 = vmul.f32 %v7167_v2, %v6201_v56 }
 0x910   : > { %v6387_v12 = vmul.f32 %v6346_v35, %v15654_v50  ;;  %v14052_v49 = vmul.f32 %v7167_v2, %v6202_v57  ;;  %v14054_v54 = vmul.f32 %v7167_v2, %v6203_v23  ;;  %v14056_v13 = vmul.f32 %v7167_v2, %v6204_v46 }
 0x911   : > { %v14058_v4 = vmul.f32 %v7167_v2, %v6205_v1  ;;  %v14060_v48 = vmul.f32 %v7167_v2, %v6206_v63  ;;  %v14062_v16 = vmul.f32 %v7167_v2, %v6207_v32  ;;  %v14064_v43 = vmul.f32 %v7167_v2, %v6208_v27 }
 0x912   : > { %6428 = vst.msk [vmem:[%s14066_s13 + $0x140] sm:$0xf] %vm3099_vm8, %v6387_v12  ;;  %v14070_v50 = vmul.f32 %v7167_v2, %v6209_v40  ;;  %v14072_v45 = vmul.f32 %v7167_v2, %v6210_v31  ;;  %v14074_v41 = vmul.f32 %v7167_v2, %v6211_v37  ;;  %v14076_v34 = vmul.f32 %v7167_v2, %v6212_v60 }
 0x913   : > { %15658 = vst [vmem:[#allocation130_spill] sm:$0xff] %v14062_v16  ;;  %v14078_v33 = vmul.f32 %v7167_v2, %v6213_v38  ;;  %v14080_v17 = vmul.f32 %v7167_v2, %v6214_v14  ;;  %v14082_v24 = vmul.f32 %v7167_v2, %v6215_v8  ;;  %v14084_v9 = vmul.f32 %v7167_v2, %v6216_v0 }
 0x914   : > { %15659 = vst [vmem:[#allocation192_spill] sm:$0xff] %v14070_v50  ;;  %15660 = vst [vmem:[#allocation66_spill] sm:$0xff] %v14072_v45  ;;  %v14086_v19 = vmul.f32 %v7167_v2, %v6217_v28  ;;  %v14088_v7 = vmul.f32 %v7167_v2, %v6218_v6  ;;  %v14090_v10 = vmul.f32 %v7167_v2, %v6219_v21  ;;  %v14095_v57 = vmul.f32 0.2, %v14008_v61 }
 0x915   : > { %15661 = vst [vmem:[#allocation223_spill] sm:$0xff] %v14076_v34  ;;  %15662 = vst [vmem:[#allocation108_spill] sm:$0xff] %v14078_v33  ;;  %v14092_v56 = vmul.f32 %v7167_v2, %v6220_v55  ;;  %v14098_v23 = vmul.f32 0.2, %v14010_v22  ;;  %v14101_v46 = vmul.f32 0.2, %v14012_v36 }
 0x916   : > { %15663 = vst [vmem:[#allocation168_spill] sm:$0xff] %v14082_v24  ;;  %15664 = vst [vmem:[#allocation129_spill] sm:$0xff] %v14084_v9  ;;  %v14104_v1 = vmul.f32 0.2, %v14015_v5  ;;  %v14107_v63 = vmul.f32 0.2, %v14017_v29 }
 0x917   : > { %15665 = vst [vmem:[#allocation191_spill] sm:$0xff] %v14088_v7  ;;  %15666 = vst [vmem:[#allocation69_spill] sm:$0xff] %v14090_v10  ;;  %v14110_v32 = vmul.f32 0.2, %v14019_v15  ;;  %v14113_v27 = vmul.f32 0.2, %v14021_v51 }
 0x918   : > { %15667 = vst [vmem:[#allocation222_spill] sm:$0xff] %v14092_v56  ;;  %15668 = vst [vmem:[#allocation111_spill] sm:$0xff] %v14095_v57  ;;  %v14116_v40 = vmul.f32 0.2, %v14023_v11  ;;  %v14119_v31 = vmul.f32 0.2, %v14025_v25  ;;  %v6309_v18 = vmax.f32 %v14015_v5, %v14104_v1  ;;  %v6310_v8 = vmax.f32 %v14017_v29, %v14107_v63 }
 0x919   : > { %15669 = vst [vmem:[#allocation240_spill] sm:$0xff] %v14098_v23  ;;  %15670 = vst [vmem:[#allocation132_spill] sm:$0xff] %v14101_v46  ;;  %v14124_v60 = vmul.f32 0.2, %v14027_v58  ;;  %v14127_v38 = vmul.f32 0.2, %v14029_v20  ;;  %v6311_v1 = vmax.f32 %v14019_v15, %v14110_v32  ;;  %v6312_v63 = vmax.f32 %v14021_v51, %v14113_v27 }
 0x91a   : > { %v14130_v14 = vmul.f32 0.2, %v14031_v47  ;;  %v14135_v0 = vmul.f32 0.2, %v14033_v42  ;;  %v14138_v28 = vmul.f32 0.2, %v14035_v59  ;;  %v6313_v32 = vmax.f32 %v14023_v11, %v14116_v40 }
 0x91b   : > { %v14141_v6 = vmul.f32 0.2, %v14037_v52  ;;  %v14146_v55 = vmul.f32 0.2, %v14039_v53  ;;  %v14149_v2 = vmul.f32 0.2, %v14041_v26  ;;  %v6314_v27 = vmax.f32 %v14025_v25, %v14119_v31 }
 0x91c   : > { %v14152_v62 = vmul.f32 0.2, %v14043_v44  ;;  %v14157_v35 = vmul.f32 0.2, %v14045_v3  ;;  %v14160_v12 = vmul.f32 0.2, %v14047_v39  ;;  %v6315_v40 = vmax.f32 %v14027_v58, %v14124_v60 }
 0x91d   : > { %v14163_v21 = vmul.f32 0.2, %v14049_v30  ;;  %v14168_v37 = vmul.f32 0.2, %v14052_v49  ;;  %v14171_v46 = vmul.f32 0.2, %v14054_v54  ;;  %v6316_v31 = vmax.f32 %v14029_v20, %v14127_v38 }
 0x91e   : > { %v14174_v5 = vmul.f32 0.2, %v14056_v13  ;;  %v14179_v36 = vmul.f32 0.2, %v14058_v4  ;;  %v14182_v23 = vmul.f32 0.2, %v14060_v48  ;;  %v6318_v58 = vmax.f32 %v14033_v42, %v14135_v0 }
 0x91f   : > { %v14185_v29 = vmul.f32 0.2, %v14062_v16  ;;  %v14190_v22 = vmul.f32 0.2, %v14064_v43  ;;  %v14193_v57 = vmul.f32 0.2, %v14070_v50  ;;  %v6319_v60 = vmax.f32 %v14035_v59, %v14138_v28 }
 0x920   : > { %v14196_v15 = vmul.f32 0.2, %v14072_v45  ;;  %v14201_v61 = vmul.f32 0.2, %v14074_v41  ;;  %v14204_v16 = vmul.f32 0.2, %v14076_v34  ;;  %v6322_v20 = vmax.f32 %v14041_v26, %v14149_v2 }
 0x921   : > { %v14207_v51 = vmul.f32 0.2, %v14078_v33  ;;  %v14212_v50 = vmul.f32 0.2, %v14080_v17  ;;  %v14215_v45 = vmul.f32 0.2, %v14082_v24  ;;  %v6323_v38 = vmax.f32 %v14043_v44, %v14152_v62 }
 0x922   : > { %v14218_v11 = vmul.f32 0.2, %v14084_v9  ;;  %v14223_v34 = vmul.f32 0.2, %v14086_v19  ;;  %v14226_v33 = vmul.f32 0.2, %v14088_v7  ;;  %v6317_v9 = vmax.f32 %v14031_v47, %v14130_v14 }
 0x923   : > { %v14229_v25 = vmul.f32 0.2, %v14090_v10  ;;  %v14234_v24 = vmul.f32 0.2, %v14092_v56  ;;  %v6320_v7 = vmax.f32 %v14037_v52, %v14141_v6  ;;  %v6321_v10 = vmax.f32 %v14039_v53, %v14146_v55  ;;  %v15688_v28 = vld [vmem:[#allocation240_spill] sm:$0xff] }
 0x924   : > { %v6324_v47 = vmax.f32 %v14045_v3, %v14157_v35  ;;  %v6325_v42 = vmax.f32 %v14047_v39, %v14160_v12  ;;  %v6326_v59 = vmax.f32 %v14049_v30, %v14163_v21  ;;  %v6327_v52 = vmax.f32 %v14052_v49, %v14168_v37  ;;  %v15673_v39 = vld [vmem:[#allocation130_spill] sm:$0xff]  ;;  %v15674_v49 = vld [vmem:[#allocation192_spill] sm:$0xff]  ;;  %v15680_v21 = vld [vmem:[#allocation191_spill] sm:$0xff] }
 0x925   : > { %15671 = vst [vmem:[#allocation194_spill] sm:$0xff] %v14229_v25  ;;  %15672 = vst [vmem:[#allocation68_spill] sm:$0xff] %v14234_v24  ;;  %v6328_v53 = vmax.f32 %v14054_v54, %v14171_v46  ;;  %v6329_v26 = vmax.f32 %v14056_v13, %v14174_v5  ;;  %v6330_v44 = vmax.f32 %v14058_v4, %v14179_v36  ;;  %v15675_v54 = vld [vmem:[#allocation66_spill] sm:$0xff]  ;;  %v15676_v36 = vld [vmem:[#allocation223_spill] sm:$0xff] }
 0x926   : > { %v6331_v3 = vmax.f32 %v14060_v48, %v14182_v23  ;;  %v6332_v14 = vmax.f32 %v15673_v39, %v14185_v29  ;;  %v6333_v30 = vmax.f32 %v14064_v43, %v14190_v22  ;;  %v6334_v37 = vmax.f32 %v15674_v49, %v14193_v57  ;;  %v15677_v48 = vld [vmem:[#allocation108_spill] sm:$0xff]  ;;  %v15679_v57 = vld [vmem:[#allocation129_spill] sm:$0xff]  ;;  %v15682_v12 = vld [vmem:[#allocation38_spill] sm:$0xff] }
 0x927   : > { %v6335_v46 = vmax.f32 %v15675_v54, %v14196_v15  ;;  %v15678_v22 = vld [vmem:[#allocation168_spill] sm:$0xff]  ;;  %v15684_v29 = vld [vmem:[#allocation111_spill] sm:$0xff]  ;;  %v15687_v54 = vld [vmem:[#allocation109_spill] sm:$0xff] }
 0x928   : > { %v15683_v5 = vld [vmem:[#allocation220_spill] sm:$0xff]  ;;  %v15686_v49 = vld [vmem:[#allocation39_spill] sm:$0xff]  ;;  %v15689_v43 = vmax.f32 %v15687_v54, %v15688_v28  ;;  %v15695_v24 = vld [vmem:[#allocation81_spill] sm:$0xff] }
 0x929   : > { %v15685_v15 = vmax.f32 %v15683_v5, %v15684_v29  ;;  %v15690_v0 = vld [vmem:[#allocation40_spill] sm:$0xff]  ;;  %v15691_v23 = vld [vmem:[#allocation239_spill] sm:$0xff]  ;;  %v6351_v56 = vmul.f32 %v6310_v8, %v15695_v24  ;;  %v15696_v5 = vld [vmem:[#allocation82_spill] sm:$0xff] }
 0x92a   : > { %v6348_v6 = vmul.f32 %v15689_v43, %v15686_v49  ;;  %v15692_v55 = vld [vmem:[#allocation132_spill] sm:$0xff]  ;;  %v15697_v29 = vld [vmem:[#allocation83_spill] sm:$0xff]  ;;  %v15700_v49 = vld [vmem:[#allocation21_spill] sm:$0xff] }
 0x92b   : > { %v6347_v39 = vmul.f32 %v15685_v15, %v15682_v12  ;;  %v15693_v4 = vmax.f32 %v15691_v23, %v15692_v55  ;;  %v15694_v13 = vld [vmem:[#allocation80_spill] sm:$0xff]  ;;  %v6352_v12 = vmul.f32 %v6311_v1, %v15696_v5  ;;  %v6353_v15 = vmul.f32 %v6312_v63, %v15697_v29  ;;  %v15698_v25 = vld [vmem:[#allocation19_spill] sm:$0xff]  ;;  %v15702_v8 = vld [vmem:[#allocation146_spill] sm:$0xff]  ;;  %6392 = vst.msk [vmem:[%s14066_s13 + $0x20] sm:$0xff] %vm1992_vm5, %v6351_v56 }
 0x92c   : > { %v6350_v35 = vmul.f32 %v6309_v18, %v15694_v13  ;;  %v6354_v28 = vmul.f32 %v6313_v32, %v15698_v25  ;;  %v15699_v54 = vld [vmem:[#allocation20_spill] sm:$0xff]  ;;  %v6356_v2 = vmul.f32 %v6315_v40, %v15700_v49  ;;  %6389 = vst.msk [vmem:[%s14066_s13 + $0x8] sm:$0xff] %vm1992_vm5, %v6348_v6  ;;  %v15701_v18 = vld [vmem:[#allocation22_spill] sm:$0xff]  ;;  %v6358_v1 = vmul.f32 %v6317_v9, %v15702_v8  ;;  %v15703_v13 = vld [vmem:[#allocation145_spill] sm:$0xff] }
 0x92d   : > { %v6349_v62 = vmul.f32 %v15693_v4, %v15690_v0  ;;  %v6355_v43 = vmul.f32 %v6314_v27, %v15699_v54  ;;  %6388 = vst.msk [vmem:[%s14066_s13] sm:$0xff] %vm1992_vm5, %v6347_v39  ;;  %v6357_v24 = vmul.f32 %v6316_v31, %v15701_v18  ;;  %v6359_v63 = vmul.f32 %v6318_v58, %v15703_v13  ;;  %v15704_v4 = vld [vmem:[#allocation149_spill] sm:$0xff]  ;;  %v15705_v27 = vld [vmem:[#allocation150_spill] sm:$0xff]  ;;  %v15706_v25 = vld [vmem:[#allocation43_spill] sm:$0xff] }
 0x92e   : > { %v6360_v32 = vmul.f32 %v6319_v60, %v15704_v4  ;;  %6391 = vst.msk [vmem:[%s14066_s13 + $0x18] sm:$0xff] %vm1992_vm5, %v6350_v35  ;;  %6393 = vst.msk [vmem:[%s14066_s13 + $0x28] sm:$0xff] %vm1992_vm5, %v6352_v12  ;;  %v6361_v40 = vmul.f32 %v6320_v7, %v15705_v27  ;;  %v6362_v9 = vmul.f32 %v6321_v10, %v15706_v25  ;;  %v15707_v31 = vld [vmem:[#allocation85_spill] sm:$0xff]  ;;  %v15708_v23 = vld [vmem:[#allocation24_spill] sm:$0xff] }
 0x92f   : > { %6390 = vst.msk [vmem:[%s14066_s13 + $0x10] sm:$0xff] %vm1992_vm5, %v6349_v62  ;;  %v6363_v58 = vmul.f32 %v6322_v20, %v15707_v31  ;;  %v6364_v60 = vmul.f32 %v6323_v38, %v15708_v23  ;;  %6394 = vst.msk [vmem:[%s14066_s13 + $0x30] sm:$0xff] %vm1992_vm5, %v6353_v15  ;;  %v15709_v56 = vld [vmem:[#allocation42_spill] sm:$0xff]  ;;  %v15711_v20 = vld [vmem:[#allocation84_spill] sm:$0xff]  ;;  %v15726_v49 = vmax.f32 %v15677_v48, %v14207_v51 }
 0x930   : > { %6395 = vst.msk [vmem:[%s14066_s13 + $0x38] sm:$0xff] %vm1992_vm5, %v6354_v28  ;;  %6396 = vst.msk [vmem:[%s14066_s13 + $0x40] sm:$0xff] %vm1992_vm5, %v6355_v43  ;;  %v6365_v7 = vmul.f32 %v6324_v47, %v15709_v56  ;;  %v15710_v0 = vld [vmem:[#allocation154_spill] sm:$0xff]  ;;  %v6367_v6 = vmul.f32 %v6326_v59, %v15711_v20  ;;  %v15712_v38 = vld [vmem:[#allocation153_spill] sm:$0xff]  ;;  %v15728_v8 = vmax.f32 %v14080_v17, %v14212_v50 }
 0x931   : > { %6397 = vst.msk [vmem:[%s14066_s13 + $0x48] sm:$0xff] %vm1992_vm5, %v6356_v2  ;;  %v6366_v10 = vmul.f32 %v6325_v42, %v15710_v0  ;;  %v6368_v55 = vmul.f32 %v6327_v52, %v15712_v38  ;;  %6398 = vst.msk [vmem:[%s14066_s13 + $0x50] sm:$0xff] %vm1992_vm5, %v6357_v24  ;;  %v15713_v2 = vld [vmem:[#allocation45_spill] sm:$0xff]  ;;  %v15714_v62 = vld [vmem:[#allocation87_spill] sm:$0xff]  ;;  %v15732_v17 = vmax.f32 %v15679_v57, %v14218_v11 }
 0x932   : > { %6399 = vst.msk [vmem:[%s14066_s13 + $0x58] sm:$0xff] %vm1992_vm5, %v6358_v1  ;;  %6400 = vst.msk [vmem:[%s14066_s13 + $0x60] sm:$0xff] %vm1992_vm5, %v6359_v63  ;;  %v6369_v47 = vmul.f32 %v6328_v53, %v15713_v2  ;;  %v6370_v42 = vmul.f32 %v6329_v26, %v15714_v62  ;;  %v15715_v35 = vld [vmem:[#allocation26_spill] sm:$0xff]  ;;  %v15717_v53 = vld [vmem:[#allocation44_spill] sm:$0xff]  ;;  %v15734_v48 = vmax.f32 %v14086_v19, %v14223_v34 }
 0x933   : > { %6401 = vst.msk [vmem:[%s14066_s13 + $0x68] sm:$0xff] %vm1992_vm5, %v6360_v32  ;;  %v6371_v59 = vmul.f32 %v6330_v44, %v15715_v35  ;;  %v15716_v52 = vld [vmem:[#allocation158_spill] sm:$0xff]  ;;  %6402 = vst.msk [vmem:[%s14066_s13 + $0x70] sm:$0xff] %vm1992_vm5, %v6361_v40  ;;  %v6373_v5 = vmul.f32 %v6332_v14, %v15717_v53  ;;  %v15719_v44 = vld [vmem:[#allocation25_spill] sm:$0xff]  ;;  %v15736_v4 = vmax.f32 %v15680_v21, %v14226_v33 }
 0x934   : > { %v6372_v39 = vmul.f32 %v6331_v3, %v15716_v52  ;;  %6403 = vst.msk [vmem:[%s14066_s13 + $0x78] sm:$0xff] %vm1992_vm5, %v6362_v9  ;;  %6404 = vst.msk [vmem:[%s14066_s13 + $0x80] sm:$0xff] %vm1992_vm5, %v6363_v58  ;;  %v15718_v26 = vld [vmem:[#allocation86_spill] sm:$0xff]  ;;  %v6375_v29 = vmul.f32 %v6334_v37, %v15719_v44  ;;  %v15720_v3 = vld [vmem:[#allocation157_spill] sm:$0xff] }
 0x935   : > { %6405 = vst.msk [vmem:[%s14066_s13 + $0x88] sm:$0xff] %vm1992_vm5, %v6364_v60  ;;  %v6374_v12 = vmul.f32 %v6333_v30, %v15718_v26  ;;  %v6376_v15 = vmul.f32 %v6335_v46, %v15720_v3  ;;  %6406 = vst.msk [vmem:[%s14066_s13 + $0x90] sm:$0xff] %vm1992_vm5, %v6365_v7  ;;  %v15721_v14 = vld [vmem:[#allocation47_spill] sm:$0xff]  ;;  %v15722_v30 = vmax.f32 %v14074_v41, %v14201_v61  ;;  %v15723_v28 = vld [vmem:[#allocation89_spill] sm:$0xff] }
 0x936   : > { %6407 = vst.msk [vmem:[%s14066_s13 + $0x98] sm:$0xff] %vm1992_vm5, %v6366_v10  ;;  %6408 = vst.msk [vmem:[%s14066_s13 + $0xa0] sm:$0xff] %vm1992_vm5, %v6367_v6  ;;  %v15724_v46 = vmax.f32 %v15676_v36, %v14204_v16  ;;  %v15725_v43 = vld [vmem:[#allocation28_spill] sm:$0xff]  ;;  %v15727_v24 = vld [vmem:[#allocation162_spill] sm:$0xff]  ;;  %v15730_v16 = vmax.f32 %v15678_v22, %v14215_v45 }
 0x937   : > { %6409 = vst.msk [vmem:[%s14066_s13 + $0xa8] sm:$0xff] %vm1992_vm5, %v6368_v55  ;;  %v6377_v37 = vmul.f32 %v15722_v30, %v15721_v14  ;;  %v6379_v18 = vmul.f32 %v15726_v49, %v15725_v43  ;;  %v6380_v1 = vmul.f32 %v15728_v8, %v15727_v24  ;;  %6410 = vst.msk [vmem:[%s14066_s13 + $0xb0] sm:$0xff] %vm1992_vm5, %v6369_v47  ;;  %v15729_v61 = vld [vmem:[#allocation46_spill] sm:$0xff]  ;;  %v15731_v50 = vld [vmem:[#allocation88_spill] sm:$0xff] }
 0x938   : > { %v6378_v54 = vmul.f32 %v15724_v46, %v15723_v28  ;;  %6411 = vst.msk [vmem:[%s14066_s13 + $0xb8] sm:$0xff] %vm1992_vm5, %v6370_v42  ;;  %6412 = vst.msk [vmem:[%s14066_s13 + $0xc0] sm:$0xff] %vm1992_vm5, %v6371_v59  ;;  %v6381_v41 = vmul.f32 %v15730_v16, %v15729_v61  ;;  %v6382_v51 = vmul.f32 %v15732_v17, %v15731_v50  ;;  %v15733_v36 = vld [vmem:[#allocation27_spill] sm:$0xff]  ;;  %v15735_v63 = vld [vmem:[#allocation161_spill] sm:$0xff] }
 0x939   : > { %6413 = vst.msk [vmem:[%s14066_s13 + $0xc8] sm:$0xff] %vm1992_vm5, %v6372_v39  ;;  %v6383_v13 = vmul.f32 %v15734_v48, %v15733_v36  ;;  %v6384_v32 = vmul.f32 %v15736_v4, %v15735_v63  ;;  %6414 = vst.msk [vmem:[%s14066_s13 + $0xd0] sm:$0xff] %vm1992_vm5, %v6373_v5  ;;  %v15737_v45 = vld [vmem:[#allocation49_spill] sm:$0xff]  ;;  %v15739_v19 = vld [vmem:[#allocation194_spill] sm:$0xff] }
 0x93a   : > { %6415 = vst.msk [vmem:[%s14066_s13 + $0xd8] sm:$0xff] %vm1992_vm5, %v6374_v12  ;;  %6416 = vst.msk [vmem:[%s14066_s13 + $0xe0] sm:$0xff] %vm1992_vm5, %v6375_v29  ;;  %v15738_v34 = vld [vmem:[#allocation69_spill] sm:$0xff]  ;;  %v15741_v33 = vld [vmem:[#allocation91_spill] sm:$0xff] }
 0x93b   : > { %6417 = vst.msk [vmem:[%s14066_s13 + $0xe8] sm:$0xff] %vm1992_vm5, %v6376_v15  ;;  %v15740_v11 = vmax.f32 %v15738_v34, %v15739_v19  ;;  %v15742_v57 = vld [vmem:[#allocation222_spill] sm:$0xff]  ;;  %v15743_v21 = vld [vmem:[#allocation68_spill] sm:$0xff]  ;;  %6418 = vst.msk [vmem:[%s14066_s13 + $0xf0] sm:$0xff] %vm1992_vm5, %v6377_v37 }
 0x93c   : > { %v15744_v27 = vmax.f32 %v15742_v57, %v15743_v21  ;;  %6419 = vst.msk [vmem:[%s14066_s13 + $0xf8] sm:$0xff] %vm1992_vm5, %v6378_v54  ;;  %6420 = vst.msk [vmem:[%s14066_s13 + $0x100] sm:$0xff] %vm1992_vm5, %v6379_v18 }
 0x93d   : > { %v6385_v22 = vmul.f32 %v15740_v11, %v15737_v45  ;;  %6421 = vst.msk [vmem:[%s14066_s13 + $0x108] sm:$0xff] %vm1992_vm5, %v6380_v1  ;;  %6422 = vst.msk [vmem:[%s14066_s13 + $0x110] sm:$0xff] %vm1992_vm5, %v6381_v41 }
 0x93e   : > { %v6386_v40 = vmul.f32 %v15744_v27, %v15741_v33  ;;  %6423 = vst.msk [vmem:[%s14066_s13 + $0x118] sm:$0xff] %vm1992_vm5, %v6382_v51  ;;  %6424 = vst.msk [vmem:[%s14066_s13 + $0x120] sm:$0xff] %vm1992_vm5, %v6383_v13 }
 0x93f   : > { %6425 = vst.msk [vmem:[%s14066_s13 + $0x128] sm:$0xff] %vm1992_vm5, %v6384_v32  ;;  %6426 = vst.msk [vmem:[%s14066_s13 + $0x130] sm:$0xff] %vm1992_vm5, %v6385_v22 }
 0x940   : > { %6427 = vst.msk [vmem:[%s14066_s13 + $0x138] sm:$0xff] %vm1992_vm5, %v6386_v40 }
 0x941   : > { %7449 = shalt.err (!%p7446_p13)
}
 0x942   : > { %s7450_s16 = scalar_lea.hbm %s14448_s8, 5248  ;;  %s7454_s30 = scalar_lea.hbm %s14512_s5, 10496 }
 0x943   : > { %p7451_p9 = scmp.ne.s32.totalorder %s14448_s8, %s7450_s16  ;;  %p7455_p4 = scmp.lt.u32.totalorder %s14448_s8, %s14512_s5 }
 0x944   : > { %p7456_p8 = scmp.lt.u32.totalorder %s7454_s30, %s7450_s16  ;;  %p7458_p3 = scmp.lt.u32.totalorder %s7450_s16, %s14448_s8 }
 0x945   : > { %p7452_p0 = pnand %p7451_p9, %p7735_p10 }
 0x946   : > { %p7457_p6 = por %p7456_p8, %p7455_p4 }
 0x947   : > { %p7453_p11 = pneg %p7452_p0 }
 0x948   : > { %p7459_p5 = por %p7458_p3, %p7457_p6 }
 0x94a   : > { %p7460_p7 = pnand %p7459_p5, %p7453_p11 }
 0x94c   : > { %7463 = shalt.err (!%p7460_p7)
}
 0x94d   : > { %s7536_s27 = smov 128  }
 0x94e   : > { %7074 = dma.vmem_to_hbm [thread:$0]  (%p7735_p10), %s14450_s24, 5248, %s14448_s8, %s6430_s22, %s7536_s27, %s7536_s27, %s7520_s26  }
 0x94f PF: > { %s6458_s12 = sand.u32 1, %s7498_s18   ;;  %p15745_p12 = scmp.ne.s32.totalorder %s14742_s25, 0 }
 0x950   : > { %p15746_p1 = scmp.ge.s32.totalorder %s7510_s21, 2  ;;  %s6459_s6 = scalar_lea.sflag [#allocation5], %s6458_s12 }
 0x952   : > { %p7094_p2 = pnand %p15746_p1, %p15745_p12 }
 0x954   : > { %7493 = dma.done.wait (!%p7094_p2), %s6459_s6, 5248  }
 0x955   : > { %7495 = vsyncadd (!%p7094_p2), %s6459_s6, 4294962048  ;;  %p20_p13 = scmp.ge.s32.totalorder %s7725_s14, 4   ;;  %s15747_s18 = smov %s7502_s19 }
 0x956   : > { %s15748_s19 = smov %s7506_s20  ;;  %s15749_s20 = smov %s7741_s9 }
 0x957   : > { %s15750_s21 = smov %s7725_s14  ;;  %22 = sbr.rel (!%p20_p13) target bundleno = 7 (0x7), region = 101 }
 0x95e   :  { %6464 = vsyncpa [#allocation4], 1 }
 0x95f   :  { %6466 = vsyncpa [#allocation4 + $0x1], 1 }
 0x960   :  { %6467 = vsyncpa [#allocation7], 1 }
 0x961   :  { %6468 = vsyncpa [#allocation10], 1 }
 0x962   :  { %6469 = vsyncpa [#allocation5], 1 }
 0x963   :  { %6471 = vsyncpa [#allocation5 + $0x1], 1 }

</bundles_post_ra>
